<compile_context>
chip_gen: v5e
topology: v5e:2x2
jax: 0.10.0
libtpu: 0.0.40
codegen_flags: <defaults>
</compile_context>

<pallas_src>
import functools
import math

import jax
import jax.numpy as jnp
from jax.experimental import pallas as pl
from jax.experimental.pallas import tpu as pltpu


# --- Fixed geometry of the 84x84 Nature-DQN conv stack -----------------------
ROW_S = 21    # flat row stride carried through the whole conv stack (= 84/4)
R_IN  = 448   # 21*21 = 441 rows of space-to-depth'd input, padded to 448
R1    = 424   # rows holding conv1's 20x20 output (valid rows: 19*21+20 = 419)
R2    = 177   # rows holding conv2's 9x9 output   (= 8*21+9; valid cols < 9)
R3    = 133   # rows holding conv3's 7x7 output   (= 6*21+7; valid cols < 7)


def _round_up(x, m):
    return -(-x // m) * m


# ----------------------------------------------------------------------------
# Activation (applied on the f32 accumulator, before any bf16 downcast)
# ----------------------------------------------------------------------------
def _apply_act(y, act):
    if act == "relu":
        return jnp.maximum(y, 0.0)
    elif act == "lrelu":
        return jnp.where(y >= 0.0, y, 0.01 * y)
    elif act == "silu":
        return y * jax.nn.sigmoid(y)
    elif act == "dsilu":
        s = jax.nn.sigmoid(y)
        return s * (1.0 + y * (1.0 - s))
    elif act == "linear":
        return y
    else:
        # TODO(synk): PAU (Padé Activation Unit) rational activations
        # ('rpau'/'paus'/'r2r2'/'r3r') are not implemented.
        raise ValueError(f"unsupported activation: {act}")


# ----------------------------------------------------------------------------
# Fused conv1+conv2+conv3 Pallas kernel (one image per grid step).
#
# Activations live in VMEM as flat (rows, channels) matrices with row stride
# ROW_S = 21 (row r = 21*h + w).  Each conv layer is an unrolled sum over its
# kernel positions of  [row-window of the previous activation] @ [Cin x Cout],
# where stride-2 of conv2 becomes a stride-2 row window.  Columns w >= the
# valid width of a layer hold harmless garbage (never read downstream, since
# the next layer's valid reads stay strictly inside the valid columns).
# ----------------------------------------------------------------------------
def _conv_stack_kernel(x_ref, w1_ref, b1_ref, w2_ref, b2_ref, w3_ref, b3_ref,
                       o_ref, act1_ref, act2_ref, *, act):
    # x_ref   : (1, 448, 16*Cin) bf16  space-to-depth'd image, row = 21*h + w
    # w1_ref  : (4,  16*Cin, 32) bf16  conv1 as a 2x2 stride-1 conv (s2d input)
    # w2_ref  : (16, 32, 64)     bf16  conv2 4x4; stride 2 folded into row reads
    # w3_ref  : (9,  64, 64)     bf16  conv3 3x3 stride 1
    # b*_ref  : (1, Cout) f32
    # o_ref   : (1, 49, 64) bf16       conv3 output, row = 7*h + w  (H,W,C order)
    # act1_ref: (424, 32) f32 scratch; act2_ref: (177, 64) f32 scratch

    # ---- conv1: 4 positions, contiguous row windows of the input ------------
    acc = None
    for p in range(4):
        i, j = divmod(p, 2)
        lhs = x_ref[0, pl.ds(ROW_S * i + j, R1), :]                  # (424, 16C)
        y = jnp.dot(lhs, w1_ref[p], preferred_element_type=jnp.float32)
        acc = y if acc is None else acc + y
    act1_ref[...] = _apply_act(acc + b1_ref[...], act)               # (424, 32)

    # ---- conv2: 16 positions, stride-2 row windows of act1 ------------------
    acc = None
    for p in range(16):
        i, j = divmod(p, 4)
        lhs = act1_ref[pl.ds(ROW_S * i + j, R2, stride=2), :]        # (177, 32)
        y = jnp.dot(lhs.astype(jnp.bfloat16), w2_ref[p],
                    preferred_element_type=jnp.float32)
        acc = y if acc is None else acc + y
    act2_ref[...] = _apply_act(acc + b2_ref[...], act)               # (177, 64)

    # ---- conv3: 9 positions, contiguous row windows of act2 -----------------
    acc = None
    for p in range(9):
        i, j = divmod(p, 3)
        lhs = act2_ref[pl.ds(ROW_S * i + j, R3), :]                  # (133, 64)
        y = jnp.dot(lhs.astype(jnp.bfloat16), w3_ref[p],
                    preferred_element_type=jnp.float32)
        acc = y if acc is None else acc + y
    y3 = _apply_act(acc + b3_ref[...], act)                          # (133, 64)

    # ---- extract the valid 7x7 rows (drop the row-stride-21 garbage cols) ---
    for oh in range(7):
        o_ref[0, 7 * oh:7 * oh + 7, :] = (
            y3[ROW_S * oh:ROW_S * oh + 7, :].astype(o_ref.dtype))


def conv_stack(x_s2d, w1, b1, w2, b2, w3, b3, act):
    """x_s2d: (B, 448, 16*Cin) bf16 -> conv3 activations (B, 49, 64) bf16."""
    B, _, c16 = x_s2d.shape
    out = pl.pallas_call(
        functools.partial(_conv_stack_kernel, act=act),
        out_shape=jax.ShapeDtypeStruct((B, 49, 64), jnp.bfloat16),
        grid=(B,),
        in_specs=[
            pl.BlockSpec((1, R_IN, c16), lambda b: (b, 0, 0)),
            pl.BlockSpec((4, c16, 32), lambda b: (0, 0, 0)),
            pl.BlockSpec((1, 32), lambda b: (0, 0)),
            pl.BlockSpec((16, 32, 64), lambda b: (0, 0, 0)),
            pl.BlockSpec((1, 64), lambda b: (0, 0)),
            pl.BlockSpec((9, 64, 64), lambda b: (0, 0, 0)),
            pl.BlockSpec((1, 64), lambda b: (0, 0)),
        ],
        out_specs=pl.BlockSpec((1, 49, 64), lambda b: (b, 0, 0)),
        scratch_shapes=[pltpu.VMEM((R1, 32), jnp.float32),
                        pltpu.VMEM((R2, 64), jnp.float32)],
        compiler_params=pltpu.CompilerParams(
            dimension_semantics=("parallel",)),
    )(x_s2d, w1, b1, w2, b2, w3, b3)
    return out


# ----------------------------------------------------------------------------
# Fused fc4 + fc5 head: grid = (M tiles, 2 feature chunks), both parallel.
# Each step computes act(x @ w4_chunk + b4_chunk) @ w5_chunk; the two fc5
# partials are summed (+ b5) in the wrapper.
# ----------------------------------------------------------------------------
def _head_kernel(x_ref, w4_ref, b4_ref, w5_ref, o_ref, *, act):
    h = jnp.dot(x_ref[...], w4_ref[...], preferred_element_type=jnp.float32)
    h = _apply_act(h + b4_ref[...], act)
    o_ref[0] = jnp.dot(h.astype(jnp.bfloat16), w5_ref[...],
                       preferred_element_type=jnp.float32)


def mlp_head(x, w4, b4, w5, b5, act, f_chunks=2):
    M, K = x.shape
    F = w4.shape[1]
    N = w5.shape[1]
    assert F % f_chunks == 0
    TF = F // f_chunks

    x = x.astype(jnp.bfloat16)
    w4 = w4.astype(jnp.bfloat16)
    w5 = w5.astype(jnp.bfloat16)
    b4 = b4.astype(jnp.float32).reshape(1, F)

    Mp = _round_up(M, 16)                 # bf16-friendly sublane multiple
    TM = Mp if Mp <= 256 else 256
    Mp = _round_up(Mp, TM)
    if Mp != M:
        x = jnp.pad(x, ((0, Mp - M), (0, 0)))

    partials = pl.pallas_call(
        functools.partial(_head_kernel, act=act),
        out_shape=jax.ShapeDtypeStruct((f_chunks, Mp, N), jnp.float32),
        grid=(Mp // TM, f_chunks),
        in_specs=[
            pl.BlockSpec((TM, K), lambda i, f: (i, 0)),
            pl.BlockSpec((K, TF), lambda i, f: (0, f)),
            pl.BlockSpec((1, TF), lambda i, f: (0, f)),
            pl.BlockSpec((TF, N), lambda i, f: (f, 0)),
        ],
        out_specs=pl.BlockSpec((1, TM, N), lambda i, f: (f, i, 0)),
        compiler_params=pltpu.CompilerParams(
            dimension_semantics=("parallel", "parallel")),
    )(x, w4, b4, w5)

    q = partials.sum(axis=0) + b5.astype(jnp.float32).reshape(1, N)
    return q[:M] if Mp != M else q


# ----------------------------------------------------------------------------
# Input transform: NCHW uint8 -> space-to-depth(4), flat rows (stride 21).
# Absorbs the NCHW->NHWC transpose; /255 is folded into w1 at init.
# ----------------------------------------------------------------------------
def _space_to_depth(state):
    B, C, H, W = state.shape
    assert H == 84 and W == 84, "Network hard-codes 84x84 inputs (3136 flatten)"
    x = state.astype(jnp.bfloat16)
    x = x.reshape(B, C, ROW_S, 4, ROW_S, 4)       # (b, c, h2, hi, w2, wi)
    x = x.transpose(0, 2, 4, 1, 3, 5)             # (b, h2, w2, c, hi, wi)
    x = x.reshape(B, ROW_S * ROW_S, C * 16)       # row = 21*h2 + w2
    # pad 441 -> 448 rows so the kernel's widest row window never reads OOB
    return jnp.pad(x, ((0, 0), (0, R_IN - ROW_S * ROW_S), (0, 0)))


# ----------------------------------------------------------------------------
# Deterministic parameter init (xavier_uniform, matching the module's shapes)
# ----------------------------------------------------------------------------
def _xavier_uniform(key, shape, fan_in, fan_out, gain):
    bound = gain * math.sqrt(6.0 / (fan_in + fan_out))
    return jax.random.uniform(key, shape, jnp.float32, -bound, bound)


def _bias_init(key, shape, fan_in):
    bound = 1.0 / math.sqrt(fan_in)
    return jax.random.uniform(key, shape, jnp.float32, -bound, bound)


def init_params(key, n_input, n_output, n_features=512):
    gain_relu = math.sqrt(2.0)
    gain_lin = 1.0
    keys = jax.random.split(key, 10)
    params = {}

    # conv1: 8x8 /4, n_input -> 32.  Stored as a 2x2 stride-1 conv over the
    # space-to-depth(4) input (channel order (c, hi, wi)); 1/255 folded in.
    w1 = _xavier_uniform(keys[0], (8, 8, n_input, 32),
                         n_input * 64, 32 * 64, gain_relu)
    w1 = w1.reshape(2, 4, 2, 4, n_input, 32)      # (i2, hi, j2, wi, c, co)
    w1 = w1.transpose(0, 2, 4, 1, 3, 5)           # (i2, j2, c, hi, wi, co)
    params["w1"] = (w1.reshape(4, n_input * 16, 32) / 255.0).astype(jnp.bfloat16)
    params["b1"] = _bias_init(keys[1], (1, 32), n_input * 64)

    # conv2: 4x4 /2, 32 -> 64   (kernel-position-major layout)
    w2 = _xavier_uniform(keys[2], (4, 4, 32, 64), 32 * 16, 64 * 16, gain_relu)
    params["w2"] = w2.reshape(16, 32, 64).astype(jnp.bfloat16)
    params["b2"] = _bias_init(keys[3], (1, 64), 32 * 16)

    # conv3: 3x3 /1, 64 -> 64
    w3 = _xavier_uniform(keys[4], (3, 3, 64, 64), 64 * 9, 64 * 9, gain_relu)
    params["w3"] = w3.reshape(9, 64, 64).astype(jnp.bfloat16)
    params["b3"] = _bias_init(keys[5], (1, 64), 64 * 9)

    # fc4: 3136 -> 512.  PyTorch flattens (C,H,W); our conv kernel emits (H,W,C).
    # Permute w4's rows ONCE here so the forward needs no transpose.
    w4 = _xavier_uniform(keys[6], (3136, n_features), 3136, n_features, gain_relu)
    w4 = (w4.reshape(64, 7, 7, n_features).transpose(1, 2, 0, 3)
            .reshape(3136, n_features))
    params["w4"] = w4.astype(jnp.bfloat16)
    params["b4"] = _bias_init(keys[7], (n_features,), 3136)

    # fc5: 512 -> n_output
    params["w5"] = _xavier_uniform(keys[8], (n_features, n_output),
                                   n_features, n_output, gain_lin).astype(jnp.bfloat16)
    params["b5"] = _bias_init(keys[9], (n_output,), n_features)
    return params


# ----------------------------------------------------------------------------
# Forward pass (activation_function='relu' branch of the PyTorch module)
# ----------------------------------------------------------------------------
def network_forward(params, state_nchw, action=None, act="relu"):
    x = _space_to_depth(state_nchw)                             # (B, 448, 16*C)
    conv_out = conv_stack(x, params["w1"], params["b1"],
                          params["w2"], params["b2"],
                          params["w3"], params["b3"], act)      # (B, 49, 64)
    h = conv_out.reshape(conv_out.shape[0], 49 * 64)            # (B, 3136) (H,W,C)
    q = mlp_head(h, params["w4"], params["b4"],
                 params["w5"], params["b5"], act)               # (B, n_out) f32
    if action is None:
        return q
    action = action.astype(jnp.int32).reshape(-1, 1)
    return jnp.squeeze(jnp.take_along_axis(q, action, axis=1))


if __name__ == "__main__":
    key = jax.random.PRNGKey(0)
    k_param, k_state = jax.random.split(key)

    # 84x84 input is implied by the hard-coded 3136 = 64*7*7 flatten.
    batch, n_input, spatial, n_output = 2, 4, 84, 6
    params = init_params(k_param, n_input, n_output)

    state = jax.random.randint(k_state, (batch, n_input, spatial, spatial),
                               0, 256, dtype=jnp.int32).astype(jnp.uint8)

    fwd = jax.jit(functools.partial(network_forward, act="relu"))
    q = fwd(params, state)
    q = jax.block_until_ready(q)
    assert q.shape == (batch, n_output)
    assert bool(jnp.all(jnp.isfinite(q)))
    print("KERNEL_OK")
</pallas_src>

<mosaic_0001>
module attributes {stable_mosaic.version = 11 : i64} {
  func.func @_conv_stack_kernel(%arg0: i32, %arg1: memref<1x448x64xbf16, #tpu.memory_space<vmem>>, %arg2: memref<4x64x32xbf16, #tpu.memory_space<vmem>>, %arg3: memref<1x32xf32, #tpu.memory_space<vmem>>, %arg4: memref<16x32x64xbf16, #tpu.memory_space<vmem>>, %arg5: memref<1x64xf32, #tpu.memory_space<vmem>>, %arg6: memref<9x64x64xbf16, #tpu.memory_space<vmem>>, %arg7: memref<1x64xf32, #tpu.memory_space<vmem>>, %arg8: memref<1x49x64xbf16, #tpu.memory_space<vmem>>, %arg9: memref<424x32xf32, #tpu.memory_space<vmem>>, %arg10: memref<177x64xf32, #tpu.memory_space<vmem>>) attributes {dimension_semantics = [#tpu.dimension_semantics<parallel>], iteration_bounds = array<i64: 2>, scalar_prefetch = 0 : i64, scratch_operands = 2 : i64, tpu.core_type = #tpu.core_type<tc>, window_params = [{transform_indices = @transform_0, window_bounds = array<i64: 1, 448, 64>}, {pipeline_mode = #tpu.pipeline_mode<synchronous>, transform_indices = @transform_1, window_bounds = array<i64: 4, 64, 32>}, {pipeline_mode = #tpu.pipeline_mode<synchronous>, transform_indices = @transform_2, window_bounds = array<i64: 1, 32>}, {pipeline_mode = #tpu.pipeline_mode<synchronous>, transform_indices = @transform_3, window_bounds = array<i64: 16, 32, 64>}, {pipeline_mode = #tpu.pipeline_mode<synchronous>, transform_indices = @transform_4, window_bounds = array<i64: 1, 64>}, {pipeline_mode = #tpu.pipeline_mode<synchronous>, transform_indices = @transform_5, window_bounds = array<i64: 9, 64, 64>}, {pipeline_mode = #tpu.pipeline_mode<synchronous>, transform_indices = @transform_6, window_bounds = array<i64: 1, 64>}, {transform_indices = @transform_7, window_bounds = array<i64: 1, 49, 64>}]} {
    %c0 = arith.constant 0 : index
    %c0_0 = arith.constant 0 : index
    %c0_1 = arith.constant 0 : index
    %0 = vector.load %arg1[%c0, %c0_0, %c0_1] : memref<1x448x64xbf16, #tpu.memory_space<vmem>>, vector<1x424x64xbf16>
    %1 = vector.shape_cast %0 : vector<1x424x64xbf16> to vector<424x64xbf16>
    %c0_2 = arith.constant 0 : index
    %c0_3 = arith.constant 0 : index
    %c0_4 = arith.constant 0 : index
    %2 = vector.load %arg2[%c0_2, %c0_3, %c0_4] : memref<4x64x32xbf16, #tpu.memory_space<vmem>>, vector<1x64x32xbf16>
    %3 = vector.shape_cast %2 : vector<1x64x32xbf16> to vector<64x32xbf16>
    %cst = arith.constant dense<0.000000e+00> : vector<424x32xf32>
    %4 = tpu.matmul %1, %3, %cst {dimension_numbers = #tpu.dot_dimension_numbers<[1], [0], [0], [1], [0, 0, 1, 1], [], []>} : vector<424x64xbf16>, vector<64x32xbf16>, vector<424x32xf32> -> vector<424x32xf32>
    %c0_5 = arith.constant 0 : index
    %c1 = arith.constant 1 : index
    %c0_6 = arith.constant 0 : index
    %5 = vector.load %arg1[%c0_5, %c1, %c0_6] : memref<1x448x64xbf16, #tpu.memory_space<vmem>>, vector<1x424x64xbf16>
    %6 = vector.shape_cast %5 : vector<1x424x64xbf16> to vector<424x64xbf16>
    %c1_7 = arith.constant 1 : index
    %c0_8 = arith.constant 0 : index
    %c0_9 = arith.constant 0 : index
    %7 = vector.load %arg2[%c1_7, %c0_8, %c0_9] : memref<4x64x32xbf16, #tpu.memory_space<vmem>>, vector<1x64x32xbf16>
    %8 = vector.shape_cast %7 : vector<1x64x32xbf16> to vector<64x32xbf16>
    %cst_10 = arith.constant dense<0.000000e+00> : vector<424x32xf32>
    %9 = tpu.matmul %6, %8, %cst_10 {dimension_numbers = #tpu.dot_dimension_numbers<[1], [0], [0], [1], [0, 0, 1, 1], [], []>} : vector<424x64xbf16>, vector<64x32xbf16>, vector<424x32xf32> -> vector<424x32xf32>
    %10 = arith.addf %4, %9 : vector<424x32xf32>
    %c0_11 = arith.constant 0 : index
    %c21 = arith.constant 21 : index
    %c0_12 = arith.constant 0 : index
    %11 = vector.load %arg1[%c0_11, %c21, %c0_12] : memref<1x448x64xbf16, #tpu.memory_space<vmem>>, vector<1x424x64xbf16>
    %12 = vector.shape_cast %11 : vector<1x424x64xbf16> to vector<424x64xbf16>
    %c2 = arith.constant 2 : index
    %c0_13 = arith.constant 0 : index
    %c0_14 = arith.constant 0 : index
    %13 = vector.load %arg2[%c2, %c0_13, %c0_14] : memref<4x64x32xbf16, #tpu.memory_space<vmem>>, vector<1x64x32xbf16>
    %14 = vector.shape_cast %13 : vector<1x64x32xbf16> to vector<64x32xbf16>
    %cst_15 = arith.constant dense<0.000000e+00> : vector<424x32xf32>
    %15 = tpu.matmul %12, %14, %cst_15 {dimension_numbers = #tpu.dot_dimension_numbers<[1], [0], [0], [1], [0, 0, 1, 1], [], []>} : vector<424x64xbf16>, vector<64x32xbf16>, vector<424x32xf32> -> vector<424x32xf32>
    %16 = arith.addf %10, %15 : vector<424x32xf32>
    %c0_16 = arith.constant 0 : index
    %c22 = arith.constant 22 : index
    %c0_17 = arith.constant 0 : index
    %17 = vector.load %arg1[%c0_16, %c22, %c0_17] : memref<1x448x64xbf16, #tpu.memory_space<vmem>>, vector<1x424x64xbf16>
    %18 = vector.shape_cast %17 : vector<1x424x64xbf16> to vector<424x64xbf16>
    %c3 = arith.constant 3 : index
    %c0_18 = arith.constant 0 : index
    %c0_19 = arith.constant 0 : index
    %19 = vector.load %arg2[%c3, %c0_18, %c0_19] : memref<4x64x32xbf16, #tpu.memory_space<vmem>>, vector<1x64x32xbf16>
    %20 = vector.shape_cast %19 : vector<1x64x32xbf16> to vector<64x32xbf16>
    %cst_20 = arith.constant dense<0.000000e+00> : vector<424x32xf32>
    %21 = tpu.matmul %18, %20, %cst_20 {dimension_numbers = #tpu.dot_dimension_numbers<[1], [0], [0], [1], [0, 0, 1, 1], [], []>} : vector<424x64xbf16>, vector<64x32xbf16>, vector<424x32xf32> -> vector<424x32xf32>
    %22 = arith.addf %16, %21 : vector<424x32xf32>
    %c0_21 = arith.constant 0 : index
    %c0_22 = arith.constant 0 : index
    %23 = vector.load %arg3[%c0_21, %c0_22] : memref<1x32xf32, #tpu.memory_space<vmem>>, vector<1x32xf32>
    %24 = vector.broadcast %23 : vector<1x32xf32> to vector<424x32xf32>
    %25 = arith.addf %22, %24 : vector<424x32xf32>
    %cst_23 = arith.constant 0.000000e+00 : f32
    %26 = vector.broadcast %cst_23 : f32 to vector<424x32xf32>
    %27 = arith.maximumf %25, %26 : vector<424x32xf32>
    %c0_24 = arith.constant 0 : index
    %c0_25 = arith.constant 0 : index
    %28 = vector.load %arg9[%c0_24, %c0_25] : memref<424x32xf32, #tpu.memory_space<vmem>>, vector<424x32xf32>
    tpu.vector_store %arg9[%c0_24, %c0_25], %27 {strides = array<i32>} : memref<424x32xf32, #tpu.memory_space<vmem>>, vector<424x32xf32>,
    %c0_26 = arith.constant 0 : index
    %c0_27 = arith.constant 0 : index
    %29 = tpu.strided_load %arg9[%c0_26, %c0_27] {strides = array<i32: 2, 1>} : memref<424x32xf32, #tpu.memory_space<vmem>>, vector<177x32xf32>
    %30 = arith.truncf %29 : vector<177x32xf32> to vector<177x32xbf16>
    %c0_28 = arith.constant 0 : index
    %c0_29 = arith.constant 0 : index
    %c0_30 = arith.constant 0 : index
    %31 = vector.load %arg4[%c0_28, %c0_29, %c0_30] : memref<16x32x64xbf16, #tpu.memory_space<vmem>>, vector<1x32x64xbf16>
    %32 = vector.shape_cast %31 : vector<1x32x64xbf16> to vector<32x64xbf16>
    %cst_31 = arith.constant dense<0.000000e+00> : vector<177x64xf32>
    %33 = tpu.matmul %30, %32, %cst_31 {dimension_numbers = #tpu.dot_dimension_numbers<[1], [0], [0], [1], [0, 0, 1, 1], [], []>} : vector<177x32xbf16>, vector<32x64xbf16>, vector<177x64xf32> -> vector<177x64xf32>
    %c1_32 = arith.constant 1 : index
    %c0_33 = arith.constant 0 : index
    %34 = tpu.strided_load %arg9[%c1_32, %c0_33] {strides = array<i32: 2, 1>} : memref<424x32xf32, #tpu.memory_space<vmem>>, vector<177x32xf32>
    %35 = arith.truncf %34 : vector<177x32xf32> to vector<177x32xbf16>
    %c1_34 = arith.constant 1 : index
    %c0_35 = arith.constant 0 : index
    %c0_36 = arith.constant 0 : index
    %36 = vector.load %arg4[%c1_34, %c0_35, %c0_36] : memref<16x32x64xbf16, #tpu.memory_space<vmem>>, vector<1x32x64xbf16>
    %37 = vector.shape_cast %36 : vector<1x32x64xbf16> to vector<32x64xbf16>
    %cst_37 = arith.constant dense<0.000000e+00> : vector<177x64xf32>
    %38 = tpu.matmul %35, %37, %cst_37 {dimension_numbers = #tpu.dot_dimension_numbers<[1], [0], [0], [1], [0, 0, 1, 1], [], []>} : vector<177x32xbf16>, vector<32x64xbf16>, vector<177x64xf32> -> vector<177x64xf32>
    %39 = arith.addf %33, %38 : vector<177x64xf32>
    %c2_38 = arith.constant 2 : index
    %c0_39 = arith.constant 0 : index
    %40 = tpu.strided_load %arg9[%c2_38, %c0_39] {strides = array<i32: 2, 1>} : memref<424x32xf32, #tpu.memory_space<vmem>>, vector<177x32xf32>
    %41 = arith.truncf %40 : vector<177x32xf32> to vector<177x32xbf16>
    %c2_40 = arith.constant 2 : index
    %c0_41 = arith.constant 0 : index
    %c0_42 = arith.constant 0 : index
    %42 = vector.load %arg4[%c2_40, %c0_41, %c0_42] : memref<16x32x64xbf16, #tpu.memory_space<vmem>>, vector<1x32x64xbf16>
    %43 = vector.shape_cast %42 : vector<1x32x64xbf16> to vector<32x64xbf16>
    %cst_43 = arith.constant dense<0.000000e+00> : vector<177x64xf32>
    %44 = tpu.matmul %41, %43, %cst_43 {dimension_numbers = #tpu.dot_dimension_numbers<[1], [0], [0], [1], [0, 0, 1, 1], [], []>} : vector<177x32xbf16>, vector<32x64xbf16>, vector<177x64xf32> -> vector<177x64xf32>
    %45 = arith.addf %39, %44 : vector<177x64xf32>
    %c3_44 = arith.constant 3 : index
    %c0_45 = arith.constant 0 : index
    %46 = tpu.strided_load %arg9[%c3_44, %c0_45] {strides = array<i32: 2, 1>} : memref<424x32xf32, #tpu.memory_space<vmem>>, vector<177x32xf32>
    %47 = arith.truncf %46 : vector<177x32xf32> to vector<177x32xbf16>
    %c3_46 = arith.constant 3 : index
    %c0_47 = arith.constant 0 : index
    %c0_48 = arith.constant 0 : index
    %48 = vector.load %arg4[%c3_46, %c0_47, %c0_48] : memref<16x32x64xbf16, #tpu.memory_space<vmem>>, vector<1x32x64xbf16>
    %49 = vector.shape_cast %48 : vector<1x32x64xbf16> to vector<32x64xbf16>
    %cst_49 = arith.constant dense<0.000000e+00> : vector<177x64xf32>
    %50 = tpu.matmul %47, %49, %cst_49 {dimension_numbers = #tpu.dot_dimension_numbers<[1], [0], [0], [1], [0, 0, 1, 1], [], []>} : vector<177x32xbf16>, vector<32x64xbf16>, vector<177x64xf32> -> vector<177x64xf32>
    %51 = arith.addf %45, %50 : vector<177x64xf32>
    %c21_50 = arith.constant 21 : index
    %c0_51 = arith.constant 0 : index
    %52 = tpu.strided_load %arg9[%c21_50, %c0_51] {strides = array<i32: 2, 1>} : memref<424x32xf32, #tpu.memory_space<vmem>>, vector<177x32xf32>
    %53 = arith.truncf %52 : vector<177x32xf32> to vector<177x32xbf16>
    %c4 = arith.constant 4 : index
    %c0_52 = arith.constant 0 : index
    %c0_53 = arith.constant 0 : index
    %54 = vector.load %arg4[%c4, %c0_52, %c0_53] : memref<16x32x64xbf16, #tpu.memory_space<vmem>>, vector<1x32x64xbf16>
    %55 = vector.shape_cast %54 : vector<1x32x64xbf16> to vector<32x64xbf16>
    %cst_54 = arith.constant dense<0.000000e+00> : vector<177x64xf32>
    %56 = tpu.matmul %53, %55, %cst_54 {dimension_numbers = #tpu.dot_dimension_numbers<[1], [0], [0], [1], [0, 0, 1, 1], [], []>} : vector<177x32xbf16>, vector<32x64xbf16>, vector<177x64xf32> -> vector<177x64xf32>
    %57 = arith.addf %51, %56 : vector<177x64xf32>
    %c22_55 = arith.constant 22 : index
    %c0_56 = arith.constant 0 : index
    %58 = tpu.strided_load %arg9[%c22_55, %c0_56] {strides = array<i32: 2, 1>} : memref<424x32xf32, #tpu.memory_space<vmem>>, vector<177x32xf32>
    %59 = arith.truncf %58 : vector<177x32xf32> to vector<177x32xbf16>
    %c5 = arith.constant 5 : index
    %c0_57 = arith.constant 0 : index
    %c0_58 = arith.constant 0 : index
    %60 = vector.load %arg4[%c5, %c0_57, %c0_58] : memref<16x32x64xbf16, #tpu.memory_space<vmem>>, vector<1x32x64xbf16>
    %61 = vector.shape_cast %60 : vector<1x32x64xbf16> to vector<32x64xbf16>
    %cst_59 = arith.constant dense<0.000000e+00> : vector<177x64xf32>
    %62 = tpu.matmul %59, %61, %cst_59 {dimension_numbers = #tpu.dot_dimension_numbers<[1], [0], [0], [1], [0, 0, 1, 1], [], []>} : vector<177x32xbf16>, vector<32x64xbf16>, vector<177x64xf32> -> vector<177x64xf32>
    %63 = arith.addf %57, %62 : vector<177x64xf32>
    %c23 = arith.constant 23 : index
    %c0_60 = arith.constant 0 : index
    %64 = tpu.strided_load %arg9[%c23, %c0_60] {strides = array<i32: 2, 1>} : memref<424x32xf32, #tpu.memory_space<vmem>>, vector<177x32xf32>
    %65 = arith.truncf %64 : vector<177x32xf32> to vector<177x32xbf16>
    %c6 = arith.constant 6 : index
    %c0_61 = arith.constant 0 : index
    %c0_62 = arith.constant 0 : index
    %66 = vector.load %arg4[%c6, %c0_61, %c0_62] : memref<16x32x64xbf16, #tpu.memory_space<vmem>>, vector<1x32x64xbf16>
    %67 = vector.shape_cast %66 : vector<1x32x64xbf16> to vector<32x64xbf16>
    %cst_63 = arith.constant dense<0.000000e+00> : vector<177x64xf32>
    %68 = tpu.matmul %65, %67, %cst_63 {dimension_numbers = #tpu.dot_dimension_numbers<[1], [0], [0], [1], [0, 0, 1, 1], [], []>} : vector<177x32xbf16>, vector<32x64xbf16>, vector<177x64xf32> -> vector<177x64xf32>
    %69 = arith.addf %63, %68 : vector<177x64xf32>
    %c24 = arith.constant 24 : index
    %c0_64 = arith.constant 0 : index
    %70 = tpu.strided_load %arg9[%c24, %c0_64] {strides = array<i32: 2, 1>} : memref<424x32xf32, #tpu.memory_space<vmem>>, vector<177x32xf32>
    %71 = arith.truncf %70 : vector<177x32xf32> to vector<177x32xbf16>
    %c7 = arith.constant 7 : index
    %c0_65 = arith.constant 0 : index
    %c0_66 = arith.constant 0 : index
    %72 = vector.load %arg4[%c7, %c0_65, %c0_66] : memref<16x32x64xbf16, #tpu.memory_space<vmem>>, vector<1x32x64xbf16>
    %73 = vector.shape_cast %72 : vector<1x32x64xbf16> to vector<32x64xbf16>
    %cst_67 = arith.constant dense<0.000000e+00> : vector<177x64xf32>
    %74 = tpu.matmul %71, %73, %cst_67 {dimension_numbers = #tpu.dot_dimension_numbers<[1], [0], [0], [1], [0, 0, 1, 1], [], []>} : vector<177x32xbf16>, vector<32x64xbf16>, vector<177x64xf32> -> vector<177x64xf32>
    %75 = arith.addf %69, %74 : vector<177x64xf32>
    %c42 = arith.constant 42 : index
    %c0_68 = arith.constant 0 : index
    %76 = tpu.strided_load %arg9[%c42, %c0_68] {strides = array<i32: 2, 1>} : memref<424x32xf32, #tpu.memory_space<vmem>>, vector<177x32xf32>
    %77 = arith.truncf %76 : vector<177x32xf32> to vector<177x32xbf16>
    %c8 = arith.constant 8 : index
    %c0_69 = arith.constant 0 : index
    %c0_70 = arith.constant 0 : index
    %78 = vector.load %arg4[%c8, %c0_69, %c0_70] : memref<16x32x64xbf16, #tpu.memory_space<vmem>>, vector<1x32x64xbf16>
    %79 = vector.shape_cast %78 : vector<1x32x64xbf16> to vector<32x64xbf16>
    %cst_71 = arith.constant dense<0.000000e+00> : vector<177x64xf32>
    %80 = tpu.matmul %77, %79, %cst_71 {dimension_numbers = #tpu.dot_dimension_numbers<[1], [0], [0], [1], [0, 0, 1, 1], [], []>} : vector<177x32xbf16>, vector<32x64xbf16>, vector<177x64xf32> -> vector<177x64xf32>
    %81 = arith.addf %75, %80 : vector<177x64xf32>
    %c43 = arith.constant 43 : index
    %c0_72 = arith.constant 0 : index
    %82 = tpu.strided_load %arg9[%c43, %c0_72] {strides = array<i32: 2, 1>} : memref<424x32xf32, #tpu.memory_space<vmem>>, vector<177x32xf32>
    %83 = arith.truncf %82 : vector<177x32xf32> to vector<177x32xbf16>
    %c9 = arith.constant 9 : index
    %c0_73 = arith.constant 0 : index
    %c0_74 = arith.constant 0 : index
    %84 = vector.load %arg4[%c9, %c0_73, %c0_74] : memref<16x32x64xbf16, #tpu.memory_space<vmem>>, vector<1x32x64xbf16>
    %85 = vector.shape_cast %84 : vector<1x32x64xbf16> to vector<32x64xbf16>
    %cst_75 = arith.constant dense<0.000000e+00> : vector<177x64xf32>
    %86 = tpu.matmul %83, %85, %cst_75 {dimension_numbers = #tpu.dot_dimension_numbers<[1], [0], [0], [1], [0, 0, 1, 1], [], []>} : vector<177x32xbf16>, vector<32x64xbf16>, vector<177x64xf32> -> vector<177x64xf32>
    %87 = arith.addf %81, %86 : vector<177x64xf32>
    %c44 = arith.constant 44 : index
    %c0_76 = arith.constant 0 : index
    %88 = tpu.strided_load %arg9[%c44, %c0_76] {strides = array<i32: 2, 1>} : memref<424x32xf32, #tpu.memory_space<vmem>>, vector<177x32xf32>
    %89 = arith.truncf %88 : vector<177x32xf32> to vector<177x32xbf16>
    %c10 = arith.constant 10 : index
    %c0_77 = arith.constant 0 : index
    %c0_78 = arith.constant 0 : index
    %90 = vector.load %arg4[%c10, %c0_77, %c0_78] : memref<16x32x64xbf16, #tpu.memory_space<vmem>>, vector<1x32x64xbf16>
    %91 = vector.shape_cast %90 : vector<1x32x64xbf16> to vector<32x64xbf16>
    %cst_79 = arith.constant dense<0.000000e+00> : vector<177x64xf32>
    %92 = tpu.matmul %89, %91, %cst_79 {dimension_numbers = #tpu.dot_dimension_numbers<[1], [0], [0], [1], [0, 0, 1, 1], [], []>} : vector<177x32xbf16>, vector<32x64xbf16>, vector<177x64xf32> -> vector<177x64xf32>
    %93 = arith.addf %87, %92 : vector<177x64xf32>
    %c45 = arith.constant 45 : index
    %c0_80 = arith.constant 0 : index
    %94 = tpu.strided_load %arg9[%c45, %c0_80] {strides = array<i32: 2, 1>} : memref<424x32xf32, #tpu.memory_space<vmem>>, vector<177x32xf32>
    %95 = arith.truncf %94 : vector<177x32xf32> to vector<177x32xbf16>
    %c11 = arith.constant 11 : index
    %c0_81 = arith.constant 0 : index
    %c0_82 = arith.constant 0 : index
    %96 = vector.load %arg4[%c11, %c0_81, %c0_82] : memref<16x32x64xbf16, #tpu.memory_space<vmem>>, vector<1x32x64xbf16>
    %97 = vector.shape_cast %96 : vector<1x32x64xbf16> to vector<32x64xbf16>
    %cst_83 = arith.constant dense<0.000000e+00> : vector<177x64xf32>
    %98 = tpu.matmul %95, %97, %cst_83 {dimension_numbers = #tpu.dot_dimension_numbers<[1], [0], [0], [1], [0, 0, 1, 1], [], []>} : vector<177x32xbf16>, vector<32x64xbf16>, vector<177x64xf32> -> vector<177x64xf32>
    %99 = arith.addf %93, %98 : vector<177x64xf32>
    %c63 = arith.constant 63 : index
    %c0_84 = arith.constant 0 : index
    %100 = tpu.strided_load %arg9[%c63, %c0_84] {strides = array<i32: 2, 1>} : memref<424x32xf32, #tpu.memory_space<vmem>>, vector<177x32xf32>
    %101 = arith.truncf %100 : vector<177x32xf32> to vector<177x32xbf16>
    %c12 = arith.constant 12 : index
    %c0_85 = arith.constant 0 : index
    %c0_86 = arith.constant 0 : index
    %102 = vector.load %arg4[%c12, %c0_85, %c0_86] : memref<16x32x64xbf16, #tpu.memory_space<vmem>>, vector<1x32x64xbf16>
    %103 = vector.shape_cast %102 : vector<1x32x64xbf16> to vector<32x64xbf16>
    %cst_87 = arith.constant dense<0.000000e+00> : vector<177x64xf32>
    %104 = tpu.matmul %101, %103, %cst_87 {dimension_numbers = #tpu.dot_dimension_numbers<[1], [0], [0], [1], [0, 0, 1, 1], [], []>} : vector<177x32xbf16>, vector<32x64xbf16>, vector<177x64xf32> -> vector<177x64xf32>
    %105 = arith.addf %99, %104 : vector<177x64xf32>
    %c64 = arith.constant 64 : index
    %c0_88 = arith.constant 0 : index
    %106 = tpu.strided_load %arg9[%c64, %c0_88] {strides = array<i32: 2, 1>} : memref<424x32xf32, #tpu.memory_space<vmem>>, vector<177x32xf32>
    %107 = arith.truncf %106 : vector<177x32xf32> to vector<177x32xbf16>
    %c13 = arith.constant 13 : index
    %c0_89 = arith.constant 0 : index
    %c0_90 = arith.constant 0 : index
    %108 = vector.load %arg4[%c13, %c0_89, %c0_90] : memref<16x32x64xbf16, #tpu.memory_space<vmem>>, vector<1x32x64xbf16>
    %109 = vector.shape_cast %108 : vector<1x32x64xbf16> to vector<32x64xbf16>
    %cst_91 = arith.constant dense<0.000000e+00> : vector<177x64xf32>
    %110 = tpu.matmul %107, %109, %cst_91 {dimension_numbers = #tpu.dot_dimension_numbers<[1], [0], [0], [1], [0, 0, 1, 1], [], []>} : vector<177x32xbf16>, vector<32x64xbf16>, vector<177x64xf32> -> vector<177x64xf32>
    %111 = arith.addf %105, %110 : vector<177x64xf32>
    %c65 = arith.constant 65 : index
    %c0_92 = arith.constant 0 : index
    %112 = tpu.strided_load %arg9[%c65, %c0_92] {strides = array<i32: 2, 1>} : memref<424x32xf32, #tpu.memory_space<vmem>>, vector<177x32xf32>
    %113 = arith.truncf %112 : vector<177x32xf32> to vector<177x32xbf16>
    %c14 = arith.constant 14 : index
    %c0_93 = arith.constant 0 : index
    %c0_94 = arith.constant 0 : index
    %114 = vector.load %arg4[%c14, %c0_93, %c0_94] : memref<16x32x64xbf16, #tpu.memory_space<vmem>>, vector<1x32x64xbf16>
    %115 = vector.shape_cast %114 : vector<1x32x64xbf16> to vector<32x64xbf16>
    %cst_95 = arith.constant dense<0.000000e+00> : vector<177x64xf32>
    %116 = tpu.matmul %113, %115, %cst_95 {dimension_numbers = #tpu.dot_dimension_numbers<[1], [0], [0], [1], [0, 0, 1, 1], [], []>} : vector<177x32xbf16>, vector<32x64xbf16>, vector<177x64xf32> -> vector<177x64xf32>
    %117 = arith.addf %111, %116 : vector<177x64xf32>
    %c66 = arith.constant 66 : index
    %c0_96 = arith.constant 0 : index
    %118 = tpu.strided_load %arg9[%c66, %c0_96] {strides = array<i32: 2, 1>} : memref<424x32xf32, #tpu.memory_space<vmem>>, vector<177x32xf32>
    %119 = arith.truncf %118 : vector<177x32xf32> to vector<177x32xbf16>
    %c15 = arith.constant 15 : index
    %c0_97 = arith.constant 0 : index
    %c0_98 = arith.constant 0 : index
    %120 = vector.load %arg4[%c15, %c0_97, %c0_98] : memref<16x32x64xbf16, #tpu.memory_space<vmem>>, vector<1x32x64xbf16>
    %121 = vector.shape_cast %120 : vector<1x32x64xbf16> to vector<32x64xbf16>
    %cst_99 = arith.constant dense<0.000000e+00> : vector<177x64xf32>
    %122 = tpu.matmul %119, %121, %cst_99 {dimension_numbers = #tpu.dot_dimension_numbers<[1], [0], [0], [1], [0, 0, 1, 1], [], []>} : vector<177x32xbf16>, vector<32x64xbf16>, vector<177x64xf32> -> vector<177x64xf32>
    %123 = arith.addf %117, %122 : vector<177x64xf32>
    %c0_100 = arith.constant 0 : index
    %c0_101 = arith.constant 0 : index
    %124 = vector.load %arg5[%c0_100, %c0_101] : memref<1x64xf32, #tpu.memory_space<vmem>>, vector<1x64xf32>
    %125 = vector.broadcast %124 : vector<1x64xf32> to vector<177x64xf32>
    %126 = arith.addf %123, %125 : vector<177x64xf32>
    %cst_102 = arith.constant 0.000000e+00 : f32
    %127 = vector.broadcast %cst_102 : f32 to vector<177x64xf32>
    %128 = arith.maximumf %126, %127 : vector<177x64xf32>
    %c0_103 = arith.constant 0 : index
    %c0_104 = arith.constant 0 : index
    %129 = vector.load %arg10[%c0_103, %c0_104] : memref<177x64xf32, #tpu.memory_space<vmem>>, vector<177x64xf32>
    tpu.vector_store %arg10[%c0_103, %c0_104], %128 {strides = array<i32>} : memref<177x64xf32, #tpu.memory_space<vmem>>, vector<177x64xf32>,
    %c0_105 = arith.constant 0 : index
    %c0_106 = arith.constant 0 : index
    %130 = vector.load %arg10[%c0_105, %c0_106] : memref<177x64xf32, #tpu.memory_space<vmem>>, vector<133x64xf32>
    %131 = arith.truncf %130 : vector<133x64xf32> to vector<133x64xbf16>
    %c0_107 = arith.constant 0 : index
    %c0_108 = arith.constant 0 : index
    %c0_109 = arith.constant 0 : index
    %132 = vector.load %arg6[%c0_107, %c0_108, %c0_109] : memref<9x64x64xbf16, #tpu.memory_space<vmem>>, vector<1x64x64xbf16>
    %133 = vector.shape_cast %132 : vector<1x64x64xbf16> to vector<64x64xbf16>
    %cst_110 = arith.constant dense<0.000000e+00> : vector<133x64xf32>
    %134 = tpu.matmul %131, %133, %cst_110 {dimension_numbers = #tpu.dot_dimension_numbers<[1], [0], [0], [1], [0, 0, 1, 1], [], []>} : vector<133x64xbf16>, vector<64x64xbf16>, vector<133x64xf32> -> vector<133x64xf32>
    %c1_111 = arith.constant 1 : index
    %c0_112 = arith.constant 0 : index
    %135 = vector.load %arg10[%c1_111, %c0_112] : memref<177x64xf32, #tpu.memory_space<vmem>>, vector<133x64xf32>
    %136 = arith.truncf %135 : vector<133x64xf32> to vector<133x64xbf16>
    %c1_113 = arith.constant 1 : index
    %c0_114 = arith.constant 0 : index
    %c0_115 = arith.constant 0 : index
    %137 = vector.load %arg6[%c1_113, %c0_114, %c0_115] : memref<9x64x64xbf16, #tpu.memory_space<vmem>>, vector<1x64x64xbf16>
    %138 = vector.shape_cast %137 : vector<1x64x64xbf16> to vector<64x64xbf16>
    %cst_116 = arith.constant dense<0.000000e+00> : vector<133x64xf32>
    %139 = tpu.matmul %136, %138, %cst_116 {dimension_numbers = #tpu.dot_dimension_numbers<[1], [0], [0], [1], [0, 0, 1, 1], [], []>} : vector<133x64xbf16>, vector<64x64xbf16>, vector<133x64xf32> -> vector<133x64xf32>
    %140 = arith.addf %134, %139 : vector<133x64xf32>
    %c2_117 = arith.constant 2 : index
    %c0_118 = arith.constant 0 : index
    %141 = vector.load %arg10[%c2_117, %c0_118] : memref<177x64xf32, #tpu.memory_space<vmem>>, vector<133x64xf32>
    %142 = arith.truncf %141 : vector<133x64xf32> to vector<133x64xbf16>
    %c2_119 = arith.constant 2 : index
    %c0_120 = arith.constant 0 : index
    %c0_121 = arith.constant 0 : index
    %143 = vector.load %arg6[%c2_119, %c0_120, %c0_121] : memref<9x64x64xbf16, #tpu.memory_space<vmem>>, vector<1x64x64xbf16>
    %144 = vector.shape_cast %143 : vector<1x64x64xbf16> to vector<64x64xbf16>
    %cst_122 = arith.constant dense<0.000000e+00> : vector<133x64xf32>
    %145 = tpu.matmul %142, %144, %cst_122 {dimension_numbers = #tpu.dot_dimension_numbers<[1], [0], [0], [1], [0, 0, 1, 1], [], []>} : vector<133x64xbf16>, vector<64x64xbf16>, vector<133x64xf32> -> vector<133x64xf32>
    %146 = arith.addf %140, %145 : vector<133x64xf32>
    %c21_123 = arith.constant 21 : index
    %c0_124 = arith.constant 0 : index
    %147 = vector.load %arg10[%c21_123, %c0_124] : memref<177x64xf32, #tpu.memory_space<vmem>>, vector<133x64xf32>
    %148 = arith.truncf %147 : vector<133x64xf32> to vector<133x64xbf16>
    %c3_125 = arith.constant 3 : index
    %c0_126 = arith.constant 0 : index
    %c0_127 = arith.constant 0 : index
    %149 = vector.load %arg6[%c3_125, %c0_126, %c0_127] : memref<9x64x64xbf16, #tpu.memory_space<vmem>>, vector<1x64x64xbf16>
    %150 = vector.shape_cast %149 : vector<1x64x64xbf16> to vector<64x64xbf16>
    %cst_128 = arith.constant dense<0.000000e+00> : vector<133x64xf32>
    %151 = tpu.matmul %148, %150, %cst_128 {dimension_numbers = #tpu.dot_dimension_numbers<[1], [0], [0], [1], [0, 0, 1, 1], [], []>} : vector<133x64xbf16>, vector<64x64xbf16>, vector<133x64xf32> -> vector<133x64xf32>
    %152 = arith.addf %146, %151 : vector<133x64xf32>
    %c22_129 = arith.constant 22 : index
    %c0_130 = arith.constant 0 : index
    %153 = vector.load %arg10[%c22_129, %c0_130] : memref<177x64xf32, #tpu.memory_space<vmem>>, vector<133x64xf32>
    %154 = arith.truncf %153 : vector<133x64xf32> to vector<133x64xbf16>
    %c4_131 = arith.constant 4 : index
    %c0_132 = arith.constant 0 : index
    %c0_133 = arith.constant 0 : index
    %155 = vector.load %arg6[%c4_131, %c0_132, %c0_133] : memref<9x64x64xbf16, #tpu.memory_space<vmem>>, vector<1x64x64xbf16>
    %156 = vector.shape_cast %155 : vector<1x64x64xbf16> to vector<64x64xbf16>
    %cst_134 = arith.constant dense<0.000000e+00> : vector<133x64xf32>
    %157 = tpu.matmul %154, %156, %cst_134 {dimension_numbers = #tpu.dot_dimension_numbers<[1], [0], [0], [1], [0, 0, 1, 1], [], []>} : vector<133x64xbf16>, vector<64x64xbf16>, vector<133x64xf32> -> vector<133x64xf32>
    %158 = arith.addf %152, %157 : vector<133x64xf32>
    %c23_135 = arith.constant 23 : index
    %c0_136 = arith.constant 0 : index
    %159 = vector.load %arg10[%c23_135, %c0_136] : memref<177x64xf32, #tpu.memory_space<vmem>>, vector<133x64xf32>
    %160 = arith.truncf %159 : vector<133x64xf32> to vector<133x64xbf16>
    %c5_137 = arith.constant 5 : index
    %c0_138 = arith.constant 0 : index
    %c0_139 = arith.constant 0 : index
    %161 = vector.load %arg6[%c5_137, %c0_138, %c0_139] : memref<9x64x64xbf16, #tpu.memory_space<vmem>>, vector<1x64x64xbf16>
    %162 = vector.shape_cast %161 : vector<1x64x64xbf16> to vector<64x64xbf16>
    %cst_140 = arith.constant dense<0.000000e+00> : vector<133x64xf32>
    %163 = tpu.matmul %160, %162, %cst_140 {dimension_numbers = #tpu.dot_dimension_numbers<[1], [0], [0], [1], [0, 0, 1, 1], [], []>} : vector<133x64xbf16>, vector<64x64xbf16>, vector<133x64xf32> -> vector<133x64xf32>
    %164 = arith.addf %158, %163 : vector<133x64xf32>
    %c42_141 = arith.constant 42 : index
    %c0_142 = arith.constant 0 : index
    %165 = vector.load %arg10[%c42_141, %c0_142] : memref<177x64xf32, #tpu.memory_space<vmem>>, vector<133x64xf32>
    %166 = arith.truncf %165 : vector<133x64xf32> to vector<133x64xbf16>
    %c6_143 = arith.constant 6 : index
    %c0_144 = arith.constant 0 : index
    %c0_145 = arith.constant 0 : index
    %167 = vector.load %arg6[%c6_143, %c0_144, %c0_145] : memref<9x64x64xbf16, #tpu.memory_space<vmem>>, vector<1x64x64xbf16>
    %168 = vector.shape_cast %167 : vector<1x64x64xbf16> to vector<64x64xbf16>
    %cst_146 = arith.constant dense<0.000000e+00> : vector<133x64xf32>
    %169 = tpu.matmul %166, %168, %cst_146 {dimension_numbers = #tpu.dot_dimension_numbers<[1], [0], [0], [1], [0, 0, 1, 1], [], []>} : vector<133x64xbf16>, vector<64x64xbf16>, vector<133x64xf32> -> vector<133x64xf32>
    %170 = arith.addf %164, %169 : vector<133x64xf32>
    %c43_147 = arith.constant 43 : index
    %c0_148 = arith.constant 0 : index
    %171 = vector.load %arg10[%c43_147, %c0_148] : memref<177x64xf32, #tpu.memory_space<vmem>>, vector<133x64xf32>
    %172 = arith.truncf %171 : vector<133x64xf32> to vector<133x64xbf16>
    %c7_149 = arith.constant 7 : index
    %c0_150 = arith.constant 0 : index
    %c0_151 = arith.constant 0 : index
    %173 = vector.load %arg6[%c7_149, %c0_150, %c0_151] : memref<9x64x64xbf16, #tpu.memory_space<vmem>>, vector<1x64x64xbf16>
    %174 = vector.shape_cast %173 : vector<1x64x64xbf16> to vector<64x64xbf16>
    %cst_152 = arith.constant dense<0.000000e+00> : vector<133x64xf32>
    %175 = tpu.matmul %172, %174, %cst_152 {dimension_numbers = #tpu.dot_dimension_numbers<[1], [0], [0], [1], [0, 0, 1, 1], [], []>} : vector<133x64xbf16>, vector<64x64xbf16>, vector<133x64xf32> -> vector<133x64xf32>
    %176 = arith.addf %170, %175 : vector<133x64xf32>
    %c44_153 = arith.constant 44 : index
    %c0_154 = arith.constant 0 : index
    %177 = vector.load %arg10[%c44_153, %c0_154] : memref<177x64xf32, #tpu.memory_space<vmem>>, vector<133x64xf32>
    %178 = arith.truncf %177 : vector<133x64xf32> to vector<133x64xbf16>
    %c8_155 = arith.constant 8 : index
    %c0_156 = arith.constant 0 : index
    %c0_157 = arith.constant 0 : index
    %179 = vector.load %arg6[%c8_155, %c0_156, %c0_157] : memref<9x64x64xbf16, #tpu.memory_space<vmem>>, vector<1x64x64xbf16>
    %180 = vector.shape_cast %179 : vector<1x64x64xbf16> to vector<64x64xbf16>
    %cst_158 = arith.constant dense<0.000000e+00> : vector<133x64xf32>
    %181 = tpu.matmul %178, %180, %cst_158 {dimension_numbers = #tpu.dot_dimension_numbers<[1], [0], [0], [1], [0, 0, 1, 1], [], []>} : vector<133x64xbf16>, vector<64x64xbf16>, vector<133x64xf32> -> vector<133x64xf32>
    %182 = arith.addf %176, %181 : vector<133x64xf32>
    %c0_159 = arith.constant 0 : index
    %c0_160 = arith.constant 0 : index
    %183 = vector.load %arg7[%c0_159, %c0_160] : memref<1x64xf32, #tpu.memory_space<vmem>>, vector<1x64xf32>
    %184 = vector.broadcast %183 : vector<1x64xf32> to vector<133x64xf32>
    %185 = arith.addf %182, %184 : vector<133x64xf32>
    %cst_161 = arith.constant 0.000000e+00 : f32
    %186 = vector.broadcast %cst_161 : f32 to vector<133x64xf32>
    %187 = arith.maximumf %185, %186 : vector<133x64xf32>
    %188 = vector.extract_strided_slice %187 {offsets = [0, 0], sizes = [7, 64], strides = [1, 1]} : vector<133x64xf32> to vector<7x64xf32>
    %189 = arith.truncf %188 : vector<7x64xf32> to vector<7x64xbf16>
    %c0_162 = arith.constant 0 : index
    %c0_163 = arith.constant 0 : index
    %c0_164 = arith.constant 0 : index
    %190 = vector.load %arg8[%c0_162, %c0_163, %c0_164] : memref<1x49x64xbf16, #tpu.memory_space<vmem>>, vector<1x7x64xbf16>
    %191 = vector.shape_cast %190 : vector<1x7x64xbf16> to vector<7x64xbf16>
    %192 = vector.shape_cast %189 : vector<7x64xbf16> to vector<1x7x64xbf16>
    tpu.vector_store %arg8[%c0_162, %c0_163, %c0_164], %192 {strides = array<i32>} : memref<1x49x64xbf16, #tpu.memory_space<vmem>>, vector<1x7x64xbf16>,
    %193 = vector.extract_strided_slice %187 {offsets = [21, 0], sizes = [7, 64], strides = [1, 1]} : vector<133x64xf32> to vector<7x64xf32>
    %194 = arith.truncf %193 : vector<7x64xf32> to vector<7x64xbf16>
    %c0_165 = arith.constant 0 : index
    %c7_166 = arith.constant 7 : index
    %c0_167 = arith.constant 0 : index
    %195 = vector.load %arg8[%c0_165, %c7_166, %c0_167] : memref<1x49x64xbf16, #tpu.memory_space<vmem>>, vector<1x7x64xbf16>
    %196 = vector.shape_cast %195 : vector<1x7x64xbf16> to vector<7x64xbf16>
    %197 = vector.shape_cast %194 : vector<7x64xbf16> to vector<1x7x64xbf16>
    tpu.vector_store %arg8[%c0_165, %c7_166, %c0_167], %197 {strides = array<i32>} : memref<1x49x64xbf16, #tpu.memory_space<vmem>>, vector<1x7x64xbf16>,
    %198 = vector.extract_strided_slice %187 {offsets = [42, 0], sizes = [7, 64], strides = [1, 1]} : vector<133x64xf32> to vector<7x64xf32>
    %199 = arith.truncf %198 : vector<7x64xf32> to vector<7x64xbf16>
    %c0_168 = arith.constant 0 : index
    %c14_169 = arith.constant 14 : index
    %c0_170 = arith.constant 0 : index
    %200 = vector.load %arg8[%c0_168, %c14_169, %c0_170] : memref<1x49x64xbf16, #tpu.memory_space<vmem>>, vector<1x7x64xbf16>
    %201 = vector.shape_cast %200 : vector<1x7x64xbf16> to vector<7x64xbf16>
    %202 = vector.shape_cast %199 : vector<7x64xbf16> to vector<1x7x64xbf16>
    tpu.vector_store %arg8[%c0_168, %c14_169, %c0_170], %202 {strides = array<i32>} : memref<1x49x64xbf16, #tpu.memory_space<vmem>>, vector<1x7x64xbf16>,
    %203 = vector.extract_strided_slice %187 {offsets = [63, 0], sizes = [7, 64], strides = [1, 1]} : vector<133x64xf32> to vector<7x64xf32>
    %204 = arith.truncf %203 : vector<7x64xf32> to vector<7x64xbf16>
    %c0_171 = arith.constant 0 : index
    %c21_172 = arith.constant 21 : index
    %c0_173 = arith.constant 0 : index
    %205 = vector.load %arg8[%c0_171, %c21_172, %c0_173] : memref<1x49x64xbf16, #tpu.memory_space<vmem>>, vector<1x7x64xbf16>
    %206 = vector.shape_cast %205 : vector<1x7x64xbf16> to vector<7x64xbf16>
    %207 = vector.shape_cast %204 : vector<7x64xbf16> to vector<1x7x64xbf16>
    tpu.vector_store %arg8[%c0_171, %c21_172, %c0_173], %207 {strides = array<i32>} : memref<1x49x64xbf16, #tpu.memory_space<vmem>>, vector<1x7x64xbf16>,
    %208 = vector.extract_strided_slice %187 {offsets = [84, 0], sizes = [7, 64], strides = [1, 1]} : vector<133x64xf32> to vector<7x64xf32>
    %209 = arith.truncf %208 : vector<7x64xf32> to vector<7x64xbf16>
    %c0_174 = arith.constant 0 : index
    %c28 = arith.constant 28 : index
    %c0_175 = arith.constant 0 : index
    %210 = vector.load %arg8[%c0_174, %c28, %c0_175] : memref<1x49x64xbf16, #tpu.memory_space<vmem>>, vector<1x7x64xbf16>
    %211 = vector.shape_cast %210 : vector<1x7x64xbf16> to vector<7x64xbf16>
    %212 = vector.shape_cast %209 : vector<7x64xbf16> to vector<1x7x64xbf16>
    tpu.vector_store %arg8[%c0_174, %c28, %c0_175], %212 {strides = array<i32>} : memref<1x49x64xbf16, #tpu.memory_space<vmem>>, vector<1x7x64xbf16>,
    %213 = vector.extract_strided_slice %187 {offsets = [105, 0], sizes = [7, 64], strides = [1, 1]} : vector<133x64xf32> to vector<7x64xf32>
    %214 = arith.truncf %213 : vector<7x64xf32> to vector<7x64xbf16>
    %c0_176 = arith.constant 0 : index
    %c35 = arith.constant 35 : index
    %c0_177 = arith.constant 0 : index
    %215 = vector.load %arg8[%c0_176, %c35, %c0_177] : memref<1x49x64xbf16, #tpu.memory_space<vmem>>, vector<1x7x64xbf16>
    %216 = vector.shape_cast %215 : vector<1x7x64xbf16> to vector<7x64xbf16>
    %217 = vector.shape_cast %214 : vector<7x64xbf16> to vector<1x7x64xbf16>
    tpu.vector_store %arg8[%c0_176, %c35, %c0_177], %217 {strides = array<i32>} : memref<1x49x64xbf16, #tpu.memory_space<vmem>>, vector<1x7x64xbf16>,
    %218 = vector.extract_strided_slice %187 {offsets = [126, 0], sizes = [7, 64], strides = [1, 1]} : vector<133x64xf32> to vector<7x64xf32>
    %219 = arith.truncf %218 : vector<7x64xf32> to vector<7x64xbf16>
    %c0_178 = arith.constant 0 : index
    %c42_179 = arith.constant 42 : index
    %c0_180 = arith.constant 0 : index
    %220 = vector.load %arg8[%c0_178, %c42_179, %c0_180] : memref<1x49x64xbf16, #tpu.memory_space<vmem>>, vector<1x7x64xbf16>
    %221 = vector.shape_cast %220 : vector<1x7x64xbf16> to vector<7x64xbf16>
    %222 = vector.shape_cast %219 : vector<7x64xbf16> to vector<1x7x64xbf16>
    tpu.vector_store %arg8[%c0_178, %c42_179, %c0_180], %222 {strides = array<i32>} : memref<1x49x64xbf16, #tpu.memory_space<vmem>>, vector<1x7x64xbf16>,
    return
  }
  func.func @transform_0(%arg0: i32) -> (i32, i32, i32) {
    %c0_i32 = arith.constant 0 : i32
    %c0_i32_0 = arith.constant 0 : i32
    %c0_i32_1 = arith.constant 0 : i32
    return %arg0, %c0_i32, %c0_i32_0 : i32, i32, i32
  }
  func.func @transform_1(%arg0: i32) -> (i32, i32, i32) {
    %c0_i32 = arith.constant 0 : i32
    %c0_i32_0 = arith.constant 0 : i32
    %c0_i32_1 = arith.constant 0 : i32
    %c0_i32_2 = arith.constant 0 : i32
    return %c0_i32, %c0_i32_0, %c0_i32_1 : i32, i32, i32
  }
  func.func @transform_2(%arg0: i32) -> (i32, i32) {
    %c0_i32 = arith.constant 0 : i32
    %c0_i32_0 = arith.constant 0 : i32
    %c0_i32_1 = arith.constant 0 : i32
    return %c0_i32, %c0_i32_0 : i32, i32
  }
  func.func @transform_3(%arg0: i32) -> (i32, i32, i32) {
    %c0_i32 = arith.constant 0 : i32
    %c0_i32_0 = arith.constant 0 : i32
    %c0_i32_1 = arith.constant 0 : i32
    %c0_i32_2 = arith.constant 0 : i32
    return %c0_i32, %c0_i32_0, %c0_i32_1 : i32, i32, i32
  }
  func.func @transform_4(%arg0: i32) -> (i32, i32) {
    %c0_i32 = arith.constant 0 : i32
    %c0_i32_0 = arith.constant 0 : i32
    %c0_i32_1 = arith.constant 0 : i32
    return %c0_i32, %c0_i32_0 : i32, i32
  }
  func.func @transform_5(%arg0: i32) -> (i32, i32, i32) {
    %c0_i32 = arith.constant 0 : i32
    %c0_i32_0 = arith.constant 0 : i32
    %c0_i32_1 = arith.constant 0 : i32
    %c0_i32_2 = arith.constant 0 : i32
    return %c0_i32, %c0_i32_0, %c0_i32_1 : i32, i32, i32
  }
  func.func @transform_6(%arg0: i32) -> (i32, i32) {
    %c0_i32 = arith.constant 0 : i32
    %c0_i32_0 = arith.constant 0 : i32
    %c0_i32_1 = arith.constant 0 : i32
    return %c0_i32, %c0_i32_0 : i32, i32
  }
  func.func @transform_7(%arg0: i32) -> (i32, i32, i32) {
    %c0_i32 = arith.constant 0 : i32
    %c0_i32_0 = arith.constant 0 : i32
    %c0_i32_1 = arith.constant 0 : i32
    return %arg0, %c0_i32, %c0_i32_0 : i32, i32, i32
  }
}

module attributes {stable_mosaic.version = 11 : i64} {
  func.func @_head_kernel(%arg0: i32, %arg1: i32, %arg2: memref<16x3136xbf16, #tpu.memory_space<vmem>>, %arg3: memref<3136x256xbf16, #tpu.memory_space<vmem>>, %arg4: memref<1x256xf32, #tpu.memory_space<vmem>>, %arg5: memref<256x6xbf16, #tpu.memory_space<vmem>>, %arg6: memref<1x16x6xf32, #tpu.memory_space<vmem>>) attributes {dimension_semantics = [#tpu.dimension_semantics<parallel>, #tpu.dimension_semantics<parallel>], iteration_bounds = array<i64: 1, 2>, scalar_prefetch = 0 : i64, scratch_operands = 0 : i64, tpu.core_type = #tpu.core_type<tc>, window_params = [{transform_indices = @transform_0, window_bounds = array<i64: 16, 3136>}, {transform_indices = @transform_1, window_bounds = array<i64: 3136, 256>}, {transform_indices = @transform_2, window_bounds = array<i64: 1, 256>}, {transform_indices = @transform_3, window_bounds = array<i64: 256, 6>}, {transform_indices = @transform_4, window_bounds = array<i64: 1, 16, 6>}]} {
    %c0 = arith.constant 0 : index
    %c0_0 = arith.constant 0 : index
    %0 = vector.load %arg2[%c0, %c0_0] : memref<16x3136xbf16, #tpu.memory_space<vmem>>, vector<16x3136xbf16>
    %c0_1 = arith.constant 0 : index
    %c0_2 = arith.constant 0 : index
    %1 = vector.load %arg3[%c0_1, %c0_2] : memref<3136x256xbf16, #tpu.memory_space<vmem>>, vector<3136x256xbf16>
    %cst = arith.constant dense<0.000000e+00> : vector<16x256xf32>
    %2 = tpu.matmul %0, %1, %cst {dimension_numbers = #tpu.dot_dimension_numbers<[1], [0], [0], [1], [0, 0, 1, 1], [], []>} : vector<16x3136xbf16>, vector<3136x256xbf16>, vector<16x256xf32> -> vector<16x256xf32>
    %c0_3 = arith.constant 0 : index
    %c0_4 = arith.constant 0 : index
    %3 = vector.load %arg4[%c0_3, %c0_4] : memref<1x256xf32, #tpu.memory_space<vmem>>, vector<1x256xf32>
    %4 = vector.broadcast %3 : vector<1x256xf32> to vector<16x256xf32>
    %5 = arith.addf %2, %4 : vector<16x256xf32>
    %cst_5 = arith.constant 0.000000e+00 : f32
    %6 = vector.broadcast %cst_5 : f32 to vector<16x256xf32>
    %7 = arith.maximumf %5, %6 : vector<16x256xf32>
    %8 = arith.truncf %7 : vector<16x256xf32> to vector<16x256xbf16>
    %c0_6 = arith.constant 0 : index
    %c0_7 = arith.constant 0 : index
    %9 = vector.load %arg5[%c0_6, %c0_7] : memref<256x6xbf16, #tpu.memory_space<vmem>>, vector<256x6xbf16>
    %cst_8 = arith.constant dense<0.000000e+00> : vector<16x6xf32>
    %10 = tpu.matmul %8, %9, %cst_8 {dimension_numbers = #tpu.dot_dimension_numbers<[1], [0], [0], [1], [0, 0, 1, 1], [], []>} : vector<16x256xbf16>, vector<256x6xbf16>, vector<16x6xf32> -> vector<16x6xf32>
    %c0_9 = arith.constant 0 : index
    %c0_10 = arith.constant 0 : index
    %c0_11 = arith.constant 0 : index
    %11 = vector.load %arg6[%c0_9, %c0_10, %c0_11] : memref<1x16x6xf32, #tpu.memory_space<vmem>>, vector<1x16x6xf32>
    %12 = vector.shape_cast %11 : vector<1x16x6xf32> to vector<16x6xf32>
    %13 = vector.shape_cast %10 : vector<16x6xf32> to vector<1x16x6xf32>
    tpu.vector_store %arg6[%c0_9, %c0_10, %c0_11], %13 {strides = array<i32>} : memref<1x16x6xf32, #tpu.memory_space<vmem>>, vector<1x16x6xf32>,
    return
  }
  func.func @transform_0(%arg0: i32, %arg1: i32) -> (i32, i32) {
    %c0_i32 = arith.constant 0 : i32
    %c0_i32_0 = arith.constant 0 : i32
    return %arg0, %c0_i32 : i32, i32
  }
  func.func @transform_1(%arg0: i32, %arg1: i32) -> (i32, i32) {
    %c0_i32 = arith.constant 0 : i32
    %c0_i32_0 = arith.constant 0 : i32
    return %c0_i32, %arg1 : i32, i32
  }
  func.func @transform_2(%arg0: i32, %arg1: i32) -> (i32, i32) {
    %c0_i32 = arith.constant 0 : i32
    %c0_i32_0 = arith.constant 0 : i32
    return %c0_i32, %arg1 : i32, i32
  }
  func.func @transform_3(%arg0: i32, %arg1: i32) -> (i32, i32) {
    %c0_i32 = arith.constant 0 : i32
    %c0_i32_0 = arith.constant 0 : i32
    return %arg1, %c0_i32 : i32, i32
  }
  func.func @transform_4(%arg0: i32, %arg1: i32) -> (i32, i32, i32) {
    %c0_i32 = arith.constant 0 : i32
    %c0_i32_0 = arith.constant 0 : i32
    return %arg1, %arg0, %c0_i32 : i32, i32, i32
  }
}

</mosaic_0001>

<bundles_post_ra>
// kernel: network_forward.3
= control target key start
LH: loop header
LB: loop body
LE: loop exit
PB: predicated region body
PF: predicated region fallthrough
CT: control target
= control target key end

     0   :  { %s9294_s15 = smov 0   ;;  %s9296_s16 = smov 0   ;;  %s11356_s0 = inlined_call_operand.vmem [shape: bf16[16,3136], index: 0, kind: input, shape index: {}]   ;;  %s11357_s1 = inlined_call_operand.vmem [shape: bf16[3136,512], index: 1, kind: input, shape index: {}]   ;;  %s11358_s2 = inlined_call_operand.vmem [shape: f32[1,512], index: 2, kind: input, shape index: {}]   ;;  %s11359_s3 = inlined_call_operand.vmem [shape: bf16[512,6], index: 3, kind: input, shape index: {}]   ;;  %s11360_s4 = inlined_call_operand.vmem [shape: f32[2,16,6], index: 4, kind: output, shape index: {}]  }
   0x1   :  { %s9298_s17 = smov 0   ;;  %s9300_s18 = smov 0  }
   0x2   :  { %s9302_s19 = smov 0  }
   0x3 LB: > { %s23_s20 = sadd.s32 1, %s9263_s18  ;;  %p66_p1 = scmp.ne.s32.totalorder %s9255_s16, %s9251_s15  ;;  %s9267_s19 = sphi %s9302_s19, %s14_s19   ;;  %s9263_s18 = sphi %s9300_s18, %s11366_s18   ;;  %s9259_s17 = sphi %s9298_s17, %s11365_s17   ;;  %s9255_s16 = sphi %s9296_s16, %s11364_s16   ;;  %s9251_s15 = sphi %s9294_s15, %s11363_s15  }
   0x4   : > { %p24_p0 = scmp.ge.s32.totalorder %s23_s20, 2  ;;  %p67_p2 = scmp.eq.s32.totalorder %s9267_s19, 0 }
   0x5   : > { %s59_s22 = sadd.s32 1, %s9255_s16  ;;  %p7007_p5 = scmp.ge.s32.totalorder %s9267_s19, 2 }
   0x6   : > { %s11368_s20 = smov (%p24_p0, %s23_s20), 0  ;;  %p68_p3 = por %p67_p2, %p66_p1 }
   0x7   : > { %s56_s21 = ssub.s32 %s9263_s18, %s11368_s20  ;;  %182 = sbr.rel (%p7007_p5) target bundleno = 408 (0x198), region = 20 }
   0x8   : > { %p57_p4 = scmp.eq.s32.totalorder %s56_s21, 0 }
   0xa   : > { %s9329_s23 = scalar_select %p57_p4, %s9255_s16, %s59_s22  }
   0xc   : > { %185 = sbr.rel (!%p68_p3) target bundleno = 408 (0x198), region = 24  ;;  %s187_s24 = sand.u32 (%p68_p3), 1, %s9255_s16  }
   0xd   : > { %s8752_s25 = sshll.u32 (%p68_p3), %s9263_s18, 3  ;;  %s9187_s26 = smul.u32 (%p68_p3), 3136, %s187_s24 }
   0xe   : > { %s9337_s29 = scalar_lea.vmem (%p68_p3), %s11357_s1, %s8752_s25 }
   0xf   : > { %v1004_v0 = vld [vmem:[%s9337_s29] sm:$0xff] (%p68_p3)  ;;  %v1006_v1 = vld [vmem:[%s9337_s29 + $0x10] sm:$0xff] (%p68_p3)  ;;  %s9342_s30 = scalar_lea.vmem (%p68_p3), [#allocation2], %s9187_s26 }
  0x10   : > { %v1008_v2 = vld [vmem:[%s9337_s29 + $0x20] sm:$0xff] (%p68_p3)  ;;  %1005 = vst [vmem:[%s9342_s30] sm:$0xff] (%p68_p3), %v1004_v0  ;;  %v1010_v3 = vld [vmem:[%s9337_s29 + $0x30] sm:$0xff] (%p68_p3) }
  0x11   : > { %1007 = vst [vmem:[%s9342_s30 + $0x8] sm:$0xff] %v1006_v1  ;;  %v1012_v4 = vld [vmem:[%s9337_s29 + $0x40] sm:$0xff]  ;;  %v1014_v5 = vld [vmem:[%s9337_s29 + $0x50] sm:$0xff] }
  0x12   : > { %1009 = vst [vmem:[%s9342_s30 + $0x10] sm:$0xff] %v1008_v2  ;;  %v1016_v6 = vld [vmem:[%s9337_s29 + $0x60] sm:$0xff]  ;;  %v1018_v7 = vld [vmem:[%s9337_s29 + $0x70] sm:$0xff] }
  0x13   : > { %1011 = vst [vmem:[%s9342_s30 + $0x18] sm:$0xff] %v1010_v3  ;;  %v1020_v8 = vld [vmem:[%s9337_s29 + $0x80] sm:$0xff]  ;;  %v1022_v9 = vld [vmem:[%s9337_s29 + $0x90] sm:$0xff] }
  0x14   : > { %1013 = vst [vmem:[%s9342_s30 + $0x20] sm:$0xff] %v1012_v4  ;;  %v1024_v10 = vld [vmem:[%s9337_s29 + $0xa0] sm:$0xff]  ;;  %v1026_v11 = vld [vmem:[%s9337_s29 + $0xb0] sm:$0xff] }
  0x15   : > { %1015 = vst [vmem:[%s9342_s30 + $0x28] sm:$0xff] %v1014_v5  ;;  %v1028_v12 = vld [vmem:[%s9337_s29 + $0xc0] sm:$0xff]  ;;  %v1030_v13 = vld [vmem:[%s9337_s29 + $0xd0] sm:$0xff] }
  0x16   : > { %1017 = vst [vmem:[%s9342_s30 + $0x30] sm:$0xff] %v1016_v6  ;;  %v1032_v14 = vld [vmem:[%s9337_s29 + $0xe0] sm:$0xff]  ;;  %v1034_v15 = vld [vmem:[%s9337_s29 + $0xf0] sm:$0xff] }
  0x17   : > { %1019 = vst [vmem:[%s9342_s30 + $0x38] sm:$0xff] %v1018_v7  ;;  %v1036_v16 = vld [vmem:[%s9337_s29 + $0x100] sm:$0xff]  ;;  %v1038_v17 = vld [vmem:[%s9337_s29 + $0x110] sm:$0xff] }
  0x18   : > { %1021 = vst [vmem:[%s9342_s30 + $0x40] sm:$0xff] %v1020_v8  ;;  %v1040_v18 = vld [vmem:[%s9337_s29 + $0x120] sm:$0xff]  ;;  %v1042_v19 = vld [vmem:[%s9337_s29 + $0x130] sm:$0xff] }
  0x19   : > { %1023 = vst [vmem:[%s9342_s30 + $0x48] sm:$0xff] %v1022_v9  ;;  %v1044_v20 = vld [vmem:[%s9337_s29 + $0x140] sm:$0xff]  ;;  %v1046_v21 = vld [vmem:[%s9337_s29 + $0x150] sm:$0xff] }
  0x1a   : > { %1025 = vst [vmem:[%s9342_s30 + $0x50] sm:$0xff] %v1024_v10  ;;  %v1048_v22 = vld [vmem:[%s9337_s29 + $0x160] sm:$0xff]  ;;  %v1050_v23 = vld [vmem:[%s9337_s29 + $0x170] sm:$0xff] }
  0x1b   : > { %1027 = vst [vmem:[%s9342_s30 + $0x58] sm:$0xff] %v1026_v11  ;;  %v1052_v24 = vld [vmem:[%s9337_s29 + $0x180] sm:$0xff]  ;;  %v1054_v25 = vld [vmem:[%s9337_s29 + $0x190] sm:$0xff] }
  0x1c   : > { %1029 = vst [vmem:[%s9342_s30 + $0x60] sm:$0xff] %v1028_v12  ;;  %v1056_v26 = vld [vmem:[%s9337_s29 + $0x1a0] sm:$0xff]  ;;  %v1058_v27 = vld [vmem:[%s9337_s29 + $0x1b0] sm:$0xff] }
  0x1d   : > { %1031 = vst [vmem:[%s9342_s30 + $0x68] sm:$0xff] %v1030_v13  ;;  %v1060_v28 = vld [vmem:[%s9337_s29 + $0x1c0] sm:$0xff]  ;;  %v1062_v29 = vld [vmem:[%s9337_s29 + $0x1d0] sm:$0xff] }
  0x1e   : > { %1033 = vst [vmem:[%s9342_s30 + $0x70] sm:$0xff] %v1032_v14  ;;  %v1064_v30 = vld [vmem:[%s9337_s29 + $0x1e0] sm:$0xff]  ;;  %v1066_v31 = vld [vmem:[%s9337_s29 + $0x1f0] sm:$0xff] }
  0x1f   : > { %1035 = vst [vmem:[%s9342_s30 + $0x78] sm:$0xff] %v1034_v15  ;;  %v1068_v32 = vld [vmem:[%s9337_s29 + $0x200] sm:$0xff]  ;;  %v1070_v33 = vld [vmem:[%s9337_s29 + $0x210] sm:$0xff] }
  0x20   : > { %1037 = vst [vmem:[%s9342_s30 + $0x80] sm:$0xff] %v1036_v16  ;;  %v1072_v34 = vld [vmem:[%s9337_s29 + $0x220] sm:$0xff]  ;;  %v1074_v35 = vld [vmem:[%s9337_s29 + $0x230] sm:$0xff] }
  0x21   : > { %1039 = vst [vmem:[%s9342_s30 + $0x88] sm:$0xff] %v1038_v17  ;;  %v1076_v36 = vld [vmem:[%s9337_s29 + $0x240] sm:$0xff]  ;;  %v1078_v37 = vld [vmem:[%s9337_s29 + $0x250] sm:$0xff] }
  0x22   : > { %1041 = vst [vmem:[%s9342_s30 + $0x90] sm:$0xff] %v1040_v18  ;;  %v1080_v38 = vld [vmem:[%s9337_s29 + $0x260] sm:$0xff]  ;;  %v1082_v39 = vld [vmem:[%s9337_s29 + $0x270] sm:$0xff] }
  0x23   : > { %1043 = vst [vmem:[%s9342_s30 + $0x98] sm:$0xff] %v1042_v19  ;;  %v1084_v40 = vld [vmem:[%s9337_s29 + $0x280] sm:$0xff]  ;;  %v1086_v41 = vld [vmem:[%s9337_s29 + $0x290] sm:$0xff] }
  0x24   : > { %1045 = vst [vmem:[%s9342_s30 + $0xa0] sm:$0xff] %v1044_v20  ;;  %v1088_v42 = vld [vmem:[%s9337_s29 + $0x2a0] sm:$0xff]  ;;  %v1090_v43 = vld [vmem:[%s9337_s29 + $0x2b0] sm:$0xff] }
  0x25   : > { %1047 = vst [vmem:[%s9342_s30 + $0xa8] sm:$0xff] %v1046_v21  ;;  %v1092_v44 = vld [vmem:[%s9337_s29 + $0x2c0] sm:$0xff]  ;;  %v1094_v45 = vld [vmem:[%s9337_s29 + $0x2d0] sm:$0xff] }
  0x26   : > { %1049 = vst [vmem:[%s9342_s30 + $0xb0] sm:$0xff] %v1048_v22  ;;  %v1096_v46 = vld [vmem:[%s9337_s29 + $0x2e0] sm:$0xff]  ;;  %v1098_v47 = vld [vmem:[%s9337_s29 + $0x2f0] sm:$0xff] }
  0x27   : > { %1051 = vst [vmem:[%s9342_s30 + $0xb8] sm:$0xff] %v1050_v23  ;;  %v1100_v48 = vld [vmem:[%s9337_s29 + $0x300] sm:$0xff]  ;;  %v1102_v49 = vld [vmem:[%s9337_s29 + $0x310] sm:$0xff] }
  0x28   : > { %1053 = vst [vmem:[%s9342_s30 + $0xc0] sm:$0xff] %v1052_v24  ;;  %v1104_v50 = vld [vmem:[%s9337_s29 + $0x320] sm:$0xff]  ;;  %v1106_v51 = vld [vmem:[%s9337_s29 + $0x330] sm:$0xff] }
  0x29   : > { %1055 = vst [vmem:[%s9342_s30 + $0xc8] sm:$0xff] %v1054_v25  ;;  %v1108_v52 = vld [vmem:[%s9337_s29 + $0x340] sm:$0xff]  ;;  %v1110_v53 = vld [vmem:[%s9337_s29 + $0x350] sm:$0xff] }
  0x2a   : > { %1057 = vst [vmem:[%s9342_s30 + $0xd0] sm:$0xff] %v1056_v26  ;;  %v1112_v54 = vld [vmem:[%s9337_s29 + $0x360] sm:$0xff]  ;;  %v1114_v55 = vld [vmem:[%s9337_s29 + $0x370] sm:$0xff] }
  0x2b   : > { %1059 = vst [vmem:[%s9342_s30 + $0xd8] sm:$0xff] %v1058_v27  ;;  %v1116_v56 = vld [vmem:[%s9337_s29 + $0x380] sm:$0xff]  ;;  %v1118_v57 = vld [vmem:[%s9337_s29 + $0x390] sm:$0xff] }
  0x2c   : > { %1061 = vst [vmem:[%s9342_s30 + $0xe0] sm:$0xff] %v1060_v28  ;;  %v1120_v58 = vld [vmem:[%s9337_s29 + $0x3a0] sm:$0xff]  ;;  %v1122_v59 = vld [vmem:[%s9337_s29 + $0x3b0] sm:$0xff] }
  0x2d   : > { %1063 = vst [vmem:[%s9342_s30 + $0xe8] sm:$0xff] %v1062_v29  ;;  %v1124_v60 = vld [vmem:[%s9337_s29 + $0x3c0] sm:$0xff]  ;;  %v1126_v61 = vld [vmem:[%s9337_s29 + $0x3d0] sm:$0xff] }
  0x2e   : > { %1065 = vst [vmem:[%s9342_s30 + $0xf0] sm:$0xff] %v1064_v30  ;;  %v1128_v62 = vld [vmem:[%s9337_s29 + $0x3e0] sm:$0xff]  ;;  %v1130_v63 = vld [vmem:[%s9337_s29 + $0x3f0] sm:$0xff] }
  0x2f   : > { %1067 = vst [vmem:[%s9342_s30 + $0xf8] sm:$0xff] %v1066_v31  ;;  %v1132_v0 = vld [vmem:[%s9337_s29 + $0x400] sm:$0xff]  ;;  %v1134_v1 = vld [vmem:[%s9337_s29 + $0x410] sm:$0xff] }
  0x30   : > { %1069 = vst [vmem:[%s9342_s30 + $0x100] sm:$0xff] %v1068_v32  ;;  %v1136_v2 = vld [vmem:[%s9337_s29 + $0x420] sm:$0xff]  ;;  %v1138_v3 = vld [vmem:[%s9337_s29 + $0x430] sm:$0xff] }
  0x31   : > { %1071 = vst [vmem:[%s9342_s30 + $0x108] sm:$0xff] %v1070_v33  ;;  %v1140_v4 = vld [vmem:[%s9337_s29 + $0x440] sm:$0xff]  ;;  %v1142_v5 = vld [vmem:[%s9337_s29 + $0x450] sm:$0xff] }
  0x32   : > { %1073 = vst [vmem:[%s9342_s30 + $0x110] sm:$0xff] %v1072_v34  ;;  %v1144_v6 = vld [vmem:[%s9337_s29 + $0x460] sm:$0xff]  ;;  %v1146_v7 = vld [vmem:[%s9337_s29 + $0x470] sm:$0xff] }
  0x33   : > { %1075 = vst [vmem:[%s9342_s30 + $0x118] sm:$0xff] %v1074_v35  ;;  %v1148_v8 = vld [vmem:[%s9337_s29 + $0x480] sm:$0xff]  ;;  %v1150_v9 = vld [vmem:[%s9337_s29 + $0x490] sm:$0xff] }
  0x34   : > { %1077 = vst [vmem:[%s9342_s30 + $0x120] sm:$0xff] %v1076_v36  ;;  %v1152_v10 = vld [vmem:[%s9337_s29 + $0x4a0] sm:$0xff]  ;;  %v1154_v11 = vld [vmem:[%s9337_s29 + $0x4b0] sm:$0xff] }
  0x35   : > { %1079 = vst [vmem:[%s9342_s30 + $0x128] sm:$0xff] %v1078_v37  ;;  %v1156_v12 = vld [vmem:[%s9337_s29 + $0x4c0] sm:$0xff]  ;;  %v1158_v13 = vld [vmem:[%s9337_s29 + $0x4d0] sm:$0xff] }
  0x36   : > { %1081 = vst [vmem:[%s9342_s30 + $0x130] sm:$0xff] %v1080_v38  ;;  %v1160_v14 = vld [vmem:[%s9337_s29 + $0x4e0] sm:$0xff]  ;;  %v1162_v15 = vld [vmem:[%s9337_s29 + $0x4f0] sm:$0xff] }
  0x37   : > { %1083 = vst [vmem:[%s9342_s30 + $0x138] sm:$0xff] %v1082_v39  ;;  %v1164_v16 = vld [vmem:[%s9337_s29 + $0x500] sm:$0xff]  ;;  %v1166_v17 = vld [vmem:[%s9337_s29 + $0x510] sm:$0xff] }
  0x38   : > { %1085 = vst [vmem:[%s9342_s30 + $0x140] sm:$0xff] %v1084_v40  ;;  %v1168_v18 = vld [vmem:[%s9337_s29 + $0x520] sm:$0xff]  ;;  %v1170_v19 = vld [vmem:[%s9337_s29 + $0x530] sm:$0xff] }
  0x39   : > { %1087 = vst [vmem:[%s9342_s30 + $0x148] sm:$0xff] %v1086_v41  ;;  %v1172_v20 = vld [vmem:[%s9337_s29 + $0x540] sm:$0xff]  ;;  %v1174_v21 = vld [vmem:[%s9337_s29 + $0x550] sm:$0xff] }
  0x3a   : > { %1089 = vst [vmem:[%s9342_s30 + $0x150] sm:$0xff] %v1088_v42  ;;  %v1176_v22 = vld [vmem:[%s9337_s29 + $0x560] sm:$0xff]  ;;  %v1178_v23 = vld [vmem:[%s9337_s29 + $0x570] sm:$0xff] }
  0x3b   : > { %1091 = vst [vmem:[%s9342_s30 + $0x158] sm:$0xff] %v1090_v43  ;;  %v1180_v24 = vld [vmem:[%s9337_s29 + $0x580] sm:$0xff]  ;;  %v1182_v25 = vld [vmem:[%s9337_s29 + $0x590] sm:$0xff] }
  0x3c   : > { %1093 = vst [vmem:[%s9342_s30 + $0x160] sm:$0xff] %v1092_v44  ;;  %v1184_v26 = vld [vmem:[%s9337_s29 + $0x5a0] sm:$0xff]  ;;  %v1186_v27 = vld [vmem:[%s9337_s29 + $0x5b0] sm:$0xff] }
  0x3d   : > { %1095 = vst [vmem:[%s9342_s30 + $0x168] sm:$0xff] %v1094_v45  ;;  %v1188_v28 = vld [vmem:[%s9337_s29 + $0x5c0] sm:$0xff]  ;;  %v1190_v29 = vld [vmem:[%s9337_s29 + $0x5d0] sm:$0xff] }
  0x3e   : > { %1097 = vst [vmem:[%s9342_s30 + $0x170] sm:$0xff] %v1096_v46  ;;  %v1192_v30 = vld [vmem:[%s9337_s29 + $0x5e0] sm:$0xff]  ;;  %v1194_v31 = vld [vmem:[%s9337_s29 + $0x5f0] sm:$0xff] }
  0x3f   : > { %1099 = vst [vmem:[%s9342_s30 + $0x178] sm:$0xff] %v1098_v47  ;;  %v1196_v32 = vld [vmem:[%s9337_s29 + $0x600] sm:$0xff]  ;;  %v1198_v33 = vld [vmem:[%s9337_s29 + $0x610] sm:$0xff] }
  0x40   : > { %1101 = vst [vmem:[%s9342_s30 + $0x180] sm:$0xff] %v1100_v48  ;;  %v1200_v34 = vld [vmem:[%s9337_s29 + $0x620] sm:$0xff]  ;;  %v1202_v35 = vld [vmem:[%s9337_s29 + $0x630] sm:$0xff] }
  0x41   : > { %1103 = vst [vmem:[%s9342_s30 + $0x188] sm:$0xff] %v1102_v49  ;;  %v1204_v36 = vld [vmem:[%s9337_s29 + $0x640] sm:$0xff]  ;;  %v1206_v37 = vld [vmem:[%s9337_s29 + $0x650] sm:$0xff] }
  0x42   : > { %1105 = vst [vmem:[%s9342_s30 + $0x190] sm:$0xff] %v1104_v50  ;;  %v1208_v38 = vld [vmem:[%s9337_s29 + $0x660] sm:$0xff]  ;;  %v1210_v39 = vld [vmem:[%s9337_s29 + $0x670] sm:$0xff] }
  0x43   : > { %1107 = vst [vmem:[%s9342_s30 + $0x198] sm:$0xff] %v1106_v51  ;;  %v1212_v40 = vld [vmem:[%s9337_s29 + $0x680] sm:$0xff]  ;;  %v1214_v41 = vld [vmem:[%s9337_s29 + $0x690] sm:$0xff] }
  0x44   : > { %1109 = vst [vmem:[%s9342_s30 + $0x1a0] sm:$0xff] %v1108_v52  ;;  %v1216_v42 = vld [vmem:[%s9337_s29 + $0x6a0] sm:$0xff]  ;;  %v1218_v43 = vld [vmem:[%s9337_s29 + $0x6b0] sm:$0xff] }
  0x45   : > { %1111 = vst [vmem:[%s9342_s30 + $0x1a8] sm:$0xff] %v1110_v53  ;;  %v1220_v44 = vld [vmem:[%s9337_s29 + $0x6c0] sm:$0xff]  ;;  %v1222_v45 = vld [vmem:[%s9337_s29 + $0x6d0] sm:$0xff] }
  0x46   : > { %1113 = vst [vmem:[%s9342_s30 + $0x1b0] sm:$0xff] %v1112_v54  ;;  %v1224_v46 = vld [vmem:[%s9337_s29 + $0x6e0] sm:$0xff]  ;;  %v1226_v47 = vld [vmem:[%s9337_s29 + $0x6f0] sm:$0xff] }
  0x47   : > { %1115 = vst [vmem:[%s9342_s30 + $0x1b8] sm:$0xff] %v1114_v55  ;;  %v1228_v48 = vld [vmem:[%s9337_s29 + $0x700] sm:$0xff]  ;;  %v1230_v49 = vld [vmem:[%s9337_s29 + $0x710] sm:$0xff] }
  0x48   : > { %1117 = vst [vmem:[%s9342_s30 + $0x1c0] sm:$0xff] %v1116_v56  ;;  %v1232_v50 = vld [vmem:[%s9337_s29 + $0x720] sm:$0xff]  ;;  %v1234_v51 = vld [vmem:[%s9337_s29 + $0x730] sm:$0xff] }
  0x49   : > { %1119 = vst [vmem:[%s9342_s30 + $0x1c8] sm:$0xff] %v1118_v57  ;;  %v1236_v52 = vld [vmem:[%s9337_s29 + $0x740] sm:$0xff]  ;;  %v1238_v53 = vld [vmem:[%s9337_s29 + $0x750] sm:$0xff] }
  0x4a   : > { %1121 = vst [vmem:[%s9342_s30 + $0x1d0] sm:$0xff] %v1120_v58  ;;  %v1240_v54 = vld [vmem:[%s9337_s29 + $0x760] sm:$0xff]  ;;  %v1242_v55 = vld [vmem:[%s9337_s29 + $0x770] sm:$0xff] }
  0x4b   : > { %1123 = vst [vmem:[%s9342_s30 + $0x1d8] sm:$0xff] %v1122_v59  ;;  %v1244_v56 = vld [vmem:[%s9337_s29 + $0x780] sm:$0xff]  ;;  %v1246_v57 = vld [vmem:[%s9337_s29 + $0x790] sm:$0xff] }
  0x4c   : > { %1125 = vst [vmem:[%s9342_s30 + $0x1e0] sm:$0xff] %v1124_v60  ;;  %v1248_v58 = vld [vmem:[%s9337_s29 + $0x7a0] sm:$0xff]  ;;  %v1250_v59 = vld [vmem:[%s9337_s29 + $0x7b0] sm:$0xff] }
  0x4d   : > { %1127 = vst [vmem:[%s9342_s30 + $0x1e8] sm:$0xff] %v1126_v61  ;;  %v1252_v60 = vld [vmem:[%s9337_s29 + $0x7c0] sm:$0xff]  ;;  %v1254_v61 = vld [vmem:[%s9337_s29 + $0x7d0] sm:$0xff] }
  0x4e   : > { %1129 = vst [vmem:[%s9342_s30 + $0x1f0] sm:$0xff] %v1128_v62  ;;  %v1256_v62 = vld [vmem:[%s9337_s29 + $0x7e0] sm:$0xff] }
  0x4f   : > { %1131 = vst [vmem:[%s9342_s30 + $0x1f8] sm:$0xff] %v1130_v63  ;;  %v1258_v63 = vld [vmem:[%s9337_s29 + $0x7f0] sm:$0xff] }
  0x50   : > { %1133 = vst [vmem:[%s9342_s30 + $0x200] sm:$0xff] %v1132_v0  ;;  %v1260_v0 = vld [vmem:[%s9337_s29 + $0x800] sm:$0xff] }
  0x51   : > { %1135 = vst [vmem:[%s9342_s30 + $0x208] sm:$0xff] %v1134_v1  ;;  %v1262_v1 = vld [vmem:[%s9337_s29 + $0x810] sm:$0xff] }
  0x52   : > { %1137 = vst [vmem:[%s9342_s30 + $0x210] sm:$0xff] %v1136_v2  ;;  %v1264_v2 = vld [vmem:[%s9337_s29 + $0x820] sm:$0xff] }
  0x53   : > { %1139 = vst [vmem:[%s9342_s30 + $0x218] sm:$0xff] %v1138_v3  ;;  %v1266_v3 = vld [vmem:[%s9337_s29 + $0x830] sm:$0xff] }
  0x54   : > { %1141 = vst [vmem:[%s9342_s30 + $0x220] sm:$0xff] %v1140_v4  ;;  %v1268_v4 = vld [vmem:[%s9337_s29 + $0x840] sm:$0xff] }
  0x55   : > { %1143 = vst [vmem:[%s9342_s30 + $0x228] sm:$0xff] %v1142_v5  ;;  %v1270_v5 = vld [vmem:[%s9337_s29 + $0x850] sm:$0xff] }
  0x56   : > { %1145 = vst [vmem:[%s9342_s30 + $0x230] sm:$0xff] %v1144_v6  ;;  %v1272_v6 = vld [vmem:[%s9337_s29 + $0x860] sm:$0xff] }
  0x57   : > { %1147 = vst [vmem:[%s9342_s30 + $0x238] sm:$0xff] %v1146_v7  ;;  %v1274_v7 = vld [vmem:[%s9337_s29 + $0x870] sm:$0xff] }
  0x58   : > { %1149 = vst [vmem:[%s9342_s30 + $0x240] sm:$0xff] %v1148_v8  ;;  %v1276_v8 = vld [vmem:[%s9337_s29 + $0x880] sm:$0xff] }
  0x59   : > { %1151 = vst [vmem:[%s9342_s30 + $0x248] sm:$0xff] %v1150_v9  ;;  %v1278_v9 = vld [vmem:[%s9337_s29 + $0x890] sm:$0xff] }
  0x5a   : > { %1153 = vst [vmem:[%s9342_s30 + $0x250] sm:$0xff] %v1152_v10  ;;  %v1280_v10 = vld [vmem:[%s9337_s29 + $0x8a0] sm:$0xff] }
  0x5b   : > { %1155 = vst [vmem:[%s9342_s30 + $0x258] sm:$0xff] %v1154_v11  ;;  %v1282_v11 = vld [vmem:[%s9337_s29 + $0x8b0] sm:$0xff] }
  0x5c   : > { %1157 = vst [vmem:[%s9342_s30 + $0x260] sm:$0xff] %v1156_v12  ;;  %v1284_v12 = vld [vmem:[%s9337_s29 + $0x8c0] sm:$0xff] }
  0x5d   : > { %1159 = vst [vmem:[%s9342_s30 + $0x268] sm:$0xff] %v1158_v13  ;;  %v1286_v13 = vld [vmem:[%s9337_s29 + $0x8d0] sm:$0xff] }
  0x5e   : > { %1161 = vst [vmem:[%s9342_s30 + $0x270] sm:$0xff] %v1160_v14  ;;  %v1288_v14 = vld [vmem:[%s9337_s29 + $0x8e0] sm:$0xff] }
  0x5f   : > { %1163 = vst [vmem:[%s9342_s30 + $0x278] sm:$0xff] %v1162_v15  ;;  %v1290_v15 = vld [vmem:[%s9337_s29 + $0x8f0] sm:$0xff] }
  0x60   : > { %1165 = vst [vmem:[%s9342_s30 + $0x280] sm:$0xff] %v1164_v16  ;;  %v1292_v16 = vld [vmem:[%s9337_s29 + $0x900] sm:$0xff] }
  0x61   : > { %1167 = vst [vmem:[%s9342_s30 + $0x288] sm:$0xff] %v1166_v17  ;;  %v1294_v17 = vld [vmem:[%s9337_s29 + $0x910] sm:$0xff] }
  0x62   : > { %1169 = vst [vmem:[%s9342_s30 + $0x290] sm:$0xff] %v1168_v18  ;;  %v1296_v18 = vld [vmem:[%s9337_s29 + $0x920] sm:$0xff] }
  0x63   : > { %1171 = vst [vmem:[%s9342_s30 + $0x298] sm:$0xff] %v1170_v19  ;;  %v1298_v19 = vld [vmem:[%s9337_s29 + $0x930] sm:$0xff] }
  0x64   : > { %1173 = vst [vmem:[%s9342_s30 + $0x2a0] sm:$0xff] %v1172_v20  ;;  %v1300_v20 = vld [vmem:[%s9337_s29 + $0x940] sm:$0xff] }
  0x65   : > { %1175 = vst [vmem:[%s9342_s30 + $0x2a8] sm:$0xff] %v1174_v21  ;;  %v1302_v21 = vld [vmem:[%s9337_s29 + $0x950] sm:$0xff] }
  0x66   : > { %1177 = vst [vmem:[%s9342_s30 + $0x2b0] sm:$0xff] %v1176_v22  ;;  %v1304_v22 = vld [vmem:[%s9337_s29 + $0x960] sm:$0xff] }
  0x67   : > { %1179 = vst [vmem:[%s9342_s30 + $0x2b8] sm:$0xff] %v1178_v23  ;;  %v1306_v23 = vld [vmem:[%s9337_s29 + $0x970] sm:$0xff] }
  0x68   : > { %1181 = vst [vmem:[%s9342_s30 + $0x2c0] sm:$0xff] %v1180_v24  ;;  %v1308_v24 = vld [vmem:[%s9337_s29 + $0x980] sm:$0xff] }
  0x69   : > { %1183 = vst [vmem:[%s9342_s30 + $0x2c8] sm:$0xff] %v1182_v25  ;;  %v1310_v25 = vld [vmem:[%s9337_s29 + $0x990] sm:$0xff] }
  0x6a   : > { %1185 = vst [vmem:[%s9342_s30 + $0x2d0] sm:$0xff] %v1184_v26  ;;  %v1312_v26 = vld [vmem:[%s9337_s29 + $0x9a0] sm:$0xff] }
  0x6b   : > { %1187 = vst [vmem:[%s9342_s30 + $0x2d8] sm:$0xff] %v1186_v27  ;;  %v1314_v27 = vld [vmem:[%s9337_s29 + $0x9b0] sm:$0xff] }
  0x6c   : > { %1189 = vst [vmem:[%s9342_s30 + $0x2e0] sm:$0xff] %v1188_v28  ;;  %v1316_v28 = vld [vmem:[%s9337_s29 + $0x9c0] sm:$0xff] }
  0x6d   : > { %1191 = vst [vmem:[%s9342_s30 + $0x2e8] sm:$0xff] %v1190_v29  ;;  %v1318_v29 = vld [vmem:[%s9337_s29 + $0x9d0] sm:$0xff] }
  0x6e   : > { %1193 = vst [vmem:[%s9342_s30 + $0x2f0] sm:$0xff] %v1192_v30  ;;  %v1320_v30 = vld [vmem:[%s9337_s29 + $0x9e0] sm:$0xff] }
  0x6f   : > { %1195 = vst [vmem:[%s9342_s30 + $0x2f8] sm:$0xff] %v1194_v31  ;;  %v1322_v31 = vld [vmem:[%s9337_s29 + $0x9f0] sm:$0xff] }
  0x70   : > { %1197 = vst [vmem:[%s9342_s30 + $0x300] sm:$0xff] %v1196_v32  ;;  %v1324_v32 = vld [vmem:[%s9337_s29 + $0xa00] sm:$0xff] }
  0x71   : > { %1199 = vst [vmem:[%s9342_s30 + $0x308] sm:$0xff] %v1198_v33  ;;  %v1326_v33 = vld [vmem:[%s9337_s29 + $0xa10] sm:$0xff] }
  0x72   : > { %1201 = vst [vmem:[%s9342_s30 + $0x310] sm:$0xff] %v1200_v34  ;;  %v1328_v34 = vld [vmem:[%s9337_s29 + $0xa20] sm:$0xff] }
  0x73   : > { %1203 = vst [vmem:[%s9342_s30 + $0x318] sm:$0xff] %v1202_v35  ;;  %v1330_v35 = vld [vmem:[%s9337_s29 + $0xa30] sm:$0xff] }
  0x74   : > { %1205 = vst [vmem:[%s9342_s30 + $0x320] sm:$0xff] %v1204_v36  ;;  %v1332_v36 = vld [vmem:[%s9337_s29 + $0xa40] sm:$0xff] }
  0x75   : > { %1207 = vst [vmem:[%s9342_s30 + $0x328] sm:$0xff] %v1206_v37  ;;  %v1334_v37 = vld [vmem:[%s9337_s29 + $0xa50] sm:$0xff] }
  0x76   : > { %1209 = vst [vmem:[%s9342_s30 + $0x330] sm:$0xff] %v1208_v38  ;;  %v1336_v38 = vld [vmem:[%s9337_s29 + $0xa60] sm:$0xff] }
  0x77   : > { %1211 = vst [vmem:[%s9342_s30 + $0x338] sm:$0xff] %v1210_v39  ;;  %v1338_v39 = vld [vmem:[%s9337_s29 + $0xa70] sm:$0xff] }
  0x78   : > { %1213 = vst [vmem:[%s9342_s30 + $0x340] sm:$0xff] %v1212_v40  ;;  %v1340_v40 = vld [vmem:[%s9337_s29 + $0xa80] sm:$0xff] }
  0x79   : > { %1215 = vst [vmem:[%s9342_s30 + $0x348] sm:$0xff] %v1214_v41  ;;  %v1342_v41 = vld [vmem:[%s9337_s29 + $0xa90] sm:$0xff] }
  0x7a   : > { %1217 = vst [vmem:[%s9342_s30 + $0x350] sm:$0xff] %v1216_v42  ;;  %v1344_v42 = vld [vmem:[%s9337_s29 + $0xaa0] sm:$0xff] }
  0x7b   : > { %1219 = vst [vmem:[%s9342_s30 + $0x358] sm:$0xff] %v1218_v43  ;;  %v1346_v43 = vld [vmem:[%s9337_s29 + $0xab0] sm:$0xff] }
  0x7c   : > { %1221 = vst [vmem:[%s9342_s30 + $0x360] sm:$0xff] %v1220_v44  ;;  %v1348_v44 = vld [vmem:[%s9337_s29 + $0xac0] sm:$0xff] }
  0x7d   : > { %1223 = vst [vmem:[%s9342_s30 + $0x368] sm:$0xff] %v1222_v45  ;;  %v1350_v45 = vld [vmem:[%s9337_s29 + $0xad0] sm:$0xff] }
  0x7e   : > { %1225 = vst [vmem:[%s9342_s30 + $0x370] sm:$0xff] %v1224_v46  ;;  %v1352_v46 = vld [vmem:[%s9337_s29 + $0xae0] sm:$0xff] }
  0x7f   : > { %1227 = vst [vmem:[%s9342_s30 + $0x378] sm:$0xff] %v1226_v47  ;;  %v1354_v47 = vld [vmem:[%s9337_s29 + $0xaf0] sm:$0xff] }
  0x80   : > { %1229 = vst [vmem:[%s9342_s30 + $0x380] sm:$0xff] %v1228_v48  ;;  %v1356_v48 = vld [vmem:[%s9337_s29 + $0xb00] sm:$0xff] }
  0x81   : > { %1231 = vst [vmem:[%s9342_s30 + $0x388] sm:$0xff] %v1230_v49  ;;  %v1358_v49 = vld [vmem:[%s9337_s29 + $0xb10] sm:$0xff] }
  0x82   : > { %1233 = vst [vmem:[%s9342_s30 + $0x390] sm:$0xff] %v1232_v50  ;;  %v1360_v50 = vld [vmem:[%s9337_s29 + $0xb20] sm:$0xff] }
  0x83   : > { %1235 = vst [vmem:[%s9342_s30 + $0x398] sm:$0xff] %v1234_v51  ;;  %v1362_v51 = vld [vmem:[%s9337_s29 + $0xb30] sm:$0xff] }
  0x84   : > { %1237 = vst [vmem:[%s9342_s30 + $0x3a0] sm:$0xff] %v1236_v52  ;;  %v1364_v52 = vld [vmem:[%s9337_s29 + $0xb40] sm:$0xff] }
  0x85   : > { %1239 = vst [vmem:[%s9342_s30 + $0x3a8] sm:$0xff] %v1238_v53  ;;  %v1366_v53 = vld [vmem:[%s9337_s29 + $0xb50] sm:$0xff] }
  0x86   : > { %1241 = vst [vmem:[%s9342_s30 + $0x3b0] sm:$0xff] %v1240_v54  ;;  %v1368_v54 = vld [vmem:[%s9337_s29 + $0xb60] sm:$0xff] }
  0x87   : > { %1243 = vst [vmem:[%s9342_s30 + $0x3b8] sm:$0xff] %v1242_v55  ;;  %v1370_v55 = vld [vmem:[%s9337_s29 + $0xb70] sm:$0xff] }
  0x88   : > { %1245 = vst [vmem:[%s9342_s30 + $0x3c0] sm:$0xff] %v1244_v56  ;;  %v1372_v56 = vld [vmem:[%s9337_s29 + $0xb80] sm:$0xff] }
  0x89   : > { %1247 = vst [vmem:[%s9342_s30 + $0x3c8] sm:$0xff] %v1246_v57  ;;  %v1374_v57 = vld [vmem:[%s9337_s29 + $0xb90] sm:$0xff] }
  0x8a   : > { %1249 = vst [vmem:[%s9342_s30 + $0x3d0] sm:$0xff] %v1248_v58  ;;  %v1376_v58 = vld [vmem:[%s9337_s29 + $0xba0] sm:$0xff] }
  0x8b   : > { %1251 = vst [vmem:[%s9342_s30 + $0x3d8] sm:$0xff] %v1250_v59  ;;  %v1378_v59 = vld [vmem:[%s9337_s29 + $0xbb0] sm:$0xff] }
  0x8c   : > { %1253 = vst [vmem:[%s9342_s30 + $0x3e0] sm:$0xff] %v1252_v60  ;;  %v1380_v60 = vld [vmem:[%s9337_s29 + $0xbc0] sm:$0xff] }
  0x8d   : > { %1255 = vst [vmem:[%s9342_s30 + $0x3e8] sm:$0xff] %v1254_v61  ;;  %v1382_v61 = vld [vmem:[%s9337_s29 + $0xbd0] sm:$0xff] }
  0x8e   : > { %1257 = vst [vmem:[%s9342_s30 + $0x3f0] sm:$0xff] %v1256_v62  ;;  %v1384_v62 = vld [vmem:[%s9337_s29 + $0xbe0] sm:$0xff] }
  0x8f   : > { %1259 = vst [vmem:[%s9342_s30 + $0x3f8] sm:$0xff] %v1258_v63  ;;  %v1386_v63 = vld [vmem:[%s9337_s29 + $0xbf0] sm:$0xff] }
  0x90   : > { %1261 = vst [vmem:[%s9342_s30 + $0x400] sm:$0xff] %v1260_v0  ;;  %v1388_v0 = vld [vmem:[%s9337_s29 + $0xc00] sm:$0xff] }
  0x91   : > { %1263 = vst [vmem:[%s9342_s30 + $0x408] sm:$0xff] %v1262_v1  ;;  %v1390_v1 = vld [vmem:[%s9337_s29 + $0xc10] sm:$0xff] }
  0x92   : > { %1265 = vst [vmem:[%s9342_s30 + $0x410] sm:$0xff] %v1264_v2  ;;  %v1392_v2 = vld [vmem:[%s9337_s29 + $0xc20] sm:$0xff] }
  0x93   : > { %1267 = vst [vmem:[%s9342_s30 + $0x418] sm:$0xff] %v1266_v3  ;;  %v1394_v3 = vld [vmem:[%s9337_s29 + $0xc30] sm:$0xff] }
  0x94   : > { %1269 = vst [vmem:[%s9342_s30 + $0x420] sm:$0xff] %v1268_v4  ;;  %v1396_v4 = vld [vmem:[%s9337_s29 + $0xc40] sm:$0xff] }
  0x95   : > { %1271 = vst [vmem:[%s9342_s30 + $0x428] sm:$0xff] %v1270_v5  ;;  %v1398_v5 = vld [vmem:[%s9337_s29 + $0xc50] sm:$0xff] }
  0x96   : > { %1273 = vst [vmem:[%s9342_s30 + $0x430] sm:$0xff] %v1272_v6  ;;  %v1400_v6 = vld [vmem:[%s9337_s29 + $0xc60] sm:$0xff] }
  0x97   : > { %1275 = vst [vmem:[%s9342_s30 + $0x438] sm:$0xff] %v1274_v7  ;;  %v1402_v7 = vld [vmem:[%s9337_s29 + $0xc70] sm:$0xff] }
  0x98   : > { %1277 = vst [vmem:[%s9342_s30 + $0x440] sm:$0xff] %v1276_v8  ;;  %v1404_v8 = vld [vmem:[%s9337_s29 + $0xc80] sm:$0xff] }
  0x99   : > { %1279 = vst [vmem:[%s9342_s30 + $0x448] sm:$0xff] %v1278_v9  ;;  %v1406_v9 = vld [vmem:[%s9337_s29 + $0xc90] sm:$0xff] }
  0x9a   : > { %1281 = vst [vmem:[%s9342_s30 + $0x450] sm:$0xff] %v1280_v10  ;;  %v1408_v10 = vld [vmem:[%s9337_s29 + $0xca0] sm:$0xff] }
  0x9b   : > { %1283 = vst [vmem:[%s9342_s30 + $0x458] sm:$0xff] %v1282_v11  ;;  %v1410_v11 = vld [vmem:[%s9337_s29 + $0xcb0] sm:$0xff] }
  0x9c   : > { %1285 = vst [vmem:[%s9342_s30 + $0x460] sm:$0xff] %v1284_v12  ;;  %v1412_v12 = vld [vmem:[%s9337_s29 + $0xcc0] sm:$0xff] }
  0x9d   : > { %1287 = vst [vmem:[%s9342_s30 + $0x468] sm:$0xff] %v1286_v13  ;;  %v1414_v13 = vld [vmem:[%s9337_s29 + $0xcd0] sm:$0xff] }
  0x9e   : > { %1289 = vst [vmem:[%s9342_s30 + $0x470] sm:$0xff] %v1288_v14  ;;  %v1416_v14 = vld [vmem:[%s9337_s29 + $0xce0] sm:$0xff] }
  0x9f   : > { %1291 = vst [vmem:[%s9342_s30 + $0x478] sm:$0xff] %v1290_v15  ;;  %v1418_v15 = vld [vmem:[%s9337_s29 + $0xcf0] sm:$0xff] }
  0xa0   : > { %1293 = vst [vmem:[%s9342_s30 + $0x480] sm:$0xff] %v1292_v16  ;;  %v1420_v16 = vld [vmem:[%s9337_s29 + $0xd00] sm:$0xff] }
  0xa1   : > { %1295 = vst [vmem:[%s9342_s30 + $0x488] sm:$0xff] %v1294_v17  ;;  %v1422_v17 = vld [vmem:[%s9337_s29 + $0xd10] sm:$0xff] }
  0xa2   : > { %1297 = vst [vmem:[%s9342_s30 + $0x490] sm:$0xff] %v1296_v18  ;;  %v1424_v18 = vld [vmem:[%s9337_s29 + $0xd20] sm:$0xff] }
  0xa3   : > { %1299 = vst [vmem:[%s9342_s30 + $0x498] sm:$0xff] %v1298_v19  ;;  %v1426_v19 = vld [vmem:[%s9337_s29 + $0xd30] sm:$0xff] }
  0xa4   : > { %1301 = vst [vmem:[%s9342_s30 + $0x4a0] sm:$0xff] %v1300_v20  ;;  %v1428_v20 = vld [vmem:[%s9337_s29 + $0xd40] sm:$0xff] }
  0xa5   : > { %1303 = vst [vmem:[%s9342_s30 + $0x4a8] sm:$0xff] %v1302_v21  ;;  %v1430_v21 = vld [vmem:[%s9337_s29 + $0xd50] sm:$0xff] }
  0xa6   : > { %1305 = vst [vmem:[%s9342_s30 + $0x4b0] sm:$0xff] %v1304_v22  ;;  %v1432_v22 = vld [vmem:[%s9337_s29 + $0xd60] sm:$0xff] }
  0xa7   : > { %1307 = vst [vmem:[%s9342_s30 + $0x4b8] sm:$0xff] %v1306_v23  ;;  %v1434_v23 = vld [vmem:[%s9337_s29 + $0xd70] sm:$0xff] }
  0xa8   : > { %1309 = vst [vmem:[%s9342_s30 + $0x4c0] sm:$0xff] %v1308_v24  ;;  %v1436_v24 = vld [vmem:[%s9337_s29 + $0xd80] sm:$0xff] }
  0xa9   : > { %1311 = vst [vmem:[%s9342_s30 + $0x4c8] sm:$0xff] %v1310_v25  ;;  %v1438_v25 = vld [vmem:[%s9337_s29 + $0xd90] sm:$0xff] }
  0xaa   : > { %1313 = vst [vmem:[%s9342_s30 + $0x4d0] sm:$0xff] %v1312_v26  ;;  %v1440_v26 = vld [vmem:[%s9337_s29 + $0xda0] sm:$0xff] }
  0xab   : > { %1315 = vst [vmem:[%s9342_s30 + $0x4d8] sm:$0xff] %v1314_v27  ;;  %v1442_v27 = vld [vmem:[%s9337_s29 + $0xdb0] sm:$0xff] }
  0xac   : > { %1317 = vst [vmem:[%s9342_s30 + $0x4e0] sm:$0xff] %v1316_v28  ;;  %v1444_v28 = vld [vmem:[%s9337_s29 + $0xdc0] sm:$0xff] }
  0xad   : > { %1319 = vst [vmem:[%s9342_s30 + $0x4e8] sm:$0xff] %v1318_v29  ;;  %v1446_v29 = vld [vmem:[%s9337_s29 + $0xdd0] sm:$0xff] }
  0xae   : > { %1321 = vst [vmem:[%s9342_s30 + $0x4f0] sm:$0xff] %v1320_v30  ;;  %v1448_v30 = vld [vmem:[%s9337_s29 + $0xde0] sm:$0xff] }
  0xaf   : > { %1323 = vst [vmem:[%s9342_s30 + $0x4f8] sm:$0xff] %v1322_v31  ;;  %v1450_v31 = vld [vmem:[%s9337_s29 + $0xdf0] sm:$0xff] }
  0xb0   : > { %1325 = vst [vmem:[%s9342_s30 + $0x500] sm:$0xff] %v1324_v32  ;;  %v1452_v32 = vld [vmem:[%s9337_s29 + $0xe00] sm:$0xff] }
  0xb1   : > { %1327 = vst [vmem:[%s9342_s30 + $0x508] sm:$0xff] %v1326_v33  ;;  %v1454_v33 = vld [vmem:[%s9337_s29 + $0xe10] sm:$0xff] }
  0xb2   : > { %1329 = vst [vmem:[%s9342_s30 + $0x510] sm:$0xff] %v1328_v34  ;;  %v1456_v34 = vld [vmem:[%s9337_s29 + $0xe20] sm:$0xff] }
  0xb3   : > { %1331 = vst [vmem:[%s9342_s30 + $0x518] sm:$0xff] %v1330_v35  ;;  %v1458_v35 = vld [vmem:[%s9337_s29 + $0xe30] sm:$0xff] }
  0xb4   : > { %1333 = vst [vmem:[%s9342_s30 + $0x520] sm:$0xff] %v1332_v36  ;;  %v1460_v36 = vld [vmem:[%s9337_s29 + $0xe40] sm:$0xff] }
  0xb5   : > { %1335 = vst [vmem:[%s9342_s30 + $0x528] sm:$0xff] %v1334_v37  ;;  %v1462_v37 = vld [vmem:[%s9337_s29 + $0xe50] sm:$0xff] }
  0xb6   : > { %1337 = vst [vmem:[%s9342_s30 + $0x530] sm:$0xff] %v1336_v38  ;;  %v1464_v38 = vld [vmem:[%s9337_s29 + $0xe60] sm:$0xff] }
  0xb7   : > { %1339 = vst [vmem:[%s9342_s30 + $0x538] sm:$0xff] %v1338_v39  ;;  %v1466_v39 = vld [vmem:[%s9337_s29 + $0xe70] sm:$0xff] }
  0xb8   : > { %1341 = vst [vmem:[%s9342_s30 + $0x540] sm:$0xff] %v1340_v40  ;;  %v1468_v40 = vld [vmem:[%s9337_s29 + $0xe80] sm:$0xff] }
  0xb9   : > { %1343 = vst [vmem:[%s9342_s30 + $0x548] sm:$0xff] %v1342_v41  ;;  %v1470_v41 = vld [vmem:[%s9337_s29 + $0xe90] sm:$0xff] }
  0xba   : > { %1345 = vst [vmem:[%s9342_s30 + $0x550] sm:$0xff] %v1344_v42  ;;  %v1472_v42 = vld [vmem:[%s9337_s29 + $0xea0] sm:$0xff] }
  0xbb   : > { %1347 = vst [vmem:[%s9342_s30 + $0x558] sm:$0xff] %v1346_v43  ;;  %v1474_v43 = vld [vmem:[%s9337_s29 + $0xeb0] sm:$0xff] }
  0xbc   : > { %1349 = vst [vmem:[%s9342_s30 + $0x560] sm:$0xff] %v1348_v44  ;;  %v1476_v44 = vld [vmem:[%s9337_s29 + $0xec0] sm:$0xff] }
  0xbd   : > { %1351 = vst [vmem:[%s9342_s30 + $0x568] sm:$0xff] %v1350_v45  ;;  %v1478_v45 = vld [vmem:[%s9337_s29 + $0xed0] sm:$0xff] }
  0xbe   : > { %1353 = vst [vmem:[%s9342_s30 + $0x570] sm:$0xff] %v1352_v46  ;;  %v1480_v46 = vld [vmem:[%s9337_s29 + $0xee0] sm:$0xff] }
  0xbf   : > { %1355 = vst [vmem:[%s9342_s30 + $0x578] sm:$0xff] %v1354_v47  ;;  %v1482_v47 = vld [vmem:[%s9337_s29 + $0xef0] sm:$0xff] }
  0xc0   : > { %1357 = vst [vmem:[%s9342_s30 + $0x580] sm:$0xff] %v1356_v48  ;;  %v1484_v48 = vld [vmem:[%s9337_s29 + $0xf00] sm:$0xff] }
  0xc1   : > { %1359 = vst [vmem:[%s9342_s30 + $0x588] sm:$0xff] %v1358_v49  ;;  %v1486_v49 = vld [vmem:[%s9337_s29 + $0xf10] sm:$0xff] }
  0xc2   : > { %1361 = vst [vmem:[%s9342_s30 + $0x590] sm:$0xff] %v1360_v50  ;;  %v1488_v50 = vld [vmem:[%s9337_s29 + $0xf20] sm:$0xff] }
  0xc3   : > { %1363 = vst [vmem:[%s9342_s30 + $0x598] sm:$0xff] %v1362_v51  ;;  %v1490_v51 = vld [vmem:[%s9337_s29 + $0xf30] sm:$0xff] }
  0xc4   : > { %1365 = vst [vmem:[%s9342_s30 + $0x5a0] sm:$0xff] %v1364_v52  ;;  %v1492_v52 = vld [vmem:[%s9337_s29 + $0xf40] sm:$0xff] }
  0xc5   : > { %1367 = vst [vmem:[%s9342_s30 + $0x5a8] sm:$0xff] %v1366_v53  ;;  %v1494_v53 = vld [vmem:[%s9337_s29 + $0xf50] sm:$0xff] }
  0xc6   : > { %1369 = vst [vmem:[%s9342_s30 + $0x5b0] sm:$0xff] %v1368_v54  ;;  %v1496_v54 = vld [vmem:[%s9337_s29 + $0xf60] sm:$0xff] }
  0xc7   : > { %1371 = vst [vmem:[%s9342_s30 + $0x5b8] sm:$0xff] %v1370_v55  ;;  %v1498_v55 = vld [vmem:[%s9337_s29 + $0xf70] sm:$0xff] }
  0xc8   : > { %1373 = vst [vmem:[%s9342_s30 + $0x5c0] sm:$0xff] %v1372_v56  ;;  %v1500_v56 = vld [vmem:[%s9337_s29 + $0xf80] sm:$0xff] }
  0xc9   : > { %1375 = vst [vmem:[%s9342_s30 + $0x5c8] sm:$0xff] %v1374_v57  ;;  %v1502_v57 = vld [vmem:[%s9337_s29 + $0xf90] sm:$0xff] }
  0xca   : > { %1377 = vst [vmem:[%s9342_s30 + $0x5d0] sm:$0xff] %v1376_v58  ;;  %v1504_v58 = vld [vmem:[%s9337_s29 + $0xfa0] sm:$0xff] }
  0xcb   : > { %1379 = vst [vmem:[%s9342_s30 + $0x5d8] sm:$0xff] %v1378_v59  ;;  %v1506_v59 = vld [vmem:[%s9337_s29 + $0xfb0] sm:$0xff] }
  0xcc   : > { %1381 = vst [vmem:[%s9342_s30 + $0x5e0] sm:$0xff] %v1380_v60  ;;  %v1508_v60 = vld [vmem:[%s9337_s29 + $0xfc0] sm:$0xff] }
  0xcd   : > { %1383 = vst [vmem:[%s9342_s30 + $0x5e8] sm:$0xff] %v1382_v61  ;;  %v1510_v61 = vld [vmem:[%s9337_s29 + $0xfd0] sm:$0xff] }
  0xce   : > { %1385 = vst [vmem:[%s9342_s30 + $0x5f0] sm:$0xff] %v1384_v62  ;;  %v1512_v62 = vld [vmem:[%s9337_s29 + $0xfe0] sm:$0xff] }
  0xcf   : > { %1387 = vst [vmem:[%s9342_s30 + $0x5f8] sm:$0xff] %v1386_v63  ;;  %v1514_v63 = vld [vmem:[%s9337_s29 + $0xff0] sm:$0xff] }
  0xd0   : > { %1389 = vst [vmem:[%s9342_s30 + $0x600] sm:$0xff] %v1388_v0  ;;  %v1516_v0 = vld [vmem:[%s9337_s29 + $0x1000] sm:$0xff] }
  0xd1   : > { %1391 = vst [vmem:[%s9342_s30 + $0x608] sm:$0xff] %v1390_v1  ;;  %v1518_v1 = vld [vmem:[%s9337_s29 + $0x1010] sm:$0xff] }
  0xd2   : > { %1393 = vst [vmem:[%s9342_s30 + $0x610] sm:$0xff] %v1392_v2  ;;  %v1520_v2 = vld [vmem:[%s9337_s29 + $0x1020] sm:$0xff] }
  0xd3   : > { %1395 = vst [vmem:[%s9342_s30 + $0x618] sm:$0xff] %v1394_v3  ;;  %v1522_v3 = vld [vmem:[%s9337_s29 + $0x1030] sm:$0xff] }
  0xd4   : > { %1397 = vst [vmem:[%s9342_s30 + $0x620] sm:$0xff] %v1396_v4  ;;  %v1524_v4 = vld [vmem:[%s9337_s29 + $0x1040] sm:$0xff] }
  0xd5   : > { %1399 = vst [vmem:[%s9342_s30 + $0x628] sm:$0xff] %v1398_v5  ;;  %v1526_v5 = vld [vmem:[%s9337_s29 + $0x1050] sm:$0xff] }
  0xd6   : > { %1401 = vst [vmem:[%s9342_s30 + $0x630] sm:$0xff] %v1400_v6  ;;  %v1528_v6 = vld [vmem:[%s9337_s29 + $0x1060] sm:$0xff] }
  0xd7   : > { %1403 = vst [vmem:[%s9342_s30 + $0x638] sm:$0xff] %v1402_v7  ;;  %v1530_v7 = vld [vmem:[%s9337_s29 + $0x1070] sm:$0xff] }
  0xd8   : > { %1405 = vst [vmem:[%s9342_s30 + $0x640] sm:$0xff] %v1404_v8  ;;  %v1532_v8 = vld [vmem:[%s9337_s29 + $0x1080] sm:$0xff] }
  0xd9   : > { %1407 = vst [vmem:[%s9342_s30 + $0x648] sm:$0xff] %v1406_v9  ;;  %v1534_v9 = vld [vmem:[%s9337_s29 + $0x1090] sm:$0xff] }
  0xda   : > { %1409 = vst [vmem:[%s9342_s30 + $0x650] sm:$0xff] %v1408_v10  ;;  %v1536_v10 = vld [vmem:[%s9337_s29 + $0x10a0] sm:$0xff] }
  0xdb   : > { %1411 = vst [vmem:[%s9342_s30 + $0x658] sm:$0xff] %v1410_v11  ;;  %v1538_v11 = vld [vmem:[%s9337_s29 + $0x10b0] sm:$0xff] }
  0xdc   : > { %1413 = vst [vmem:[%s9342_s30 + $0x660] sm:$0xff] %v1412_v12  ;;  %v1540_v12 = vld [vmem:[%s9337_s29 + $0x10c0] sm:$0xff] }
  0xdd   : > { %1415 = vst [vmem:[%s9342_s30 + $0x668] sm:$0xff] %v1414_v13  ;;  %v1542_v13 = vld [vmem:[%s9337_s29 + $0x10d0] sm:$0xff] }
  0xde   : > { %1417 = vst [vmem:[%s9342_s30 + $0x670] sm:$0xff] %v1416_v14  ;;  %v1544_v14 = vld [vmem:[%s9337_s29 + $0x10e0] sm:$0xff] }
  0xdf   : > { %1419 = vst [vmem:[%s9342_s30 + $0x678] sm:$0xff] %v1418_v15  ;;  %v1546_v15 = vld [vmem:[%s9337_s29 + $0x10f0] sm:$0xff] }
  0xe0   : > { %1421 = vst [vmem:[%s9342_s30 + $0x680] sm:$0xff] %v1420_v16  ;;  %v1548_v16 = vld [vmem:[%s9337_s29 + $0x1100] sm:$0xff] }
  0xe1   : > { %1423 = vst [vmem:[%s9342_s30 + $0x688] sm:$0xff] %v1422_v17  ;;  %v1550_v17 = vld [vmem:[%s9337_s29 + $0x1110] sm:$0xff] }
  0xe2   : > { %1425 = vst [vmem:[%s9342_s30 + $0x690] sm:$0xff] %v1424_v18  ;;  %v1552_v18 = vld [vmem:[%s9337_s29 + $0x1120] sm:$0xff] }
  0xe3   : > { %1427 = vst [vmem:[%s9342_s30 + $0x698] sm:$0xff] %v1426_v19  ;;  %v1554_v19 = vld [vmem:[%s9337_s29 + $0x1130] sm:$0xff] }
  0xe4   : > { %1429 = vst [vmem:[%s9342_s30 + $0x6a0] sm:$0xff] %v1428_v20  ;;  %v1556_v20 = vld [vmem:[%s9337_s29 + $0x1140] sm:$0xff] }
  0xe5   : > { %1431 = vst [vmem:[%s9342_s30 + $0x6a8] sm:$0xff] %v1430_v21  ;;  %v1558_v21 = vld [vmem:[%s9337_s29 + $0x1150] sm:$0xff] }
  0xe6   : > { %1433 = vst [vmem:[%s9342_s30 + $0x6b0] sm:$0xff] %v1432_v22  ;;  %v1560_v22 = vld [vmem:[%s9337_s29 + $0x1160] sm:$0xff] }
  0xe7   : > { %1435 = vst [vmem:[%s9342_s30 + $0x6b8] sm:$0xff] %v1434_v23  ;;  %v1562_v23 = vld [vmem:[%s9337_s29 + $0x1170] sm:$0xff] }
  0xe8   : > { %1437 = vst [vmem:[%s9342_s30 + $0x6c0] sm:$0xff] %v1436_v24  ;;  %v1564_v24 = vld [vmem:[%s9337_s29 + $0x1180] sm:$0xff] }
  0xe9   : > { %1439 = vst [vmem:[%s9342_s30 + $0x6c8] sm:$0xff] %v1438_v25  ;;  %v1566_v25 = vld [vmem:[%s9337_s29 + $0x1190] sm:$0xff] }
  0xea   : > { %1441 = vst [vmem:[%s9342_s30 + $0x6d0] sm:$0xff] %v1440_v26  ;;  %v1568_v26 = vld [vmem:[%s9337_s29 + $0x11a0] sm:$0xff] }
  0xeb   : > { %1443 = vst [vmem:[%s9342_s30 + $0x6d8] sm:$0xff] %v1442_v27  ;;  %v1570_v27 = vld [vmem:[%s9337_s29 + $0x11b0] sm:$0xff] }
  0xec   : > { %1445 = vst [vmem:[%s9342_s30 + $0x6e0] sm:$0xff] %v1444_v28  ;;  %v1572_v28 = vld [vmem:[%s9337_s29 + $0x11c0] sm:$0xff] }
  0xed   : > { %1447 = vst [vmem:[%s9342_s30 + $0x6e8] sm:$0xff] %v1446_v29  ;;  %v1574_v29 = vld [vmem:[%s9337_s29 + $0x11d0] sm:$0xff] }
  0xee   : > { %1449 = vst [vmem:[%s9342_s30 + $0x6f0] sm:$0xff] %v1448_v30  ;;  %v1576_v30 = vld [vmem:[%s9337_s29 + $0x11e0] sm:$0xff] }
  0xef   : > { %1451 = vst [vmem:[%s9342_s30 + $0x6f8] sm:$0xff] %v1450_v31  ;;  %v1578_v31 = vld [vmem:[%s9337_s29 + $0x11f0] sm:$0xff] }
  0xf0   : > { %1453 = vst [vmem:[%s9342_s30 + $0x700] sm:$0xff] %v1452_v32  ;;  %v1580_v32 = vld [vmem:[%s9337_s29 + $0x1200] sm:$0xff] }
  0xf1   : > { %1455 = vst [vmem:[%s9342_s30 + $0x708] sm:$0xff] %v1454_v33  ;;  %v1582_v33 = vld [vmem:[%s9337_s29 + $0x1210] sm:$0xff] }
  0xf2   : > { %1457 = vst [vmem:[%s9342_s30 + $0x710] sm:$0xff] %v1456_v34  ;;  %v1584_v34 = vld [vmem:[%s9337_s29 + $0x1220] sm:$0xff] }
  0xf3   : > { %1459 = vst [vmem:[%s9342_s30 + $0x718] sm:$0xff] %v1458_v35  ;;  %v1586_v35 = vld [vmem:[%s9337_s29 + $0x1230] sm:$0xff] }
  0xf4   : > { %1461 = vst [vmem:[%s9342_s30 + $0x720] sm:$0xff] %v1460_v36  ;;  %v1588_v36 = vld [vmem:[%s9337_s29 + $0x1240] sm:$0xff] }
  0xf5   : > { %1463 = vst [vmem:[%s9342_s30 + $0x728] sm:$0xff] %v1462_v37  ;;  %v1590_v37 = vld [vmem:[%s9337_s29 + $0x1250] sm:$0xff] }
  0xf6   : > { %1465 = vst [vmem:[%s9342_s30 + $0x730] sm:$0xff] %v1464_v38  ;;  %v1592_v38 = vld [vmem:[%s9337_s29 + $0x1260] sm:$0xff] }
  0xf7   : > { %1467 = vst [vmem:[%s9342_s30 + $0x738] sm:$0xff] %v1466_v39  ;;  %v1594_v39 = vld [vmem:[%s9337_s29 + $0x1270] sm:$0xff] }
  0xf8   : > { %1469 = vst [vmem:[%s9342_s30 + $0x740] sm:$0xff] %v1468_v40  ;;  %v1596_v40 = vld [vmem:[%s9337_s29 + $0x1280] sm:$0xff] }
  0xf9   : > { %1471 = vst [vmem:[%s9342_s30 + $0x748] sm:$0xff] %v1470_v41  ;;  %v1598_v41 = vld [vmem:[%s9337_s29 + $0x1290] sm:$0xff] }
  0xfa   : > { %1473 = vst [vmem:[%s9342_s30 + $0x750] sm:$0xff] %v1472_v42  ;;  %v1600_v42 = vld [vmem:[%s9337_s29 + $0x12a0] sm:$0xff] }
  0xfb   : > { %1475 = vst [vmem:[%s9342_s30 + $0x758] sm:$0xff] %v1474_v43  ;;  %v1602_v43 = vld [vmem:[%s9337_s29 + $0x12b0] sm:$0xff] }
  0xfc   : > { %1477 = vst [vmem:[%s9342_s30 + $0x760] sm:$0xff] %v1476_v44  ;;  %v1604_v44 = vld [vmem:[%s9337_s29 + $0x12c0] sm:$0xff] }
  0xfd   : > { %1479 = vst [vmem:[%s9342_s30 + $0x768] sm:$0xff] %v1478_v45  ;;  %v1606_v45 = vld [vmem:[%s9337_s29 + $0x12d0] sm:$0xff] }
  0xfe   : > { %1481 = vst [vmem:[%s9342_s30 + $0x770] sm:$0xff] %v1480_v46  ;;  %v1608_v46 = vld [vmem:[%s9337_s29 + $0x12e0] sm:$0xff] }
  0xff   : > { %1483 = vst [vmem:[%s9342_s30 + $0x778] sm:$0xff] %v1482_v47  ;;  %v1610_v47 = vld [vmem:[%s9337_s29 + $0x12f0] sm:$0xff] }
 0x100   : > { %1485 = vst [vmem:[%s9342_s30 + $0x780] sm:$0xff] %v1484_v48  ;;  %v1612_v48 = vld [vmem:[%s9337_s29 + $0x1300] sm:$0xff] }
 0x101   : > { %1487 = vst [vmem:[%s9342_s30 + $0x788] sm:$0xff] %v1486_v49  ;;  %v1614_v49 = vld [vmem:[%s9337_s29 + $0x1310] sm:$0xff] }
 0x102   : > { %1489 = vst [vmem:[%s9342_s30 + $0x790] sm:$0xff] %v1488_v50  ;;  %v1616_v50 = vld [vmem:[%s9337_s29 + $0x1320] sm:$0xff] }
 0x103   : > { %1491 = vst [vmem:[%s9342_s30 + $0x798] sm:$0xff] %v1490_v51  ;;  %v1618_v51 = vld [vmem:[%s9337_s29 + $0x1330] sm:$0xff] }
 0x104   : > { %1493 = vst [vmem:[%s9342_s30 + $0x7a0] sm:$0xff] %v1492_v52  ;;  %v1620_v52 = vld [vmem:[%s9337_s29 + $0x1340] sm:$0xff] }
 0x105   : > { %1495 = vst [vmem:[%s9342_s30 + $0x7a8] sm:$0xff] %v1494_v53  ;;  %v1622_v53 = vld [vmem:[%s9337_s29 + $0x1350] sm:$0xff] }
 0x106   : > { %1497 = vst [vmem:[%s9342_s30 + $0x7b0] sm:$0xff] %v1496_v54  ;;  %v1624_v54 = vld [vmem:[%s9337_s29 + $0x1360] sm:$0xff] }
 0x107   : > { %1499 = vst [vmem:[%s9342_s30 + $0x7b8] sm:$0xff] %v1498_v55  ;;  %v1626_v55 = vld [vmem:[%s9337_s29 + $0x1370] sm:$0xff] }
 0x108   : > { %1501 = vst [vmem:[%s9342_s30 + $0x7c0] sm:$0xff] %v1500_v56  ;;  %v1628_v56 = vld [vmem:[%s9337_s29 + $0x1380] sm:$0xff] }
 0x109   : > { %1503 = vst [vmem:[%s9342_s30 + $0x7c8] sm:$0xff] %v1502_v57  ;;  %v1630_v57 = vld [vmem:[%s9337_s29 + $0x1390] sm:$0xff] }
 0x10a   : > { %1505 = vst [vmem:[%s9342_s30 + $0x7d0] sm:$0xff] %v1504_v58  ;;  %v1632_v58 = vld [vmem:[%s9337_s29 + $0x13a0] sm:$0xff] }
 0x10b   : > { %1507 = vst [vmem:[%s9342_s30 + $0x7d8] sm:$0xff] %v1506_v59  ;;  %v1634_v59 = vld [vmem:[%s9337_s29 + $0x13b0] sm:$0xff] }
 0x10c   : > { %1509 = vst [vmem:[%s9342_s30 + $0x7e0] sm:$0xff] %v1508_v60  ;;  %v1636_v60 = vld [vmem:[%s9337_s29 + $0x13c0] sm:$0xff] }
 0x10d   : > { %1511 = vst [vmem:[%s9342_s30 + $0x7e8] sm:$0xff] %v1510_v61  ;;  %v1638_v61 = vld [vmem:[%s9337_s29 + $0x13d0] sm:$0xff] }
 0x10e   : > { %1513 = vst [vmem:[%s9342_s30 + $0x7f0] sm:$0xff] %v1512_v62  ;;  %v1640_v62 = vld [vmem:[%s9337_s29 + $0x13e0] sm:$0xff] }
 0x10f   : > { %1515 = vst [vmem:[%s9342_s30 + $0x7f8] sm:$0xff] %v1514_v63  ;;  %v1642_v63 = vld [vmem:[%s9337_s29 + $0x13f0] sm:$0xff] }
 0x110   : > { %1517 = vst [vmem:[%s9342_s30 + $0x800] sm:$0xff] %v1516_v0  ;;  %v1644_v0 = vld [vmem:[%s9337_s29 + $0x1400] sm:$0xff] }
 0x111   : > { %1519 = vst [vmem:[%s9342_s30 + $0x808] sm:$0xff] %v1518_v1  ;;  %v1646_v1 = vld [vmem:[%s9337_s29 + $0x1410] sm:$0xff] }
 0x112   : > { %1521 = vst [vmem:[%s9342_s30 + $0x810] sm:$0xff] %v1520_v2  ;;  %v1648_v2 = vld [vmem:[%s9337_s29 + $0x1420] sm:$0xff] }
 0x113   : > { %1523 = vst [vmem:[%s9342_s30 + $0x818] sm:$0xff] %v1522_v3  ;;  %v1650_v3 = vld [vmem:[%s9337_s29 + $0x1430] sm:$0xff] }
 0x114   : > { %1525 = vst [vmem:[%s9342_s30 + $0x820] sm:$0xff] %v1524_v4  ;;  %v1652_v4 = vld [vmem:[%s9337_s29 + $0x1440] sm:$0xff] }
 0x115   : > { %1527 = vst [vmem:[%s9342_s30 + $0x828] sm:$0xff] %v1526_v5  ;;  %v1654_v5 = vld [vmem:[%s9337_s29 + $0x1450] sm:$0xff] }
 0x116   : > { %1529 = vst [vmem:[%s9342_s30 + $0x830] sm:$0xff] %v1528_v6  ;;  %v1656_v6 = vld [vmem:[%s9337_s29 + $0x1460] sm:$0xff] }
 0x117   : > { %1531 = vst [vmem:[%s9342_s30 + $0x838] sm:$0xff] %v1530_v7  ;;  %v1658_v7 = vld [vmem:[%s9337_s29 + $0x1470] sm:$0xff] }
 0x118   : > { %1533 = vst [vmem:[%s9342_s30 + $0x840] sm:$0xff] %v1532_v8  ;;  %v1660_v8 = vld [vmem:[%s9337_s29 + $0x1480] sm:$0xff] }
 0x119   : > { %1535 = vst [vmem:[%s9342_s30 + $0x848] sm:$0xff] %v1534_v9  ;;  %v1662_v9 = vld [vmem:[%s9337_s29 + $0x1490] sm:$0xff] }
 0x11a   : > { %1537 = vst [vmem:[%s9342_s30 + $0x850] sm:$0xff] %v1536_v10  ;;  %v1664_v10 = vld [vmem:[%s9337_s29 + $0x14a0] sm:$0xff] }
 0x11b   : > { %1539 = vst [vmem:[%s9342_s30 + $0x858] sm:$0xff] %v1538_v11  ;;  %v1666_v11 = vld [vmem:[%s9337_s29 + $0x14b0] sm:$0xff] }
 0x11c   : > { %1541 = vst [vmem:[%s9342_s30 + $0x860] sm:$0xff] %v1540_v12  ;;  %v1668_v12 = vld [vmem:[%s9337_s29 + $0x14c0] sm:$0xff] }
 0x11d   : > { %1543 = vst [vmem:[%s9342_s30 + $0x868] sm:$0xff] %v1542_v13  ;;  %v1670_v13 = vld [vmem:[%s9337_s29 + $0x14d0] sm:$0xff] }
 0x11e   : > { %1545 = vst [vmem:[%s9342_s30 + $0x870] sm:$0xff] %v1544_v14  ;;  %v1672_v14 = vld [vmem:[%s9337_s29 + $0x14e0] sm:$0xff] }
 0x11f   : > { %1547 = vst [vmem:[%s9342_s30 + $0x878] sm:$0xff] %v1546_v15  ;;  %v1674_v15 = vld [vmem:[%s9337_s29 + $0x14f0] sm:$0xff] }
 0x120   : > { %1549 = vst [vmem:[%s9342_s30 + $0x880] sm:$0xff] %v1548_v16  ;;  %v1676_v16 = vld [vmem:[%s9337_s29 + $0x1500] sm:$0xff] }
 0x121   : > { %1551 = vst [vmem:[%s9342_s30 + $0x888] sm:$0xff] %v1550_v17  ;;  %v1678_v17 = vld [vmem:[%s9337_s29 + $0x1510] sm:$0xff] }
 0x122   : > { %1553 = vst [vmem:[%s9342_s30 + $0x890] sm:$0xff] %v1552_v18  ;;  %v1680_v18 = vld [vmem:[%s9337_s29 + $0x1520] sm:$0xff] }
 0x123   : > { %1555 = vst [vmem:[%s9342_s30 + $0x898] sm:$0xff] %v1554_v19  ;;  %v1682_v19 = vld [vmem:[%s9337_s29 + $0x1530] sm:$0xff] }
 0x124   : > { %1557 = vst [vmem:[%s9342_s30 + $0x8a0] sm:$0xff] %v1556_v20  ;;  %v1684_v20 = vld [vmem:[%s9337_s29 + $0x1540] sm:$0xff] }
 0x125   : > { %1559 = vst [vmem:[%s9342_s30 + $0x8a8] sm:$0xff] %v1558_v21  ;;  %v1686_v21 = vld [vmem:[%s9337_s29 + $0x1550] sm:$0xff] }
 0x126   : > { %1561 = vst [vmem:[%s9342_s30 + $0x8b0] sm:$0xff] %v1560_v22  ;;  %v1688_v22 = vld [vmem:[%s9337_s29 + $0x1560] sm:$0xff] }
 0x127   : > { %1563 = vst [vmem:[%s9342_s30 + $0x8b8] sm:$0xff] %v1562_v23  ;;  %v1690_v23 = vld [vmem:[%s9337_s29 + $0x1570] sm:$0xff] }
 0x128   : > { %1565 = vst [vmem:[%s9342_s30 + $0x8c0] sm:$0xff] %v1564_v24  ;;  %v1692_v24 = vld [vmem:[%s9337_s29 + $0x1580] sm:$0xff] }
 0x129   : > { %1567 = vst [vmem:[%s9342_s30 + $0x8c8] sm:$0xff] %v1566_v25  ;;  %v1694_v25 = vld [vmem:[%s9337_s29 + $0x1590] sm:$0xff] }
 0x12a   : > { %1569 = vst [vmem:[%s9342_s30 + $0x8d0] sm:$0xff] %v1568_v26  ;;  %v1696_v26 = vld [vmem:[%s9337_s29 + $0x15a0] sm:$0xff] }
 0x12b   : > { %1571 = vst [vmem:[%s9342_s30 + $0x8d8] sm:$0xff] %v1570_v27  ;;  %v1698_v27 = vld [vmem:[%s9337_s29 + $0x15b0] sm:$0xff] }
 0x12c   : > { %1573 = vst [vmem:[%s9342_s30 + $0x8e0] sm:$0xff] %v1572_v28  ;;  %v1700_v28 = vld [vmem:[%s9337_s29 + $0x15c0] sm:$0xff] }
 0x12d   : > { %1575 = vst [vmem:[%s9342_s30 + $0x8e8] sm:$0xff] %v1574_v29  ;;  %v1702_v29 = vld [vmem:[%s9337_s29 + $0x15d0] sm:$0xff] }
 0x12e   : > { %1577 = vst [vmem:[%s9342_s30 + $0x8f0] sm:$0xff] %v1576_v30  ;;  %v1704_v30 = vld [vmem:[%s9337_s29 + $0x15e0] sm:$0xff] }
 0x12f   : > { %1579 = vst [vmem:[%s9342_s30 + $0x8f8] sm:$0xff] %v1578_v31  ;;  %v1706_v31 = vld [vmem:[%s9337_s29 + $0x15f0] sm:$0xff] }
 0x130   : > { %1581 = vst [vmem:[%s9342_s30 + $0x900] sm:$0xff] %v1580_v32  ;;  %v1708_v32 = vld [vmem:[%s9337_s29 + $0x1600] sm:$0xff] }
 0x131   : > { %1583 = vst [vmem:[%s9342_s30 + $0x908] sm:$0xff] %v1582_v33  ;;  %v1710_v33 = vld [vmem:[%s9337_s29 + $0x1610] sm:$0xff] }
 0x132   : > { %1585 = vst [vmem:[%s9342_s30 + $0x910] sm:$0xff] %v1584_v34  ;;  %v1712_v34 = vld [vmem:[%s9337_s29 + $0x1620] sm:$0xff] }
 0x133   : > { %1587 = vst [vmem:[%s9342_s30 + $0x918] sm:$0xff] %v1586_v35  ;;  %v1714_v35 = vld [vmem:[%s9337_s29 + $0x1630] sm:$0xff] }
 0x134   : > { %1589 = vst [vmem:[%s9342_s30 + $0x920] sm:$0xff] %v1588_v36  ;;  %v1716_v36 = vld [vmem:[%s9337_s29 + $0x1640] sm:$0xff] }
 0x135   : > { %1591 = vst [vmem:[%s9342_s30 + $0x928] sm:$0xff] %v1590_v37  ;;  %v1718_v37 = vld [vmem:[%s9337_s29 + $0x1650] sm:$0xff] }
 0x136   : > { %1593 = vst [vmem:[%s9342_s30 + $0x930] sm:$0xff] %v1592_v38  ;;  %v1720_v38 = vld [vmem:[%s9337_s29 + $0x1660] sm:$0xff] }
 0x137   : > { %1595 = vst [vmem:[%s9342_s30 + $0x938] sm:$0xff] %v1594_v39  ;;  %v1722_v39 = vld [vmem:[%s9337_s29 + $0x1670] sm:$0xff] }
 0x138   : > { %1597 = vst [vmem:[%s9342_s30 + $0x940] sm:$0xff] %v1596_v40  ;;  %v1724_v40 = vld [vmem:[%s9337_s29 + $0x1680] sm:$0xff] }
 0x139   : > { %1599 = vst [vmem:[%s9342_s30 + $0x948] sm:$0xff] %v1598_v41  ;;  %v1726_v41 = vld [vmem:[%s9337_s29 + $0x1690] sm:$0xff] }
 0x13a   : > { %1601 = vst [vmem:[%s9342_s30 + $0x950] sm:$0xff] %v1600_v42  ;;  %v1728_v42 = vld [vmem:[%s9337_s29 + $0x16a0] sm:$0xff] }
 0x13b   : > { %1603 = vst [vmem:[%s9342_s30 + $0x958] sm:$0xff] %v1602_v43  ;;  %v1730_v43 = vld [vmem:[%s9337_s29 + $0x16b0] sm:$0xff] }
 0x13c   : > { %1605 = vst [vmem:[%s9342_s30 + $0x960] sm:$0xff] %v1604_v44  ;;  %v1732_v44 = vld [vmem:[%s9337_s29 + $0x16c0] sm:$0xff] }
 0x13d   : > { %1607 = vst [vmem:[%s9342_s30 + $0x968] sm:$0xff] %v1606_v45  ;;  %v1734_v45 = vld [vmem:[%s9337_s29 + $0x16d0] sm:$0xff] }
 0x13e   : > { %1609 = vst [vmem:[%s9342_s30 + $0x970] sm:$0xff] %v1608_v46  ;;  %v1736_v46 = vld [vmem:[%s9337_s29 + $0x16e0] sm:$0xff] }
 0x13f   : > { %1611 = vst [vmem:[%s9342_s30 + $0x978] sm:$0xff] %v1610_v47  ;;  %v1738_v47 = vld [vmem:[%s9337_s29 + $0x16f0] sm:$0xff] }
 0x140   : > { %1613 = vst [vmem:[%s9342_s30 + $0x980] sm:$0xff] %v1612_v48  ;;  %v1740_v48 = vld [vmem:[%s9337_s29 + $0x1700] sm:$0xff] }
 0x141   : > { %1615 = vst [vmem:[%s9342_s30 + $0x988] sm:$0xff] %v1614_v49  ;;  %v1742_v49 = vld [vmem:[%s9337_s29 + $0x1710] sm:$0xff] }
 0x142   : > { %1617 = vst [vmem:[%s9342_s30 + $0x990] sm:$0xff] %v1616_v50  ;;  %v1744_v50 = vld [vmem:[%s9337_s29 + $0x1720] sm:$0xff] }
 0x143   : > { %1619 = vst [vmem:[%s9342_s30 + $0x998] sm:$0xff] %v1618_v51  ;;  %v1746_v51 = vld [vmem:[%s9337_s29 + $0x1730] sm:$0xff] }
 0x144   : > { %1621 = vst [vmem:[%s9342_s30 + $0x9a0] sm:$0xff] %v1620_v52  ;;  %v1748_v52 = vld [vmem:[%s9337_s29 + $0x1740] sm:$0xff] }
 0x145   : > { %1623 = vst [vmem:[%s9342_s30 + $0x9a8] sm:$0xff] %v1622_v53  ;;  %v1750_v53 = vld [vmem:[%s9337_s29 + $0x1750] sm:$0xff] }
 0x146   : > { %1625 = vst [vmem:[%s9342_s30 + $0x9b0] sm:$0xff] %v1624_v54  ;;  %v1752_v54 = vld [vmem:[%s9337_s29 + $0x1760] sm:$0xff] }
 0x147   : > { %1627 = vst [vmem:[%s9342_s30 + $0x9b8] sm:$0xff] %v1626_v55  ;;  %v1754_v55 = vld [vmem:[%s9337_s29 + $0x1770] sm:$0xff] }
 0x148   : > { %1629 = vst [vmem:[%s9342_s30 + $0x9c0] sm:$0xff] %v1628_v56  ;;  %v1756_v56 = vld [vmem:[%s9337_s29 + $0x1780] sm:$0xff] }
 0x149   : > { %1631 = vst [vmem:[%s9342_s30 + $0x9c8] sm:$0xff] %v1630_v57  ;;  %v1758_v57 = vld [vmem:[%s9337_s29 + $0x1790] sm:$0xff] }
 0x14a   : > { %1633 = vst [vmem:[%s9342_s30 + $0x9d0] sm:$0xff] %v1632_v58  ;;  %v1760_v58 = vld [vmem:[%s9337_s29 + $0x17a0] sm:$0xff] }
 0x14b   : > { %1635 = vst [vmem:[%s9342_s30 + $0x9d8] sm:$0xff] %v1634_v59  ;;  %v1762_v59 = vld [vmem:[%s9337_s29 + $0x17b0] sm:$0xff] }
 0x14c   : > { %1637 = vst [vmem:[%s9342_s30 + $0x9e0] sm:$0xff] %v1636_v60  ;;  %v1764_v60 = vld [vmem:[%s9337_s29 + $0x17c0] sm:$0xff] }
 0x14d   : > { %1639 = vst [vmem:[%s9342_s30 + $0x9e8] sm:$0xff] %v1638_v61  ;;  %v1766_v61 = vld [vmem:[%s9337_s29 + $0x17d0] sm:$0xff] }
 0x14e   : > { %1641 = vst [vmem:[%s9342_s30 + $0x9f0] sm:$0xff] %v1640_v62  ;;  %v1768_v62 = vld [vmem:[%s9337_s29 + $0x17e0] sm:$0xff] }
 0x14f   : > { %1643 = vst [vmem:[%s9342_s30 + $0x9f8] sm:$0xff] %v1642_v63  ;;  %v1770_v63 = vld [vmem:[%s9337_s29 + $0x17f0] sm:$0xff] }
 0x150   : > { %1645 = vst [vmem:[%s9342_s30 + $0xa00] sm:$0xff] %v1644_v0  ;;  %v1772_v0 = vld [vmem:[%s9337_s29 + $0x1800] sm:$0xff] }
 0x151   : > { %1647 = vst [vmem:[%s9342_s30 + $0xa08] sm:$0xff] %v1646_v1  ;;  %v1774_v1 = vld [vmem:[%s9337_s29 + $0x1810] sm:$0xff] }
 0x152   : > { %1649 = vst [vmem:[%s9342_s30 + $0xa10] sm:$0xff] %v1648_v2  ;;  %v1776_v2 = vld [vmem:[%s9337_s29 + $0x1820] sm:$0xff] }
 0x153   : > { %1651 = vst [vmem:[%s9342_s30 + $0xa18] sm:$0xff] %v1650_v3  ;;  %v1778_v3 = vld [vmem:[%s9337_s29 + $0x1830] sm:$0xff] }
 0x154   : > { %1653 = vst [vmem:[%s9342_s30 + $0xa20] sm:$0xff] %v1652_v4  ;;  %v1780_v4 = vld [vmem:[%s9337_s29 + $0x1840] sm:$0xff] }
 0x155   : > { %1655 = vst [vmem:[%s9342_s30 + $0xa28] sm:$0xff] %v1654_v5  ;;  %v1782_v5 = vld [vmem:[%s9337_s29 + $0x1850] sm:$0xff] }
 0x156   : > { %1657 = vst [vmem:[%s9342_s30 + $0xa30] sm:$0xff] %v1656_v6  ;;  %v1784_v6 = vld [vmem:[%s9337_s29 + $0x1860] sm:$0xff] }
 0x157   : > { %1659 = vst [vmem:[%s9342_s30 + $0xa38] sm:$0xff] %v1658_v7  ;;  %v1786_v7 = vld [vmem:[%s9337_s29 + $0x1870] sm:$0xff] }
 0x158   : > { %1661 = vst [vmem:[%s9342_s30 + $0xa40] sm:$0xff] %v1660_v8 }
 0x159   : > { %1663 = vst [vmem:[%s9342_s30 + $0xa48] sm:$0xff] %v1662_v9 }
 0x15a   : > { %1665 = vst [vmem:[%s9342_s30 + $0xa50] sm:$0xff] %v1664_v10 }
 0x15b   : > { %1667 = vst [vmem:[%s9342_s30 + $0xa58] sm:$0xff] %v1666_v11 }
 0x15c   : > { %1669 = vst [vmem:[%s9342_s30 + $0xa60] sm:$0xff] %v1668_v12 }
 0x15d   : > { %1671 = vst [vmem:[%s9342_s30 + $0xa68] sm:$0xff] %v1670_v13 }
 0x15e   : > { %1673 = vst [vmem:[%s9342_s30 + $0xa70] sm:$0xff] %v1672_v14 }
 0x15f   : > { %1675 = vst [vmem:[%s9342_s30 + $0xa78] sm:$0xff] %v1674_v15 }
 0x160   : > { %1677 = vst [vmem:[%s9342_s30 + $0xa80] sm:$0xff] %v1676_v16 }
 0x161   : > { %1679 = vst [vmem:[%s9342_s30 + $0xa88] sm:$0xff] %v1678_v17 }
 0x162   : > { %1681 = vst [vmem:[%s9342_s30 + $0xa90] sm:$0xff] %v1680_v18 }
 0x163   : > { %1683 = vst [vmem:[%s9342_s30 + $0xa98] sm:$0xff] %v1682_v19 }
 0x164   : > { %1685 = vst [vmem:[%s9342_s30 + $0xaa0] sm:$0xff] %v1684_v20 }
 0x165   : > { %1687 = vst [vmem:[%s9342_s30 + $0xaa8] sm:$0xff] %v1686_v21 }
 0x166   : > { %1689 = vst [vmem:[%s9342_s30 + $0xab0] sm:$0xff] %v1688_v22 }
 0x167   : > { %1691 = vst [vmem:[%s9342_s30 + $0xab8] sm:$0xff] %v1690_v23 }
 0x168   : > { %1693 = vst [vmem:[%s9342_s30 + $0xac0] sm:$0xff] %v1692_v24 }
 0x169   : > { %1695 = vst [vmem:[%s9342_s30 + $0xac8] sm:$0xff] %v1694_v25 }
 0x16a   : > { %1697 = vst [vmem:[%s9342_s30 + $0xad0] sm:$0xff] %v1696_v26 }
 0x16b   : > { %1699 = vst [vmem:[%s9342_s30 + $0xad8] sm:$0xff] %v1698_v27 }
 0x16c   : > { %1701 = vst [vmem:[%s9342_s30 + $0xae0] sm:$0xff] %v1700_v28 }
 0x16d   : > { %1703 = vst [vmem:[%s9342_s30 + $0xae8] sm:$0xff] %v1702_v29 }
 0x16e   : > { %1705 = vst [vmem:[%s9342_s30 + $0xaf0] sm:$0xff] %v1704_v30 }
 0x16f   : > { %1707 = vst [vmem:[%s9342_s30 + $0xaf8] sm:$0xff] %v1706_v31 }
 0x170   : > { %1709 = vst [vmem:[%s9342_s30 + $0xb00] sm:$0xff] %v1708_v32 }
 0x171   : > { %1711 = vst [vmem:[%s9342_s30 + $0xb08] sm:$0xff] %v1710_v33 }
 0x172   : > { %1713 = vst [vmem:[%s9342_s30 + $0xb10] sm:$0xff] %v1712_v34 }
 0x173   : > { %1715 = vst [vmem:[%s9342_s30 + $0xb18] sm:$0xff] %v1714_v35 }
 0x174   : > { %1717 = vst [vmem:[%s9342_s30 + $0xb20] sm:$0xff] %v1716_v36 }
 0x175   : > { %1719 = vst [vmem:[%s9342_s30 + $0xb28] sm:$0xff] %v1718_v37 }
 0x176   : > { %1721 = vst [vmem:[%s9342_s30 + $0xb30] sm:$0xff] %v1720_v38 }
 0x177   : > { %1723 = vst [vmem:[%s9342_s30 + $0xb38] sm:$0xff] %v1722_v39 }
 0x178   : > { %1725 = vst [vmem:[%s9342_s30 + $0xb40] sm:$0xff] %v1724_v40 }
 0x179   : > { %1727 = vst [vmem:[%s9342_s30 + $0xb48] sm:$0xff] %v1726_v41 }
 0x17a   : > { %1729 = vst [vmem:[%s9342_s30 + $0xb50] sm:$0xff] %v1728_v42 }
 0x17b   : > { %1731 = vst [vmem:[%s9342_s30 + $0xb58] sm:$0xff] %v1730_v43 }
 0x17c   : > { %1733 = vst [vmem:[%s9342_s30 + $0xb60] sm:$0xff] %v1732_v44 }
 0x17d   : > { %1735 = vst [vmem:[%s9342_s30 + $0xb68] sm:$0xff] %v1734_v45 }
 0x17e   : > { %1737 = vst [vmem:[%s9342_s30 + $0xb70] sm:$0xff] %v1736_v46 }
 0x17f   : > { %1739 = vst [vmem:[%s9342_s30 + $0xb78] sm:$0xff] %v1738_v47 }
 0x180   : > { %1741 = vst [vmem:[%s9342_s30 + $0xb80] sm:$0xff] %v1740_v48 }
 0x181   : > { %1743 = vst [vmem:[%s9342_s30 + $0xb88] sm:$0xff] %v1742_v49 }
 0x182   : > { %1745 = vst [vmem:[%s9342_s30 + $0xb90] sm:$0xff] %v1744_v50 }
 0x183   : > { %1747 = vst [vmem:[%s9342_s30 + $0xb98] sm:$0xff] %v1746_v51 }
 0x184   : > { %1749 = vst [vmem:[%s9342_s30 + $0xba0] sm:$0xff] %v1748_v52 }
 0x185   : > { %1751 = vst [vmem:[%s9342_s30 + $0xba8] sm:$0xff] %v1750_v53 }
 0x186   : > { %1753 = vst [vmem:[%s9342_s30 + $0xbb0] sm:$0xff] %v1752_v54 }
 0x187   : > { %1755 = vst [vmem:[%s9342_s30 + $0xbb8] sm:$0xff] %v1754_v55 }
 0x188   : > { %1757 = vst [vmem:[%s9342_s30 + $0xbc0] sm:$0xff] %v1756_v56 }
 0x189   : > { %1759 = vst [vmem:[%s9342_s30 + $0xbc8] sm:$0xff] %v1758_v57 }
 0x18a   : > { %1761 = vst [vmem:[%s9342_s30 + $0xbd0] sm:$0xff] %v1760_v58 }
 0x18b   : > { %1763 = vst [vmem:[%s9342_s30 + $0xbd8] sm:$0xff] %v1762_v59 }
 0x18c   : > { %1765 = vst [vmem:[%s9342_s30 + $0xbe0] sm:$0xff] %v1764_v60 }
 0x18d   : > { %1767 = vst [vmem:[%s9342_s30 + $0xbe8] sm:$0xff] %v1766_v61 }
 0x18e   : > { %1769 = vst [vmem:[%s9342_s30 + $0xbf0] sm:$0xff] %v1768_v62 }
 0x18f   : > { %1771 = vst [vmem:[%s9342_s30 + $0xbf8] sm:$0xff] %v1770_v63 }
 0x190   : > { %1773 = vst [vmem:[%s9342_s30 + $0xc00] sm:$0xff] %v1772_v0 }
 0x191   : > { %1775 = vst [vmem:[%s9342_s30 + $0xc08] sm:$0xff] %v1774_v1 }
 0x192   : > { %1777 = vst [vmem:[%s9342_s30 + $0xc10] sm:$0xff] %v1776_v2 }
 0x193   : > { %1779 = vst [vmem:[%s9342_s30 + $0xc18] sm:$0xff] %v1778_v3 }
 0x194   : > { %1781 = vst [vmem:[%s9342_s30 + $0xc20] sm:$0xff] %v1780_v4 }
 0x195   : > { %1783 = vst [vmem:[%s9342_s30 + $0xc28] sm:$0xff] %v1782_v5 }
 0x196   : > { %1785 = vst [vmem:[%s9342_s30 + $0xc30] sm:$0xff] %v1784_v6 }
 0x197   : > { %1787 = vst [vmem:[%s9342_s30 + $0xc38] sm:$0xff] %v1786_v7 }
 0x198 PF: > { %p7010_p6 = scmp.ge.s32.totalorder %s9267_s19, 1  ;;  %p3412_p7 = scmp.lt.s32.totalorder %s9267_s19, 3 }
 0x19a   : > { %p3413_p8 = pnand %p7010_p6, %p3412_p7 }
 0x19b   : > { %s3419_s5 = sand.u32 (!%p3413_p8), 1, %s9251_s15   ;;  %s7011_s13 = sshll.u32 (!%p3413_p8), %s9259_s17, 1 }
 0x19c   : > { %3416 = sbr.rel (%p3413_p8) target bundleno = 1104 (0x450), region = 84  ;;  %p11004_p9 = scmp.lt.s32.totalorder (!%p3413_p8), %s7011_s13, 3 }
 0x19d   : > { %s9188_s6 = smul.u32 (!%p3413_p8), 3136, %s3419_s5  ;;  %s7012_s24 = sshll.u32 (!%p3413_p8), %s9259_s17, 5 }
 0x19e   : > { %p11238_p10 = scmp.lt.s32.totalorder (!%p3413_p8), %s7012_s24, 63  ;;  %p3483_p11 = scmp.lt.s32.totalorder (!%p3413_p8), %s9259_s17, 1 }
 0x19f   : > { %s10128_s7 = scalar_lea.vmem (!%p3413_p8), [#allocation2], %s9188_s6 }
 0x1a1   : > { %v7174_v8 = vld [vmem:[%s10128_s7 + $0x70] sm:$0xf]  ;;  %v8794_v9 = vld [vmem:[%s10128_s7 + $0x74] sm:$0xf0]  ;;  %v7166_v19 = vld [vmem:[%s10128_s7 + $0x60] sm:$0xf] }
 0x1a2   : > { %v7238_v10 = vld [vmem:[%s10128_s7 + $0xf0] sm:$0xf]  ;;  %v7175_v11 = vor.u32 %v8794_v9, %v7174_v8  ;;  %v8810_v12 = vld [vmem:[%s10128_s7 + $0xf4] sm:$0xf0]  ;;  %v8792_v21 = vld [vmem:[%s10128_s7 + $0x64] sm:$0xf0] }
 0x1a3   : > { %v7302_v13 = vld [vmem:[%s10128_s7 + $0x170] sm:$0xf]  ;;  %v8826_v14 = vld [vmem:[%s10128_s7 + $0x174] sm:$0xf0]  ;;  %v7239_v15 = vor.u32 %v8810_v12, %v7238_v10  ;;  %v7230_v22 = vld [vmem:[%s10128_s7 + $0xe0] sm:$0xf]  ;;  %v7167_v24 = vor.u32 %v8792_v21, %v7166_v19 }
 0x1a4   : > { %v7303_v16 = vor.u32 %v8826_v14, %v7302_v13  ;;  %v7366_v17 = vld [vmem:[%s10128_s7 + $0x1f0] sm:$0xf]  ;;  %v8842_v18 = vld [vmem:[%s10128_s7 + $0x1f4] sm:$0xf0]  ;;  %6006 = vmatpush.bf16.msra.mxu0 %v7175_v11  ;;  %v8808_v23 = vld [vmem:[%s10128_s7 + $0xe4] sm:$0xf0] }
 0x1a5   : > { %v7367_v20 = vor.u32 %v8842_v18, %v7366_v17  ;;  %6020 = vmatpush.bf16.msra.mxu1 %v7239_v15  ;;  %v7231_v25 = vor.u32 %v8808_v23, %v7230_v22  ;;  %v7294_v26 = vld [vmem:[%s10128_s7 + $0x160] sm:$0xf]  ;;  %v8824_v27 = vld [vmem:[%s10128_s7 + $0x164] sm:$0xf0]  ;;  %v7158_v31 = vld [vmem:[%s10128_s7 + $0x50] sm:$0xf] }
 0x1a6   : > { %6034 = vmatpush.bf16.msra.mxu2 %v7303_v16  ;;  %v7358_v28 = vld [vmem:[%s10128_s7 + $0x1e0] sm:$0xf]  ;;  %v7295_v29 = vor.u32 %v8824_v27, %v7294_v26  ;;  %v8840_v30 = vld [vmem:[%s10128_s7 + $0x1e4] sm:$0xf0]  ;;  %v8790_v32 = vld [vmem:[%s10128_s7 + $0x54] sm:$0xf0] }
 0x1a7   : > { %6048 = vmatpush.bf16.msra.mxu3 %v7367_v20  ;;  %v7359_v33 = vor.u32 %v8840_v30, %v7358_v28  ;;  %v7222_v34 = vld [vmem:[%s10128_s7 + $0xd0] sm:$0xf]  ;;  %v8806_v35 = vld [vmem:[%s10128_s7 + $0xd4] sm:$0xf0]  ;;  %v7159_v37 = vor.u32 %v8790_v32, %v7158_v31  ;;  %v7150_v43 = vld [vmem:[%s10128_s7 + $0x40] sm:$0xf] }
 0x1a8   : > { %v7286_v36 = vld [vmem:[%s10128_s7 + $0x150] sm:$0xf]  ;;  %6007 = vmatpush.bf16.msra.mxu0 %v7167_v24  ;;  %v8822_v38 = vld [vmem:[%s10128_s7 + $0x154] sm:$0xf0]  ;;  %v7223_v41 = vor.u32 %v8806_v35, %v7222_v34  ;;  %v8788_v44 = vld [vmem:[%s10128_s7 + $0x44] sm:$0xf0] }
 0x1a9   : > { %v7350_v39 = vld [vmem:[%s10128_s7 + $0x1d0] sm:$0xf]  ;;  %v8838_v40 = vld [vmem:[%s10128_s7 + $0x1d4] sm:$0xf0]  ;;  %6021 = vmatpush.bf16.msra.mxu1 %v7231_v25  ;;  %v7287_v42 = vor.u32 %v8822_v38, %v7286_v36  ;;  %v7214_v45 = vld [vmem:[%s10128_s7 + $0xc0] sm:$0xf]  ;;  %v7151_v52 = vor.u32 %v8788_v44, %v7150_v43 }
 0x1aa   : > { %6035 = vmatpush.bf16.msra.mxu2 %v7295_v29  ;;  %v7351_v46 = vor.u32 %v8838_v40, %v7350_v39  ;;  %v8804_v47 = vld [vmem:[%s10128_s7 + $0xc4] sm:$0xf0]  ;;  %v7278_v48 = vld [vmem:[%s10128_s7 + $0x140] sm:$0xf]  ;;  %v7142_v55 = vld [vmem:[%s10128_s7 + $0x30] sm:$0xf] }
 0x1ab   : > { %6049 = vmatpush.bf16.msra.mxu3 %v7359_v33  ;;  %v8820_v49 = vld [vmem:[%s10128_s7 + $0x144] sm:$0xf0]  ;;  %v7342_v50 = vld [vmem:[%s10128_s7 + $0x1c0] sm:$0xf]  ;;  %v7215_v53 = vor.u32 %v8804_v47, %v7214_v45  ;;  %v8786_v56 = vld [vmem:[%s10128_s7 + $0x34] sm:$0xf0] }
 0x1ac   : > { %v8836_v51 = vld [vmem:[%s10128_s7 + $0x1c4] sm:$0xf0]  ;;  %6008 = vmatpush.bf16.msra.mxu0 %v7159_v37  ;;  %v7279_v54 = vor.u32 %v8820_v49, %v7278_v48  ;;  %v7206_v57 = vld [vmem:[%s10128_s7 + $0xb0] sm:$0xf]  ;;  %v8802_v59 = vld [vmem:[%s10128_s7 + $0xb4] sm:$0xf0]  ;;  %v7143_v0 = vor.u32 %v8786_v56, %v7142_v55 }
 0x1ad   : > { %6022 = vmatpush.bf16.msra.mxu1 %v7223_v41  ;;  %v7343_v58 = vor.u32 %v8836_v51, %v7342_v50  ;;  %v7270_v60 = vld [vmem:[%s10128_s7 + $0x130] sm:$0xf]  ;;  %v8818_v61 = vld [vmem:[%s10128_s7 + $0x134] sm:$0xf0]  ;;  %v7207_v1 = vor.u32 %v8802_v59, %v7206_v57  ;;  %v7134_v3 = vld [vmem:[%s10128_s7 + $0x20] sm:$0xf] }
 0x1ae   : > { %6036 = vmatpush.bf16.msra.mxu2 %v7287_v42  ;;  %v7334_v62 = vld [vmem:[%s10128_s7 + $0x1b0] sm:$0xf]  ;;  %v8834_v63 = vld [vmem:[%s10128_s7 + $0x1b4] sm:$0xf0]  ;;  %v7271_v2 = vor.u32 %v8818_v61, %v7270_v60  ;;  %v8784_v4 = vld [vmem:[%s10128_s7 + $0x24] sm:$0xf0] }
 0x1af   : > { %6050 = vmatpush.bf16.msra.mxu3 %v7351_v46  ;;  %v7198_v5 = vld [vmem:[%s10128_s7 + $0xa0] sm:$0xf]  ;;  %v7335_v6 = vor.u32 %v8834_v63, %v7334_v62  ;;  %v8800_v7 = vld [vmem:[%s10128_s7 + $0xa4] sm:$0xf0]  ;;  %v7135_v12 = vor.u32 %v8784_v4, %v7134_v3  ;;  %v7126_v15 = vld [vmem:[%s10128_s7 + $0x10] sm:$0xf] }
 0x1b0   : > { %6009 = vmatpush.bf16.msra.mxu0 %v7151_v52  ;;  %v7262_v8 = vld [vmem:[%s10128_s7 + $0x120] sm:$0xf]  ;;  %v8816_v9 = vld [vmem:[%s10128_s7 + $0x124] sm:$0xf0]  ;;  %v7199_v13 = vor.u32 %v8800_v7, %v7198_v5  ;;  %v8782_v16 = vld [vmem:[%s10128_s7 + $0x14] sm:$0xf0] }
 0x1b1   : > { %6023 = vmatpush.bf16.msra.mxu1 %v7215_v53  ;;  %v7326_v10 = vld [vmem:[%s10128_s7 + $0x1a0] sm:$0xf]  ;;  %v8832_v11 = vld [vmem:[%s10128_s7 + $0x1a4] sm:$0xf0]  ;;  %v7263_v14 = vor.u32 %v8816_v9, %v7262_v8  ;;  %v7190_v17 = vld [vmem:[%s10128_s7 + $0x90] sm:$0xf]  ;;  %v7127_v24 = vor.u32 %v8782_v16, %v7126_v15 }
 0x1b2   : > { %6037 = vmatpush.bf16.msra.mxu2 %v7279_v54  ;;  %v7327_v18 = vor.u32 %v8832_v11, %v7326_v10  ;;  %v8798_v19 = vld [vmem:[%s10128_s7 + $0x94] sm:$0xf0]  ;;  %v7254_v20 = vld [vmem:[%s10128_s7 + $0x110] sm:$0xf]  ;;  %v7118_v25 = vld [vmem:[%s10128_s7] sm:$0xf] }
 0x1b3   : > { %6051 = vmatpush.bf16.msra.mxu3 %v7343_v58  ;;  %v8814_v21 = vld [vmem:[%s10128_s7 + $0x114] sm:$0xf0]  ;;  %v7318_v22 = vld [vmem:[%s10128_s7 + $0x190] sm:$0xf]  ;;  %v8780_v26 = vld [vmem:[%s10128_s7 + $0x4] sm:$0xf0]  ;;  %v7191_v27 = vor.u32 %v8798_v19, %v7190_v17 }
 0x1b4   : > { %6010 = vmatpush.bf16.msra.mxu0 %v7143_v0  ;;  %v8830_v23 = vld [vmem:[%s10128_s7 + $0x194] sm:$0xf0]  ;;  %v7255_v28 = vor.u32 %v8814_v21, %v7254_v20  ;;  %v7182_v29 = vld [vmem:[%s10128_s7 + $0x80] sm:$0xf]  ;;  %v8796_v30 = vld [vmem:[%s10128_s7 + $0x84] sm:$0xf0]  ;;  %v7119_v39 = vor.u32 %v8780_v26, %v7118_v25 }
 0x1b5   : > { %6024 = vmatpush.bf16.msra.mxu1 %v7207_v1  ;;  %v7246_v31 = vld [vmem:[%s10128_s7 + $0x100] sm:$0xf]  ;;  %v7319_v32 = vor.u32 %v8830_v23, %v7318_v22  ;;  %v8812_v33 = vld [vmem:[%s10128_s7 + $0x104] sm:$0xf0]  ;;  %v7430_v36 = vld [vmem:[%s10128_s7 + $0x270] sm:$0xf]  ;;  %v7183_v43 = vor.u32 %v8796_v30, %v7182_v29 }
 0x1b6   : > { %6038 = vmatpush.bf16.msra.mxu2 %v7271_v2  ;;  %v7310_v34 = vld [vmem:[%s10128_s7 + $0x180] sm:$0xf]  ;;  %v8828_v35 = vld [vmem:[%s10128_s7 + $0x184] sm:$0xf0]  ;;  %v8858_v37 = vld [vmem:[%s10128_s7 + $0x274] sm:$0xf0]  ;;  %v7247_v44 = vor.u32 %v8812_v33, %v7246_v31 }
 0x1b7   : > { %6052 = vmatpush.bf16.msra.mxu3 %v7335_v6  ;;  %v7494_v38 = vld [vmem:[%s10128_s7 + $0x2f0] sm:$0xf]  ;;  %v8874_v40 = vld [vmem:[%s10128_s7 + $0x2f4] sm:$0xf0]  ;;  %v7311_v47 = vor.u32 %v8828_v35, %v7310_v34  ;;  %v7431_v48 = vor.u32 %v8858_v37, %v7430_v36  ;;  %v7422_v49 = vld [vmem:[%s10128_s7 + $0x260] sm:$0xf] }
 0x1b8   : > { %6011 = vmatpush.bf16.msra.mxu0 %v7135_v12  ;;  %v7558_v41 = vld [vmem:[%s10128_s7 + $0x370] sm:$0xf]  ;;  %v8890_v42 = vld [vmem:[%s10128_s7 + $0x374] sm:$0xf0]  ;;  %v8856_v50 = vld [vmem:[%s10128_s7 + $0x264] sm:$0xf0]  ;;  %v7495_v51 = vor.u32 %v8874_v40, %v7494_v38 }
 0x1b9   : > { %6025 = vmatpush.bf16.msra.mxu1 %v7199_v13  ;;  %v7622_v45 = vld [vmem:[%s10128_s7 + $0x3f0] sm:$0xf]  ;;  %v8906_v46 = vld [vmem:[%s10128_s7 + $0x3f4] sm:$0xf0]  ;;  %v7559_v52 = vor.u32 %v8890_v42, %v7558_v41  ;;  %v7486_v53 = vld [vmem:[%s10128_s7 + $0x2e0] sm:$0xf]  ;;  %v7423_v63 = vor.u32 %v8856_v50, %v7422_v49 }
 0x1ba   : > { %6039 = vmatpush.bf16.msra.mxu2 %v7263_v14  ;;  %v8872_v54 = vld [vmem:[%s10128_s7 + $0x2e4] sm:$0xf0]  ;;  %v7550_v55 = vld [vmem:[%s10128_s7 + $0x360] sm:$0xf]  ;;  %v7623_v56 = vor.u32 %v8906_v46, %v7622_v45  ;;  %v8766_v61 = vld [vmem:[%s11356_s0 + $0x60] sm:$0xf0] }
 0x1bb   : > { %6053 = vmatpush.bf16.msra.mxu3 %v7327_v18  ;;  %v8888_v57 = vld [vmem:[%s10128_s7 + $0x364] sm:$0xf0]  ;;  %v7614_v58 = vld [vmem:[%s10128_s7 + $0x3e0] sm:$0xf]  ;;  %v7414_v0 = vld [vmem:[%s10128_s7 + $0x250] sm:$0xf]  ;;  %v7487_v4 = vor.u32 %v8872_v54, %v7486_v53 }
 0x1bc   : > { %6012 = vmatpush.bf16.msra.mxu0 %v7127_v24  ;;  %v8904_v59 = vld [vmem:[%s10128_s7 + $0x3e4] sm:$0xf0]  ;;  %v7018_v60 = vld [vmem:[%s11356_s0] sm:$0xf]  ;;  %v8854_v1 = vld [vmem:[%s10128_s7 + $0x254] sm:$0xf0]  ;;  %v7551_v5 = vor.u32 %v8888_v57, %v7550_v55 }
 0x1bd   : > { %6026 = vmatpush.bf16.msra.mxu1 %v7191_v27  ;;  %v7026_v62 = vld [vmem:[%s11356_s0 + $0x8] sm:$0xf]  ;;  %v10221_v2 = vor.u32 %v8766_v61, %v7018_v60  ;;  %v8767_v3 = vld [vmem:[%s11356_s0 + $0x68] sm:$0xf0]  ;;  %v7478_v6 = vld [vmem:[%s10128_s7 + $0x2d0] sm:$0xf]  ;;  %v7615_v10 = vor.u32 %v8904_v59, %v7614_v58  ;;  %v7415_v17 = vor.u32 %v8854_v1, %v7414_v0 }
 0x1be   : > { %6040 = vmatpush.bf16.msra.mxu2 %v7255_v28  ;;  %v8870_v7 = vld [vmem:[%s10128_s7 + $0x2d4] sm:$0xf0]  ;;  %v7542_v8 = vld [vmem:[%s10128_s7 + $0x350] sm:$0xf]  ;;  %v10229_v9 = vor.u32 %v8767_v3, %v7026_v62  ;;  %v8754_v14 = vld [vmem:[%s11356_s0 + $0x4] sm:$0xf] }
 0x1bf   : > { %6054 = vmatpush.bf16.msra.mxu3 %v7319_v32  ;;  %v8886_v11 = vld [vmem:[%s10128_s7 + $0x354] sm:$0xf0]  ;;  %v7606_v12 = vld [vmem:[%s10128_s7 + $0x3d0] sm:$0xf]  ;;  %v7020_v15 = vld [vmem:[%s11356_s0 + $0x64] sm:$0xf0]  ;;  %v7479_v20 = vor.u32 %v8870_v7, %v7478_v6 }
 0x1c0   : > { %6013 = vmatpush.bf16.msra.mxu0 %v7119_v39  ;;  %v8902_v13 = vld [vmem:[%s10128_s7 + $0x3d4] sm:$0xf0]  ;;  %v8755_v16 = vld [vmem:[%s11356_s0 + $0xc] sm:$0xf]  ;;  %v10245_v18 = vor.u32 %v8754_v14, %v7020_v15  ;;  %v7028_v19 = vld [vmem:[%s11356_s0 + $0x6c] sm:$0xf0]  ;;  %v7543_v21 = vor.u32 %v8886_v11, %v7542_v8 }
 0x1c1   : > { %6027 = vmatpush.bf16.msra.mxu1 %v7183_v43  ;;  %v7406_v22 = vld [vmem:[%s10128_s7 + $0x240] sm:$0xf]  ;;  %v8852_v23 = vld [vmem:[%s10128_s7 + $0x244] sm:$0xf0]  ;;  %v10253_v25 = vor.u32 %v8755_v16, %v7028_v19  ;;  %v7607_v26 = vor.u32 %v8902_v13, %v7606_v12  ;;  %v7398_v35 = vld [vmem:[%s10128_s7 + $0x230] sm:$0xf] }
 0x1c2   : > { %6041 = vmatpush.bf16.msra.mxu2 %v7247_v44  ;;  %v7470_v24 = vld [vmem:[%s10128_s7 + $0x2c0] sm:$0xf]  ;;  %v8868_v27 = vld [vmem:[%s10128_s7 + $0x2c4] sm:$0xf0]  ;;  %v7407_v32 = vor.u32 %v8852_v23, %v7406_v22  ;;  %v8850_v36 = vld [vmem:[%s10128_s7 + $0x234] sm:$0xf0] }
 0x1c3   : > { %6055 = vmatpush.bf16.msra.mxu3 %v7311_v47  ;;  %6014 = vmatmul.bf16.vlgmr.msra.gmra.mxu0 %v10221_v2  ;;  %v7534_v28 = vld [vmem:[%s10128_s7 + $0x340] sm:$0xf]  ;;  %v8884_v29 = vld [vmem:[%s10128_s7 + $0x344] sm:$0xf0]  ;;  %v7471_v33 = vor.u32 %v8868_v27, %v7470_v24  ;;  %v7462_v37 = vld [vmem:[%s10128_s7 + $0x2b0] sm:$0xf]  ;;  %v7399_v44 = vor.u32 %v8850_v36, %v7398_v35 }
 0x1c4   : > { %6062 = vmatpush.bf16.msrb.mxu0 %v7431_v48  ;;  %6028 = vmatmul.bf16.vlgmr.msra.gmra.mxu1 %v10245_v18  ;;  %v7598_v30 = vld [vmem:[%s10128_s7 + $0x3c0] sm:$0xf]  ;;  %v8900_v31 = vld [vmem:[%s10128_s7 + $0x3c4] sm:$0xf0]  ;;  %v7535_v34 = vor.u32 %v8884_v29, %v7534_v28  ;;  %v8866_v39 = vld [vmem:[%s10128_s7 + $0x2b4] sm:$0xf0] }
 0x1c5   : > { %6076 = vmatpush.bf16.msrb.mxu1 %v7495_v51  ;;  %6042 = vmatmul.bf16.vlgmr.msra.gmra.mxu2 %v10229_v9  ;;  %v7599_v38 = vor.u32 %v8900_v31, %v7598_v30  ;;  %v7526_v40 = vld [vmem:[%s10128_s7 + $0x330] sm:$0xf]  ;;  %v8882_v41 = vld [vmem:[%s10128_s7 + $0x334] sm:$0xf0]  ;;  %v7463_v45 = vor.u32 %v8866_v39, %v7462_v37  ;;  %v7390_v47 = vld [vmem:[%s10128_s7 + $0x220] sm:$0xf] }
 0x1c6   : > { %6090 = vmatpush.bf16.msrb.mxu2 %v7559_v52  ;;  %6056 = vmatmul.bf16.vlgmr.msra.gmra.mxu3 %v10253_v25  ;;  %v7590_v42 = vld [vmem:[%s10128_s7 + $0x3b0] sm:$0xf]  ;;  %v8898_v43 = vld [vmem:[%s10128_s7 + $0x3b4] sm:$0xf0]  ;;  %v7527_v46 = vor.u32 %v8882_v41, %v7526_v40  ;;  %v8848_v48 = vld [vmem:[%s10128_s7 + $0x224] sm:$0xf0] }
 0x1c7   : > { %6104 = vmatpush.bf16.msrb.mxu3 %v7623_v56  ;;  %v7454_v49 = vld [vmem:[%s10128_s7 + $0x2a0] sm:$0xf]  ;;  %v7591_v50 = vor.u32 %v8898_v43, %v7590_v42  ;;  %v8864_v51 = vld [vmem:[%s10128_s7 + $0x2a4] sm:$0xf0]  ;;  %v7391_v56 = vor.u32 %v8848_v48, %v7390_v47  ;;  %v7382_v57 = vld [vmem:[%s10128_s7 + $0x210] sm:$0xf] }
 0x1c8   : > { %6063 = vmatpush.bf16.msrb.mxu0 %v7423_v63  ;;  %v7518_v52 = vld [vmem:[%s10128_s7 + $0x320] sm:$0xf]  ;;  %v8880_v53 = vld [vmem:[%s10128_s7 + $0x324] sm:$0xf0]  ;;  %v7455_v58 = vor.u32 %v8864_v51, %v7454_v49  ;;  %v8846_v60 = vld [vmem:[%s10128_s7 + $0x214] sm:$0xf0] }
 0x1c9   : > { %6077 = vmatpush.bf16.msrb.mxu1 %v7487_v4  ;;  %v7582_v54 = vld [vmem:[%s10128_s7 + $0x3a0] sm:$0xf]  ;;  %v8896_v55 = vld [vmem:[%s10128_s7 + $0x3a4] sm:$0xf0]  ;;  %v7519_v59 = vor.u32 %v8880_v53, %v7518_v52  ;;  %v7446_v61 = vld [vmem:[%s10128_s7 + $0x290] sm:$0xf]  ;;  %v7383_v7 = vor.u32 %v8846_v60, %v7382_v57 }
 0x1ca   : > { %6091 = vmatpush.bf16.msrb.mxu2 %v7551_v5  ;;  %v8862_v62 = vld [vmem:[%s10128_s7 + $0x294] sm:$0xf0]  ;;  %v7583_v63 = vor.u32 %v8896_v55, %v7582_v54  ;;  %v7510_v0 = vld [vmem:[%s10128_s7 + $0x310] sm:$0xf]  ;;  %v7374_v5 = vld [vmem:[%s10128_s7 + $0x200] sm:$0xf] }
 0x1cb   : > { %6105 = vmatpush.bf16.msrb.mxu3 %v7615_v10  ;;  %v8878_v1 = vld [vmem:[%s10128_s7 + $0x314] sm:$0xf0]  ;;  %v7574_v3 = vld [vmem:[%s10128_s7 + $0x390] sm:$0xf]  ;;  %v8844_v6 = vld [vmem:[%s10128_s7 + $0x204] sm:$0xf0]  ;;  %v7447_v13 = vor.u32 %v8862_v62, %v7446_v61 }
 0x1cc   : > { %6064 = vmatpush.bf16.msrb.mxu0 %v7415_v17  ;;  %v8894_v4 = vld [vmem:[%s10128_s7 + $0x394] sm:$0xf0]  ;;  %v7438_v8 = vld [vmem:[%s10128_s7 + $0x280] sm:$0xf]  ;;  %v8860_v10 = vld [vmem:[%s10128_s7 + $0x284] sm:$0xf0]  ;;  %v7511_v14 = vor.u32 %v8878_v1, %v7510_v0  ;;  %v7375_v27 = vor.u32 %v8844_v6, %v7374_v5 }
 0x1cd   : > { %6078 = vmatpush.bf16.msrb.mxu1 %v7479_v20  ;;  %v7502_v11 = vld [vmem:[%s10128_s7 + $0x300] sm:$0xf]  ;;  %v8876_v12 = vld [vmem:[%s10128_s7 + $0x304] sm:$0xf0]  ;;  %v7686_v17 = vld [vmem:[%s10128_s7 + $0x470] sm:$0xf]  ;;  %v7575_v19 = vor.u32 %v8894_v4, %v7574_v3  ;;  %v7439_v31 = vor.u32 %v8860_v10, %v7438_v8 }
 0x1ce   : > { %6092 = vmatpush.bf16.msrb.mxu2 %v7543_v21  ;;  %v7566_v15 = vld [vmem:[%s10128_s7 + $0x380] sm:$0xf]  ;;  %v8892_v16 = vld [vmem:[%s10128_s7 + $0x384] sm:$0xf0]  ;;  %v8922_v20 = vld [vmem:[%s10128_s7 + $0x474] sm:$0xf0] }
 0x1cf   : > { %6106 = vmatpush.bf16.msrb.mxu3 %v7607_v26  ;;  %v7750_v21 = vld [vmem:[%s10128_s7 + $0x4f0] sm:$0xf]  ;;  %v8938_v22 = vld [vmem:[%s10128_s7 + $0x4f4] sm:$0xf0]  ;;  %v8768_v30 = vld [vmem:[%s11356_s0 + $0x70] sm:$0xf0]  ;;  %v7567_v36 = vor.u32 %v8892_v16, %v7566_v15  ;;  %v7687_v37 = vor.u32 %v8922_v20, %v7686_v17 }
 0x1d0   : > { %6065 = vmatpush.bf16.msrb.mxu0 %v7407_v32  ;;  %v7814_v23 = vld [vmem:[%s10128_s7 + $0x570] sm:$0xf]  ;;  %v8954_v24 = vld [vmem:[%s10128_s7 + $0x574] sm:$0xf0]  ;;  %v7503_v32 = vor.u32 %v8876_v12, %v7502_v11  ;;  %v8756_v35 = vld [vmem:[%s11356_s0 + $0x14] sm:$0xf]  ;;  %v7751_v41 = vor.u32 %v8938_v22, %v7750_v21 }
 0x1d1   : > { %6079 = vmatpush.bf16.msrb.mxu1 %v7471_v33  ;;  %v7878_v26 = vld [vmem:[%s10128_s7 + $0x5f0] sm:$0xf]  ;;  %v8970_v28 = vld [vmem:[%s10128_s7 + $0x5f4] sm:$0xf0]  ;;  %v8757_v39 = vld [vmem:[%s11356_s0 + $0x1c] sm:$0xf]  ;;  %v7815_v42 = vor.u32 %v8954_v24, %v7814_v23 }
 0x1d2   : > { %6093 = vmatpush.bf16.msrb.mxu2 %v7535_v34  ;;  %v7034_v29 = vld [vmem:[%s11356_s0 + $0x10] sm:$0xf]  ;;  %v7042_v33 = vld [vmem:[%s11356_s0 + $0x18] sm:$0xf]  ;;  %v8769_v34 = vld [vmem:[%s11356_s0 + $0x78] sm:$0xf0] }
 0x1d3   : > { %6107 = vmatpush.bf16.msrb.mxu3 %v7599_v38  ;;  %v7036_v38 = vld [vmem:[%s11356_s0 + $0x74] sm:$0xf0]  ;;  %v7044_v40 = vld [vmem:[%s11356_s0 + $0x7c] sm:$0xf0]  ;;  %v10329_v47 = vor.u32 %v8768_v30, %v7034_v29  ;;  %v8936_v48 = vld [vmem:[%s10128_s7 + $0x4e4] sm:$0xf0]  ;;  %v10334_v51 = vor.u32 %v8769_v34, %v7042_v33 }
 0x1d4   : > { %6066 = vmatpush.bf16.msrb.mxu0 %v7399_v44  ;;  %v7678_v43 = vld [vmem:[%s10128_s7 + $0x460] sm:$0xf]  ;;  %v8920_v44 = vld [vmem:[%s10128_s7 + $0x464] sm:$0xf0]  ;;  %v10336_v52 = vor.u32 %v8756_v35, %v7036_v38  ;;  %v10340_v55 = vor.u32 %v8757_v39, %v7044_v40  ;;  %v8918_v60 = vld [vmem:[%s10128_s7 + $0x454] sm:$0xf0] }
 0x1d5   : > { %6080 = vmatpush.bf16.msrb.mxu1 %v7463_v45  ;;  %v7742_v45 = vld [vmem:[%s10128_s7 + $0x4e0] sm:$0xf]  ;;  %v8968_v54 = vld [vmem:[%s10128_s7 + $0x5e4] sm:$0xf0]  ;;  %v7734_v61 = vld [vmem:[%s10128_s7 + $0x4d0] sm:$0xf] }
 0x1d6   : > { %6094 = vmatpush.bf16.msrb.mxu2 %v7527_v46  ;;  %v7879_v46 = vor.u32 %v8970_v28, %v7878_v26  ;;  %v7806_v49 = vld [vmem:[%s10128_s7 + $0x560] sm:$0xf]  ;;  %v7743_v57 = vor.u32 %v8936_v48, %v7742_v45  ;;  %v7798_v0 = vld [vmem:[%s10128_s7 + $0x550] sm:$0xf]  ;;  %v8950_v1 = vld [vmem:[%s10128_s7 + $0x554] sm:$0xf0] }
 0x1d7   : > { %6108 = vmatpush.bf16.msrb.mxu3 %v7591_v50  ;;  %v8952_v50 = vld [vmem:[%s10128_s7 + $0x564] sm:$0xf0]  ;;  %v7870_v53 = vld [vmem:[%s10128_s7 + $0x5e0] sm:$0xf]  ;;  %v7862_v3 = vld [vmem:[%s10128_s7 + $0x5d0] sm:$0xf] }
 0x1d8   : > { %6067 = vmatpush.bf16.msrb.mxu0 %v7391_v56  ;;  %v7679_v56 = vor.u32 %v8920_v44, %v7678_v43  ;;  %v7871_v62 = vor.u32 %v8968_v54, %v7870_v53  ;;  %v8966_v4 = vld [vmem:[%s10128_s7 + $0x5d4] sm:$0xf0]  ;;  %v7662_v8 = vld [vmem:[%s10128_s7 + $0x440] sm:$0xf]  ;;  %v8916_v10 = vld [vmem:[%s10128_s7 + $0x444] sm:$0xf0] }
 0x1d9   : > { %6081 = vmatpush.bf16.msrb.mxu1 %v7455_v58  ;;  %v7807_v58 = vor.u32 %v8952_v50, %v7806_v49  ;;  %v7726_v11 = vld [vmem:[%s10128_s7 + $0x4c0] sm:$0xf]  ;;  %v7863_v12 = vor.u32 %v8966_v4, %v7862_v3  ;;  %v8948_v15 = vld [vmem:[%s10128_s7 + $0x544] sm:$0xf0]  ;;  %v7654_v22 = vld [vmem:[%s10128_s7 + $0x430] sm:$0xf] }
 0x1da   : > { %6095 = vmatpush.bf16.msrb.mxu2 %v7519_v59  ;;  %v7670_v59 = vld [vmem:[%s10128_s7 + $0x450] sm:$0xf]  ;;  %v7854_v16 = vld [vmem:[%s10128_s7 + $0x5c0] sm:$0xf]  ;;  %v8964_v17 = vld [vmem:[%s10128_s7 + $0x5c4] sm:$0xf0] }
 0x1db   : > { %6109 = vmatpush.bf16.msrb.mxu3 %v7583_v63  ;;  %v8934_v63 = vld [vmem:[%s10128_s7 + $0x4d4] sm:$0xf0]  ;;  %v7671_v5 = vor.u32 %v8918_v60, %v7670_v59  ;;  %v7718_v24 = vld [vmem:[%s10128_s7 + $0x4b0] sm:$0xf]  ;;  %v7855_v26 = vor.u32 %v8964_v17, %v7854_v16  ;;  %v7646_v35 = vld [vmem:[%s10128_s7 + $0x420] sm:$0xf] }
 0x1dc   : > { %6068 = vmatpush.bf16.msrb.mxu0 %v7383_v7  ;;  %v7735_v6 = vor.u32 %v8934_v63, %v7734_v61  ;;  %v7799_v7 = vor.u32 %v8950_v1, %v7798_v0  ;;  %v8914_v23 = vld [vmem:[%s10128_s7 + $0x434] sm:$0xf0]  ;;  %v7782_v28 = vld [vmem:[%s10128_s7 + $0x530] sm:$0xf]  ;;  %v8928_v39 = vld [vmem:[%s10128_s7 + $0x4a4] sm:$0xf0] }
 0x1dd   : > { %6082 = vmatpush.bf16.msrb.mxu1 %v7447_v13  ;;  %v8932_v13 = vld [vmem:[%s10128_s7 + $0x4c4] sm:$0xf0]  ;;  %v8946_v29 = vld [vmem:[%s10128_s7 + $0x534] sm:$0xf0]  ;;  %v7846_v30 = vld [vmem:[%s10128_s7 + $0x5b0] sm:$0xf] }
 0x1de   : > { %6096 = vmatpush.bf16.msrb.mxu2 %v7511_v14  ;;  %v7790_v14 = vld [vmem:[%s10128_s7 + $0x540] sm:$0xf]  ;;  %v7727_v20 = vor.u32 %v8932_v13, %v7726_v11  ;;  %v7783_v34 = vor.u32 %v8946_v29, %v7782_v28  ;;  %v8960_v43 = vld [vmem:[%s10128_s7 + $0x5a4] sm:$0xf0]  ;;  %v7638_v45 = vld [vmem:[%s10128_s7 + $0x410] sm:$0xf] }
 0x1df   : > { %6110 = vmatpush.bf16.msrb.mxu3 %v7575_v19  ;;  %v7663_v19 = vor.u32 %v8916_v10, %v7662_v8  ;;  %v7791_v21 = vor.u32 %v8948_v15, %v7790_v14  ;;  %v7774_v40 = vld [vmem:[%s10128_s7 + $0x520] sm:$0xf]  ;;  %v8910_v49 = vld [vmem:[%s10128_s7 + $0x414] sm:$0xf0]  ;;  %v7702_v50 = vld [vmem:[%s10128_s7 + $0x490] sm:$0xf] }
 0x1e0   : > { %6069 = vmatpush.bf16.msrb.mxu0 %v7375_v27  ;;  %v8930_v27 = vld [vmem:[%s10128_s7 + $0x4b4] sm:$0xf0]  ;;  %v7630_v60 = vld [vmem:[%s10128_s7 + $0x400] sm:$0xf]  ;;  %v8908_v61 = vld [vmem:[%s10128_s7 + $0x404] sm:$0xf0] }
 0x1e1   : > { %6083 = vmatpush.bf16.msrb.mxu1 %v7439_v31  ;;  %v8962_v31 = vld [vmem:[%s10128_s7 + $0x5b4] sm:$0xf0]  ;;  %v7719_v33 = vor.u32 %v8930_v27, %v7718_v24  ;;  %v7694_v63 = vld [vmem:[%s10128_s7 + $0x480] sm:$0xf]  ;;  %v8924_v0 = vld [vmem:[%s10128_s7 + $0x484] sm:$0xf0]  ;;  %v7631_v17 = vor.u32 %v8908_v61, %v7630_v60 }
 0x1e2   : > { %6097 = vmatpush.bf16.msrb.mxu2 %v7503_v32  ;;  %v7655_v32 = vor.u32 %v8914_v23, %v7654_v22  ;;  %v7847_v38 = vor.u32 %v8962_v31, %v7846_v30  ;;  %v8926_v53 = vld [vmem:[%s10128_s7 + $0x494] sm:$0xf0]  ;;  %v7758_v1 = vld [vmem:[%s10128_s7 + $0x500] sm:$0xf]  ;;  %v8940_v3 = vld [vmem:[%s10128_s7 + $0x504] sm:$0xf0]  ;;  %v7695_v22 = vor.u32 %v8924_v0, %v7694_v63 }
 0x1e3   : > { %6111 = vmatpush.bf16.msrb.mxu3 %v7567_v36  ;;  %6070 = vmatmul.bf16.vlgmr.msrb.gmra.mxu0 %v10329_v47  ;;  %v8912_v36 = vld [vmem:[%s10128_s7 + $0x424] sm:$0xf0]  ;;  %v8958_v59 = vld [vmem:[%s10128_s7 + $0x594] sm:$0xf0]  ;;  %v7703_v4 = vor.u32 %v8926_v53, %v7702_v50  ;;  %v7942_v8 = vld [vmem:[%s10128_s7 + $0x670] sm:$0xf]  ;;  %v7759_v23 = vor.u32 %v8940_v3, %v7758_v1 }
 0x1e4   : > { %6118 = vmatpush.bf16.msra.mxu0 %v7687_v37  ;;  %6084 = vmatmul.bf16.vlgmr.msrb.gmra.mxu1 %v10336_v52  ;;  %v7710_v37 = vld [vmem:[%s10128_s7 + $0x4a0] sm:$0xf]  ;;  %v7647_v44 = vor.u32 %v8912_v36, %v7646_v35  ;;  %v8986_v11 = vld [vmem:[%s10128_s7 + $0x674] sm:$0xf0]  ;;  %v8070_v14 = vld [vmem:[%s10128_s7 + $0x770] sm:$0xf] }
 0x1e5   : > { %6132 = vmatpush.bf16.msra.mxu1 %v7751_v41  ;;  %6098 = vmatmul.bf16.vlgmr.msrb.gmra.mxu2 %v10334_v51  ;;  %v8944_v41 = vld [vmem:[%s10128_s7 + $0x524] sm:$0xf0]  ;;  %v9002_v13 = vld [vmem:[%s10128_s7 + $0x6f4] sm:$0xf0]  ;;  %v8134_v16 = vld [vmem:[%s10128_s7 + $0x7f0] sm:$0xf]  ;;  %v7943_v29 = vor.u32 %v8986_v11, %v7942_v8 }
 0x1e6   : > { %6146 = vmatpush.bf16.msra.mxu2 %v7815_v42  ;;  %6112 = vmatmul.bf16.vlgmr.msrb.gmra.mxu3 %v10340_v55  ;;  %v7838_v42 = vld [vmem:[%s10128_s7 + $0x5a0] sm:$0xf]  ;;  %v7775_v48 = vor.u32 %v8944_v41, %v7774_v40  ;;  %v9018_v15 = vld [vmem:[%s10128_s7 + $0x774] sm:$0xf0]  ;;  %v7058_v24 = vld [vmem:[%s11356_s0 + $0x28] sm:$0xf] }
 0x1e7   : > { %6160 = vmatpush.bf16.msra.mxu3 %v7879_v46  ;;  %v7711_v46 = vor.u32 %v8928_v39, %v7710_v37  ;;  %v7839_v54 = vor.u32 %v8960_v43, %v7838_v42  ;;  %v8758_v27 = vld [vmem:[%s11356_s0 + $0x24] sm:$0xf]  ;;  %v7052_v30 = vld [vmem:[%s11356_s0 + $0x84] sm:$0xf0]  ;;  %v8759_v31 = vld [vmem:[%s11356_s0 + $0x2c] sm:$0xf] }
 0x1e8   : > { %6119 = vmatpush.bf16.msra.mxu0 %v7679_v56  ;;  %v7766_v56 = vld [vmem:[%s10128_s7 + $0x510] sm:$0xf]  ;;  %v7934_v35 = vld [vmem:[%s10128_s7 + $0x660] sm:$0xf]  ;;  %v8984_v36 = vld [vmem:[%s10128_s7 + $0x664] sm:$0xf0] }
 0x1e9   : > { %6133 = vmatpush.bf16.msra.mxu1 %v7743_v57  ;;  %v8942_v57 = vld [vmem:[%s10128_s7 + $0x514] sm:$0xf0]  ;;  %v7998_v37 = vld [vmem:[%s10128_s7 + $0x6e0] sm:$0xf]  ;;  %v9000_v40 = vld [vmem:[%s10128_s7 + $0x6e4] sm:$0xf0] }
 0x1ea   : > { %6147 = vmatpush.bf16.msra.mxu2 %v7807_v58  ;;  %v7830_v58 = vld [vmem:[%s10128_s7 + $0x590] sm:$0xf]  ;;  %v8062_v41 = vld [vmem:[%s10128_s7 + $0x760] sm:$0xf]  ;;  %v9016_v42 = vld [vmem:[%s10128_s7 + $0x764] sm:$0xf0]  ;;  %v7999_v50 = vor.u32 %v9000_v40, %v7998_v37 }
 0x1eb   : > { %6161 = vmatpush.bf16.msra.mxu3 %v7871_v62  ;;  %v7639_v62 = vor.u32 %v8910_v49, %v7638_v45  ;;  %v7831_v10 = vor.u32 %v8958_v59, %v7830_v58  ;;  %v8126_v45 = vld [vmem:[%s10128_s7 + $0x7e0] sm:$0xf]  ;;  %v7935_v49 = vor.u32 %v8984_v36, %v7934_v35  ;;  %v8063_v53 = vor.u32 %v9016_v42, %v8062_v41  ;;  %v8998_v59 = vld [vmem:[%s10128_s7 + $0x6d4] sm:$0xf0]  ;;  %v8054_v60 = vld [vmem:[%s10128_s7 + $0x750] sm:$0xf] }
 0x1ec   : > { %6120 = vmatpush.bf16.msra.mxu0 %v7671_v5  ;;  %v7767_v5 = vor.u32 %v8942_v57, %v7766_v56  ;;  %v8982_v56 = vld [vmem:[%s10128_s7 + $0x654] sm:$0xf0]  ;;  %v7990_v57 = vld [vmem:[%s10128_s7 + $0x6d0] sm:$0xf]  ;;  %v8996_v8 = vld [vmem:[%s10128_s7 + $0x6c4] sm:$0xf0] }
 0x1ed   : > { %6134 = vmatpush.bf16.msra.mxu1 %v7735_v6  ;;  %v7822_v6 = vld [vmem:[%s10128_s7 + $0x580] sm:$0xf]  ;;  %v9014_v61 = vld [vmem:[%s10128_s7 + $0x754] sm:$0xf0]  ;;  %v7991_v1 = vor.u32 %v8998_v59, %v7990_v57  ;;  %v9012_v11 = vld [vmem:[%s10128_s7 + $0x744] sm:$0xf0] }
 0x1ee   : > { %6148 = vmatpush.bf16.msra.mxu2 %v7799_v7  ;;  %v8956_v7 = vld [vmem:[%s10128_s7 + $0x584] sm:$0xf0]  ;;  %v9030_v63 = vld [vmem:[%s10128_s7 + $0x7d4] sm:$0xf0]  ;;  %v8055_v3 = vor.u32 %v9014_v61, %v8054_v60  ;;  %v8030_v36 = vld [vmem:[%s10128_s7 + $0x720] sm:$0xf] }
 0x1ef   : > { %6162 = vmatpush.bf16.msra.mxu3 %v7863_v12  ;;  %v8006_v12 = vld [vmem:[%s10128_s7 + $0x6f0] sm:$0xf]  ;;  %v7823_v28 = vor.u32 %v8956_v7, %v7822_v6  ;;  %v7982_v6 = vld [vmem:[%s10128_s7 + $0x6c0] sm:$0xf]  ;;  %v8992_v35 = vld [vmem:[%s10128_s7 + $0x6a4] sm:$0xf0] }
 0x1f0   : > { %6121 = vmatpush.bf16.msra.mxu0 %v7663_v19  ;;  %v9034_v19 = vld [vmem:[%s10128_s7 + $0x7f4] sm:$0xf0]  ;;  %v9008_v37 = vld [vmem:[%s10128_s7 + $0x724] sm:$0xf0]  ;;  %v7894_v42 = vld [vmem:[%s10128_s7 + $0x610] sm:$0xf] }
 0x1f1   : > { %6135 = vmatpush.bf16.msra.mxu1 %v7727_v20  ;;  %v7050_v20 = vld [vmem:[%s11356_s0 + $0x20] sm:$0xf]  ;;  %v9024_v40 = vld [vmem:[%s10128_s7 + $0x7a4] sm:$0xf0]  ;;  %v9006_v57 = vld [vmem:[%s10128_s7 + $0x714] sm:$0xf0] }
 0x1f2   : > { %6149 = vmatpush.bf16.msra.mxu2 %v7791_v21  ;;  %v8770_v21 = vld [vmem:[%s11356_s0 + $0x80] sm:$0xf0]  ;;  %v9022_v59 = vld [vmem:[%s10128_s7 + $0x794] sm:$0xf0]  ;;  %v7886_v60 = vld [vmem:[%s10128_s7 + $0x600] sm:$0xf] }
 0x1f3   : > { %6163 = vmatpush.bf16.msra.mxu3 %v7855_v26  ;;  %v8771_v26 = vld [vmem:[%s11356_s0 + $0x88] sm:$0xf0]  ;;  %v10429_v39 = vor.u32 %v8770_v21, %v7050_v20  ;;  %v7974_v20 = vld [vmem:[%s10128_s7 + $0x6b0] sm:$0xf]  ;;  %v8972_v61 = vld [vmem:[%s10128_s7 + $0x604] sm:$0xf0] }
 0x1f4   : > { %6122 = vmatpush.bf16.msra.mxu0 %v7655_v32  ;;  %v7060_v32 = vld [vmem:[%s11356_s0 + $0x8c] sm:$0xf0]  ;;  %v10434_v43 = vor.u32 %v8771_v26, %v7058_v24  ;;  %v9010_v24 = vld [vmem:[%s10128_s7 + $0x734] sm:$0xf0]  ;;  %vm6002_vm0 = vcmask 523264   ;;  %s11370_s13 = smov (!%p11004_p9, %s7011_s13), 3 }
 0x1f5   : > { %6136 = vmatpush.bf16.msra.mxu1 %v7719_v33  ;;  %v8007_v33 = vor.u32 %v9002_v13, %v8006_v12  ;;  %v8110_v12 = vld [vmem:[%s10128_s7 + $0x7c0] sm:$0xf]  ;;  %v9028_v13 = vld [vmem:[%s10128_s7 + $0x7c4] sm:$0xf0]  ;;  %v8102_v26 = vld [vmem:[%s10128_s7 + $0x7b0] sm:$0xf]  ;;  %s3474_s22 = scalar_lea.vmem %s11358_s2, %s11370_s13 }
 0x1f6   : > { %6150 = vmatpush.bf16.msra.mxu2 %v7783_v34  ;;  %v8071_v34 = vor.u32 %v9018_v15, %v8070_v14  ;;  %v7983_v15 = vor.u32 %v8996_v8, %v7982_v6  ;;  %v8111_v21 = vor.u32 %v9028_v13, %v8110_v12  ;;  %v8078_v6 = vld [vmem:[%s10128_s7 + $0x780] sm:$0xf]  ;;  %v8198_v8 = vld [vmem:[%s10128_s7 + $0x870] sm:$0xf]  ;;  %v9066_v13 = vld [vmem:[%s10128_s7 + $0x8f4] sm:$0xf0] }
 0x1f7   : > { %6164 = vmatpush.bf16.msra.mxu3 %v7847_v38  ;;  %v8135_v38 = vor.u32 %v9034_v19, %v8134_v16  ;;  %v8978_v19 = vld [vmem:[%s10128_s7 + $0x634] sm:$0xf0]  ;;  %v8262_v12 = vld [vmem:[%s10128_s7 + $0x8f0] sm:$0xf]  ;;  %s11372_s24 = smov (!%p11238_p10, %s7012_s24), 63  ;;  %s11374_s17 = smov (!%p3483_p11, %s9259_s17), 1 }
 0x1f8   : > { %6123 = vmatpush.bf16.msra.mxu0 %v7647_v44  ;;  %v10436_v44 = vor.u32 %v8758_v27, %v7052_v30  ;;  %v9026_v27 = vld [vmem:[%s10128_s7 + $0x7b4] sm:$0xf0]  ;;  %s7013_s26 = sshll.u32 %s11372_s24, 2  ;;  %vm6868_vm1 = vcmask 48128  }
 0x1f9   : > { %6137 = vmatpush.bf16.msra.mxu1 %v7711_v46  ;;  %v9032_v46 = vld [vmem:[%s10128_s7 + $0x7e4] sm:$0xf0]  ;;  %s11289_s29 = scalar_lea.vmem %s11359_s3, %s7013_s26 }
 0x1fa   : > { %6151 = vmatpush.bf16.msra.mxu2 %v7775_v48  ;;  %v10440_v48 = vor.u32 %v8759_v31, %v7060_v32  ;;  %v8127_v58 = vor.u32 %v9032_v46, %v8126_v45  ;;  %v7902_v31 = vld [vmem:[%s10128_s7 + $0x620] sm:$0xf]  ;;  %v8976_v32 = vld [vmem:[%s10128_s7 + $0x624] sm:$0xf0]  ;;  %v8031_v46 = vor.u32 %v9008_v37, %v8030_v36 }
 0x1fb   : > { %6165 = vmatpush.bf16.msra.mxu3 %v7839_v54  ;;  %v7926_v54 = vld [vmem:[%s10128_s7 + $0x650] sm:$0xf]  ;;  %v7903_v41 = vor.u32 %v8976_v32, %v7902_v31  ;;  %v8761_v31 = vld [vmem:[%s11356_s0 + $0x3c] sm:$0xf]  ;;  %v7076_v32 = vld [vmem:[%s11356_s0 + $0x9c] sm:$0xf0] }
 0x1fc   : > { %6124 = vmatpush.bf16.msra.mxu0 %v7639_v62  ;;  %v8118_v62 = vld [vmem:[%s10128_s7 + $0x7d0] sm:$0xf]  ;;  %v7927_v0 = vor.u32 %v8982_v56, %v7926_v54  ;;  %v9048_v36 = vld [vmem:[%s10128_s7 + $0x864] sm:$0xf0]  ;;  %v8254_v37 = vld [vmem:[%s10128_s7 + $0x8e0] sm:$0xf] }
 0x1fd   : > { %6138 = vmatpush.bf16.msra.mxu1 %v7703_v4  ;;  %v7918_v4 = vld [vmem:[%s10128_s7 + $0x640] sm:$0xf]  ;;  %v8119_v7 = vor.u32 %v9030_v63, %v8118_v62  ;;  %v8022_v56 = vld [vmem:[%s10128_s7 + $0x710] sm:$0xf] }
 0x1fe   : > { %6152 = vmatpush.bf16.msra.mxu2 %v7767_v5  ;;  %v8980_v5 = vld [vmem:[%s10128_s7 + $0x644] sm:$0xf0]  ;;  %v7950_v63 = vld [vmem:[%s10128_s7 + $0x680] sm:$0xf] }
 0x1ff   : > { %6166 = vmatpush.bf16.msra.mxu3 %v7831_v10  ;;  %v8046_v10 = vld [vmem:[%s10128_s7 + $0x740] sm:$0xf]  ;;  %v7919_v14 = vor.u32 %v8980_v5, %v7918_v4  ;;  %v8023_v5 = vor.u32 %v9006_v57, %v8022_v56 }
 0x200   : > { %6125 = vmatpush.bf16.msra.mxu0 %v7631_v17  ;;  %v8047_v16 = vor.u32 %v9012_v11, %v8046_v10  ;;  %v7910_v17 = vld [vmem:[%s10128_s7 + $0x630] sm:$0xf]  ;;  %v9050_v11 = vld [vmem:[%s10128_s7 + $0x874] sm:$0xf0] }
 0x201   : > { %6139 = vmatpush.bf16.msra.mxu1 %v7695_v22  ;;  %v8994_v22 = vld [vmem:[%s10128_s7 + $0x6b4] sm:$0xf0] }
 0x202   : > { %6153 = vmatpush.bf16.msra.mxu2 %v7759_v23  ;;  %v8038_v23 = vld [vmem:[%s10128_s7 + $0x730] sm:$0xf] }
 0x203   : > { %6167 = vmatpush.bf16.msra.mxu3 %v7823_v28  ;;  %6126 = vmatmul.bf16.vlgmr.msra.gmra.mxu0 %v10429_v39  ;;  %v7911_v28 = vor.u32 %v8978_v19, %v7910_v17  ;;  %v8039_v30 = vor.u32 %v9010_v24, %v8038_v23  ;;  %v7887_v17 = vor.u32 %v8972_v61, %v7886_v60  ;;  %v9098_v19 = vld [vmem:[%s10128_s7 + $0x9f4] sm:$0xf0]  ;;  %v8246_v61 = vld [vmem:[%s10128_s7 + $0x8d0] sm:$0xf] }
 0x204   : > { %6174 = vmatpush.bf16.msrb.mxu0 %v7943_v29  ;;  %6140 = vmatmul.bf16.vlgmr.msra.gmra.mxu1 %v10436_v44  ;;  %v7975_v29 = vor.u32 %v8994_v22, %v7974_v20  ;;  %v7066_v20 = vld [vmem:[%s11356_s0 + $0x30] sm:$0xf]  ;;  %v7074_v24 = vld [vmem:[%s11356_s0 + $0x38] sm:$0xf] }
 0x205   : > { %6188 = vmatpush.bf16.msrb.mxu1 %v8007_v33  ;;  %6154 = vmatmul.bf16.vlgmr.msra.gmra.mxu2 %v10434_v43  ;;  %v7966_v33 = vld [vmem:[%s10128_s7 + $0x6a0] sm:$0xf]  ;;  %v9046_v60 = vld [vmem:[%s10128_s7 + $0x854] sm:$0xf0] }
 0x206   : > { %6202 = vmatpush.bf16.msrb.mxu2 %v8071_v34  ;;  %6168 = vmatmul.bf16.vlgmr.msra.gmra.mxu3 %v10440_v48  ;;  %v8103_v34 = vor.u32 %v9026_v27, %v8102_v26  ;;  %v7967_v45 = vor.u32 %v8992_v35, %v7966_v33  ;;  %v8773_v26 = vld [vmem:[%s11356_s0 + $0x98] sm:$0xf0]  ;;  %v8760_v27 = vld [vmem:[%s11356_s0 + $0x34] sm:$0xf]  ;;  %v8263_v33 = vor.u32 %v9066_v13, %v8262_v12  ;;  %v8190_v35 = vld [vmem:[%s10128_s7 + $0x860] sm:$0xf] }
 0x207   : > { %6216 = vmatpush.bf16.msrb.mxu3 %v8135_v38  ;;  %v8094_v38 = vld [vmem:[%s10128_s7 + $0x7a0] sm:$0xf]  ;;  %v8191_v56 = vor.u32 %v9048_v36, %v8190_v35  ;;  %v9060_v13 = vld [vmem:[%s10128_s7 + $0x8c4] sm:$0xf0] }
 0x208   : > { %6175 = vmatpush.bf16.msrb.mxu0 %v7935_v49  ;;  %v8974_v49 = vld [vmem:[%s10128_s7 + $0x614] sm:$0xf0]  ;;  %v8095_v54 = vor.u32 %v9024_v40, %v8094_v38  ;;  %v8158_v35 = vld [vmem:[%s10128_s7 + $0x820] sm:$0xf]  ;;  %v9040_v36 = vld [vmem:[%s10128_s7 + $0x824] sm:$0xf0] }
 0x209   : > { %6189 = vmatpush.bf16.msrb.mxu1 %v7999_v50  ;;  %v7958_v50 = vld [vmem:[%s10128_s7 + $0x690] sm:$0xf]  ;;  %v7895_v62 = vor.u32 %v8974_v49, %v7894_v42  ;;  %v8318_v42 = vld [vmem:[%s10128_s7 + $0x960] sm:$0xf] }
 0x20a   : > { %6203 = vmatpush.bf16.msrb.mxu2 %v8063_v53  ;;  %v8990_v53 = vld [vmem:[%s10128_s7 + $0x694] sm:$0xf0] }
 0x20b   : > { %6217 = vmatpush.bf16.msrb.mxu3 %v8127_v58  ;;  %v8086_v58 = vld [vmem:[%s10128_s7 + $0x790] sm:$0xf]  ;;  %v7959_v4 = vor.u32 %v8990_v53, %v7958_v50  ;;  %v8382_v50 = vld [vmem:[%s10128_s7 + $0x9e0] sm:$0xf]  ;;  %v9096_v53 = vld [vmem:[%s10128_s7 + $0x9e4] sm:$0xf0] }
 0x20c   : > { %6176 = vmatpush.bf16.msrb.mxu0 %v7927_v0  ;;  %v8988_v0 = vld [vmem:[%s10128_s7 + $0x684] sm:$0xf0]  ;;  %v8087_v10 = vor.u32 %v9022_v59, %v8086_v58  ;;  %v8182_v59 = vld [vmem:[%s10128_s7 + $0x850] sm:$0xf] }
 0x20d   : > { %6190 = vmatpush.bf16.msrb.mxu1 %v7991_v1  ;;  %v8014_v1 = vld [vmem:[%s10128_s7 + $0x700] sm:$0xf]  ;;  %v7951_v22 = vor.u32 %v8988_v0, %v7950_v63  ;;  %v9062_v63 = vld [vmem:[%s10128_s7 + $0x8d4] sm:$0xf0]  ;;  %v8310_v0 = vld [vmem:[%s10128_s7 + $0x950] sm:$0xf] }
 0x20e   : > { %6204 = vmatpush.bf16.msrb.mxu2 %v8055_v3  ;;  %v9004_v3 = vld [vmem:[%s10128_s7 + $0x704] sm:$0xf0] }
 0x20f   : > { %6218 = vmatpush.bf16.msrb.mxu3 %v8119_v7  ;;  %v9020_v7 = vld [vmem:[%s10128_s7 + $0x784] sm:$0xf0]  ;;  %v8015_v23 = vor.u32 %v9004_v3, %v8014_v1  ;;  %v9078_v1 = vld [vmem:[%s10128_s7 + $0x954] sm:$0xf0]  ;;  %v8374_v3 = vld [vmem:[%s10128_s7 + $0x9d0] sm:$0xf] }
 0x210   : > { %6177 = vmatpush.bf16.msrb.mxu0 %v7919_v14  ;;  %v8326_v14 = vld [vmem:[%s10128_s7 + $0x970] sm:$0xf] }
 0x211   : > { %6191 = vmatpush.bf16.msrb.mxu1 %v7983_v15  ;;  %v9082_v15 = vld [vmem:[%s10128_s7 + $0x974] sm:$0xf0] }
 0x212   : > { %6205 = vmatpush.bf16.msrb.mxu2 %v8047_v16  ;;  %v8390_v16 = vld [vmem:[%s10128_s7 + $0x9f0] sm:$0xf] }
 0x213   : > { %6219 = vmatpush.bf16.msrb.mxu3 %v8111_v21  ;;  %v8772_v21 = vld [vmem:[%s11356_s0 + $0x90] sm:$0xf0]  ;;  %v8391_v38 = vor.u32 %v9098_v19, %v8390_v16  ;;  %v8366_v16 = vld [vmem:[%s10128_s7 + $0x9c0] sm:$0xf] }
 0x214   : > { %6178 = vmatpush.bf16.msrb.mxu0 %v7911_v28  ;;  %v8079_v28 = vor.u32 %v9020_v7, %v8078_v6  ;;  %v10529_v40 = vor.u32 %v8772_v21, %v7066_v20  ;;  %v8247_v6 = vor.u32 %v9062_v63, %v8246_v61  ;;  %v8311_v7 = vor.u32 %v9078_v1, %v8310_v0  ;;  %v8214_v61 = vld [vmem:[%s10128_s7 + $0x890] sm:$0xf]  ;;  %v9070_v1 = vld [vmem:[%s10128_s7 + $0x914] sm:$0xf0] }
 0x215   : > { %6192 = vmatpush.bf16.msrb.mxu1 %v7975_v29  ;;  %v8199_v29 = vor.u32 %v9050_v11, %v8198_v8  ;;  %v8174_v8 = vld [vmem:[%s10128_s7 + $0x840] sm:$0xf]  ;;  %v8278_v0 = vld [vmem:[%s10128_s7 + $0x910] sm:$0xf] }
 0x216   : > { %6206 = vmatpush.bf16.msrb.mxu2 %v8039_v30  ;;  %v7068_v30 = vld [vmem:[%s11356_s0 + $0x94] sm:$0xf0]  ;;  %v8238_v11 = vld [vmem:[%s10128_s7 + $0x8c0] sm:$0xf] }
 0x217   : > { %6220 = vmatpush.bf16.msrb.mxu3 %v8103_v34  ;;  %v8327_v34 = vor.u32 %v9082_v15, %v8326_v14  ;;  %v10536_v49 = vor.u32 %v8760_v27, %v7068_v30  ;;  %v8302_v14 = vld [vmem:[%s10128_s7 + $0x940] sm:$0xf]  ;;  %v9076_v15 = vld [vmem:[%s10128_s7 + $0x944] sm:$0xf0]  ;;  %v8239_v20 = vor.u32 %v9060_v13, %v8238_v11  ;;  %v9058_v27 = vld [vmem:[%s10128_s7 + $0x8b4] sm:$0xf0] }
 0x218   : > { %6179 = vmatpush.bf16.msrb.mxu0 %v7903_v41  ;;  %v9064_v41 = vld [vmem:[%s10128_s7 + $0x8e4] sm:$0xf0]  ;;  %v8303_v21 = vor.u32 %v9076_v15, %v8302_v14  ;;  %v8358_v30 = vld [vmem:[%s10128_s7 + $0x9b0] sm:$0xf]  ;;  %v8270_v11 = vld [vmem:[%s10128_s7 + $0x900] sm:$0xf]  ;;  %v8279_v14 = vor.u32 %v9070_v1, %v8278_v0 }
 0x219   : > { %6193 = vmatpush.bf16.msrb.mxu1 %v7967_v45  ;;  %v9080_v45 = vld [vmem:[%s10128_s7 + $0x964] sm:$0xf0]  ;;  %v8255_v57 = vor.u32 %v9064_v41, %v8254_v37  ;;  %v8222_v37 = vld [vmem:[%s10128_s7 + $0x8a0] sm:$0xf] }
 0x21a   : > { %6207 = vmatpush.bf16.msrb.mxu2 %v8031_v46  ;;  %v10534_v46 = vor.u32 %v8773_v26, %v7074_v24  ;;  %v8319_v58 = vor.u32 %v9080_v45, %v8318_v42  ;;  %v8230_v24 = vld [vmem:[%s10128_s7 + $0x8b0] sm:$0xf]  ;;  %v9056_v41 = vld [vmem:[%s10128_s7 + $0x8a4] sm:$0xf0]  ;;  %v8286_v42 = vld [vmem:[%s10128_s7 + $0x920] sm:$0xf] }
 0x21b   : > { %6221 = vmatpush.bf16.msrb.mxu3 %v8095_v54  ;;  %v10540_v54 = vor.u32 %v8761_v31, %v7076_v32  ;;  %v9090_v31 = vld [vmem:[%s10128_s7 + $0x9b4] sm:$0xf0]  ;;  %v9072_v45 = vld [vmem:[%s10128_s7 + $0x924] sm:$0xf0]  ;;  %v8334_v15 = vld [vmem:[%s10128_s7 + $0x980] sm:$0xf] }
 0x21c   : > { %6180 = vmatpush.bf16.msrb.mxu0 %v7895_v62  ;;  %v8383_v62 = vor.u32 %v9096_v53, %v8382_v50  ;;  %v8350_v50 = vld [vmem:[%s10128_s7 + $0x9a0] sm:$0xf]  ;;  %v9088_v53 = vld [vmem:[%s10128_s7 + $0x9a4] sm:$0xf0] }
 0x21d   : > { %6194 = vmatpush.bf16.msrb.mxu1 %v7959_v4  ;;  %v9094_v4 = vld [vmem:[%s10128_s7 + $0x9d4] sm:$0xf0]  ;;  %v8351_v63 = vor.u32 %v9088_v53, %v8350_v50  ;;  %v8446_v53 = vld [vmem:[%s10128_s7 + $0xa60] sm:$0xf] }
 0x21e   : > { %6208 = vmatpush.bf16.msrb.mxu2 %v8023_v5  ;;  %v8183_v5 = vor.u32 %v9046_v60, %v8182_v59  ;;  %v8375_v12 = vor.u32 %v9094_v4, %v8374_v3  ;;  %v8287_v59 = vor.u32 %v9072_v45, %v8286_v42  ;;  %v9038_v60 = vld [vmem:[%s10128_s7 + $0x814] sm:$0xf0]  ;;  %v8342_v3 = vld [vmem:[%s10128_s7 + $0x990] sm:$0xf]  ;;  %v8638_v1 = vld [vmem:[%s10128_s7 + $0xbe0] sm:$0xf] }
 0x21f   : > { %6222 = vmatpush.bf16.msrb.mxu3 %v8087_v10  ;;  %v9044_v10 = vld [vmem:[%s10128_s7 + $0x844] sm:$0xf0]  ;;  %v9086_v4 = vld [vmem:[%s10128_s7 + $0x994] sm:$0xf0]  ;;  %v7092_v42 = vld [vmem:[%s11356_s0 + $0xac] sm:$0xf0] }
 0x220   : > { %6181 = vmatpush.bf16.msrb.mxu0 %v7887_v17  ;;  %v9092_v17 = vld [vmem:[%s10128_s7 + $0x9c4] sm:$0xf0]  ;;  %v8175_v19 = vor.u32 %v9044_v10, %v8174_v8  ;;  %v8206_v8 = vld [vmem:[%s10128_s7 + $0x880] sm:$0xf] }
 0x221   : > { %6195 = vmatpush.bf16.msrb.mxu1 %v7951_v22  ;;  %v8166_v22 = vld [vmem:[%s10128_s7 + $0x830] sm:$0xf]  ;;  %v8367_v26 = vor.u32 %v9092_v17, %v8366_v16  ;;  %v9052_v10 = vld [vmem:[%s10128_s7 + $0x884] sm:$0xf0] }
 0x222   : > { %6209 = vmatpush.bf16.msrb.mxu2 %v8015_v23  ;;  %v9042_v23 = vld [vmem:[%s10128_s7 + $0x834] sm:$0xf0]  ;;  %v9084_v16 = vld [vmem:[%s10128_s7 + $0x984] sm:$0xf0]  ;;  %v8454_v17 = vld [vmem:[%s10128_s7 + $0xa70] sm:$0xf] }
 0x223   : > { %6223 = vmatpush.bf16.msrb.mxu3 %v8079_v28  ;;  %6182 = vmatmul.bf16.vlgmr.msrb.gmra.mxu0 %v10529_v40  ;;  %v8294_v28 = vld [vmem:[%s10128_s7 + $0x930] sm:$0xf]  ;;  %v8167_v32 = vor.u32 %v9042_v23, %v8166_v22  ;;  %v9130_v22 = vld [vmem:[%s10128_s7 + $0xaf4] sm:$0xf0] }
 0x224   : > { %6230 = vmatpush.bf16.msra.mxu0 %v8199_v29  ;;  %6196 = vmatmul.bf16.vlgmr.msrb.gmra.mxu1 %v10536_v49  ;;  %v9074_v29 = vld [vmem:[%s10128_s7 + $0x934] sm:$0xf0]  ;;  %v8582_v23 = vld [vmem:[%s10128_s7 + $0xb70] sm:$0xf] }
 0x225   : > { %6244 = vmatpush.bf16.msra.mxu1 %v8263_v33  ;;  %6210 = vmatmul.bf16.vlgmr.msrb.gmra.mxu2 %v10534_v46  ;;  %v8231_v33 = vor.u32 %v9058_v27, %v8230_v24  ;;  %v9146_v24 = vld [vmem:[%s10128_s7 + $0xb74] sm:$0xf0] }
 0x226   : > { %6258 = vmatpush.bf16.msra.mxu2 %v8327_v34  ;;  %6224 = vmatmul.bf16.vlgmr.msrb.gmra.mxu3 %v10540_v54  ;;  %v8295_v34 = vor.u32 %v9074_v29, %v8294_v28  ;;  %v9162_v28 = vld [vmem:[%s10128_s7 + $0xbf4] sm:$0xf0]  ;;  %v7082_v29 = vld [vmem:[%s11356_s0 + $0x40] sm:$0xf]  ;;  %v8583_v50 = vor.u32 %v9146_v24, %v8582_v23  ;;  %v9108_v23 = vld [vmem:[%s10128_s7 + $0xa44] sm:$0xf0] }
 0x227   : > { %6272 = vmatpush.bf16.msra.mxu3 %v8391_v38  ;;  %v8359_v38 = vor.u32 %v9090_v31, %v8358_v30  ;;  %v8774_v30 = vld [vmem:[%s11356_s0 + $0xa0] sm:$0xf0]  ;;  %v8207_v31 = vor.u32 %v9052_v10, %v8206_v8  ;;  %v8438_v8 = vld [vmem:[%s10128_s7 + $0xa50] sm:$0xf]  ;;  %v9110_v10 = vld [vmem:[%s10128_s7 + $0xa54] sm:$0xf0] }
 0x228   : > { %6231 = vmatpush.bf16.msra.mxu0 %v8191_v56  ;;  %v8159_v56 = vor.u32 %v9040_v36, %v8158_v35  ;;  %v8762_v35 = vld [vmem:[%s11356_s0 + $0x44] sm:$0xf]  ;;  %v8335_v36 = vor.u32 %v9084_v16, %v8334_v15  ;;  %v9142_v15 = vld [vmem:[%s10128_s7 + $0xb54] sm:$0xf0]  ;;  %v8630_v16 = vld [vmem:[%s10128_s7 + $0xbd0] sm:$0xf] }
 0x229   : > { %6245 = vmatpush.bf16.msra.mxu1 %v8255_v57  ;;  %v8150_v57 = vld [vmem:[%s10128_s7 + $0x810] sm:$0xf]  ;;  %v8494_v24 = vld [vmem:[%s10128_s7 + $0xac0] sm:$0xf] }
 0x22a   : > { %6259 = vmatpush.bf16.msra.mxu2 %v8319_v58  ;;  %v8223_v58 = vor.u32 %v9056_v41, %v8222_v37  ;;  %v8763_v41 = vld [vmem:[%s11356_s0 + $0x4c] sm:$0xf] }
 0x22b   : > { %6273 = vmatpush.bf16.msra.mxu3 %v8383_v62  ;;  %v9054_v62 = vld [vmem:[%s10128_s7 + $0x894] sm:$0xf0] }
 0x22c   : > { %6232 = vmatpush.bf16.msra.mxu0 %v8183_v5  ;;  %v8142_v5 = vld [vmem:[%s10128_s7 + $0x800] sm:$0xf]  ;;  %v8215_v13 = vor.u32 %v9054_v62, %v8214_v61  ;;  %v9144_v62 = vld [vmem:[%s10128_s7 + $0xb64] sm:$0xf0] }
 0x22d   : > { %6246 = vmatpush.bf16.msra.mxu1 %v8247_v6  ;;  %v9036_v6 = vld [vmem:[%s10128_s7 + $0x804] sm:$0xf0]  ;;  %v8574_v61 = vld [vmem:[%s10128_s7 + $0xb60] sm:$0xf] }
 0x22e   : > { %6260 = vmatpush.bf16.msra.mxu2 %v8311_v7  ;;  %v8151_v7 = vor.u32 %v9038_v60, %v8150_v57  ;;  %v8143_v27 = vor.u32 %v9036_v6, %v8142_v5  ;;  %v8510_v57 = vld [vmem:[%s10128_s7 + $0xae0] sm:$0xf]  ;;  %v9128_v60 = vld [vmem:[%s10128_s7 + $0xae4] sm:$0xf0] }
 0x22f   : > { %6274 = vmatpush.bf16.msra.mxu3 %v8375_v12  ;;  %v9068_v12 = vld [vmem:[%s10128_s7 + $0x904] sm:$0xf0]  ;;  %v8511_v6 = vor.u32 %v9128_v60, %v8510_v57  ;;  %v8414_v60 = vld [vmem:[%s10128_s7 + $0xa20] sm:$0xf] }
 0x230   : > { %6233 = vmatpush.bf16.msra.mxu0 %v8175_v19  ;;  %v8343_v19 = vor.u32 %v9086_v4, %v8342_v3  ;;  %v9160_v3 = vld [vmem:[%s10128_s7 + $0xbe4] sm:$0xf0]  ;;  %v10640_v4 = vor.u32 %v8763_v41, %v7092_v42  ;;  %v9122_v41 = vld [vmem:[%s10128_s7 + $0xab4] sm:$0xf0]  ;;  %v8550_v42 = vld [vmem:[%s10128_s7 + $0xb30] sm:$0xf] }
 0x231   : > { %6247 = vmatpush.bf16.msra.mxu1 %v8239_v20  ;;  %v9114_v20 = vld [vmem:[%s10128_s7 + $0xa74] sm:$0xf0] }
 0x232   : > { %6261 = vmatpush.bf16.msra.mxu2 %v8303_v21  ;;  %v8518_v21 = vld [vmem:[%s10128_s7 + $0xaf0] sm:$0xf]  ;;  %v8455_v37 = vor.u32 %v9114_v20, %v8454_v17  ;;  %v9158_v17 = vld [vmem:[%s10128_s7 + $0xbd4] sm:$0xf0] }
 0x233   : > { %6275 = vmatpush.bf16.msra.mxu3 %v8367_v26  ;;  %v8646_v26 = vld [vmem:[%s10128_s7 + $0xbf0] sm:$0xf]  ;;  %v8519_v45 = vor.u32 %v9130_v22, %v8518_v21  ;;  %v8430_v22 = vld [vmem:[%s10128_s7 + $0xa40] sm:$0xf] }
 0x234   : > { %6234 = vmatpush.bf16.msra.mxu0 %v8167_v32  ;;  %v8271_v32 = vor.u32 %v9068_v12, %v8270_v11  ;;  %v8502_v11 = vld [vmem:[%s10128_s7 + $0xad0] sm:$0xf]  ;;  %v8639_v12 = vor.u32 %v9160_v3, %v8638_v1  ;;  %v9120_v3 = vld [vmem:[%s10128_s7 + $0xaa4] sm:$0xf0] }
 0x235   : > { %6248 = vmatpush.bf16.msra.mxu1 %v8231_v33  ;;  %v7090_v33 = vld [vmem:[%s11356_s0 + $0x48] sm:$0xf] }
 0x236   : > { %6262 = vmatpush.bf16.msra.mxu2 %v8295_v34  ;;  %v8775_v34 = vld [vmem:[%s11356_s0 + $0xa8] sm:$0xf0] }
 0x237   : > { %6276 = vmatpush.bf16.msra.mxu3 %v8359_v38  ;;  %v7084_v38 = vld [vmem:[%s11356_s0 + $0xa4] sm:$0xf0] }
 0x238   : > { %6235 = vmatpush.bf16.msra.mxu0 %v8159_v56  ;;  %v9112_v56 = vld [vmem:[%s10128_s7 + $0xa64] sm:$0xf0]  ;;  %v10636_v0 = vor.u32 %v8762_v35, %v7084_v38  ;;  %v8422_v35 = vld [vmem:[%s10128_s7 + $0xa30] sm:$0xf] }
 0x239   : > { %6249 = vmatpush.bf16.msra.mxu1 %v8223_v58  ;;  %v8647_v58 = vor.u32 %v9162_v28, %v8646_v26  ;;  %v8447_v5 = vor.u32 %v9112_v56, %v8446_v53  ;;  %v8631_v26 = vor.u32 %v9158_v17, %v8630_v16  ;;  %v8558_v28 = vld [vmem:[%s10128_s7 + $0xb40] sm:$0xf]  ;;  %v9154_v53 = vld [vmem:[%s10128_s7 + $0xbb4] sm:$0xf0] }
 0x23a   : > { %6263 = vmatpush.bf16.msra.mxu2 %v8287_v59  ;;  %v10629_v59 = vor.u32 %v8774_v30, %v7082_v29  ;;  %v9140_v29 = vld [vmem:[%s10128_s7 + $0xb44] sm:$0xf0]  ;;  %v8622_v30 = vld [vmem:[%s10128_s7 + $0xbc0] sm:$0xf]  ;;  %v9118_v16 = vld [vmem:[%s10128_s7 + $0xa94] sm:$0xf0] }
 0x23b   : > { %6277 = vmatpush.bf16.msra.mxu3 %v8351_v63  ;;  %v10634_v63 = vor.u32 %v8775_v34, %v7090_v33  ;;  %v8559_v34 = vor.u32 %v9140_v29, %v8558_v28  ;;  %v9116_v28 = vld [vmem:[%s10128_s7 + $0xa84] sm:$0xf0]  ;;  %v8526_v29 = vld [vmem:[%s10128_s7 + $0xb00] sm:$0xf] }
 0x23c   : > { %6236 = vmatpush.bf16.msra.mxu0 %v8151_v7  ;;  %v8575_v7 = vor.u32 %v9144_v62, %v8574_v61  ;;  %v9104_v61 = vld [vmem:[%s10128_s7 + $0xa24] sm:$0xf0]  ;;  %v8478_v62 = vld [vmem:[%s10128_s7 + $0xaa0] sm:$0xf] }
 0x23d   : > { %6250 = vmatpush.bf16.msra.mxu1 %v8215_v13  ;;  %v9126_v13 = vld [vmem:[%s10128_s7 + $0xad4] sm:$0xf0] }
 0x23e   : > { %6264 = vmatpush.bf16.msra.mxu2 %v8279_v14  ;;  %v8566_v14 = vld [vmem:[%s10128_s7 + $0xb50] sm:$0xf]  ;;  %v8503_v20 = vor.u32 %v9126_v13, %v8502_v11 }
 0x23f   : > { %6278 = vmatpush.bf16.msra.mxu3 %v8343_v19  ;;  %v8439_v19 = vor.u32 %v9110_v10, %v8438_v8  ;;  %v8567_v21 = vor.u32 %v9142_v15, %v8566_v14  ;;  %v9152_v8 = vld [vmem:[%s10128_s7 + $0xba4] sm:$0xf0]  ;;  %v8415_v10 = vor.u32 %v9104_v61, %v8414_v60  ;;  %v8406_v11 = vld [vmem:[%s10128_s7 + $0xa10] sm:$0xf]  ;;  %v9102_v14 = vld [vmem:[%s10128_s7 + $0xa14] sm:$0xf0] }
 0x240   : > { %6237 = vmatpush.bf16.msra.mxu0 %v8143_v27  ;;  %v9124_v27 = vld [vmem:[%s10128_s7 + $0xac4] sm:$0xf0]  ;;  %v8470_v15 = vld [vmem:[%s10128_s7 + $0xa90] sm:$0xf] }
 0x241   : > { %6251 = vmatpush.bf16.msra.mxu1 %v8207_v31  ;;  %v9156_v31 = vld [vmem:[%s10128_s7 + $0xbc4] sm:$0xf0]  ;;  %v8495_v33 = vor.u32 %v9124_v27, %v8494_v24  ;;  %v8462_v27 = vld [vmem:[%s10128_s7 + $0xa80] sm:$0xf] }
 0x242   : > { %6265 = vmatpush.bf16.msra.mxu2 %v8271_v32  ;;  %v8431_v32 = vor.u32 %v9108_v23, %v8430_v22  ;;  %v8623_v38 = vor.u32 %v9156_v31, %v8622_v30  ;;  %v9150_v22 = vld [vmem:[%s10128_s7 + $0xb94] sm:$0xf0]  ;;  %v8398_v23 = vld [vmem:[%s10128_s7 + $0xa00] sm:$0xf]  ;;  %v9100_v24 = vld [vmem:[%s10128_s7 + $0xa04] sm:$0xf0]  ;;  %v8471_v31 = vor.u32 %v9118_v16, %v8470_v15  ;;  %v8463_v60 = vor.u32 %v9116_v28, %v8462_v27 }
 0x243   : > { %6279 = vmatpush.bf16.msra.mxu3 %v8335_v36  ;;  %6238 = vmatmul.bf16.vlgmr.msra.gmra.mxu0 %v10629_v59  ;;  %v9106_v36 = vld [vmem:[%s10128_s7 + $0xa34] sm:$0xf0]  ;;  %v9132_v30 = vld [vmem:[%s10128_s7 + $0xb04] sm:$0xf0]  ;;  %v8791_v15 = vld [vmem:[%s10128_s7 + $0x64] sm:$0xf] }
 0x244   : > { %6286 = vmatpush.bf16.msrb.mxu0 %v8455_v37  ;;  %6252 = vmatmul.bf16.vlgmr.msra.gmra.mxu1 %v10636_v0  ;;  %v8486_v37 = vld [vmem:[%s10128_s7 + $0xab0] sm:$0xf]  ;;  %v8423_v56 = vor.u32 %v9106_v36, %v8422_v35  ;;  %v8527_v61 = vor.u32 %v9132_v30, %v8526_v29 }
 0x245   : > { %6300 = vmatpush.bf16.msrb.mxu1 %v8519_v45  ;;  %6266 = vmatmul.bf16.vlgmr.msra.gmra.mxu2 %v10634_v63  ;;  %v9138_v45 = vld [vmem:[%s10128_s7 + $0xb34] sm:$0xf0]  ;;  %v8487_v57 = vor.u32 %v9122_v41, %v8486_v37  ;;  %v8678_v35 = vld [vmem:[%s10128_s7 + $0xc30] sm:$0xf]  ;;  %v7176_v41 = vld [vmem:[%s10128_s7 + $0x78] sm:$0xf0] }
 0x246   : > { %6314 = vmatpush.bf16.msrb.mxu2 %v8583_v50  ;;  %6280 = vmatmul.bf16.vlgmr.msra.gmra.mxu3 %v10640_v4  ;;  %v8614_v50 = vld [vmem:[%s10128_s7 + $0xbb0] sm:$0xf]  ;;  %v9170_v37 = vld [vmem:[%s10128_s7 + $0xc34] sm:$0xf0] }
 0x247   : > { %6328 = vmatpush.bf16.msrb.mxu3 %v8647_v58  ;;  %v8551_v58 = vor.u32 %v9138_v45, %v8550_v42  ;;  %v8615_v1 = vor.u32 %v9154_v53, %v8614_v50  ;;  %v8809_v42 = vld [vmem:[%s10128_s7 + $0xf4] sm:$0xf]  ;;  %v7240_v45 = vld [vmem:[%s10128_s7 + $0xf8] sm:$0xf0]  ;;  %v8399_v53 = vor.u32 %v9100_v24, %v8398_v23  ;;  %v8823_v24 = vld [vmem:[%s10128_s7 + $0x164] sm:$0xf] }
 0x248   : > { %6287 = vmatpush.bf16.msrb.mxu0 %v8447_v5  ;;  %v8542_v5 = vld [vmem:[%s10128_s7 + $0xb20] sm:$0xf]  ;;  %v8825_v50 = vld [vmem:[%s10128_s7 + $0x174] sm:$0xf] }
 0x249   : > { %6301 = vmatpush.bf16.msrb.mxu1 %v8511_v6  ;;  %v9136_v6 = vld [vmem:[%s10128_s7 + $0xb24] sm:$0xf0] }
 0x24a   : > { %6315 = vmatpush.bf16.msrb.mxu2 %v8575_v7  ;;  %v8606_v7 = vld [vmem:[%s10128_s7 + $0xba0] sm:$0xf]  ;;  %v8543_v13 = vor.u32 %v9136_v6, %v8542_v5  ;;  %v8679_v6 = vor.u32 %v9170_v37, %v8678_v35  ;;  %v7160_v35 = vld [vmem:[%s10128_s7 + $0x58] sm:$0xf0] }
 0x24b   : > { %6329 = vmatpush.bf16.msrb.mxu3 %v8639_v12  ;;  %v8479_v12 = vor.u32 %v9120_v3, %v8478_v62  ;;  %v8607_v17 = vor.u32 %v9152_v8, %v8606_v7  ;;  %v7106_v62 = vld [vmem:[%s11356_s0 + $0x58] sm:$0xf]  ;;  %v8764_v3 = vld [vmem:[%s11356_s0 + $0x54] sm:$0xf]  ;;  %v8765_v8 = vld [vmem:[%s11356_s0 + $0x5c] sm:$0xf] }
 0x24c   : > { %6288 = vmatpush.bf16.msrb.mxu0 %v8439_v19  ;;  %v8534_v19 = vld [vmem:[%s10128_s7 + $0xb10] sm:$0xf]  ;;  %v7100_v7 = vld [vmem:[%s11356_s0 + $0xb4] sm:$0xf0]  ;;  %v7224_v37 = vld [vmem:[%s10128_s7 + $0xd8] sm:$0xf0] }
 0x24d   : > { %6302 = vmatpush.bf16.msrb.mxu1 %v8503_v20  ;;  %v9134_v20 = vld [vmem:[%s10128_s7 + $0xb14] sm:$0xf0]  ;;  %v10736_v23 = vor.u32 %v8764_v3, %v7100_v7  ;;  %v7280_v3 = vld [vmem:[%s10128_s7 + $0x148] sm:$0xf0] }
 0x24e   : > { %6316 = vmatpush.bf16.msrb.mxu2 %v8567_v21  ;;  %v8598_v21 = vld [vmem:[%s10128_s7 + $0xb90] sm:$0xf] }
 0x24f   : > { %6330 = vmatpush.bf16.msrb.mxu3 %v8631_v26  ;;  %v8407_v26 = vor.u32 %v9102_v14, %v8406_v11  ;;  %v8599_v36 = vor.u32 %v9150_v22, %v8598_v21  ;;  %v9168_v14 = vld [vmem:[%s10128_s7 + $0xc24] sm:$0xf0]  ;;  %v7232_v21 = vld [vmem:[%s10128_s7 + $0xe8] sm:$0xf0] }
 0x250   : > { %6289 = vmatpush.bf16.msrb.mxu0 %v8431_v32  ;;  %v8535_v32 = vor.u32 %v9134_v20, %v8534_v19  ;;  %v7168_v19 = vld [vmem:[%s10128_s7 + $0x68] sm:$0xf0]  ;;  %v8807_v20 = vld [vmem:[%s10128_s7 + $0xe4] sm:$0xf] }
 0x251   : > { %6303 = vmatpush.bf16.msrb.mxu1 %v8495_v33  ;;  %v8590_v33 = vld [vmem:[%s10128_s7 + $0xb80] sm:$0xf]  ;;  %v7171_v29 = vor.u32 %v8791_v15, %v7168_v19  ;;  %v7235_v30 = vor.u32 %v8807_v20, %v7232_v21  ;;  %v8801_v15 = vld [vmem:[%s10128_s7 + $0xb4] sm:$0xf]  ;;  %v7272_v20 = vld [vmem:[%s10128_s7 + $0x138] sm:$0xf0] }
 0x252   : > { %6317 = vmatpush.bf16.msrb.mxu2 %v8559_v34  ;;  %v9148_v34 = vld [vmem:[%s10128_s7 + $0xb84] sm:$0xf0]  ;;  %v8817_v19 = vld [vmem:[%s10128_s7 + $0x134] sm:$0xf]  ;;  %v8839_v21 = vld [vmem:[%s10128_s7 + $0x1e4] sm:$0xf] }
 0x253   : > { %6331 = vmatpush.bf16.msrb.mxu3 %v8623_v38  ;;  %v8793_v38 = vld [vmem:[%s10128_s7 + $0x74] sm:$0xf]  ;;  %v8591_v5 = vor.u32 %v9148_v34, %v8590_v33 }
 0x254   : > { %6290 = vmatpush.bf16.msrb.mxu0 %v8423_v56  ;;  %v7304_v56 = vld [vmem:[%s10128_s7 + $0x178] sm:$0xf0]  ;;  %v7179_v11 = vor.u32 %v8793_v38, %v7176_v41  ;;  %v8789_v33 = vld [vmem:[%s10128_s7 + $0x54] sm:$0xf] }
 0x255   : > { %6304 = vmatpush.bf16.msrb.mxu1 %v8487_v57  ;;  %v7098_v57 = vld [vmem:[%s11356_s0 + $0x50] sm:$0xf]  ;;  %v7307_v16 = vor.u32 %v8825_v50, %v7304_v56  ;;  %v8821_v38 = vld [vmem:[%s10128_s7 + $0x154] sm:$0xf]  ;;  %v7288_v41 = vld [vmem:[%s10128_s7 + $0x158] sm:$0xf0]  ;;  %v7163_v50 = vor.u32 %v8789_v33, %v7160_v35  ;;  %v7275_v33 = vor.u32 %v8817_v19, %v7272_v20 }
 0x256   : > { %6318 = vmatpush.bf16.msrb.mxu2 %v8551_v58  ;;  %v8776_v58 = vld [vmem:[%s11356_s0 + $0xb0] sm:$0xf0]  ;;  %v9164_v56 = vld [vmem:[%s10128_s7 + $0xc04] sm:$0xf0]  ;;  %v8799_v35 = vld [vmem:[%s10128_s7 + $0xa4] sm:$0xf] }
 0x257   : > { %6332 = vmatpush.bf16.msrb.mxu3 %v8615_v1  ;;  %v8777_v1 = vld [vmem:[%s11356_s0 + $0xb8] sm:$0xf0]  ;;  %v7248_v19 = vld [vmem:[%s10128_s7 + $0x108] sm:$0xf0]  ;;  %v8833_v20 = vld [vmem:[%s10128_s7 + $0x1b4] sm:$0xf] }
 0x258   : > { %6291 = vmatpush.bf16.msrb.mxu0 %v8415_v10  ;;  %v7108_v10 = vld [vmem:[%s11356_s0 + $0xbc] sm:$0xf0]  ;;  %v10734_v22 = vor.u32 %v8777_v1, %v7106_v62  ;;  %v7216_v62 = vld [vmem:[%s10128_s7 + $0xc8] sm:$0xf0]  ;;  %v8819_v1 = vld [vmem:[%s10128_s7 + $0x144] sm:$0xf] }
 0x259   : > { %6305 = vmatpush.bf16.msrb.mxu1 %v8479_v12  ;;  %v7243_v12 = vor.u32 %v8809_v42, %v7240_v45  ;;  %v10740_v27 = vor.u32 %v8765_v8, %v7108_v10  ;;  %v8654_v45 = vld [vmem:[%s10128_s7 + $0xc00] sm:$0xf] }
 0x25a   : > { %6319 = vmatpush.bf16.msrb.mxu2 %v8543_v13  ;;  %v8670_v13 = vld [vmem:[%s10128_s7 + $0xc20] sm:$0xf]  ;;  %v8655_v7 = vor.u32 %v9164_v56, %v8654_v45  ;;  %v7352_v45 = vld [vmem:[%s10128_s7 + $0x1d8] sm:$0xf0]  ;;  %v8781_v56 = vld [vmem:[%s10128_s7 + $0x14] sm:$0xf] }
 0x25b   : > { %6333 = vmatpush.bf16.msrb.mxu3 %v8607_v17  ;;  %v10729_v17 = vor.u32 %v8776_v58, %v7098_v57  ;;  %v8671_v28 = vor.u32 %v9168_v14, %v8670_v13  ;;  %v8787_v57 = vld [vmem:[%s10128_s7 + $0x44] sm:$0xf]  ;;  %v7152_v58 = vld [vmem:[%s10128_s7 + $0x48] sm:$0xf0]  ;;  %v7283_v13 = vor.u32 %v8819_v1, %v7280_v3  ;;  %v8813_v1 = vld [vmem:[%s10128_s7 + $0x114] sm:$0xf] }
 0x25c   : > { %6292 = vmatpush.bf16.msrb.mxu0 %v8407_v26  ;;  %v7296_v26 = vld [vmem:[%s10128_s7 + $0x168] sm:$0xf0]  ;;  %v7155_v8 = vor.u32 %v8787_v57, %v7152_v58  ;;  %v7128_v57 = vld [vmem:[%s10128_s7 + $0x18] sm:$0xf0] }
 0x25d   : > { %6306 = vmatpush.bf16.msrb.mxu1 %v8471_v31  ;;  %v8662_v31 = vld [vmem:[%s10128_s7 + $0xc10] sm:$0xf]  ;;  %v7299_v34 = vor.u32 %v8823_v24, %v7296_v26  ;;  %v7360_v24 = vld [vmem:[%s10128_s7 + $0x1e8] sm:$0xf0]  ;;  %v7114_v26 = vld [vmem:[%s11356_s0 + $0x60] sm:$0xf] }
 0x25e   : > { %6320 = vmatpush.bf16.msrb.mxu2 %v8535_v32  ;;  %v9166_v32 = vld [vmem:[%s10128_s7 + $0xc14] sm:$0xf0]  ;;  %v7256_v3 = vld [vmem:[%s10128_s7 + $0x118] sm:$0xf0] }
 0x25f   : > { %6334 = vmatpush.bf16.msrb.mxu3 %v8599_v36  ;;  %v8805_v36 = vld [vmem:[%s10128_s7 + $0xd4] sm:$0xf]  ;;  %v8663_v42 = vor.u32 %v9166_v32, %v8662_v31  ;;  %v8783_v31 = vld [vmem:[%s10128_s7 + $0x24] sm:$0xf]  ;;  %v7136_v32 = vld [vmem:[%s10128_s7 + $0x28] sm:$0xf0] }
 0x260   : > { %6293 = vmatpush.bf16.msrb.mxu0 %v8399_v53  ;;  %v7227_v53 = vor.u32 %v8805_v36, %v7224_v37  ;;  %v7200_v36 = vld [vmem:[%s10128_s7 + $0xa8] sm:$0xf0]  ;;  %v8815_v37 = vld [vmem:[%s10128_s7 + $0x124] sm:$0xf] }
 0x261   : > { %6307 = vmatpush.bf16.msrb.mxu1 %v8463_v60  ;;  %v7291_v60 = vor.u32 %v8821_v38, %v7288_v41  ;;  %v7264_v41 = vld [vmem:[%s10128_s7 + $0x128] sm:$0xf0] }
 0x262   : > { %6321 = vmatpush.bf16.msrb.mxu2 %v8527_v61  ;;  %v8803_v61 = vld [vmem:[%s10128_s7 + $0xc4] sm:$0xf]  ;;  %v7267_v58 = vor.u32 %v8815_v37, %v7264_v41 }
 0x263   : > { %6335 = vmatpush.bf16.msrb.mxu3 %v8591_v5  ;;  %6294 = vmatmul.bf16.vlgmr.msrb.gmra.mxu0 %v10729_v17  ;;  %v8841_v5 = vld [vmem:[%s10128_s7 + $0x1f4] sm:$0xf]  ;;  %v7219_v10 = vor.u32 %v8803_v61, %v7216_v62  ;;  %v7192_v62 = vld [vmem:[%s10128_s7 + $0x98] sm:$0xf0]  ;;  %v8831_v41 = vld [vmem:[%s10128_s7 + $0x1a4] sm:$0xf] }
 0x264   : > { %6346 = vmatpush.bf16.msra.mxu0 %v8679_v6  ;;  %6308 = vmatmul.bf16.vlgmr.msrb.gmra.mxu1 %v10736_v23  ;;  %v7368_v6 = vld [vmem:[%s10128_s7 + $0x1f8] sm:$0xf0]  ;;  %v8797_v61 = vld [vmem:[%s10128_s7 + $0x94] sm:$0xf] }
 0x265   : > { %6356 = vmatpush.bf16.msra.mxu1 %v7179_v11  ;;  %6322 = vmatmul.bf16.vlgmr.msrb.gmra.mxu2 %v10734_v22  ;;  %v8785_v11 = vld [vmem:[%s10128_s7 + $0x34] sm:$0xf]  ;;  %v7371_v14 = vor.u32 %v8841_v5, %v7368_v6  ;;  %v8835_v5 = vld [vmem:[%s10128_s7 + $0x1c4] sm:$0xf]  ;;  %v7344_v6 = vld [vmem:[%s10128_s7 + $0x1c8] sm:$0xf0] }
 0x266   : > { %6370 = vmatpush.bf16.msra.mxu2 %v7243_v12  ;;  %6336 = vmatmul.bf16.vlgmr.msrb.gmra.mxu3 %v10740_v27  ;;  %v7144_v12 = vld [vmem:[%s10128_s7 + $0x38] sm:$0xf0] }
 0x267   : > { %6384 = vmatpush.bf16.msra.mxu3 %v7307_v16  ;;  %v7208_v16 = vld [vmem:[%s10128_s7 + $0xb8] sm:$0xf0] }
 0x268   : > { %6347 = vmatpush.bf16.msra.mxu0 %v8671_v28  ;;  %v8778_v28 = vld [vmem:[%s11356_s0 + $0xc0] sm:$0xf0] }
 0x269   : > { %6357 = vmatpush.bf16.msra.mxu1 %v7171_v29  ;;  %v7147_v29 = vor.u32 %v8785_v11, %v7144_v12  ;;  %v10783_v38 = vor.u32 %v8778_v28, %v7114_v26  ;;  %v7120_v11 = vld [vmem:[%s10128_s7 + $0x8] sm:$0xf0]  ;;  %v8795_v12 = vld [vmem:[%s10128_s7 + $0x84] sm:$0xf]  ;;  %v7432_v26 = vld [vmem:[%s10128_s7 + $0x278] sm:$0xf0] }
 0x26a   : > { %6371 = vmatpush.bf16.msra.mxu2 %v7235_v30  ;;  %v7211_v30 = vor.u32 %v8801_v15, %v7208_v16  ;;  %v7184_v15 = vld [vmem:[%s10128_s7 + $0x88] sm:$0xf0]  ;;  %v8811_v16 = vld [vmem:[%s10128_s7 + $0x104] sm:$0xf]  ;;  %v8873_v28 = vld [vmem:[%s10128_s7 + $0x2f4] sm:$0xf] }
 0x26b   : > { %6385 = vmatpush.bf16.msra.mxu3 %v7299_v34  ;;  %v7363_v34 = vor.u32 %v8839_v21, %v7360_v24  ;;  %v7336_v21 = vld [vmem:[%s10128_s7 + $0x1b8] sm:$0xf0]  ;;  %v8857_v24 = vld [vmem:[%s10128_s7 + $0x274] sm:$0xf] }
 0x26c   : > { %6348 = vmatpush.bf16.msra.mxu0 %v8663_v42  ;;  %v8837_v42 = vld [vmem:[%s10128_s7 + $0x1d4] sm:$0xf] }
 0x26d   : > { %6358 = vmatpush.bf16.msra.mxu1 %v7163_v50  ;;  %v7139_v50 = vor.u32 %v8783_v31, %v7136_v32  ;;  %v7187_v31 = vor.u32 %v8795_v12, %v7184_v15  ;;  %v8889_v32 = vld [vmem:[%s10128_s7 + $0x374] sm:$0xf]  ;;  %v8827_v15 = vld [vmem:[%s10128_s7 + $0x184] sm:$0xf] }
 0x26e   : > { %6372 = vmatpush.bf16.msra.mxu2 %v7227_v53  ;;  %v7203_v53 = vor.u32 %v8799_v35, %v7200_v36  ;;  %v7339_v35 = vor.u32 %v8833_v20, %v7336_v21  ;;  %v7435_v36 = vor.u32 %v8857_v24, %v7432_v26  ;;  %v8885_v12 = vld [vmem:[%s10128_s7 + $0x354] sm:$0xf]  ;;  %v8851_v20 = vld [vmem:[%s10128_s7 + $0x244] sm:$0xf]  ;;  %v7408_v21 = vld [vmem:[%s10128_s7 + $0x248] sm:$0xf0] }
 0x26f   : > { %6386 = vmatpush.bf16.msra.mxu3 %v7291_v60  ;;  %v7355_v60 = vor.u32 %v8837_v42, %v7352_v45  ;;  %v7328_v42 = vld [vmem:[%s10128_s7 + $0x1a8] sm:$0xf0]  ;;  %v8855_v45 = vld [vmem:[%s10128_s7 + $0x264] sm:$0xf] }
 0x270   : > { %6349 = vmatpush.bf16.msra.mxu0 %v8655_v7  ;;  %v7131_v7 = vor.u32 %v8781_v56, %v7128_v57  ;;  %v8871_v56 = vld [vmem:[%s10128_s7 + $0x2e4] sm:$0xf]  ;;  %v7488_v57 = vld [vmem:[%s10128_s7 + $0x2e8] sm:$0xf0] }
 0x271   : > { %6359 = vmatpush.bf16.msra.mxu1 %v7155_v8  ;;  %v7195_v8 = vor.u32 %v8797_v61, %v7192_v62  ;;  %v7331_v61 = vor.u32 %v8831_v41, %v7328_v42  ;;  %v8867_v24 = vld [vmem:[%s10128_s7 + $0x2c4] sm:$0xf]  ;;  %v7472_v26 = vld [vmem:[%s10128_s7 + $0x2c8] sm:$0xf0]  ;;  %v8865_v41 = vld [vmem:[%s10128_s7 + $0x2b4] sm:$0xf] }
 0x272   : > { %6373 = vmatpush.bf16.msra.mxu2 %v7219_v10  ;;  %v8779_v10 = vld [vmem:[%s10128_s7 + $0x4] sm:$0xf]  ;;  %v7464_v42 = vld [vmem:[%s10128_s7 + $0x2b8] sm:$0xf0] }
 0x273   : > { %6387 = vmatpush.bf16.msra.mxu3 %v7283_v13  ;;  %8684 = vmatmul.msk.bf16.vlgmr.msra.gmra.mxu0 %vm6002_vm0, %v10783_v38  ;;  %v7259_v13 = vor.u32 %v8813_v1, %v7256_v3  ;;  %v7491_v1 = vor.u32 %v8871_v56, %v7488_v57  ;;  %v8829_v3 = vld [vmem:[%s10128_s7 + $0x194] sm:$0xf]  ;;  %v7616_v56 = vld [vmem:[%s10128_s7 + $0x3e8] sm:$0xf0] }
 0x274   : > { %6398 = vmatpush.bf16.msrb.mxu0 %v7371_v14  ;;  %v7347_v14 = vor.u32 %v8835_v5, %v7344_v6  ;;  %v7320_v5 = vld [vmem:[%s10128_s7 + $0x198] sm:$0xf0]  ;;  %v8853_v6 = vld [vmem:[%s10128_s7 + $0x254] sm:$0xf] }
 0x275   : > { %6360 = vmatpush.bf16.msra.mxu1 %v7147_v29  ;;  %v7496_v29 = vld [vmem:[%s10128_s7 + $0x2f8] sm:$0xf0] }
 0x276   : > { %6374 = vmatpush.bf16.msra.mxu2 %v7211_v30  ;;  %v7123_v30 = vor.u32 %v8779_v10, %v7120_v11  ;;  %v7499_v37 = vor.u32 %v8873_v28, %v7496_v29  ;;  %v8869_v10 = vld [vmem:[%s10128_s7 + $0x2d4] sm:$0xf]  ;;  %v7480_v11 = vld [vmem:[%s10128_s7 + $0x2d8] sm:$0xf0]  ;;  %v7536_v28 = vld [vmem:[%s10128_s7 + $0x348] sm:$0xf0] }
 0x277   : > { %6388 = vmatpush.bf16.msra.mxu3 %v7275_v33  ;;  %v7560_v33 = vld [vmem:[%s10128_s7 + $0x378] sm:$0xf0]  ;;  %v8905_v29 = vld [vmem:[%s10128_s7 + $0x3f4] sm:$0xf] }
 0x278   : > { %6399 = vmatpush.bf16.msrb.mxu0 %v7363_v34  ;;  %v7251_v34 = vor.u32 %v8811_v16, %v7248_v19  ;;  %v7483_v19 = vor.u32 %v8869_v10, %v7480_v11  ;;  %v7608_v10 = vld [vmem:[%s10128_s7 + $0x3d8] sm:$0xf0] }
 0x279   : > { %6361 = vmatpush.bf16.msra.mxu1 %v7139_v50  ;;  %v7563_v50 = vor.u32 %v8889_v32, %v7560_v33  ;;  %v7411_v32 = vor.u32 %v8851_v20, %v7408_v21  ;;  %v7475_v33 = vor.u32 %v8867_v24, %v7472_v26  ;;  %v8877_v20 = vld [vmem:[%s10128_s7 + $0x314] sm:$0xf]  ;;  %v8899_v21 = vld [vmem:[%s10128_s7 + $0x3c4] sm:$0xf] }
 0x27a   : > { %6375 = vmatpush.bf16.msra.mxu2 %v7203_v53  ;;  %v7424_v53 = vld [vmem:[%s10128_s7 + $0x268] sm:$0xf0] }
 0x27b   : > { %6389 = vmatpush.bf16.msra.mxu3 %v7267_v58  ;;  %v8887_v58 = vld [vmem:[%s10128_s7 + $0x364] sm:$0xf]  ;;  %v7427_v62 = vor.u32 %v8855_v45, %v7424_v53  ;;  %v8881_v45 = vld [vmem:[%s10128_s7 + $0x334] sm:$0xf] }
 0x27c   : > { %6400 = vmatpush.bf16.msrb.mxu0 %v7355_v60  ;;  %v7552_v60 = vld [vmem:[%s10128_s7 + $0x368] sm:$0xf0]  ;;  %v8903_v53 = vld [vmem:[%s10128_s7 + $0x3e4] sm:$0xf] }
 0x27d   : > { %6362 = vmatpush.bf16.msra.mxu1 %v7131_v7  ;;  %v7555_v7 = vor.u32 %v8887_v58, %v7552_v60  ;;  %v7467_v58 = vor.u32 %v8865_v41, %v7464_v42  ;;  %v8847_v60 = vld [vmem:[%s10128_s7 + $0x224] sm:$0xf]  ;;  %v7688_v41 = vld [vmem:[%s10128_s7 + $0x478] sm:$0xf0]  ;;  %v8937_v42 = vld [vmem:[%s10128_s7 + $0x4f4] sm:$0xf] }
 0x27e   : > { %6376 = vmatpush.bf16.msra.mxu2 %v7195_v8  ;;  %v7416_v8 = vld [vmem:[%s10128_s7 + $0x258] sm:$0xf0] }
 0x27f   : > { %6390 = vmatpush.bf16.msra.mxu3 %v7259_v13  ;;  %v7544_v13 = vld [vmem:[%s10128_s7 + $0x358] sm:$0xf0]  ;;  %v7419_v16 = vor.u32 %v8853_v6, %v7416_v8  ;;  %v8879_v6 = vld [vmem:[%s10128_s7 + $0x324] sm:$0xf]  ;;  %v8901_v8 = vld [vmem:[%s10128_s7 + $0x3d4] sm:$0xf] }
 0x280   : > { %6401 = vmatpush.bf16.msrb.mxu0 %v7347_v14  ;;  %v7323_v14 = vor.u32 %v8829_v3, %v7320_v5  ;;  %v8863_v3 = vld [vmem:[%s10128_s7 + $0x2a4] sm:$0xf]  ;;  %v7456_v5 = vld [vmem:[%s10128_s7 + $0x2a8] sm:$0xf0] }
 0x281   : > { %6363 = vmatpush.bf16.msra.mxu1 %v7123_v30  ;;  %v7624_v30 = vld [vmem:[%s10128_s7 + $0x3f8] sm:$0xf0] }
 0x282   : > { %6377 = vmatpush.bf16.msra.mxu2 %v7187_v31 }
 0x283   : > { %6391 = vmatpush.bf16.msra.mxu3 %v7251_v34  ;;  %v8849_v34 = vld [vmem:[%s10128_s7 + $0x234] sm:$0xf] }
 0x284   : > { %6402 = vmatpush.bf16.msrb.mxu0 %v7339_v35  ;;  %6364 = vmatmul.bf16.vlgmr.msra.gmra.mxu1 %v10221_v2  ;;  %v7312_v2 = vld [vmem:[%s10128_s7 + $0x188] sm:$0xf0]  ;;  %v7400_v35 = vld [vmem:[%s10128_s7 + $0x238] sm:$0xf0] }
 0x285   : > { %6412 = vmatpush.bf16.msrb.mxu1 %v7435_v36  ;;  %6378 = vmatmul.bf16.vlgmr.msra.gmra.mxu2 %v10245_v18  ;;  %v7547_v18 = vor.u32 %v8885_v12, %v7544_v13  ;;  %v7315_v31 = vor.u32 %v8827_v15, %v7312_v2  ;;  %v7403_v57 = vor.u32 %v8849_v34, %v7400_v35  ;;  %v8845_v13 = vld [vmem:[%s10128_s7 + $0x214] sm:$0xf]  ;;  %v7448_v2 = vld [vmem:[%s10128_s7 + $0x298] sm:$0xf0]  ;;  %v7504_v34 = vld [vmem:[%s10128_s7 + $0x308] sm:$0xf0] }
 0x286   : > { %6426 = vmatpush.bf16.msrb.mxu2 %v7499_v37  ;;  %6392 = vmatmul.bf16.vlgmr.msra.gmra.mxu3 %v10229_v9  ;;  %v8883_v9 = vld [vmem:[%s10128_s7 + $0x344] sm:$0xf]  ;;  %v7627_v37 = vor.u32 %v8905_v29, %v7624_v30  ;;  %v7459_v12 = vor.u32 %v8863_v3, %v7456_v5  ;;  %v8897_v35 = vld [vmem:[%s10128_s7 + $0x3b4] sm:$0xf]  ;;  %v7584_v3 = vld [vmem:[%s10128_s7 + $0x3a8] sm:$0xf0] }
 0x287   : > { %6440 = vmatpush.bf16.msrb.mxu3 %v7563_v50  ;;  %v7539_v36 = vor.u32 %v8883_v9, %v7536_v28  ;;  %v7528_v50 = vld [vmem:[%s10128_s7 + $0x338] sm:$0xf0]  ;;  %v8843_v9 = vld [vmem:[%s10128_s7 + $0x204] sm:$0xf]  ;;  %v7376_v28 = vld [vmem:[%s10128_s7 + $0x208] sm:$0xf0] }
 0x288   : > { %6403 = vmatpush.bf16.msrb.mxu0 %v7331_v61  ;;  %v7392_v61 = vld [vmem:[%s10128_s7 + $0x228] sm:$0xf0]  ;;  %v8859_v29 = vld [vmem:[%s10128_s7 + $0x284] sm:$0xf] }
 0x289   : > { %6413 = vmatpush.bf16.msrb.mxu1 %v7427_v62  ;;  %v7531_v62 = vor.u32 %v8881_v45, %v7528_v50  ;;  %v7395_v11 = vor.u32 %v8847_v60, %v7392_v61  ;;  %v7752_v45 = vld [vmem:[%s10128_s7 + $0x4f8] sm:$0xf0]  ;;  %v7379_v50 = vor.u32 %v8843_v9, %v7376_v28  ;;  %v8919_v5 = vld [vmem:[%s10128_s7 + $0x464] sm:$0xf] }
 0x28a   : > { %6427 = vmatpush.bf16.msrb.mxu2 %v7491_v1  ;;  %v7619_v1 = vor.u32 %v8903_v53, %v7616_v56  ;;  %v8953_v56 = vld [vmem:[%s10128_s7 + $0x574] sm:$0xf]  ;;  %v8891_v9 = vld [vmem:[%s10128_s7 + $0x384] sm:$0xf] }
 0x28b   : > { %6441 = vmatpush.bf16.msrb.mxu3 %v7555_v7  ;;  %v7520_v7 = vld [vmem:[%s10128_s7 + $0x328] sm:$0xf0] }
 0x28c   : > { %6404 = vmatpush.bf16.msrb.mxu0 %v7323_v14  ;;  %v7384_v14 = vld [vmem:[%s10128_s7 + $0x218] sm:$0xf0]  ;;  %v7523_v15 = vor.u32 %v8879_v6, %v7520_v7  ;;  %v7680_v7 = vld [vmem:[%s10128_s7 + $0x468] sm:$0xf0] }
 0x28d   : > { %6414 = vmatpush.bf16.msrb.mxu1 %v7419_v16  ;;  %v7611_v16 = vor.u32 %v8901_v8, %v7608_v10  ;;  %v7387_v24 = vor.u32 %v8845_v13, %v7384_v14  ;;  %v8935_v8 = vld [vmem:[%s10128_s7 + $0x4e4] sm:$0xf]  ;;  %v7744_v10 = vld [vmem:[%s10128_s7 + $0x4e8] sm:$0xf0]  ;;  %v7683_v14 = vor.u32 %v8919_v5, %v7680_v7 }
 0x28e   : > { %6428 = vmatpush.bf16.msrb.mxu2 %v7483_v19  ;;  %v8861_v19 = vld [vmem:[%s10128_s7 + $0x294] sm:$0xf]  ;;  %v8911_v7 = vld [vmem:[%s10128_s7 + $0x424] sm:$0xf] }
 0x28f   : > { %6442 = vmatpush.bf16.msrb.mxu3 %v7547_v18  ;;  %v7600_v18 = vld [vmem:[%s10128_s7 + $0x3c8] sm:$0xf0]  ;;  %v7451_v26 = vor.u32 %v8861_v19, %v7448_v2  ;;  %v7576_v19 = vld [vmem:[%s10128_s7 + $0x398] sm:$0xf0]  ;;  %v8917_v2 = vld [vmem:[%s10128_s7 + $0x454] sm:$0xf] }
 0x290   : > { %6405 = vmatpush.bf16.msrb.mxu0 %v7315_v31  ;;  %v7603_v31 = vor.u32 %v8899_v21, %v7600_v18  ;;  %v8933_v21 = vld [vmem:[%s10128_s7 + $0x4d4] sm:$0xf]  ;;  %v7736_v18 = vld [vmem:[%s10128_s7 + $0x4d8] sm:$0xf0] }
 0x291   : > { %6415 = vmatpush.bf16.msrb.mxu1 %v7411_v32  ;;  %v7440_v32 = vld [vmem:[%s10128_s7 + $0x288] sm:$0xf0] }
 0x292   : > { %6429 = vmatpush.bf16.msrb.mxu2 %v7475_v33  ;;  %v8875_v33 = vld [vmem:[%s10128_s7 + $0x304] sm:$0xf]  ;;  %v7443_v53 = vor.u32 %v8859_v29, %v7440_v32  ;;  %v7739_v29 = vor.u32 %v8933_v21, %v7736_v18  ;;  %v8909_v21 = vld [vmem:[%s10128_s7 + $0x414] sm:$0xf]  ;;  %v7640_v18 = vld [vmem:[%s10128_s7 + $0x418] sm:$0xf0] }
 0x293   : > { %6443 = vmatpush.bf16.msrb.mxu3 %v7539_v36  ;;  %6406 = vmatmul.bf16.vlgmr.msrb.gmra.mxu0 %v10253_v25  ;;  %v7512_v25 = vld [vmem:[%s10128_s7 + $0x318] sm:$0xf0]  ;;  %v8931_v32 = vld [vmem:[%s10128_s7 + $0x4c4] sm:$0xf] }
 0x294   : > { %6454 = vmatpush.bf16.msra.mxu0 %v7627_v37  ;;  %v7515_v30 = vor.u32 %v8877_v20, %v7512_v25  ;;  %v7592_v36 = vld [vmem:[%s10128_s7 + $0x3b8] sm:$0xf0]  ;;  %v8921_v37 = vld [vmem:[%s10128_s7 + $0x474] sm:$0xf] }
 0x295   : > { %6416 = vmatpush.bf16.msrb.mxu1 %v7403_v57  ;;  %v7816_v57 = vld [vmem:[%s10128_s7 + $0x578] sm:$0xf0]  ;;  %v7595_v60 = vor.u32 %v8897_v35, %v7592_v36  ;;  %v7691_v61 = vor.u32 %v8921_v37, %v7688_v41  ;;  %v7792_v35 = vld [vmem:[%s10128_s7 + $0x548] sm:$0xf0]  ;;  %v8969_v36 = vld [vmem:[%s10128_s7 + $0x5f4] sm:$0xf] }
 0x296   : > { %6430 = vmatpush.bf16.msrb.mxu2 %v7467_v58  ;;  %v7507_v58 = vor.u32 %v8875_v33, %v7504_v34  ;;  %v7819_v6 = vor.u32 %v8953_v56, %v7816_v57  ;;  %v7672_v25 = vld [vmem:[%s10128_s7 + $0x458] sm:$0xf0]  ;;  %v7728_v33 = vld [vmem:[%s10128_s7 + $0x4c8] sm:$0xf0]  ;;  %v8947_v34 = vld [vmem:[%s10128_s7 + $0x544] sm:$0xf] }
 0x297   : > { %6444 = vmatpush.bf16.msrb.mxu3 %v7531_v62  ;;  %v7755_v62 = vor.u32 %v8937_v42, %v7752_v45  ;;  %v7675_v28 = vor.u32 %v8917_v2, %v7672_v25  ;;  %v7880_v37 = vld [vmem:[%s10128_s7 + $0x5f8] sm:$0xf0]  ;;  %v7731_v45 = vor.u32 %v8931_v32, %v7728_v33  ;;  %v7795_v56 = vor.u32 %v8947_v34, %v7792_v35  ;;  %v10926_v2 = vpop.f32.mrf.mxu0  ;;  %v7632_v32 = vld [vmem:[%s10128_s7 + $0x408] sm:$0xf0]  ;;  %v8923_v33 = vld [vmem:[%s10128_s7 + $0x484] sm:$0xf] }
 0x298   : > { %6455 = vmatpush.bf16.msra.mxu0 %v7619_v1  ;;  %v8895_v1 = vld [vmem:[%s10128_s7 + $0x3a4] sm:$0xf]  ;;  %v7883_v57 = vor.u32 %v8969_v36, %v7880_v37  ;;  %v7696_v36 = vld [vmem:[%s10128_s7 + $0x488] sm:$0xf0] }
 0x299   : > { %6417 = vmatpush.bf16.msrb.mxu1 %v7395_v11  ;;  %v8951_v11 = vld [vmem:[%s10128_s7 + $0x564] sm:$0xf]  ;;  %v7587_v13 = vor.u32 %v8895_v1, %v7584_v3  ;;  %v7872_v3 = vld [vmem:[%s10128_s7 + $0x5e8] sm:$0xf0] }
 0x29a   : > { %6431 = vmatpush.bf16.msrb.mxu2 %v7459_v12  ;;  %v7808_v12 = vld [vmem:[%s10128_s7 + $0x568] sm:$0xf0]  ;;  %v8967_v1 = vld [vmem:[%s10128_s7 + $0x5e4] sm:$0xf] }
 0x29b   : > { %6445 = vmatpush.bf16.msrb.mxu3 %v7523_v15  ;;  %v7747_v15 = vor.u32 %v8935_v8, %v7744_v10  ;;  %v7811_v20 = vor.u32 %v8951_v11, %v7808_v12  ;;  %v7648_v8 = vld [vmem:[%s10128_s7 + $0x428] sm:$0xf0]  ;;  %v7875_v11 = vor.u32 %v8967_v1, %v7872_v3  ;;  %v8927_v12 = vld [vmem:[%s10128_s7 + $0x4a4] sm:$0xf] }
 0x29c   : > { %6456 = vmatpush.bf16.msra.mxu0 %v7611_v16  ;;  %v8893_v16 = vld [vmem:[%s10128_s7 + $0x394] sm:$0xf]  ;;  %v8939_v37 = vld [vmem:[%s10128_s7 + $0x504] sm:$0xf] }
 0x29d   : > { %6418 = vmatpush.bf16.msrb.mxu1 %v7387_v24  ;;  %v8949_v24 = vld [vmem:[%s10128_s7 + $0x554] sm:$0xf] }
 0x29e   : > { %6432 = vmatpush.bf16.msrb.mxu2 %v7451_v26  ;;  %v7800_v26 = vld [vmem:[%s10128_s7 + $0x558] sm:$0xf0] }
 0x29f   : > { %6446 = vmatpush.bf16.msrb.mxu3 %v7515_v30  ;;  %v7568_v30 = vld [vmem:[%s10128_s7 + $0x388] sm:$0xf0] }
 0x2a0   : > { %6457 = vmatpush.bf16.msra.mxu0 %v7603_v31  ;;  %v8915_v31 = vld [vmem:[%s10128_s7 + $0x444] sm:$0xf]  ;;  %v7571_v41 = vor.u32 %v8891_v9, %v7568_v30  ;;  %v8941_v9 = vld [vmem:[%s10128_s7 + $0x514] sm:$0xf]  ;;  %v7856_v30 = vld [vmem:[%s10128_s7 + $0x5c8] sm:$0xf0] }
 0x2a1   : > { %6419 = vmatpush.bf16.msrb.mxu1 %v7379_v50  ;;  %v8913_v50 = vld [vmem:[%s10128_s7 + $0x434] sm:$0xf] }
 0x2a2   : > { %6433 = vmatpush.bf16.msrb.mxu2 %v7443_v53  ;;  %v7656_v53 = vld [vmem:[%s10128_s7 + $0x438] sm:$0xf0] }
 0x2a3   : > { %6447 = vmatpush.bf16.msrb.mxu3 %v7507_v58  ;;  %v8929_v58 = vld [vmem:[%s10128_s7 + $0x4b4] sm:$0xf]  ;;  %v7659_v5 = vor.u32 %v8913_v50, %v7656_v53  ;;  %v7944_v53 = vld [vmem:[%s10128_s7 + $0x678] sm:$0xf0] }
 0x2a4   : > { %6458 = vmatpush.bf16.msra.mxu0 %v7595_v60  ;;  %6420 = vmatmul.bf16.vlgmr.msrb.gmra.mxu1 %v10329_v47  ;;  %v7579_v47 = vor.u32 %v8893_v16, %v7576_v19  ;;  %v7720_v60 = vld [vmem:[%s10128_s7 + $0x4b8] sm:$0xf0]  ;;  %v8965_v16 = vld [vmem:[%s10128_s7 + $0x5d4] sm:$0xf] }
 0x2a5   : > { %6468 = vmatpush.bf16.msra.mxu1 %v7691_v61  ;;  %6434 = vmatmul.bf16.vlgmr.msrb.gmra.mxu2 %v10336_v52  ;;  %v7664_v52 = vld [vmem:[%s10128_s7 + $0x448] sm:$0xf0]  ;;  %v8945_v61 = vld [vmem:[%s10128_s7 + $0x534] sm:$0xf]  ;;  %v7864_v19 = vld [vmem:[%s10128_s7 + $0x5d8] sm:$0xf0] }
 0x2a6   : > { %6482 = vmatpush.bf16.msra.mxu2 %v7755_v62  ;;  %6448 = vmatmul.bf16.vlgmr.msrb.gmra.mxu3 %v10334_v51  ;;  %v7803_v51 = vor.u32 %v8949_v24, %v7800_v26  ;;  %v7667_v42 = vor.u32 %v8915_v31, %v7664_v52  ;;  %v7784_v62 = vld [vmem:[%s10128_s7 + $0x538] sm:$0xf0]  ;;  %v7867_v24 = vor.u32 %v8965_v16, %v7864_v19  ;;  %v8925_v26 = vld [vmem:[%s10128_s7 + $0x494] sm:$0xf]  ;;  %v10958_v16 = vpop.f32.mrf.mxu1  ;;  %v9015_v19 = vld [vmem:[%s10128_s7 + $0x764] sm:$0xf] }
 0x2a7   : > { %6496 = vmatpush.bf16.msra.mxu3 %v7819_v6  ;;  %v7723_v6 = vor.u32 %v8929_v58, %v7720_v60  ;;  %v7787_v10 = vor.u32 %v8945_v61, %v7784_v62  ;;  %v7643_v31 = vor.u32 %v8909_v21, %v7640_v18  ;;  %v8985_v50 = vld [vmem:[%s10128_s7 + $0x674] sm:$0xf]  ;;  %v7699_v60 = vor.u32 %v8923_v33, %v7696_v36  ;;  %v8072_v62 = vld [vmem:[%s10128_s7 + $0x778] sm:$0xf0]  ;;  %v10962_v21 = vpop.f32.mrf.mxu2 }
 0x2a8   : > { %6459 = vmatpush.bf16.msra.mxu0 %v7587_v13  ;;  %v7712_v13 = vld [vmem:[%s10128_s7 + $0x4a8] sm:$0xf0]  ;;  %v9017_v61 = vld [vmem:[%s10128_s7 + $0x774] sm:$0xf] }
 0x2a9   : > { %6469 = vmatpush.bf16.msra.mxu1 %v7683_v14  ;;  %v8943_v14 = vld [vmem:[%s10128_s7 + $0x524] sm:$0xf]  ;;  %v7715_v25 = vor.u32 %v8927_v12, %v7712_v13  ;;  %v8075_v12 = vor.u32 %v9017_v61, %v8072_v62  ;;  %v7936_v13 = vld [vmem:[%s10128_s7 + $0x668] sm:$0xf0]  ;;  %v8977_v62 = vld [vmem:[%s10128_s7 + $0x634] sm:$0xf] }
 0x2aa   : > { %6483 = vmatpush.bf16.msra.mxu2 %v7747_v15  ;;  %v7776_v15 = vld [vmem:[%s10128_s7 + $0x528] sm:$0xf0] }
 0x2ab   : > { %6497 = vmatpush.bf16.msra.mxu3 %v7811_v20  ;;  %v7651_v20 = vor.u32 %v8911_v7, %v7648_v8  ;;  %v8959_v8 = vld [vmem:[%s10128_s7 + $0x5a4] sm:$0xf] }
 0x2ac   : > { %6460 = vmatpush.bf16.msra.mxu0 %v7579_v47  ;;  %v7704_v47 = vld [vmem:[%s10128_s7 + $0x498] sm:$0xf0] }
 0x2ad   : > { %6470 = vmatpush.bf16.msra.mxu1 %v7675_v28  ;;  %v7768_v28 = vld [vmem:[%s10128_s7 + $0x518] sm:$0xf0]  ;;  %v7707_v52 = vor.u32 %v8925_v26, %v7704_v47  ;;  %v8981_v47 = vld [vmem:[%s10128_s7 + $0x654] sm:$0xf] }
 0x2ae   : > { %6484 = vmatpush.bf16.msra.mxu2 %v7739_v29  ;;  %v8963_v29 = vld [vmem:[%s10128_s7 + $0x5c4] sm:$0xf]  ;;  %v7771_v34 = vor.u32 %v8941_v9, %v7768_v28  ;;  %v7832_v26 = vld [vmem:[%s10128_s7 + $0x598] sm:$0xf0] }
 0x2af   : > { %6498 = vmatpush.bf16.msra.mxu3 %v7803_v51  ;;  %v8907_v51 = vld [vmem:[%s10128_s7 + $0x404] sm:$0xf]  ;;  %v7859_v35 = vor.u32 %v8963_v29, %v7856_v30  ;;  %v7928_v28 = vld [vmem:[%s10128_s7 + $0x658] sm:$0xf0]  ;;  %v8997_v29 = vld [vmem:[%s10128_s7 + $0x6d4] sm:$0xf] }
 0x2b0   : > { %6461 = vmatpush.bf16.msra.mxu0 %v7571_v41  ;;  %v7760_v41 = vld [vmem:[%s10128_s7 + $0x508] sm:$0xf0]  ;;  %v7635_v58 = vor.u32 %v8907_v51, %v7632_v32  ;;  %v7992_v30 = vld [vmem:[%s10128_s7 + $0x6d8] sm:$0xf0]  ;;  %v10976_v32 = vpop.f32.mrf.mxu3  ;;  %v7931_v33 = vor.u32 %v8981_v47, %v7928_v28  ;;  %v9007_v47 = vld [vmem:[%s10128_s7 + $0x724] sm:$0xf] }
 0x2b1   : > { %6471 = vmatpush.bf16.msra.mxu1 %v7667_v42  ;;  %v8961_v42 = vld [vmem:[%s10128_s7 + $0x5b4] sm:$0xf]  ;;  %v7763_v1 = vor.u32 %v8939_v37, %v7760_v41  ;;  %v8995_v37 = vld [vmem:[%s10128_s7 + $0x6c4] sm:$0xf]  ;;  %v7984_v41 = vld [vmem:[%s10128_s7 + $0x6c8] sm:$0xf0] }
 0x2b2   : > { %6485 = vmatpush.bf16.msra.mxu2 %v7731_v45  ;;  %v7848_v45 = vld [vmem:[%s10128_s7 + $0x5b8] sm:$0xf0]  ;;  %v7987_v61 = vor.u32 %v8995_v37, %v7984_v41  ;;  %v8032_v28 = vld [vmem:[%s10128_s7 + $0x728] sm:$0xf0]  ;;  %v9027_v41 = vld [vmem:[%s10128_s7 + $0x7c4] sm:$0xf] }
 0x2b3   : > { %6499 = vmatpush.bf16.msra.mxu3 %v7795_v56  ;;  %6462 = vmatmul.bf16.vlgmr.msra.gmra.mxu0 %v10340_v55  ;;  %v7779_v55 = vor.u32 %v8943_v14, %v7776_v15  ;;  %v9001_v56 = vld [vmem:[%s10128_s7 + $0x6f4] sm:$0xf]  ;;  %v7851_v3 = vor.u32 %v8961_v42, %v7848_v45  ;;  %v8999_v14 = vld [vmem:[%s10128_s7 + $0x6e4] sm:$0xf]  ;;  %v8000_v15 = vld [vmem:[%s10128_s7 + $0x6e8] sm:$0xf0] }
 0x2b4   : > { %6510 = vmatpush.bf16.msrb.mxu0 %v7883_v57  ;;  %v8008_v57 = vld [vmem:[%s10128_s7 + $0x6f8] sm:$0xf0]  ;;  %v9011_v42 = vld [vmem:[%s10128_s7 + $0x744] sm:$0xf] }
 0x2b5   : > { %6472 = vmatpush.bf16.msra.mxu1 %v7659_v5  ;;  %v10950_v5 = vpop.f32.mrf.mxu0  ;;  %v8011_v7 = vor.u32 %v9001_v56, %v8008_v57  ;;  %v8136_v56 = vld [vmem:[%s10128_s7 + $0x7f8] sm:$0xf0] }
 0x2b6   : > { %6486 = vmatpush.bf16.msra.mxu2 %v7723_v6  ;;  %v7947_v6 = vor.u32 %v8985_v50, %v7944_v53  ;;  %v8048_v50 = vld [vmem:[%s10128_s7 + $0x748] sm:$0xf0]  ;;  %v9033_v53 = vld [vmem:[%s10128_s7 + $0x7f4] sm:$0xf]  ;;  %v8024_v37 = vld [vmem:[%s10128_s7 + $0x718] sm:$0xf0] }
 0x2b7   : > { %6500 = vmatpush.bf16.msra.mxu3 %v7787_v10  ;;  %v7840_v10 = vld [vmem:[%s10128_s7 + $0x5a8] sm:$0xf0] }
 0x2b8   : > { %6511 = vmatpush.bf16.msrb.mxu0 %v7875_v11  ;;  %v8983_v11 = vld [vmem:[%s10128_s7 + $0x664] sm:$0xf] }
 0x2b9   : > { %6473 = vmatpush.bf16.msra.mxu1 %v7651_v20  ;;  %v8064_v20 = vld [vmem:[%s10128_s7 + $0x768] sm:$0xf0]  ;;  %v7939_v18 = vor.u32 %v8983_v11, %v7936_v13  ;;  %v10997_v11 = vpop.f32.mrf.mxu2  ;;  %v9031_v13 = vld [vmem:[%s10128_s7 + $0x7e4] sm:$0xf] }
 0x2ba   : > { %6487 = vmatpush.bf16.msra.mxu2 %v7715_v25  ;;  %v7843_v25 = vor.u32 %v8959_v8, %v7840_v10  ;;  %v8067_v9 = vor.u32 %v9015_v19, %v8064_v20  ;;  %v7976_v8 = vld [vmem:[%s10128_s7 + $0x6b8] sm:$0xf0]  ;;  %v9009_v10 = vld [vmem:[%s10128_s7 + $0x734] sm:$0xf]  ;;  %v8975_v20 = vld [vmem:[%s10128_s7 + $0x624] sm:$0xf] }
 0x2bb   : > { %6501 = vmatpush.bf16.msra.mxu3 %v7779_v55  ;;  %v8003_v55 = vor.u32 %v8999_v14, %v8000_v15  ;;  %v8128_v14 = vld [vmem:[%s10128_s7 + $0x7e8] sm:$0xf0] }
 0x2bc   : > { %6512 = vmatpush.bf16.msrb.mxu0 %v7867_v24  ;;  %v8957_v24 = vld [vmem:[%s10128_s7 + $0x594] sm:$0xf] }
 0x2bd   : > { %6474 = vmatpush.bf16.msra.mxu1 %v7643_v31  ;;  %v9013_v31 = vld [vmem:[%s10128_s7 + $0x754] sm:$0xf]  ;;  %v7835_v51 = vor.u32 %v8957_v24, %v7832_v26  ;;  %v10984_v45 = vpop.f32.mrf.mxu0  ;;  %v8991_v24 = vld [vmem:[%s10128_s7 + $0x6a4] sm:$0xf]  ;;  %v7968_v26 = vld [vmem:[%s10128_s7 + $0x6a8] sm:$0xf0] }
 0x2be   : > { %6488 = vmatpush.bf16.msra.mxu2 %v7707_v52  ;;  %v8056_v52 = vld [vmem:[%s10128_s7 + $0x758] sm:$0xf0] }
 0x2bf   : > { %6502 = vmatpush.bf16.msra.mxu3 %v7771_v34  ;;  %v7824_v34 = vld [vmem:[%s10128_s7 + $0x588] sm:$0xf0]  ;;  %v8059_v36 = vor.u32 %v9013_v31, %v8056_v52 }
 0x2c0   : > { %6513 = vmatpush.bf16.msrb.mxu0 %v7859_v35  ;;  %v7920_v35 = vld [vmem:[%s10128_s7 + $0x648] sm:$0xf0] }
 0x2c1   : > { %6475 = vmatpush.bf16.msra.mxu1 %v7635_v58  ;;  %v10990_v58 = vpop.f32.mrf.mxu1 }
 0x2c2   : > { %6489 = vmatpush.bf16.msra.mxu2 %v7699_v60 }
 0x2c3   : > { %6503 = vmatpush.bf16.msra.mxu3 %v7763_v1  ;;  %v7912_v1 = vld [vmem:[%s10128_s7 + $0x638] sm:$0xf0] }
 0x2c4   : > { %6514 = vmatpush.bf16.msrb.mxu0 %v7851_v3  ;;  %6476 = vmatmul.bf16.vlgmr.msra.gmra.mxu1 %v10429_v39  ;;  %v8955_v39 = vld [vmem:[%s10128_s7 + $0x584] sm:$0xf]  ;;  %v8051_v3 = vor.u32 %v9011_v42, %v8048_v50  ;;  %v7915_v15 = vor.u32 %v8977_v62, %v7912_v1  ;;  %v8112_v42 = vld [vmem:[%s10128_s7 + $0x7c8] sm:$0xf0]  ;;  %v11037_v50 = vpop.f32.mrf.mxu2 }
 0x2c5   : > { %6524 = vmatpush.bf16.msrb.mxu1 %v7947_v6  ;;  %6490 = vmatmul.bf16.vlgmr.msra.gmra.mxu2 %v10436_v44  ;;  %v7995_v44 = vor.u32 %v8997_v29, %v7992_v30  ;;  %v7827_v57 = vor.u32 %v8955_v39, %v7824_v34  ;;  %v8139_v6 = vor.u32 %v9033_v53, %v8136_v56  ;;  %v9029_v29 = vld [vmem:[%s10128_s7 + $0x7d4] sm:$0xf]  ;;  %v8120_v30 = vld [vmem:[%s10128_s7 + $0x7d8] sm:$0xf0]  ;;  %v11025_v31 = vpop.f32.mrf.mxu0 }
 0x2c6   : > { %6538 = vmatpush.bf16.msrb.mxu2 %v8011_v7  ;;  %6504 = vmatmul.bf16.vlgmr.msra.gmra.mxu3 %v10434_v43  ;;  %v8979_v43 = vld [vmem:[%s10128_s7 + $0x644] sm:$0xf]  ;;  %v8993_v7 = vld [vmem:[%s10128_s7 + $0x6b4] sm:$0xf]  ;;  %v7896_v39 = vld [vmem:[%s10128_s7 + $0x618] sm:$0xf0]  ;;  %v8115_v1 = vor.u32 %v9027_v41, %v8112_v42 }
 0x2c7   : > { %6552 = vmatpush.bf16.msrb.mxu3 %v8075_v12  ;;  %v7923_v60 = vor.u32 %v8979_v43, %v7920_v35  ;;  %v8040_v12 = vld [vmem:[%s10128_s7 + $0x738] sm:$0xf0]  ;;  %v7979_v19 = vor.u32 %v8993_v7, %v7976_v8  ;;  %v8989_v34 = vld [vmem:[%s10128_s7 + $0x694] sm:$0xf]  ;;  %v8016_v7 = vld [vmem:[%s10128_s7 + $0x708] sm:$0xf0] }
 0x2c8   : > { %6515 = vmatpush.bf16.msrb.mxu0 %v7843_v25  ;;  %v7904_v25 = vld [vmem:[%s10128_s7 + $0x628] sm:$0xf0]  ;;  %v7960_v43 = vld [vmem:[%s10128_s7 + $0x698] sm:$0xf0]  ;;  %v9005_v35 = vld [vmem:[%s10128_s7 + $0x714] sm:$0xf] }
 0x2c9   : > { %6525 = vmatpush.bf16.msrb.mxu1 %v7939_v18  ;;  %v8043_v18 = vor.u32 %v9009_v10, %v8040_v12  ;;  %v7907_v52 = vor.u32 %v8975_v20, %v7904_v25  ;;  %v7963_v56 = vor.u32 %v8989_v34, %v7960_v43  ;;  %v8027_v62 = vor.u32 %v9005_v35, %v8024_v37  ;;  %v9025_v8 = vld [vmem:[%s10128_s7 + $0x7b4] sm:$0xf]  ;;  %v8104_v10 = vld [vmem:[%s10128_s7 + $0x7b8] sm:$0xf0]  ;;  %v8256_v34 = vld [vmem:[%s10128_s7 + $0x8e8] sm:$0xf0] }
 0x2ca   : > { %6539 = vmatpush.bf16.msrb.mxu2 %v8003_v55  ;;  %v8131_v55 = vor.u32 %v9031_v13, %v8128_v14  ;;  %v9049_v12 = vld [vmem:[%s10128_s7 + $0x874] sm:$0xf]  ;;  %v8200_v13 = vld [vmem:[%s10128_s7 + $0x878] sm:$0xf0]  ;;  %v9079_v35 = vld [vmem:[%s10128_s7 + $0x964] sm:$0xf] }
 0x2cb   : > { %6553 = vmatpush.bf16.msrb.mxu3 %v8067_v9  ;;  %v11013_v9 = vpop.f32.mrf.mxu3  ;;  %v9065_v14 = vld [vmem:[%s10128_s7 + $0x8f4] sm:$0xf]  ;;  %v8320_v37 = vld [vmem:[%s10128_s7 + $0x968] sm:$0xf0] }
 0x2cc   : > { %6516 = vmatpush.bf16.msrb.mxu0 %v7835_v51  ;;  %v7971_v51 = vor.u32 %v8991_v24, %v7968_v26  ;;  %v8328_v24 = vld [vmem:[%s10128_s7 + $0x978] sm:$0xf0]  ;;  %v11061_v26 = vld [vmem:[%s3474_s22] sm:$0x3] }
 0x2cd   : > { %6526 = vmatpush.bf16.msrb.mxu1 %v7931_v33  ;;  %v8035_v33 = vor.u32 %v9007_v47, %v8032_v28  ;;  %v11057_v20 = vpop.f32.mrf.mxu0  ;;  %v8107_v28 = vor.u32 %v9025_v8, %v8104_v10  ;;  %v3913_v41 = vperm.slane %v11061_v26, 0  ;;  %v9077_v8 = vld [vmem:[%s10128_s7 + $0x954] sm:$0xf]  ;;  %v8312_v10 = vld [vmem:[%s10128_s7 + $0x958] sm:$0xf0] }
 0x2ce   : > { %6540 = vmatpush.bf16.msrb.mxu2 %v7995_v44  ;;  %v8123_v44 = vor.u32 %v9029_v29, %v8120_v30  ;;  %v8203_v29 = vor.u32 %v9049_v12, %v8200_v13  ;;  %v9019_v13 = vld [vmem:[%s10128_s7 + $0x784] sm:$0xf] }
 0x2cf   : > { %6554 = vmatpush.bf16.msrb.mxu3 %v8059_v36  ;;  %v11032_v36 = vpop.f32.mrf.mxu1 }
 0x2d0   : > { %6517 = vmatpush.bf16.msrb.mxu0 %v7827_v57  ;;  %v8971_v57 = vld [vmem:[%s10128_s7 + $0x604] sm:$0xf] }
 0x2d1   : > { %6527 = vmatpush.bf16.msrb.mxu1 %v7923_v60  ;;  %v7888_v60 = vld [vmem:[%s10128_s7 + $0x608] sm:$0xf0] }
 0x2d2   : > { %6541 = vmatpush.bf16.msrb.mxu2 %v7987_v61  ;;  %v8987_v61 = vld [vmem:[%s10128_s7 + $0x684] sm:$0xf]  ;;  %v7891_v25 = vor.u32 %v8971_v57, %v7888_v60  ;;  %v9021_v60 = vld [vmem:[%s10128_s7 + $0x794] sm:$0xf] }
 0x2d3   : > { %6555 = vmatpush.bf16.msrb.mxu3 %v8051_v3  ;;  %6518 = vmatmul.bf16.vlgmr.msrb.gmra.mxu0 %v10440_v48  ;;  %v8973_v48 = vld [vmem:[%s10128_s7 + $0x614] sm:$0xf]  ;;  %v7952_v3 = vld [vmem:[%s10128_s7 + $0x688] sm:$0xf0] }
 0x2d4   : > { %6566 = vmatpush.bf16.msra.mxu0 %v8139_v6  ;;  %v7899_v53 = vor.u32 %v8973_v48, %v7896_v39  ;;  %v9003_v6 = vld [vmem:[%s10128_s7 + $0x704] sm:$0xf] }
 0x2d5   : > { %6528 = vmatpush.bf16.msrb.mxu1 %v7915_v15  ;;  %v8264_v15 = vld [vmem:[%s10128_s7 + $0x8f8] sm:$0xf0]  ;;  %v8019_v47 = vor.u32 %v9003_v6, %v8016_v7  ;;  %v9047_v48 = vld [vmem:[%s10128_s7 + $0x864] sm:$0xf]  ;;  %v9061_v6 = vld [vmem:[%s10128_s7 + $0x8d4] sm:$0xf] }
 0x2d6   : > { %6542 = vmatpush.bf16.msrb.mxu2 %v7979_v19  ;;  %v11055_v19 = vpop.f32.mrf.mxu3  ;;  %v8267_v30 = vor.u32 %v9065_v14, %v8264_v15  ;;  %v8248_v7 = vld [vmem:[%s10128_s7 + $0x8d8] sm:$0xf0]  ;;  %v11091_v15 = vpop.f32.mrf.mxu0 }
 0x2d7   : > { %6556 = vmatpush.bf16.msrb.mxu3 %v8043_v18  ;;  %v7955_v18 = vor.u32 %v8987_v61, %v7952_v3  ;;  %v11069_v43 = vpop.f32.mrf.mxu1  ;;  %v8088_v61 = vld [vmem:[%s10128_s7 + $0x798] sm:$0xf0] }
 0x2d8   : > { %6567 = vmatpush.bf16.msra.mxu0 %v8131_v55  ;;  %v9081_v55 = vld [vmem:[%s10128_s7 + $0x974] sm:$0xf]  ;;  %v8184_v3 = vld [vmem:[%s10128_s7 + $0x858] sm:$0xf0]  ;;  %v8091_v12 = vor.u32 %v9021_v60, %v8088_v61 }
 0x2d9   : > { %6529 = vmatpush.bf16.msrb.mxu1 %v7907_v52  ;;  %v9023_v52 = vld [vmem:[%s10128_s7 + $0x7a4] sm:$0xf]  ;;  %v8331_v39 = vor.u32 %v9081_v55, %v8328_v24  ;;  %v8176_v55 = vld [vmem:[%s10128_s7 + $0x848] sm:$0xf0]  ;;  %v8315_v24 = vor.u32 %v9077_v8, %v8312_v10  ;;  %v9073_v60 = vld [vmem:[%s10128_s7 + $0x934] sm:$0xf] }
 0x2da   : > { %6543 = vmatpush.bf16.msrb.mxu2 %v7971_v51  ;;  %v8096_v51 = vld [vmem:[%s10128_s7 + $0x7a8] sm:$0xf0]  ;;  %v8296_v61 = vld [vmem:[%s10128_s7 + $0x938] sm:$0xf0] }
 0x2db   : > { %6557 = vmatpush.bf16.msrb.mxu3 %v8035_v33  ;;  %v8192_v33 = vld [vmem:[%s10128_s7 + $0x868] sm:$0xf0]  ;;  %v8099_v42 = vor.u32 %v9023_v52, %v8096_v51  ;;  %v9097_v52 = vld [vmem:[%s10128_s7 + $0x9f4] sm:$0xf]  ;;  %v8392_v51 = vld [vmem:[%s10128_s7 + $0x9f8] sm:$0xf0] }
 0x2dc   : > { %6568 = vmatpush.bf16.msra.mxu0 %v8123_v44  ;;  %v9063_v44 = vld [vmem:[%s10128_s7 + $0x8e4] sm:$0xf] }
 0x2dd   : > { %6530 = vmatpush.bf16.msrb.mxu1 %v7899_v53  ;;  %v11074_v53 = vpop.f32.mrf.mxu2  ;;  %v8259_v57 = vor.u32 %v9063_v44, %v8256_v34 }
 0x2de   : > { %6544 = vmatpush.bf16.msrb.mxu2 %v7963_v56  ;;  %v8195_v56 = vor.u32 %v9047_v48, %v8192_v33  ;;  %v11089_v14 = vpop.f32.mrf.mxu3  ;;  %v6018_v48 = vadd.f32 %v10950_v5, %v3913_v41  ;;  %v9057_v5 = vld [vmem:[%s10128_s7 + $0x8b4] sm:$0xf] }
 0x2df   : > { %6558 = vmatpush.bf16.msrb.mxu3 %v8027_v62  ;;  %v9045_v62 = vld [vmem:[%s10128_s7 + $0x854] sm:$0xf] }
 0x2e0   : > { %6569 = vmatpush.bf16.msra.mxu0 %v8115_v1  ;;  %v8323_v1 = vor.u32 %v9079_v35, %v8320_v37  ;;  %v9041_v37 = vld [vmem:[%s10128_s7 + $0x834] sm:$0xf] }
 0x2e1   : > { %6531 = vmatpush.bf16.msrb.mxu1 %v7891_v25  ;;  %v8080_v25 = vld [vmem:[%s10128_s7 + $0x788] sm:$0xf0] }
 0x2e2   : > { %6545 = vmatpush.bf16.msrb.mxu2 %v7955_v18  ;;  %v9043_v18 = vld [vmem:[%s10128_s7 + $0x844] sm:$0xf] }
 0x2e3   : > { %6559 = vmatpush.bf16.msrb.mxu3 %v8019_v47  ;;  %v9059_v47 = vld [vmem:[%s10128_s7 + $0x8c4] sm:$0xf]  ;;  %v8179_v34 = vor.u32 %v9043_v18, %v8176_v55  ;;  %v9093_v18 = vld [vmem:[%s10128_s7 + $0x9d4] sm:$0xf]  ;;  %v8376_v55 = vld [vmem:[%s10128_s7 + $0x9d8] sm:$0xf0] }
 0x2e4   : > { %6570 = vmatpush.bf16.msra.mxu0 %v8107_v28  ;;  %6532 = vmatmul.bf16.vlgmr.msrb.gmra.mxu1 %v10529_v40  ;;  %v6016_v40 = vadd.f32 %v10926_v2, %v3913_v41  ;;  %v8240_v28 = vld [vmem:[%s10128_s7 + $0x8c8] sm:$0xf0]  ;;  %v9075_v2 = vld [vmem:[%s10128_s7 + $0x944] sm:$0xf]  ;;  %v8232_v41 = vld [vmem:[%s10128_s7 + $0x8b8] sm:$0xf0] }
 0x2e5   : > { %6580 = vmatpush.bf16.msra.mxu1 %v8203_v29  ;;  %6546 = vmatmul.bf16.vlgmr.msrb.gmra.mxu2 %v10536_v49  ;;  %v8251_v49 = vor.u32 %v9061_v6, %v8248_v7  ;;  %v11099_v29 = vpop.f32.mrf.mxu1  ;;  %v11106_v44 = vpop.f32.mrf.mxu2  ;;  %v8243_v35 = vor.u32 %v9059_v47, %v8240_v28  ;;  %v8235_v10 = vor.u32 %v9057_v5, %v8232_v41  ;;  %v9035_v41 = vld [vmem:[%s10128_s7 + $0x804] sm:$0xf] }
 0x2e6   : > { %6594 = vmatpush.bf16.msra.mxu2 %v8267_v30  ;;  %6560 = vmatmul.bf16.vlgmr.msrb.gmra.mxu3 %v10534_v46  ;;  %v8187_v46 = vor.u32 %v9045_v62, %v8184_v3  ;;  %v8304_v30 = vld [vmem:[%s10128_s7 + $0x948] sm:$0xf0]  ;;  %v6030_v33 = vadd.f32 %v10958_v16, %v6016_v40  ;;  %v9095_v62 = vld [vmem:[%s10128_s7 + $0x9e4] sm:$0xf]  ;;  %v11118_v6 = vpop.f32.mrf.mxu3  ;;  %v11120_v7 = vpop.f32.mrf.mxu0 }
 0x2e7   : > { %6608 = vmatpush.bf16.msra.mxu3 %v8331_v39  ;;  %v8083_v39 = vor.u32 %v9019_v13, %v8080_v25  ;;  %v8384_v16 = vld [vmem:[%s10128_s7 + $0x9e8] sm:$0xf0] }
 0x2e8   : > { %6571 = vmatpush.bf16.msra.mxu0 %v8099_v42  ;;  %v8168_v42 = vld [vmem:[%s10128_s7 + $0x838] sm:$0xf0]  ;;  %v6044_v3 = vadd.f32 %v10962_v21, %v6030_v33  ;;  %v8160_v13 = vld [vmem:[%s10128_s7 + $0x828] sm:$0xf0]  ;;  %v8387_v40 = vor.u32 %v9095_v62, %v8384_v16  ;;  %v9055_v21 = vld [vmem:[%s10128_s7 + $0x8a4] sm:$0xf] }
 0x2e9   : > { %6581 = vmatpush.bf16.msra.mxu1 %v8195_v56  ;;  %v8307_v56 = vor.u32 %v9075_v2, %v8304_v30  ;;  %v8171_v8 = vor.u32 %v9041_v37, %v8168_v42  ;;  %v8288_v25 = vld [vmem:[%s10128_s7 + $0x928] sm:$0xf0] }
 0x2ea   : > { %6595 = vmatpush.bf16.msra.mxu2 %v8259_v57  ;;  %v8395_v57 = vor.u32 %v9097_v52, %v8392_v51  ;;  %v6058_v47 = vadd.f32 %v10976_v32, %v6044_v3  ;;  %v8152_v52 = vld [vmem:[%s10128_s7 + $0x818] sm:$0xf0]  ;;  %v8368_v37 = vld [vmem:[%s10128_s7 + $0x9c8] sm:$0xf0] }
 0x2eb   : > { %6609 = vmatpush.bf16.msra.mxu3 %v8323_v1  ;;  %v6032_v1 = vadd.f32 %v10990_v58, %v6018_v48  ;;  %v8299_v58 = vor.u32 %v9073_v60, %v8296_v61  ;;  %v8379_v48 = vor.u32 %v9093_v18, %v8376_v55  ;;  %v8216_v32 = vld [vmem:[%s10128_s7 + $0x898] sm:$0xf0]  ;;  %v8144_v60 = vld [vmem:[%s10128_s7 + $0x808] sm:$0xf0]  ;;  %v9051_v61 = vld [vmem:[%s10128_s7 + $0x884] sm:$0xf] }
 0x2ec   : > { %6572 = vmatpush.bf16.msra.mxu0 %v8091_v12  ;;  %v9039_v12 = vld [vmem:[%s10128_s7 + $0x824] sm:$0xf]  ;;  %v8272_v3 = vld [vmem:[%s10128_s7 + $0x908] sm:$0xf0]  ;;  %v9145_v55 = vld [vmem:[%s10128_s7 + $0xb74] sm:$0xf] }
 0x2ed   : > { %6582 = vmatpush.bf16.msra.mxu1 %v8187_v46  ;;  %v8224_v46 = vld [vmem:[%s10128_s7 + $0x8a8] sm:$0xf0]  ;;  %v11133_v28 = vpop.f32.mrf.mxu1  ;;  %v8163_v2 = vor.u32 %v9039_v12, %v8160_v13  ;;  %v11140_v33 = vpop.f32.mrf.mxu2  ;;  %v9089_v12 = vld [vmem:[%s10128_s7 + $0x9b4] sm:$0xf]  ;;  %v8360_v13 = vld [vmem:[%s10128_s7 + $0x9b8] sm:$0xf0] }
 0x2ee   : > { %6596 = vmatpush.bf16.msra.mxu2 %v8251_v49  ;;  %v9071_v49 = vld [vmem:[%s10128_s7 + $0x924] sm:$0xf]  ;;  %v8227_v30 = vor.u32 %v9055_v21, %v8224_v46  ;;  %v9129_v21 = vld [vmem:[%s10128_s7 + $0xaf4] sm:$0xf]  ;;  %v8520_v46 = vld [vmem:[%s10128_s7 + $0xaf8] sm:$0xf0] }
 0x2ef   : > { %6610 = vmatpush.bf16.msra.mxu3 %v8315_v24  ;;  %v6046_v24 = vadd.f32 %v10997_v11, %v6032_v1  ;;  %v8291_v51 = vor.u32 %v9071_v49, %v8288_v25  ;;  %v9053_v11 = vld [vmem:[%s10128_s7 + $0x894] sm:$0xf]  ;;  %v9067_v1 = vld [vmem:[%s10128_s7 + $0x904] sm:$0xf]  ;;  %v8147_v25 = vor.u32 %v9035_v41, %v8144_v60 }
 0x2f0   : > { %6573 = vmatpush.bf16.msra.mxu0 %v8083_v39  ;;  %v9069_v39 = vld [vmem:[%s10128_s7 + $0x914] sm:$0xf]  ;;  %v8219_v5 = vor.u32 %v9053_v11, %v8216_v32  ;;  %v9111_v11 = vld [vmem:[%s10128_s7 + $0xa64] sm:$0xf] }
 0x2f1   : > { %6583 = vmatpush.bf16.msra.mxu1 %v8179_v34  ;;  %v8280_v34 = vld [vmem:[%s10128_s7 + $0x918] sm:$0xf0]  ;;  %v6060_v42 = vadd.f32 %v11013_v9, %v6046_v24  ;;  %v9085_v60 = vld [vmem:[%s10128_s7 + $0x994] sm:$0xf] }
 0x2f2   : > { %6597 = vmatpush.bf16.msra.mxu2 %v8243_v35  ;;  %v9091_v35 = vld [vmem:[%s10128_s7 + $0x9c4] sm:$0xf]  ;;  %v8283_v9 = vor.u32 %v9069_v39, %v8280_v34  ;;  %v8584_v24 = vld [vmem:[%s10128_s7 + $0xb78] sm:$0xf0]  ;;  %v8448_v34 = vld [vmem:[%s10128_s7 + $0xa68] sm:$0xf0] }
 0x2f3   : > { %6611 = vmatpush.bf16.msra.mxu3 %v8307_v56  ;;  %6574 = vmatmul.bf16.vlgmr.msra.gmra.mxu0 %v10540_v54  ;;  %v9037_v54 = vld [vmem:[%s10128_s7 + $0x814] sm:$0xf]  ;;  %v6072_v56 = vadd.f32 %v10984_v45, %v6058_v47  ;;  %v6074_v62 = vadd.f32 %v11025_v31, %v6060_v42  ;;  %v8371_v16 = vor.u32 %v9091_v35, %v8368_v37  ;;  %v8208_v45 = vld [vmem:[%s10128_s7 + $0x888] sm:$0xf0]  ;;  %v9127_v35 = vld [vmem:[%s10128_s7 + $0xae4] sm:$0xf] }
 0x2f4   : > { %6622 = vmatpush.bf16.msrb.mxu0 %v8395_v57  ;;  %v8155_v57 = vor.u32 %v9037_v54, %v8152_v52  ;;  %v8211_v18 = vor.u32 %v9051_v61, %v8208_v45  ;;  %v8523_v52 = vor.u32 %v9129_v21, %v8520_v46  ;;  %v8587_v39 = vor.u32 %v9145_v55, %v8584_v24  ;;  %v9143_v42 = vld [vmem:[%s10128_s7 + $0xb64] sm:$0xf]  ;;  %v8344_v61 = vld [vmem:[%s10128_s7 + $0x998] sm:$0xf0]  ;;  %v8336_v46 = vld [vmem:[%s10128_s7 + $0x988] sm:$0xf0] }
 0x2f5   : > { %6584 = vmatpush.bf16.msra.mxu1 %v8171_v8  ;;  %v11154_v8 = vpop.f32.mrf.mxu3  ;;  %v6086_v31 = vadd.f32 %v11032_v36, %v6072_v56  ;;  %v11165_v49 = vpop.f32.mrf.mxu1  ;;  %v6088_v47 = vadd.f32 %v11069_v43, %v6074_v62  ;;  %v8363_v36 = vor.u32 %v9089_v12, %v8360_v13  ;;  %v8512_v43 = vld [vmem:[%s10128_s7 + $0xae8] sm:$0xf0]  ;;  %v8451_v41 = vor.u32 %v9111_v11, %v8448_v34  ;;  %v9109_v62 = vld [vmem:[%s10128_s7 + $0xa54] sm:$0xf]  ;;  %v8440_v45 = vld [vmem:[%s10128_s7 + $0xa58] sm:$0xf0] }
 0x2f6   : > { %6598 = vmatpush.bf16.msra.mxu2 %v8235_v10  ;;  %v11156_v10 = vpop.f32.mrf.mxu0  ;;  %v8576_v56 = vld [vmem:[%s10128_s7 + $0xb68] sm:$0xf0]  ;;  %v9141_v13 = vld [vmem:[%s10128_s7 + $0xb54] sm:$0xf]  ;;  %v9139_v24 = vld [vmem:[%s10128_s7 + $0xb44] sm:$0xf] }
 0x2f7   : > { %6612 = vmatpush.bf16.msra.mxu3 %v8299_v58  ;;  %v9113_v58 = vld [vmem:[%s10128_s7 + $0xa74] sm:$0xf]  ;;  %v6102_v32 = vadd.f32 %v11074_v53, %v6088_v47  ;;  %v6100_v37 = vadd.f32 %v11037_v50, %v6086_v31  ;;  %v8515_v50 = vor.u32 %v9127_v35, %v8512_v43  ;;  %v9107_v31 = vld [vmem:[%s10128_s7 + $0xa44] sm:$0xf]  ;;  %v8496_v55 = vld [vmem:[%s10128_s7 + $0xac8] sm:$0xf0] }
 0x2f8   : > { %6623 = vmatpush.bf16.msrb.mxu0 %v8387_v40  ;;  %v8456_v40 = vld [vmem:[%s10128_s7 + $0xa78] sm:$0xf0]  ;;  %v8560_v47 = vld [vmem:[%s10128_s7 + $0xb48] sm:$0xf0]  ;;  %v9121_v43 = vld [vmem:[%s10128_s7 + $0xab4] sm:$0xf] }
 0x2f9   : > { %6585 = vmatpush.bf16.msra.mxu1 %v8163_v2  ;;  %v8275_v2 = vor.u32 %v9067_v1, %v8272_v3  ;;  %v8459_v54 = vor.u32 %v9113_v58, %v8456_v40  ;;  %v9125_v1 = vld [vmem:[%s10128_s7 + $0xad4] sm:$0xf]  ;;  %v8504_v3 = vld [vmem:[%s10128_s7 + $0xad8] sm:$0xf0]  ;;  %v6114_v12 = vadd.f32 %v11055_v19, %v6100_v37  ;;  %v9083_v40 = vld [vmem:[%s10128_s7 + $0x984] sm:$0xf] }
 0x2fa   : > { %6599 = vmatpush.bf16.msra.mxu2 %v8227_v30  ;;  %v11170_v30 = vpop.f32.mrf.mxu2  ;;  %v8568_v58 = vld [vmem:[%s10128_s7 + $0xb58] sm:$0xf0] }
 0x2fb   : > { %6613 = vmatpush.bf16.msra.mxu3 %v8291_v51  ;;  %v9087_v51 = vld [vmem:[%s10128_s7 + $0x9a4] sm:$0xf]  ;;  %v6128_v21 = vadd.f32 %v11057_v20, %v6114_v12  ;;  %v8488_v37 = vld [vmem:[%s10128_s7 + $0xab8] sm:$0xf0]  ;;  %v8480_v12 = vld [vmem:[%s10128_s7 + $0xaa8] sm:$0xf0] }
 0x2fc   : > { %6624 = vmatpush.bf16.msrb.mxu0 %v8379_v48  ;;  %v8352_v48 = vld [vmem:[%s10128_s7 + $0x9a8] sm:$0xf0] }
 0x2fd   : > { %6586 = vmatpush.bf16.msra.mxu1 %v8155_v57  ;;  %v8355_v57 = vor.u32 %v9087_v51, %v8352_v48  ;;  %v11182_v53 = vpop.f32.mrf.mxu3  ;;  %v11202_v19 = vpop.f32.mrf.mxu1  ;;  %v6142_v51 = vadd.f32 %v11099_v29, %v6128_v21  ;;  %v9137_v29 = vld [vmem:[%s10128_s7 + $0xb34] sm:$0xf] }
 0x2fe   : > { %6600 = vmatpush.bf16.msra.mxu2 %v8219_v5  ;;  %v11184_v5 = vpop.f32.mrf.mxu0 }
 0x2ff   : > { %6614 = vmatpush.bf16.msra.mxu3 %v8283_v9  ;;  %v6116_v9 = vadd.f32 %v11089_v14, %v6102_v32  ;;  %v9105_v32 = vld [vmem:[%s10128_s7 + $0xa34] sm:$0xf] }
 0x300   : > { %6625 = vmatpush.bf16.msrb.mxu0 %v8371_v16  ;;  %v8579_v16 = vor.u32 %v9143_v42, %v8576_v56  ;;  %v6156_v42 = vadd.f32 %v11106_v44, %v6142_v51  ;;  %v9103_v44 = vld [vmem:[%s10128_s7 + $0xa24] sm:$0xf] }
 0x301   : > { %6587 = vmatpush.bf16.msra.mxu1 %v8147_v25  ;;  %v6130_v14 = vadd.f32 %v11091_v15, %v6116_v9  ;;  %v8432_v25 = vld [vmem:[%s10128_s7 + $0xa48] sm:$0xf0]  ;;  %v8571_v15 = vor.u32 %v9141_v13, %v8568_v58  ;;  %v9135_v13 = vld [vmem:[%s10128_s7 + $0xb24] sm:$0xf] }
 0x302   : > { %6601 = vmatpush.bf16.msra.mxu2 %v8211_v18  ;;  %v9123_v18 = vld [vmem:[%s10128_s7 + $0xac4] sm:$0xf]  ;;  %v11210_v20 = vpop.f32.mrf.mxu2  ;;  %v8435_v48 = vor.u32 %v9107_v31, %v8432_v25  ;;  %v8416_v9 = vld [vmem:[%s10128_s7 + $0xa28] sm:$0xf0]  ;;  %v6170_v58 = vadd.f32 %v11118_v6, %v6156_v42  ;;  %v8408_v31 = vld [vmem:[%s10128_s7 + $0xa18] sm:$0xf0] }
 0x303   : > { %6615 = vmatpush.bf16.msra.mxu3 %v8275_v2  ;;  %v9161_v2 = vld [vmem:[%s10128_s7 + $0xbf4] sm:$0xf]  ;;  %v8499_v11 = vor.u32 %v9123_v18, %v8496_v55  ;;  %v8472_v25 = vld [vmem:[%s10128_s7 + $0xa98] sm:$0xf0] }
 0x304   : > { %6626 = vmatpush.bf16.msrb.mxu0 %v8363_v36  ;;  %6588 = vmatmul.bf16.vlgmr.msra.gmra.mxu1 %v10629_v59  ;;  %v8347_v59 = vor.u32 %v9085_v60, %v8344_v61  ;;  %v8648_v36 = vld [vmem:[%s10128_s7 + $0xbf8] sm:$0xf0]  ;;  %v8640_v60 = vld [vmem:[%s10128_s7 + $0xbe8] sm:$0xf0] }
 0x305   : > { %6636 = vmatpush.bf16.msrb.mxu1 %v8459_v54  ;;  %6602 = vmatmul.bf16.vlgmr.msra.gmra.mxu2 %v10636_v0  ;;  %v8507_v0 = vor.u32 %v9125_v1, %v8504_v3  ;;  %v6144_v54 = vadd.f32 %v11133_v28, %v6130_v14  ;;  %v8563_v28 = vor.u32 %v9139_v24, %v8560_v47  ;;  %v11225_v56 = vpop.f32.mrf.mxu3  ;;  %v9119_v3 = vld [vmem:[%s10128_s7 + $0xaa4] sm:$0xf]  ;;  %v8536_v24 = vld [vmem:[%s10128_s7 + $0xb18] sm:$0xf0] }
 0x306   : > { %6650 = vmatpush.bf16.msrb.mxu2 %v8523_v52  ;;  %6616 = vmatmul.bf16.vlgmr.msra.gmra.mxu3 %v10634_v63  ;;  %v8443_v63 = vor.u32 %v9109_v62, %v8440_v45  ;;  %v8339_v52 = vor.u32 %v9083_v40, %v8336_v46  ;;  %v8651_v35 = vor.u32 %v9161_v2, %v8648_v36  ;;  %v8632_v40 = vld [vmem:[%s10128_s7 + $0xbd8] sm:$0xf0]  ;;  %v9101_v46 = vld [vmem:[%s10128_s7 + $0xa14] sm:$0xf]  ;;  %v9155_v47 = vld [vmem:[%s10128_s7 + $0xbc4] sm:$0xf] }
 0x307   : > { %6664 = vmatpush.bf16.msrb.mxu3 %v8587_v39  ;;  %v8424_v39 = vld [vmem:[%s10128_s7 + $0xa38] sm:$0xf0]  ;;  %v6158_v34 = vadd.f32 %v11140_v33, %v6144_v54  ;;  %v11232_v33 = vpop.f32.mrf.mxu1  ;;  %v8491_v62 = vor.u32 %v9121_v43, %v8488_v37  ;;  %v8483_v6 = vor.u32 %v9119_v3, %v8480_v12  ;;  %v8624_v2 = vld [vmem:[%s10128_s7 + $0xbc8] sm:$0xf0]  ;;  %v9153_v37 = vld [vmem:[%s10128_s7 + $0xbb4] sm:$0xf] }
 0x308   : > { %6627 = vmatpush.bf16.msrb.mxu0 %v8355_v57  ;;  %v11227_v57 = vpop.f32.mrf.mxu0  ;;  %v8427_v61 = vor.u32 %v9105_v32, %v8424_v39  ;;  %v8627_v39 = vor.u32 %v9155_v47, %v8624_v2  ;;  %v8528_v43 = vld [vmem:[%s10128_s7 + $0xb08] sm:$0xf0]  ;;  %v9163_v47 = vld [vmem:[%s10128_s7 + $0xc04] sm:$0xf] }
 0x309   : > { %6637 = vmatpush.bf16.msrb.mxu1 %v8451_v41  ;;  %v8552_v41 = vld [vmem:[%s10128_s7 + $0xb38] sm:$0xf0]  ;;  %v8656_v2 = vld [vmem:[%s10128_s7 + $0xc08] sm:$0xf0] }
 0x30a   : > { %6651 = vmatpush.bf16.msrb.mxu2 %v8515_v50  ;;  %v9159_v50 = vld [vmem:[%s10128_s7 + $0xbe4] sm:$0xf]  ;;  %v8555_v45 = vor.u32 %v9137_v29, %v8552_v41  ;;  %v11247_v14 = vpop.f32.mrf.mxu2  ;;  %v8616_v29 = vld [vmem:[%s10128_s7 + $0xbb8] sm:$0xf0] }
 0x30b   : > { %6665 = vmatpush.bf16.msrb.mxu3 %v8579_v16  ;;  %v6172_v16 = vadd.f32 %v11154_v8, %v6158_v34  ;;  %v8643_v1 = vor.u32 %v9159_v50, %v8640_v60  ;;  %v9157_v8 = vld [vmem:[%s10128_s7 + $0xbd4] sm:$0xf]  ;;  %v9115_v34 = vld [vmem:[%s10128_s7 + $0xa84] sm:$0xf]  ;;  %v8680_v41 = vld [vmem:[%s10128_s7 + $0xc38] sm:$0xf0] }
 0x30c   : > { %6628 = vmatpush.bf16.msrb.mxu0 %v8347_v59  ;;  %v8544_v59 = vld [vmem:[%s10128_s7 + $0xb28] sm:$0xf0] }
 0x30d   : > { %6638 = vmatpush.bf16.msrb.mxu1 %v8443_v63  ;;  %v6186_v21 = vadd.f32 %v11156_v10, %v6172_v16  ;;  %v6184_v63 = vadd.f32 %v11120_v7, %v6170_v58  ;;  %v8635_v10 = vor.u32 %v9157_v8, %v8632_v40  ;;  %v9117_v7 = vld [vmem:[%s10128_s7 + $0xa94] sm:$0xf]  ;;  %v11266_v18 = vpop.f32.mrf.mxu3  ;;  %v8672_v58 = vld [vmem:[%s10128_s7 + $0xc28] sm:$0xf0] }
 0x30e   : > { %6652 = vmatpush.bf16.msrb.mxu2 %v8507_v0  ;;  %v8419_v0 = vor.u32 %v9103_v44, %v8416_v9  ;;  %v8475_v51 = vor.u32 %v9117_v7, %v8472_v25  ;;  %v8619_v44 = vor.u32 %v9153_v37, %v8616_v29  ;;  %v9178_v9 = vld [vmem:[%s11289_s29 + $0x38] sm:$0xff]  ;;  %v9176_v25 = vld [vmem:[%s11289_s29 + $0x28] sm:$0xff] }
 0x30f   : > { %6666 = vmatpush.bf16.msrb.mxu3 %v8571_v15  ;;  %v9133_v15 = vld [vmem:[%s10128_s7 + $0xb14] sm:$0xf]  ;;  %v6200_v36 = vadd.f32 %v11202_v19, %v6186_v21  ;;  %v6198_v54 = vadd.f32 %v11165_v49, %v6184_v63  ;;  %v8464_v49 = vld [vmem:[%s10128_s7 + $0xa88] sm:$0xf0] }
 0x310   : > { %6629 = vmatpush.bf16.msrb.mxu0 %v8339_v52  ;;  %v11268_v55 = vpop.f32.mrf.mxu0  ;;  %v8411_v52 = vor.u32 %v9101_v46, %v8408_v31  ;;  %v8539_v19 = vor.u32 %v9133_v15, %v8536_v24  ;;  %v9149_v63 = vld [vmem:[%s10128_s7 + $0xb94] sm:$0xf]  ;;  %v8664_v46 = vld [vmem:[%s10128_s7 + $0xc18] sm:$0xf0]  ;;  %v8592_v24 = vld [vmem:[%s10128_s7 + $0xb88] sm:$0xf0] }
 0x311   : > { %6639 = vmatpush.bf16.msrb.mxu1 %v8435_v48  ;;  %v9099_v48 = vld [vmem:[%s10128_s7 + $0xa04] sm:$0xf]  ;;  %v6214_v32 = vadd.f32 %v11210_v20, %v6200_v36  ;;  %v6212_v42 = vadd.f32 %v11170_v30, %v6198_v54  ;;  %v9169_v20 = vld [vmem:[%s10128_s7 + $0xc34] sm:$0xf]  ;;  %v9172_v29 = vld [vmem:[%s11289_s29 + $0x8] sm:$0xff] }
 0x312   : > { %6653 = vmatpush.bf16.msrb.mxu2 %v8499_v11  ;;  %v8400_v11 = vld [vmem:[%s10128_s7 + $0xa08] sm:$0xf0]  ;;  %v6269_v50 = vpop.f32.mrf.mxu2  ;;  %v8683_v16 = vor.u32 %v9169_v20, %v8680_v41 }
 0x313   : > { %6667 = vmatpush.bf16.msrb.mxu3 %v8563_v28  ;;  %6630 = vmatmul.bf16.vlgmr.msrb.gmra.mxu0 %v10640_v4  ;;  %v8547_v4 = vor.u32 %v9135_v13, %v8544_v59  ;;  %v9131_v28 = vld [vmem:[%s10128_s7 + $0xb04] sm:$0xf]  ;;  %v8403_v60 = vor.u32 %v9099_v48, %v8400_v11  ;;  %v6226_v3 = vadd.f32 %v11182_v53, %v6212_v42  ;;  %v9177_v53 = vld [vmem:[%s11289_s29 + $0x30] sm:$0xff] }
 0x314   : > { %6678 = vmatpush.bf16.msra.mxu0 %v8651_v35  ;;  %v6255_v35 = vpop.f32.mrf.mxu1  ;;  %v8531_v30 = vor.u32 %v9131_v28, %v8528_v43  ;;  %v9167_v13 = vld [vmem:[%s10128_s7 + $0xc24] sm:$0xf]  ;;  %v9173_v43 = vld [vmem:[%s11289_s29 + $0x10] sm:$0xff] }
 0x315   : > { %6640 = vmatpush.bf16.msrb.mxu1 %v8427_v61  ;;  %v8467_v61 = vor.u32 %v9115_v34, %v8464_v49  ;;  %v6283_v59 = vpop.f32.mrf.mxu3 }
 0x316   : > { %6654 = vmatpush.bf16.msrb.mxu2 %v8491_v62  ;;  %v6228_v62 = vadd.f32 %v11225_v56, %v6214_v32  ;;  %v6240_v56 = vadd.f32 %v11184_v5, %v6226_v3  ;;  %v9165_v5 = vld [vmem:[%s10128_s7 + $0xc14] sm:$0xf] }
 0x317   : > { %6668 = vmatpush.bf16.msrb.mxu3 %v8555_v45  ;;  %v9151_v45 = vld [vmem:[%s10128_s7 + $0xba4] sm:$0xf]  ;;  %v8667_v15 = vor.u32 %v9165_v5, %v8664_v46 }
 0x318   : > { %6679 = vmatpush.bf16.msra.mxu0 %v8643_v1  ;;  %v8608_v1 = vld [vmem:[%s10128_s7 + $0xba8] sm:$0xf0]  ;;  %v6242_v12 = vadd.f32 %v11227_v57, %v6228_v62  ;;  %v6297_v8 = vpop.f32.mrf.mxu0  ;;  %v8675_v57 = vor.u32 %v9167_v13, %v8672_v58 }
 0x319   : > { %6641 = vmatpush.bf16.msrb.mxu1 %v8419_v0  ;;  %v8611_v40 = vor.u32 %v9151_v45, %v8608_v1  ;;  %v8600_v0 = vld [vmem:[%s10128_s7 + $0xb98] sm:$0xf0] }
 0x31a   : > { %6655 = vmatpush.bf16.msrb.mxu2 %v8483_v6  ;;  %v6256_v6 = vadd.f32 %v6255_v35, %v6242_v12  ;;  %v6323_v31 = vpop.f32.mrf.mxu2  ;;  %v8603_v7 = vor.u32 %v9149_v63, %v8600_v0 }
 0x31b   : > { %6669 = vmatpush.bf16.msrb.mxu3 %v8547_v4  ;;  %v6254_v4 = vadd.f32 %v11232_v33, %v6240_v56 }
 0x31c   : > { %6680 = vmatpush.bf16.msra.mxu0 %v8635_v10  ;;  %v6309_v21 = vpop.f32.mrf.mxu1  ;;  %v6270_v10 = vadd.f32 %v6269_v50, %v6256_v6  ;;  %v9171_v50 = vld [vmem:[%s11289_s29] sm:$0xff] }
 0x31d   : > { %6642 = vmatpush.bf16.msrb.mxu1 %v8411_v52  ;;  %v6337_v36 = vpop.f32.mrf.mxu3  ;;  %v9175_v52 = vld [vmem:[%s11289_s29 + $0x20] sm:$0xff] }
 0x31e   : > { %6656 = vmatpush.bf16.msrb.mxu2 %v8475_v51  ;;  %v6284_v54 = vadd.f32 %v6283_v59, %v6270_v10  ;;  %v8659_v51 = vor.u32 %v9163_v47, %v8656_v2  ;;  %v9185_v2 = vld [vmem:[%s11289_s29 + $0x70] sm:$0xff] }
 0x31f   : > { %6670 = vmatpush.bf16.msrb.mxu3 %v8539_v19 }
 0x320   : > { %6681 = vmatpush.bf16.msra.mxu0 %v8627_v39  ;;  %v6351_v33 = vpop.f32.mrf.mxu0  ;;  %v6298_v11 = vadd.f32 %v6297_v8, %v6284_v54  ;;  %v9174_v39 = vld [vmem:[%s11289_s29 + $0x18] sm:$0xff] }
 0x321   : > { %6643 = vmatpush.bf16.msrb.mxu1 %v8403_v60 }
 0x322   : > { %6657 = vmatpush.bf16.msrb.mxu2 %v8467_v61 }
 0x323   : > { %6671 = vmatpush.bf16.msrb.mxu3 %v8531_v30 }
 0x324   : > { %6682 = vmatpush.bf16.msra.mxu0 %v8619_v44  ;;  %6644 = vmatmul.bf16.vlgmr.msrb.gmra.mxu1 %v10729_v17  ;;  %v9147_v17 = vld [vmem:[%s10128_s7 + $0xb84] sm:$0xf]  ;;  %v6311_v32 = vpop.f32.mrf.mxu1  ;;  %s8753_s7 = sshll.u32 %s11374_s17, 4 }
 0x325   : > { %6696 = vmatpush.bf16.msra.mxu1 %v8683_v16  ;;  %6658 = vmatmul.bf16.vlgmr.msrb.gmra.mxu2 %v10736_v23  ;;  %v6268_v23 = vadd.f32 %v11247_v14, %v6254_v4  ;;  %v6325_v14 = vpop.f32.mrf.mxu2  ;;  %v6312_v34 = vadd.f32 %v6311_v32, %v6298_v11  ;;  %v6339_v35 = vpop.f32.mrf.mxu3  ;;  %v9184_v11 = vld [vmem:[%s11289_s29 + $0x68] sm:$0xff]  ;;  %s3490_s6 = scalar_lea.vmem %s11360_s4, %s8753_s7 }
 0x326   : > { %6840 = vmatpush.bf16.msra.mxu2 %v9178_v9  ;;  %6672 = vmatmul.bf16.vlgmr.msrb.gmra.mxu3 %v10734_v22  ;;  %v8595_v22 = vor.u32 %v9147_v17, %v8592_v24 }
 0x327   : > { %v6282_v48 = vadd.f32 %v11266_v18, %v6268_v23  ;;  %v6326_v28 = vadd.f32 %v6325_v14, %v6312_v34  ;;  %v9183_v14 = vld [vmem:[%s11289_s29 + $0x60] sm:$0xff] }
 0x328   : > { %6683 = vmatpush.bf16.msra.mxu0 %v8611_v40  ;;  %v3914_v40 = vperm.slane %v11061_v26, 1  ;;  %v9186_v26 = vld [vmem:[%s11289_s29 + $0x78] sm:$0xff] }
 0x329   : > { %6697 = vmatpush.bf16.msra.mxu1 %v8675_v57  ;;  %v6296_v19 = vadd.f32 %v11268_v55, %v6282_v48  ;;  %v6353_v55 = vpop.f32.mrf.mxu0  ;;  %v6340_v37 = vadd.f32 %v6339_v35, %v6326_v28  ;;  %6854 = vmatpush.bf16.msra.mxu3 %v9186_v26 }
 0x32a   : > { %6841 = vmatpush.bf16.msra.mxu2 %v9177_v53 }
 0x32b   : > { %v6310_v49 = vadd.f32 %v6309_v21, %v6296_v19  ;;  %v6354_v20 = vadd.f32 %v6353_v55, %v6340_v37  ;;  %v9182_v37 = vld [vmem:[%s11289_s29 + $0x58] sm:$0xff] }
 0x32c   : > { %6684 = vmatpush.bf16.msra.mxu0 %v8603_v7  ;;  %v6365_v62 = vpop.f32.mrf.mxu1 }
 0x32d   : > { %6698 = vmatpush.bf16.msra.mxu1 %v8667_v15  ;;  %v6324_v18 = vadd.f32 %v6323_v31, %v6310_v49  ;;  %v6379_v30 = vpop.f32.mrf.mxu2  ;;  %v6393_v44 = vpop.f32.mrf.mxu3  ;;  %v6366_v53 = vadd.f32 %v6365_v62, %v3914_v40  ;;  %6855 = vmatpush.bf16.msra.mxu3 %v9185_v2 }
 0x32e   : > { %6842 = vmatpush.bf16.msra.mxu2 %v9176_v25 }
 0x32f   : > { %v6338_v42 = vadd.f32 %v6337_v36, %v6324_v18  ;;  %v6380_v0 = vadd.f32 %v6379_v30, %v6366_v53 }
 0x330   : > { %6685 = vmatpush.bf16.msra.mxu0 %v8595_v22 }
 0x331   : > { %6699 = vmatpush.bf16.msra.mxu1 %v8659_v51  ;;  %v6352_v41 = vadd.f32 %v6351_v33, %v6338_v42  ;;  %v6407_v16 = vpop.f32.mrf.mxu0  ;;  %v6394_v46 = vadd.f32 %v6393_v44, %v6380_v0  ;;  %6856 = vmatpush.bf16.msra.mxu3 %v9184_v11  ;;  %v9180_v44 = vld [vmem:[%s11289_s29 + $0x48] sm:$0xff] }
 0x332   : > { %6843 = vmatpush.bf16.msra.mxu2 %v9175_v52 }
 0x333   : > { %6686 = vmatmul.bf16.vlgmr.msra.gmra.mxu0 %v10740_v27  ;;  %v6708_v27 = vmax.f32 %v6354_v20, 0.0  ;;  %v6706_v60 = vmax.f32 %v6352_v41, 0.0  ;;  %v6408_v7 = vadd.f32 %v6407_v16, %v6394_v46 }
 0x334   : > { %8685 = vmatmul.msk.bf16.vlgmr.msra.gmra.mxu1 %vm6002_vm0, %v10783_v38  ;;  %v6367_v9 = vpop.f32.mrf.mxu1 }
 0x335   : > { %v6710_v61 = vpack.c.bf16 %v6708_v27, %v6706_v60  ;;  %v6381_v38 = vpop.f32.mrf.mxu2  ;;  %v6395_v45 = vpop.f32.mrf.mxu3  ;;  %v6368_v4 = vadd.f32 %v6367_v9, %v3914_v40  ;;  %6857 = vmatpush.bf16.msra.mxu3 %v9183_v14 }
 0x336   : > { %6844 = vmatpush.bf16.msra.mxu2 %v9174_v39 }
 0x337   : > { %v6382_v25 = vadd.f32 %v6381_v38, %v6368_v4 }
 0x339   : > { %v6409_v3 = vpop.f32.mrf.mxu0  ;;  %v6396_v23 = vadd.f32 %v6395_v45, %v6382_v25  ;;  %6858 = vmatpush.bf16.msra.mxu3 %v9182_v37 }
 0x33a   : > { %6845 = vmatpush.bf16.msra.mxu2 %v9173_v43 }
 0x33b   : > { %v6410_v22 = vadd.f32 %v6409_v3, %v6396_v23  ;;  %v9179_v3 = vld [vmem:[%s11289_s29 + $0x40] sm:$0xff] }
 0x33c   : > { %v6421_v1 = vpop.f32.mrf.mxu1 }
 0x33d   : > { %v6435_v12 = vpop.f32.mrf.mxu2  ;;  %v6449_v13 = vpop.f32.mrf.mxu3  ;;  %v6422_v24 = vadd.f32 %v6421_v1, %v6408_v7 }
 0x33e   : > { %6846 = vmatpush.bf16.msra.mxu2 %v9172_v29 }
 0x33f   : > { %v6436_v54 = vadd.f32 %v6435_v12, %v6422_v24 }
 0x341   : > { %v6463_v59 = vpop.f32.mrf.mxu0  ;;  %v6450_v48 = vadd.f32 %v6449_v13, %v6436_v54 }
 0x342   : > { %6847 = vmatpush.bf16.msra.mxu2 %v9171_v50  ;;  %v9181_v50 = vld [vmem:[%s11289_s29 + $0x50] sm:$0xff] }
 0x343   : > { %v6464_v39 = vadd.f32 %v6463_v59, %v6450_v48  ;;  %6859 = vmatpush.bf16.msra.mxu3 %v9181_v50 }
 0x344   : > { %v6423_v58 = vpop.f32.mrf.mxu1 }
 0x345   : > { %6848 = vmatmul.bf16.vlgmr.msra.gmra.mxu2 %v6710_v61  ;;  %v6437_v8 = vpop.f32.mrf.mxu2  ;;  %v6451_v21 = vpop.f32.mrf.mxu3  ;;  %v6424_v52 = vadd.f32 %v6423_v58, %v6410_v22 }
 0x347   : > { %v6438_v32 = vadd.f32 %v6437_v8, %v6424_v52  ;;  %6860 = vmatpush.bf16.msra.mxu3 %v9180_v44 }
 0x349   : > { %v6465_v57 = vpop.f32.mrf.mxu0  ;;  %v6452_v34 = vadd.f32 %v6451_v21, %v6438_v32 }
 0x34b   : > { %v6466_v35 = vadd.f32 %v6465_v57, %v6452_v34  ;;  %6861 = vmatpush.bf16.msra.mxu3 %v9179_v3 }
 0x34c   : > { %v6477_v56 = vpop.f32.mrf.mxu1 }
 0x34d   : > { %v6491_v63 = vpop.f32.mrf.mxu2  ;;  %v6505_v6 = vpop.f32.mrf.mxu3  ;;  %v6478_v28 = vadd.f32 %v6477_v56, %v6464_v39 }
 0x34f   : > { %v6492_v18 = vadd.f32 %v6491_v63, %v6478_v28 }
 0x351   : > { %v6519_v31 = vpop.f32.mrf.mxu0  ;;  %v6506_v20 = vadd.f32 %v6505_v6, %v6492_v18 }
 0x353   : > { %v6520_v60 = vadd.f32 %v6519_v31, %v6506_v20 }
 0x354   : > { %v6479_v5 = vpop.f32.mrf.mxu1 }
 0x355   : > { %v6493_v10 = vpop.f32.mrf.mxu2  ;;  %v6507_v17 = vpop.f32.mrf.mxu3  ;;  %v6480_v29 = vadd.f32 %v6479_v5, %v6466_v35 }
 0x357   : > { %v6494_v42 = vadd.f32 %v6493_v10, %v6480_v29 }
 0x359   : > { %v6521_v47 = vpop.f32.mrf.mxu0  ;;  %v6508_v61 = vadd.f32 %v6507_v17, %v6494_v42 }
 0x35b   : > { %v6522_v9 = vadd.f32 %v6521_v47, %v6508_v61 }
 0x361   : > { %v6533_v15 = vpop.f32.mrf.mxu1 }
 0x362   : > { %v6534_v62 = vadd.f32 %v6533_v15, %v6520_v60 }
 0x368   : > { %v6547_v36 = vpop.f32.mrf.mxu2 }
 0x369   : > { %v6561_v33 = vpop.f32.mrf.mxu3  ;;  %v6535_v51 = vpop.f32.mrf.mxu1  ;;  %v6548_v38 = vadd.f32 %v6547_v36, %v6534_v62 }
 0x36a   : > { %v6536_v45 = vadd.f32 %v6535_v51, %v6522_v9 }
 0x36b   : > { %v6562_v13 = vadd.f32 %v6561_v33, %v6548_v38 }
 0x370   : > { %v6575_v19 = vpop.f32.mrf.mxu0  ;;  %v6549_v49 = vpop.f32.mrf.mxu2 }
 0x371   : > { %v6563_v55 = vpop.f32.mrf.mxu3  ;;  %v6550_v12 = vadd.f32 %v6549_v49, %v6536_v45  ;;  %v6576_v59 = vadd.f32 %v6575_v19, %v6562_v13 }
 0x373   : > { %v6564_v8 = vadd.f32 %v6563_v55, %v6550_v12 }
 0x378   : > { %v6577_v41 = vpop.f32.mrf.mxu0 }
 0x379   : > { %v6578_v53 = vadd.f32 %v6577_v41, %v6564_v8 }
 0x381   : > { %v6589_v43 = vpop.f32.mrf.mxu1 }
 0x382   : > { %v6590_v40 = vadd.f32 %v6589_v43, %v6576_v59 }
 0x388   : > { %v6603_v27 = vpop.f32.mrf.mxu2 }
 0x389   : > { %v6617_v30 = vpop.f32.mrf.mxu3  ;;  %v6591_v16 = vpop.f32.mrf.mxu1  ;;  %v6604_v57 = vadd.f32 %v6603_v27, %v6590_v40 }
 0x38a   : > { %v6592_v63 = vadd.f32 %v6591_v16, %v6578_v53 }
 0x38b   : > { %v6618_v46 = vadd.f32 %v6617_v30, %v6604_v57 }
 0x390   : > { %v6631_v1 = vpop.f32.mrf.mxu0  ;;  %v6605_v58 = vpop.f32.mrf.mxu2 }
 0x391   : > { %v6619_v21 = vpop.f32.mrf.mxu3  ;;  %v6606_v6 = vadd.f32 %v6605_v58, %v6592_v63  ;;  %v6632_v4 = vadd.f32 %v6631_v1, %v6618_v46 }
 0x393   : > { %v6620_v7 = vadd.f32 %v6619_v21, %v6606_v6 }
 0x398   : > { %v6633_v0 = vpop.f32.mrf.mxu0 }
 0x399   : > { %v6634_v15 = vadd.f32 %v6633_v0, %v6620_v7 }
 0x3a1   : > { %v6645_v56 = vpop.f32.mrf.mxu1 }
 0x3a2   : > { %v6646_v25 = vadd.f32 %v6645_v56, %v6632_v4 }
 0x3a8   : > { %v6659_v5 = vpop.f32.mrf.mxu2 }
 0x3a9   : > { %v6647_v31 = vpop.f32.mrf.mxu1  ;;  %v6673_v10 = vpop.f32.mrf.mxu3  ;;  %v6660_v17 = vadd.f32 %v6659_v5, %v6646_v25 }
 0x3aa   : > { %v6648_v26 = vadd.f32 %v6647_v31, %v6634_v15 }
 0x3ab   : > { %v6674_v36 = vadd.f32 %v6673_v10, %v6660_v17 }
 0x3b0   : > { %v6687_v24 = vpop.f32.mrf.mxu0  ;;  %v6661_v23 = vpop.f32.mrf.mxu2 }
 0x3b1   : > { %v6662_v47 = vadd.f32 %v6661_v23, %v6648_v26  ;;  %v6701_v2 = vpop.f32.mrf.mxu1  ;;  %v6688_v54 = vadd.f32 %v6687_v24, %v6674_v36  ;;  %v6675_v22 = vpop.f32.mrf.mxu3 }
 0x3b3   : > { %v6676_v33 = vadd.f32 %v6675_v22, %v6662_v47  ;;  %v6702_v48 = vadd.f32 %v6701_v2, %v6688_v54 }
 0x3b5   : > { %v6707_v19 = vmax.f32 %v6702_v48, 0.0 }
 0x3b8   : > { %v6689_v52 = vpop.f32.mrf.mxu0 }
 0x3b9   : > { %v6690_v51 = vadd.f32 %v6689_v52, %v6676_v33  ;;  %v6703_v11 = vpop.f32.mrf.mxu1 }
 0x3bb   : > { %v6704_v32 = vadd.f32 %v6703_v11, %v6690_v51 }
 0x3bd   : > { %v6709_v14 = vmax.f32 %v6704_v32, 0.0 }
 0x3bf   : > { %v6711_v39 = vpack.c.bf16 %v6709_v14, %v6707_v19 }
 0x3c1   : > { %6862 = vmatmul.bf16.vlgmr.msra.gmra.mxu3 %v6711_v39 }
 0x3c8   : > { %v6849_v34 = vpop.f32.mrf.mxu2 }
 0x3d0   : > { %v6851_v35 = vpop.f32.mrf.mxu2 }
 0x444   : > { %v6863_v49 = vpop.f32.mrf.mxu3 }
 0x445   : > { %v6864_v28 = vadd.f32 %v6863_v49, %v6849_v34 }
 0x447   : > { %6869 = vst.msk [vmem:[%s3490_s6] sm:$0xff] %vm6868_vm1, %v6864_v28 }
 0x44c   : > { %v6865_v43 = vpop.f32.mrf.mxu3 }
 0x44d   : > { %v6866_v18 = vadd.f32 %v6865_v43, %v6851_v35 }
 0x44f   : > { %6870 = vst.msk [vmem:[%s3490_s6 + $0x8] sm:$0xff] %vm6868_vm1, %v6866_v18 }
 0x450 PF: > { %s14_s19 = sadd.s32 1, %s9267_s19   ;;  %s11363_s15 = smov %s9255_s16 }
 0x451   : > { %p11_p12 = scmp.ge.s32.totalorder %s14_s19, 4   ;;  %s11364_s16 = smov %s9329_s23 }
 0x452   : > { %s11365_s17 = smov %s9263_s18  ;;  %s11366_s18 = smov %s11368_s20 }
 0x453   :  { %13 = sbr.rel (!%p11_p12) target bundleno = 3 (0x3), region = 138 }

// kernel: network_forward.2
= control target key start
LH: loop header
LB: loop body
LE: loop exit
PB: predicated region body
PF: predicated region fallthrough
CT: control target
= control target key end

     0   :  { %s8429_s24 = smov 0   ;;  %s10906_s0 = inlined_call_operand.vmem [shape: bf16[2,448,64], index: 0, kind: input, shape index: {}]   ;;  %s10907_s1 = inlined_call_operand.vmem [shape: bf16[4,64,32], index: 1, kind: input, shape index: {}]   ;;  %s10908_s2 = inlined_call_operand.vmem [shape: f32[1,32], index: 2, kind: input, shape index: {}]   ;;  %s10909_s3 = inlined_call_operand.vmem [shape: bf16[16,32,64], index: 3, kind: input, shape index: {}]   ;;  %s10910_s4 = inlined_call_operand.vmem [shape: f32[1,64], index: 4, kind: input, shape index: {}]   ;;  %s10911_s5 = inlined_call_operand.vmem [shape: bf16[9,64,64], index: 5, kind: input, shape index: {}]   ;;  %s10912_s6 = inlined_call_operand.vmem [shape: f32[1,64], index: 6, kind: input, shape index: {}]   ;;  %s10913_s7 = inlined_call_operand.vmem [shape: bf16[2,49,64], index: 7, kind: output, shape index: {}]  }
   0x1 LB: > { %s7134_s25 = sadd.s32 4294967295, %s8387_s24   ;;  %p7138_p0 = scmp.ge.s32.totalorder %s8387_s24, 1  ;;  %s8387_s24 = sphi %s8429_s24, %s17_s24  }
   0x2   : > { %p237_p1 = scmp.lt.s32.totalorder %s8387_s24, 3 }
   0x4   : > { %p238_p2 = pnand %p7138_p0, %p237_p1 }
   0x5   : > { %p269_p3 = scmp.lt.s32.totalorder (!%p238_p2), %s7134_s25, 1 }
   0x6   : > { %241 = sbr.rel (%p238_p2) target bundleno = 1806 (0x70e), region = 48 }
   0xb   : > { %v8251_v0 = vld [vmem:[%s10907_s1 + $0x38] sm:$0xff]  ;;  %v8250_v2 = vld [vmem:[%s10907_s1 + $0x30] sm:$0xff]  ;;  %s10917_s25 = smov (!%p269_p3, %s7134_s25), 1  ;;  %v8249_v4 = vld [vmem:[%s10907_s1 + $0x28] sm:$0xff]  ;;  %vm486_vm0 = vsmask.f32 7424 }
   0xc   : > { %v8285_v1 = vld [vmem:[%s10907_s1 + $0x78] sm:$0xff]  ;;  %812 = vmatpush.bf16.msra.mxu0 %v8251_v0  ;;  %8354 = vmatpush.bf16.msra.mxu1 %v8251_v0  ;;  %v8284_v3 = vld [vmem:[%s10907_s1 + $0x70] sm:$0xff]  ;;  %s8362_s11 = smul.u32 224, %s10917_s25  ;;  %v8283_v5 = vld [vmem:[%s10907_s1 + $0x68] sm:$0xff]  ;;  %vm726_vm1 = vcmask 523264   ;;  %vm1929_vm2 = vcmask 1044480  }
   0xd   : > { %8355 = vmatpush.bf16.msra.mxu2 %v8251_v0  ;;  %2092 = vmatpush.bf16.msra.mxu3 %v8285_v1  ;;  %v8248_v12 = vld [vmem:[%s10907_s1 + $0x20] sm:$0xff]  ;;  %v8281_v30 = vld [vmem:[%s10907_s1 + $0x58] sm:$0xff]  ;;  %v8280_v46 = vld [vmem:[%s10907_s1 + $0x50] sm:$0xff]  ;;  %vm1372_vm3 = vsmask.f32 5376  ;;  %vm2394_vm4 = vcmask 261120  }
   0xe   : > { %s8461_s18 = scalar_lea.vmem %s10906_s0, %s8362_s11  ;;  %v8282_v22 = vld [vmem:[%s10907_s1 + $0x60] sm:$0xff]  ;;  %v8247_v33 = vld [vmem:[%s10907_s1 + $0x18] sm:$0xff]  ;;  %v8246_v50 = vld [vmem:[%s10907_s1 + $0x10] sm:$0xff]  ;;  %vm5647_vm5 = vcmask 516096   ;;  %s8363_s14 = smul.u32 28, %s10917_s25  ;;  %vm6967_vm6 = vcmask 519168  }
   0xf   : > { %v8464_v6 = vld [vmem:[%s8461_s18] sm:$0xff]  ;;  %v8467_v7 = vld [vmem:[%s8461_s18 + $0x8] sm:$0xff]  ;;  %v8471_v9 = vld [vmem:[%s8461_s18 + $0xb0] sm:$0xff]  ;;  %vm6968_vm7 = vsmask.f32 3328  ;;  %vm6986_vm9 = vcmask 519171  }
  0x10   : > { %813 = vmatpush.bf16.msra.mxu0 %v8250_v2  ;;  %8356 = vmatpush.bf16.msra.mxu1 %v8250_v2  ;;  %v8239_v8 = vld [vmem:[%s8461_s18 + $0xa8] sm:$0xff]  ;;  %v8242_v10 = vld [vmem:[%s8461_s18 + $0xc0] sm:$0xff]  ;;  %v488_v13 = vshrl.u32 %v8464_v6, 16  ;;  %v490_v14 = vshll.u32 %v8464_v6, 16  ;;  %v495_v15 = vshll.u32 %v8467_v7, 16  ;;  %v663_v18 = vshll.u32 %v8471_v9, 16  ;;  %s10833_s20 = scalar_lea.vmem %s10913_s7, %s8363_s14  ;;  %vm6969_vm8 = vmand %vm6967_vm6, %vm6968_vm7 }
  0x11   : > { %8357 = vmatpush.bf16.msra.mxu2 %v8250_v2  ;;  %2093 = vmatpush.bf16.msra.mxu3 %v8284_v3  ;;  %v8475_v11 = vld [vmem:[%s8461_s18 + $0xc8] sm:$0xff]  ;;  %v655_v16 = vshll.u32 %v8239_v8, 16  ;;  %v659_v17 = vshrl.u32 %v8239_v8, 16  ;;  %v679_v19 = vshll.u32 %v8242_v10, 16  ;;  %v683_v20 = vshrl.u32 %v8242_v10, 16  ;;  %v8494_v27 = vld [vmem:[%s8461_s18 + $0x10] sm:$0xff] }
  0x12   : > { %v8485_v21 = vld [vmem:[%s8461_s18 + $0xc] sm:$0xf]  ;;  %v492_v23 = vrot.slane %v490_v14, 1  ;;  %v497_v24 = vrot.slane %v495_v15, 1  ;;  %v687_v26 = vshll.u32 %v8475_v11, 16  ;;  %v665_v28 = vrot.slane %v663_v18, 1 }
  0x13   : > { %v8490_v25 = vrot.slane %v655_v16, 1  ;;  %v8496_v29 = vrot.slane %v679_v19, 1  ;;  %v1292_v31 = vunpack.c.l.b16 %v8485_v21  ;;  %v1916_v32 = vld [vmem:[%s8461_s18 + $0x8] sm:$0x8]  ;;  %v332_v39 = vld [vmem:[%s8461_s18 + $0xd0] sm:$0xf] }
  0x14   : > { %814 = vmatpush.bf16.msra.mxu0 %v8249_v4  ;;  %8358 = vmatpush.bf16.msra.mxu1 %v8249_v4  ;;  %v493_v34 = vor.u32 %v492_v23, %v488_v13  ;;  %v689_v36 = vrot.slane %v687_v26, 1  ;;  %v1927_v37 = vunpack.c.l.b16 %v1916_v32  ;;  %v341_v40 = vld [vmem:[%s8461_s18 + $0xd4] sm:$0x1]  ;;  %v1931_v44 = vrot.slane %v8494_v27, 3  ;;  %v8241_v52 = vld [vmem:[%s8461_s18 + $0xb8] sm:$0xff]  ;;  %v8279_v55 = vld [vmem:[%s10907_s1 + $0x48] sm:$0xff] }
  0x15   : > { %8359 = vmatpush.bf16.msra.mxu2 %v8249_v4  ;;  %2094 = vmatpush.bf16.msra.mxu3 %v8283_v5  ;;  %v661_v35 = vor.u32 %v659_v17, %v8490_v25  ;;  %v685_v38 = vor.u32 %v683_v20, %v8496_v29  ;;  %v8521_v48 = vunpack.c.l.b16 %v332_v39  ;;  %v458_v49 = vunpack.c.l.b16 %v341_v40  ;;  %v8528_v51 = vld [vmem:[%s8461_s18 + $0x10] sm:$0xff]  ;;  %v8245_v56 = vld [vmem:[%s10907_s1 + $0x8] sm:$0xff]  ;;  %v8278_v63 = vld [vmem:[%s10907_s1 + $0x40] sm:$0xff] }
  0x16   : > { %v498_v41 = vsel %vm486_vm0, %v493_v34, %v497_v24  ;;  %v1928_v43 = vpack.c.b16 %v1292_v31, %v1927_v37  ;;  %v499_v57 = vshrl.u32 %v8467_v7, 16  ;;  %v503_v58 = vshll.u32 %v8528_v51, 16  ;;  %v8548_v0 = vld [vmem:[%s8461_s18 + $0x18] sm:$0xff]  ;;  %v8244_v1 = vld [vmem:[%s10907_s1] sm:$0xff]  ;;  %v8291_v16 = vld [vmem:[%s10909_s3 + $0x28] sm:$0xff] }
  0x17   : > { %v666_v42 = vsel %vm486_vm0, %v661_v35, %v665_v28  ;;  %v690_v45 = vsel %vm486_vm0, %v685_v38, %v689_v36  ;;  %v485_v54 = vpack.c.b16 %v458_v49, %v8521_v48  ;;  %v667_v59 = vshrl.u32 %v8471_v9, 16  ;;  %v8562_v15 = vld [vmem:[%s8461_s18 + $0x18] sm:$0xff]  ;;  %v8287_v18 = vld [vmem:[%s10909_s3 + $0x8] sm:$0xff]  ;;  %v8591_v40 = vld [vmem:[%s8461_s18 + $0x20] sm:$0xff] }
  0x18   : > { %815 = vmatpush.bf16.msra.mxu0 %v8248_v12  ;;  %8360 = vmatpush.bf16.msra.mxu1 %v8248_v12  ;;  %v1930_v47 = vrot.slane %v1928_v43, 3  ;;  %v671_v60 = vshll.u32 %v8241_v52, 16  ;;  %v691_v61 = vshrl.u32 %v8475_v11, 16  ;;  %v501_v2 = vor.u32 %v499_v57, %v497_v24  ;;  %v8293_v17 = vld [vmem:[%s10909_s3 + $0x38] sm:$0xff]  ;;  %v1174_v23 = vld [vmem:[%s8461_s18 + $0x8] sm:$0xc] }
  0x19   : > { %8361 = vmatpush.bf16.msra.mxu2 %v8248_v12  ;;  %2095 = vmatpush.bf16.msra.mxu3 %v8282_v22  ;;  %v695_v62 = vshll.u32 %v485_v54, 16  ;;  %v505_v3 = vrot.slane %v503_v58, 1  ;;  %v669_v4 = vor.u32 %v667_v59, %v665_v28  ;;  %v1933_v10 = vrot.slane %v8548_v0, 3  ;;  %v8578_v24 = vld [vmem:[%s8461_s18 + $0x20] sm:$0xff]  ;;  %v8255_v49 = vld [vmem:[%s8461_s18 + $0x28] sm:$0xff] }
  0x1a   : > { %v1932_v53 = vsel %vm1929_vm2, %v1930_v47, %v1931_v44  ;;  %v673_v5 = vrot.slane %v671_v60, 1  ;;  %v693_v8 = vor.u32 %v691_v61, %v689_v36  ;;  %v507_v19 = vshrl.u32 %v8528_v51, 16  ;;  %v8607_v58 = vld [vmem:[%s8461_s18 + $0x28] sm:$0xff] }
  0x1b   : > { %7269 = vmatmul.msk.bf16.vlgmr.msra.gmra.mxu0 %vm726_vm1, %v498_v41  ;;  %7290 = vmatmul.msk.bf16.vlgmr.msra.gmra.mxu1 %vm726_vm1, %v666_v42  ;;  %v697_v9 = vrot.slane %v695_v62, 1  ;;  %v506_v11 = vsel %vm486_vm0, %v501_v2, %v505_v3  ;;  %v1934_v14 = vsel %vm1929_vm2, %v1931_v44, %v1933_v10  ;;  %v511_v20 = vshll.u32 %v8562_v15, 16 }
  0x1c   : > { %1035 = vmatpush.bf16.msrb.mxu1 %v8247_v33  ;;  %7293 = vmatmul.msk.bf16.vlgmr.msra.gmra.mxu2 %vm726_vm1, %v690_v45  ;;  %v674_v12 = vsel %vm486_vm0, %v669_v4, %v673_v5  ;;  %v675_v22 = vshrl.u32 %v8241_v52, 16  ;;  %v509_v26 = vor.u32 %v507_v19, %v505_v3  ;;  %v699_v32 = vshrl.u32 %v485_v54, 16 }
  0x1d   : > { %1724 = vmatpush.bf16.msrb.mxu2 %v8281_v30  ;;  %7518 = vmatmul.msk.bf16.vlgmr.msra.gmra.mxu3 %vm726_vm1, %v1932_v53  ;;  %v698_v13 = vsel %vm486_vm0, %v693_v8, %v697_v9  ;;  %v513_v28 = vrot.slane %v511_v20, 1  ;;  %v1291_v33 = vunpack.c.l.b16 %v1174_v23  ;;  %v1935_v34 = vrot.slane %v8578_v24, 3 }
  0x1e   : > { %3123 = vmatpush.bf16.msrb.mxu3 %v8293_v17  ;;  %v677_v30 = vor.u32 %v675_v22, %v673_v5  ;;  %v701_v37 = vor.u32 %v699_v32, %v697_v9  ;;  %v1382_v43 = vshrl.u32 %v8494_v27, 16  ;;  %v515_v21 = vshrl.u32 %v8562_v15, 16 }
  0x1f   : > { %v514_v35 = vsel %vm486_vm0, %v509_v26, %v513_v28  ;;  %v1345_v38 = vpack.c.b16 %v1292_v31, %v1291_v33  ;;  %v1936_v39 = vsel %vm1929_vm2, %v1933_v10, %v1935_v34  ;;  %v519_v31 = vshll.u32 %v8591_v40, 16  ;;  %v8623_v10 = vld [vmem:[%s8461_s18 + $0x30] sm:$0xff]  ;;  %v8289_v33 = vld [vmem:[%s10909_s3 + $0x18] sm:$0xff] }
  0x20   : > { %1036 = vmatpush.bf16.msrb.mxu1 %v8246_v50  ;;  %v682_v36 = vsel %vm486_vm0, %v677_v30, %v8496_v29  ;;  %v1385_v29 = vshll.u32 %v8494_v27, 16  ;;  %v517_v50 = vor.u32 %v515_v21, %v513_v28  ;;  %v1391_v59 = vshrl.u32 %v8548_v0, 16  ;;  %v8639_v28 = vld [vmem:[%s8461_s18 + $0x38] sm:$0xff]  ;;  %2626 = vmatpush.bf16.msrb.mxu0 %v8289_v33 }
  0x21   : > { %1725 = vmatpush.bf16.msrb.mxu2 %v8280_v46  ;;  %v1374_v41 = vshrl.u32 %v1345_v38, 16  ;;  %v1377_v42 = vshll.u32 %v1345_v38, 16  ;;  %v1384_v46 = vrot.slane %v1382_v43, 2  ;;  %v521_v52 = vrot.slane %v519_v31, 1  ;;  %v8656_v31 = vld [vmem:[%s8461_s18 + $0x40] sm:$0xff] }
  0x22   : > { %v1387_v47 = vrot.slane %v1385_v29, 3  ;;  %v1394_v60 = vshll.u32 %v8548_v0, 16  ;;  %v523_v61 = vshrl.u32 %v8591_v40, 16  ;;  %v527_v62 = vshll.u32 %v8607_v58, 16 }
  0x23   : > { %v1376_v44 = vrot.slane %v1374_v41, 2  ;;  %v1379_v45 = vrot.slane %v1377_v42, 3  ;;  %v522_v27 = vsel %vm486_vm0, %v517_v50, %v521_v52  ;;  %v1409_v30 = vshrl.u32 %v8255_v49, 16 }
  0x24   : > { %1037 = vmatpush.bf16.msrb.mxu1 %v8245_v56  ;;  %v1388_v54 = vor.u32 %v1387_v47, %v1384_v46  ;;  %v525_v2 = vor.u32 %v523_v61, %v521_v52  ;;  %v529_v3 = vrot.slane %v527_v62, 1  ;;  %v1412_v32 = vshll.u32 %v8255_v49, 16  ;;  %v8662_v52 = vld [vmem:[%s8461_s18 + $0x48] sm:$0xff] }
  0x25   : > { %1726 = vmatpush.bf16.msrb.mxu2 %v8279_v55  ;;  %v1380_v53 = vor.u32 %v1379_v45, %v1376_v44  ;;  %v1937_v55 = vrot.slane %v8255_v49, 3  ;;  %v547_v46 = vshrl.u32 %v8639_v28, 16  ;;  %v551_v47 = vshll.u32 %v8656_v31, 16 }
  0x26   : > { %v530_v8 = vsel %vm486_vm0, %v525_v2, %v529_v3  ;;  %v555_v62 = vshrl.u32 %v8656_v31, 16  ;;  %v8679_v2 = vld [vmem:[%s8461_s18 + $0x50] sm:$0xff]  ;;  %vm6987_vm10 = vsmask.f32 7950  ;;  %vm6977_vm12 = vcmask 1040384  }
  0x27   : > { %v1389_v56 = vsel %vm1372_vm3, %v1380_v53, %v1388_v54  ;;  %v1938_v57 = vsel %vm1929_vm2, %v1935_v34, %v1937_v55  ;;  %v539_v34 = vshrl.u32 %v8623_v10, 16  ;;  %v553_v53 = vrot.slane %v551_v47, 1  ;;  %vm6988_vm11 = vmand %vm6986_vm9, %vm6987_vm10 }
  0x28   : > { %1038 = vmatpush.bf16.msrb.mxu1 %v8244_v1  ;;  %v1396_v1 = vrot.slane %v1394_v60, 3  ;;  %vm6978_vm13 = vcmask 1044484   ;;  %vm6992_vm15 = vcmask 518144   ;;  %vm7019_vm6 = vcmask 1042432  }
  0x29   : > { %1727 = vmatpush.bf16.msrb.mxu2 %v8278_v63  ;;  %v1393_v63 = vrot.slane %v1391_v59, 2  ;;  %v8673_v59 = vld [vmem:[%s8461_s18 + $0x48] sm:$0xff]  ;;  %vm6979_vm14 = vmor %vm6977_vm12, %vm6978_vm13  ;;  %vm7020_vm7 = vcmask 1046532   ;;  %vm7035_vm12 = vcmask 517120   ;;  %vm7042_vm13 = vsmask.f32 1280 }
  0x2a   : > { %vm7021_vm10 = vmor %vm7019_vm6, %vm7020_vm7 }
  0x2b   : > { %7270 = vmatmul.msk.bf16.gmra.mxu0 %vm726_vm1, %v506_v11  ;;  %7291 = vmatmul.msk.bf16.gmra.mxu1 %vm726_vm1, %v674_v12  ;;  %v1397_v4 = vor.u32 %v1396_v1, %v1393_v63  ;;  %v1400_v11 = vshrl.u32 %v8578_v24, 16  ;;  %v1403_v12 = vshll.u32 %v8578_v24, 16  ;;  %v559_v63 = vshll.u32 %v8673_v59, 16 }
  0x2c   : > { %7294 = vmatmul.msk.bf16.gmra.mxu2 %vm726_vm1, %v698_v13  ;;  %2742 = vmatpush.bf16.msra.mxu1 %v8287_v18  ;;  %v531_v13 = vshrl.u32 %v8607_v58, 16 }
  0x2d   : > { %7519 = vmatmul.msk.bf16.gmra.mxu3 %vm726_vm1, %v1934_v14  ;;  %2921 = vmatpush.bf16.msra.mxu2 %v8291_v16  ;;  %v1398_v9 = vsel %vm1372_vm3, %v1388_v54, %v1397_v4  ;;  %v535_v14 = vshll.u32 %v8623_v10, 16  ;;  %v1402_v16 = vrot.slane %v1400_v11, 2  ;;  %v1405_v17 = vrot.slane %v1403_v12, 3 }
  0x2e   : > { %v533_v18 = vor.u32 %v531_v13, %v529_v3  ;;  %v561_v3 = vrot.slane %v559_v63, 1  ;;  %v8694_v13 = vld [vmem:[%s8461_s18 + $0x50] sm:$0xff]  ;;  %v8762_v63 = vld [vmem:[%s8461_s18 + $0x60] sm:$0xff] }
  0x2f   : > { %v537_v19 = vrot.slane %v535_v14, 1  ;;  %v1406_v20 = vor.u32 %v1405_v17, %v1402_v16 }
  0x31   : > { %v538_v23 = vsel %vm486_vm0, %v533_v18, %v537_v19  ;;  %v1407_v26 = vsel %vm1372_vm3, %v1397_v4, %v1406_v20  ;;  %v541_v38 = vor.u32 %v539_v34, %v537_v19  ;;  %v563_v19 = vshrl.u32 %v8673_v59, 16 }
  0x3b   : > { %7271 = vmatmul.msk.bf16.gmra.mxu0 %vm726_vm1, %v514_v35  ;;  %7292 = vmatmul.msk.bf16.gmra.mxu1 %vm726_vm1, %v682_v36  ;;  %v543_v35 = vshll.u32 %v8639_v28, 16  ;;  %v1414_v36 = vrot.slane %v1412_v32, 3 }
  0x3c   : > { %7295 = vmatmul.msk.bf16.gmra.mxu2 %vm726_vm1, %v701_v37  ;;  %v8258_v37 = vld [vmem:[%s8461_s18 + $0x40] sm:$0xff] }
  0x3d   : > { %7520 = vmatmul.msk.bf16.gmra.mxu3 %vm726_vm1, %v1936_v39  ;;  %v545_v39 = vrot.slane %v543_v35, 1  ;;  %v1943_v42 = vrot.slane %v8258_v37, 3  ;;  %v1436_v14 = vshrl.u32 %v8258_v37, 16  ;;  %v1439_v16 = vshll.u32 %v8258_v37, 16 }
  0x3f   : > { %v546_v43 = vsel %vm486_vm0, %v541_v38, %v545_v39 }
  0x4b   : > { %7272 = vmatmul.msk.bf16.gmra.mxu0 %vm726_vm1, %v522_v27  ;;  %7312 = vmatmul.msk.bf16.vlgmr.msrb.gmra.mxu1 %vm726_vm1, %v8464_v6  ;;  %v8256_v6 = vld [vmem:[%s8461_s18 + $0x30] sm:$0xff] }
  0x4c   : > { %7467 = vmatmul.msk.bf16.vlgmr.msrb.gmra.mxu2 %vm726_vm1, %v1389_v56  ;;  %v1939_v5 = vrot.slane %v8256_v6, 3  ;;  %v1418_v44 = vshrl.u32 %v8256_v6, 16  ;;  %v1421_v45 = vshll.u32 %v8256_v6, 16 }
  0x4d   : > { %7521 = vmatmul.msk.bf16.gmra.mxu3 %vm726_vm1, %v1938_v57 }
  0x4e   : > { %v1940_v0 = vsel %vm1929_vm2, %v1937_v55, %v1939_v5  ;;  %v1420_v49 = vrot.slane %v1418_v44, 2  ;;  %v1423_v50 = vrot.slane %v1421_v45, 3  ;;  %v1945_v55 = vrot.slane %v8662_v52, 3 }
  0x50   : > { %v1424_v54 = vor.u32 %v1423_v50, %v1420_v49  ;;  %v1946_v57 = vsel %vm1929_vm2, %v1943_v42, %v1945_v55  ;;  %v8743_v50 = vld [vmem:[%s8461_s18 + $0x60] sm:$0xff] }
  0x5b   : > { %7273 = vmatmul.msk.bf16.gmra.mxu0 %vm726_vm1, %v530_v8  ;;  %7313 = vmatmul.msk.bf16.gmra.mxu1 %vm726_vm1, %v8467_v7  ;;  %v8257_v7 = vld [vmem:[%s8461_s18 + $0x38] sm:$0xff] }
  0x5c   : > { %7468 = vmatmul.msk.bf16.gmra.mxu2 %vm726_vm1, %v1398_v9  ;;  %v1941_v22 = vrot.slane %v8257_v7, 3  ;;  %v1427_v60 = vshrl.u32 %v8257_v7, 16  ;;  %v1430_v61 = vshll.u32 %v8257_v7, 16 }
  0x5d   : > { %7522 = vmatmul.msk.bf16.gmra.mxu3 %vm726_vm1, %v1940_v0 }
  0x5e   : > { %v1942_v24 = vsel %vm1929_vm2, %v1939_v5, %v1941_v22  ;;  %v1944_v21 = vsel %vm1929_vm2, %v1941_v22, %v1943_v42  ;;  %v1429_v1 = vrot.slane %v1427_v60, 2  ;;  %v1432_v6 = vrot.slane %v1430_v61, 3 }
  0x5f   : > { %v1947_v5 = vrot.slane %v8679_v2, 3  ;;  %v1438_v22 = vrot.slane %v1436_v14, 2  ;;  %v1445_v42 = vshrl.u32 %v8662_v52, 16  ;;  %v8778_v14 = vld [vmem:[%s8461_s18 + $0x68] sm:$0xff] }
  0x60   : > { %v1433_v4 = vor.u32 %v1432_v6, %v1429_v1  ;;  %v1454_v1 = vshrl.u32 %v8679_v2, 16  ;;  %v1457_v6 = vshll.u32 %v8679_v2, 16 }
  0x61   : > { %v1948_v12 = vsel %vm1929_vm2, %v1945_v55, %v1947_v5  ;;  %v1447_v47 = vrot.slane %v1445_v42, 2  ;;  %v1951_v55 = vrot.slane %v8743_v50, 3 }
  0x62   : > { %v1434_v11 = vsel %vm1372_vm3, %v1424_v54, %v1433_v4 }
  0x6b   : > { %7274 = vmatmul.msk.bf16.gmra.mxu0 %vm726_vm1, %v538_v23  ;;  %7314 = vmatmul.msk.bf16.gmra.mxu1 %vm726_vm1, %v8528_v51  ;;  %v1411_v51 = vrot.slane %v1409_v30, 2  ;;  %v1441_v23 = vrot.slane %v1439_v16, 3 }
  0x6c   : > { %7469 = vmatmul.msk.bf16.gmra.mxu2 %vm726_vm1, %v1407_v26  ;;  %v8708_v26 = vld [vmem:[%s8461_s18 + $0x58] sm:$0xff] }
  0x6d   : > { %7523 = vmatmul.msk.bf16.gmra.mxu3 %vm726_vm1, %v1942_v24  ;;  %v1415_v41 = vor.u32 %v1414_v36, %v1411_v51  ;;  %v565_v24 = vor.u32 %v563_v19, %v561_v3  ;;  %v1442_v32 = vor.u32 %v1441_v23, %v1438_v22  ;;  %v1949_v34 = vrot.slane %v8708_v26, 3 }
  0x6e   : > { %v1953_v22 = vrot.slane %v8778_v14, 3  ;;  %v1463_v42 = vshrl.u32 %v8708_v26, 16 }
  0x6f   : > { %v1416_v29 = vsel %vm1372_vm3, %v1406_v20, %v1415_v41  ;;  %v1425_v56 = vsel %vm1372_vm3, %v1415_v41, %v1424_v54  ;;  %v1443_v38 = vsel %vm1372_vm3, %v1433_v4, %v1442_v32  ;;  %v8727_v41 = vld [vmem:[%s8461_s18 + $0x58] sm:$0xff] }
  0x70   : > { %v575_v45 = vshll.u32 %v8727_v41, 16 }
  0x7b   : > { %7275 = vmatmul.msk.bf16.gmra.mxu0 %vm726_vm1, %v546_v43  ;;  %7315 = vmatmul.msk.bf16.gmra.mxu1 %vm726_vm1, %v8562_v15  ;;  %v549_v15 = vor.u32 %v547_v46, %v545_v39  ;;  %v1950_v39 = vsel %vm1929_vm2, %v1947_v5, %v1949_v34  ;;  %v1448_v43 = vshll.u32 %v8662_v52, 16  ;;  %v583_v5 = vshll.u32 %v8762_v63, 16 }
  0x7c   : > { %7470 = vmatmul.msk.bf16.gmra.mxu2 %vm726_vm1, %v1416_v29 }
  0x7d   : > { %7524 = vmatmul.msk.bf16.gmra.mxu3 %vm726_vm1, %v1944_v21  ;;  %v554_v27 = vsel %vm486_vm0, %v549_v15, %v553_v53  ;;  %v1450_v49 = vrot.slane %v1448_v43, 3  ;;  %v577_v15 = vrot.slane %v575_v45, 1  ;;  %v585_v16 = vrot.slane %v583_v5, 1 }
  0x7e   : > { %v1466_v43 = vshll.u32 %v8708_v26, 16 }
  0x80   : > { %v1468_v26 = vrot.slane %v1466_v43, 3 }
  0x8b   : > { %7276 = vmatmul.msk.bf16.gmra.mxu0 %vm726_vm1, %v554_v27  ;;  %7316 = vmatmul.msk.bf16.gmra.mxu1 %vm726_vm1, %v8591_v40  ;;  %v557_v40 = vor.u32 %v555_v62, %v553_v53  ;;  %v1451_v53 = vor.u32 %v1450_v49, %v1447_v47  ;;  %v1952_v62 = vsel %vm1929_vm2, %v1949_v34, %v1951_v55  ;;  %v587_v49 = vshrl.u32 %v8762_v63, 16 }
  0x8c   : > { %7471 = vmatmul.msk.bf16.gmra.mxu2 %vm726_vm1, %v1425_v56 }
  0x8d   : > { %7525 = vmatmul.msk.bf16.gmra.mxu3 %vm726_vm1, %v1946_v57  ;;  %v562_v0 = vsel %vm486_vm0, %v557_v40, %v561_v3  ;;  %v1452_v61 = vsel %vm1372_vm3, %v1442_v32, %v1451_v53 }
  0x98   : > { %v8682_v8 = vpop.f32.mrf.mxu0  ;;  %v8684_v9 = vpop.f32.mrf.mxu1 }
  0x9b   : > { %7277 = vmatmul.msk.bf16.gmra.mxu0 %vm726_vm1, %v562_v0  ;;  %7317 = vmatmul.msk.bf16.gmra.mxu1 %vm726_vm1, %v8607_v58  ;;  %v567_v58 = vshll.u32 %v8694_v13, 16 }
  0x9c   : > { %7472 = vmatmul.msk.bf16.gmra.mxu2 %vm726_vm1, %v1434_v11  ;;  %v1456_v11 = vrot.slane %v1454_v1, 2 }
  0x9d   : > { %7526 = vmatmul.msk.bf16.gmra.mxu3 %vm726_vm1, %v1948_v12  ;;  %v569_v30 = vrot.slane %v567_v58, 1  ;;  %v1459_v12 = vrot.slane %v1457_v6, 3 }
  0x9f   : > { %v8697_v17 = vpop.f32.mrf.mxu2  ;;  %v570_v36 = vsel %vm486_vm0, %v565_v24, %v569_v30  ;;  %v1460_v19 = vor.u32 %v1459_v12, %v1456_v11 }
  0xa0   : > { %v8699_v7 = vpop.f32.mrf.mxu0  ;;  %v8701_v18 = vpop.f32.mrf.mxu1 }
  0xa1   : > { %v8705_v20 = vpop.f32.mrf.mxu3  ;;  %v1461_v34 = vsel %vm1372_vm3, %v1451_v53, %v1460_v19  ;;  %v1465_v53 = vrot.slane %v1463_v42, 2  ;;  %v8833_v42 = vld [vmem:[%s8461_s18 + $0x70] sm:$0xff] }
  0xa3   : > { %v1469_v6 = vor.u32 %v1468_v26, %v1465_v53  ;;  %v8847_v26 = vld [vmem:[%s8461_s18 + $0x78] sm:$0xff] }
  0xa7   : > { %v8710_v33 = vpop.f32.mrf.mxu2 }
  0xa8   : > { %v8713_v35 = vpop.f32.mrf.mxu0  ;;  %v8715_v51 = vpop.f32.mrf.mxu1 }
  0xa9   : > { %v8718_v37 = vpop.f32.mrf.mxu3 }
  0xab   : > { %7278 = vmatmul.msk.bf16.gmra.mxu0 %vm726_vm1, %v570_v36  ;;  %7318 = vmatmul.msk.bf16.gmra.mxu1 %vm726_vm1, %v8623_v10  ;;  %v571_v10 = vshrl.u32 %v8694_v13, 16  ;;  %v1954_v36 = vsel %vm1929_vm2, %v1951_v55, %v1953_v22 }
  0xac   : > { %7473 = vmatmul.msk.bf16.gmra.mxu2 %vm726_vm1, %v1443_v38 }
  0xad   : > { %7527 = vmatmul.msk.bf16.gmra.mxu3 %vm726_vm1, %v1950_v39  ;;  %v573_v52 = vor.u32 %v571_v10, %v569_v30  ;;  %v8794_v39 = vld [vmem:[%s8461_s18 + $0x68] sm:$0xff] }
  0xaf   : > { %v8732_v29 = vpop.f32.mrf.mxu2  ;;  %v578_v57 = vsel %vm486_vm0, %v573_v52, %v577_v15  ;;  %v591_v52 = vshll.u32 %v8794_v39, 16 }
  0xb0   : > { %v8734_v21 = vpop.f32.mrf.mxu0  ;;  %v8736_v44 = vpop.f32.mrf.mxu1 }
  0xb1   : > { %v8740_v46 = vpop.f32.mrf.mxu3  ;;  %v593_v1 = vrot.slane %v591_v52, 1 }
  0xb7   : > { %v8745_v54 = vpop.f32.mrf.mxu2 }
  0xb8   : > { %v8748_v27 = vpop.f32.mrf.mxu0  ;;  %v8750_v56 = vpop.f32.mrf.mxu1 }
  0xb9   : > { %v8753_v60 = vpop.f32.mrf.mxu3 }
  0xbb   : > { %7279 = vmatmul.msk.bf16.gmra.mxu0 %vm726_vm1, %v578_v57  ;;  %7319 = vmatmul.msk.bf16.gmra.mxu1 %vm726_vm1, %v8639_v28  ;;  %v579_v28 = vshrl.u32 %v8727_v41, 16  ;;  %v8812_v57 = vld [vmem:[%s8461_s18 + $0x70] sm:$0xff] }
  0xbc   : > { %7474 = vmatmul.msk.bf16.gmra.mxu2 %vm726_vm1, %v1452_v61  ;;  %v1955_v12 = vrot.slane %v8812_v57, 3 }
  0xbd   : > { %7528 = vmatmul.msk.bf16.gmra.mxu3 %vm726_vm1, %v1952_v62  ;;  %v581_v2 = vor.u32 %v579_v28, %v577_v15  ;;  %v589_v62 = vor.u32 %v587_v49, %v585_v16 }
  0xbf   : > { %v8767_v40 = vpop.f32.mrf.mxu2  ;;  %v586_v30 = vsel %vm486_vm0, %v581_v2, %v585_v16  ;;  %v1470_v16 = vsel %vm1372_vm3, %v1460_v19, %v1469_v6  ;;  %v1472_v19 = vshrl.u32 %v8743_v50, 16 }
  0xc0   : > { %v8769_v3 = vpop.f32.mrf.mxu0  ;;  %v8771_v4 = vpop.f32.mrf.mxu1 }
  0xc1   : > { %v8775_v0 = vpop.f32.mrf.mxu3  ;;  %v1474_v52 = vrot.slane %v1472_v19, 2 }
  0xc7   : > { %v949_v58 = vpop.f32.mrf.mxu2 }
  0xc8   : > { %v8781_v23 = vpop.f32.mrf.mxu0  ;;  %v1040_v24 = vpop.f32.mrf.mxu1 }
  0xc9   : > { %v8784_v32 = vpop.f32.mrf.mxu3  ;;  %v1041_v38 = vadd.f32 %v1040_v24, %v8682_v8  ;;  %v594_v24 = vsel %vm486_vm0, %v589_v62, %v593_v1 }
  0xcb   : > { %7280 = vmatmul.msk.bf16.gmra.mxu0 %vm726_vm1, %v586_v30  ;;  %7320 = vmatmul.msk.bf16.gmra.mxu1 %vm726_vm1, %v8656_v31  ;;  %v8802_v31 = vld [vmem:[%s10908_s2] ss:$0 sm:$0xff] }
  0xcc   : > { %7475 = vmatmul.msk.bf16.gmra.mxu2 %vm726_vm1, %v1461_v34 }
  0xcd   : > { %7529 = vmatmul.msk.bf16.gmra.mxu3 %vm726_vm1, %v1954_v36 }
  0xcf   : > { %v1729_v10 = vpop.f32.mrf.mxu2 }
  0xd0   : > { %v1863_v45 = vadd.f32 %v1729_v10, %v1041_v38  ;;  %v8804_v47 = vpop.f32.mrf.mxu0  ;;  %v1042_v8 = vpop.f32.mrf.mxu1 }
  0xd1   : > { %v8808_v15 = vpop.f32.mrf.mxu3  ;;  %v1043_v5 = vadd.f32 %v1042_v8, %v8699_v7  ;;  %v1956_v7 = vsel %vm1929_vm2, %v1953_v22, %v1955_v12  ;;  %v599_v8 = vshll.u32 %v8833_v42, 16 }
  0xd2   : > { %v2231_v55 = vadd.f32 %v8705_v20, %v1863_v45 }
  0xd3   : > { %v601_v62 = vrot.slane %v599_v8, 1 }
  0xd4   : > { %v2288_v61 = vadd.f32 %v8802_v31, %v2231_v55 }
  0xd6   : > { %v2341_v28 = vmax.f32 %v2288_v61, 0.0 }
  0xd7   : > { %v1731_v11 = vpop.f32.mrf.mxu2 }
  0xd8   : > { %2395 = vst.msk [vmem:[#allocation2] sm:$0xff] %vm2394_vm4, %v2341_v28  ;;  %v1864_v2 = vadd.f32 %v1731_v11, %v1043_v5  ;;  %v8818_v58 = vpop.f32.mrf.mxu0  ;;  %v1045_v20 = vpop.f32.mrf.mxu1 }
  0xd9   : > { %v8821_v30 = vpop.f32.mrf.mxu3  ;;  %v1046_v38 = vadd.f32 %v1045_v20, %v8713_v35  ;;  %v595_v35 = vshrl.u32 %v8794_v39, 16  ;;  %v1957_v20 = vrot.slane %v8847_v26, 3 }
  0xda   : > { %v2232_v34 = vadd.f32 %v8718_v37, %v1864_v2  ;;  %v1475_v37 = vshll.u32 %v8743_v50, 16 }
  0xdb   : > { %7281 = vmatmul.msk.bf16.gmra.mxu0 %vm726_vm1, %v594_v24  ;;  %7321 = vmatmul.msk.bf16.gmra.mxu1 %vm726_vm1, %v8673_v59  ;;  %v597_v61 = vor.u32 %v595_v35, %v593_v1 }
  0xdc   : > { %v2289_v36 = vadd.f32 %v8802_v31, %v2232_v34  ;;  %7476 = vmatmul.msk.bf16.gmra.mxu2 %vm726_vm1, %v1470_v16  ;;  %v1477_v53 = vrot.slane %v1475_v37, 3  ;;  %v8868_v37 = vld [vmem:[%s8461_s18 + $0x78] sm:$0xff] }
  0xdd   : > { %7530 = vmatmul.msk.bf16.gmra.mxu3 %vm726_vm1, %v1956_v7  ;;  %v602_v34 = vsel %vm486_vm0, %v597_v61, %v601_v62 }
  0xde   : > { %v2342_v43 = vmax.f32 %v2289_v36, 0.0  ;;  %v1478_v28 = vor.u32 %v1477_v53, %v1474_v52  ;;  %v8882_v53 = vld [vmem:[%s8461_s18 + $0x80] sm:$0xff] }
  0xdf   : > { %v1734_v10 = vpop.f32.mrf.mxu2 }
  0xe0   : > { %2396 = vst.msk [vmem:[#allocation2 + $0x8] sm:$0xff] %vm2394_vm4, %v2342_v43  ;;  %v1865_v59 = vadd.f32 %v1734_v10, %v1046_v38  ;;  %v8839_v22 = vpop.f32.mrf.mxu0  ;;  %v1047_v45 = vpop.f32.mrf.mxu1  ;;  %v1479_v1 = vsel %vm1372_vm3, %v1469_v6, %v1478_v28  ;;  %v1481_v6 = vshrl.u32 %v8778_v14, 16 }
  0xe1   : > { %v8843_v49 = vpop.f32.mrf.mxu3  ;;  %v1048_v11 = vadd.f32 %v1047_v45, %v8734_v21  ;;  %v1958_v21 = vsel %vm1929_vm2, %v1955_v12, %v1957_v20  ;;  %v607_v45 = vshll.u32 %v8868_v37, 16 }
  0xe2   : > { %v2233_v50 = vadd.f32 %v8740_v46, %v1865_v59  ;;  %v1483_v8 = vrot.slane %v1481_v6, 2 }
  0xe3   : > { %v609_v61 = vrot.slane %v607_v45, 1 }
  0xe4   : > { %v2290_v55 = vadd.f32 %v8802_v31, %v2233_v50 }
  0xe6   : > { %v2343_v5 = vmax.f32 %v2290_v55, 0.0 }
  0xe7   : > { %v1736_v2 = vpop.f32.mrf.mxu2 }
  0xe8   : > { %2397 = vst.msk [vmem:[#allocation2 + $0x10] sm:$0xff] %vm2394_vm4, %v2343_v5  ;;  %v1866_v24 = vadd.f32 %v1736_v2, %v1048_v11  ;;  %v8853_v16 = vpop.f32.mrf.mxu0  ;;  %v1050_v46 = vpop.f32.mrf.mxu1 }
  0xe9   : > { %v8856_v7 = vpop.f32.mrf.mxu3  ;;  %v1051_v19 = vadd.f32 %v1050_v46, %v8748_v27  ;;  %v603_v27 = vshrl.u32 %v8833_v42, 16  ;;  %v1959_v46 = vrot.slane %v8882_v53, 3 }
  0xea   : > { %v2234_v36 = vadd.f32 %v8753_v60, %v1866_v24  ;;  %v1484_v60 = vshll.u32 %v8778_v14, 16 }
  0xeb   : > { %7282 = vmatmul.msk.bf16.gmra.mxu0 %vm726_vm1, %v602_v34  ;;  %7322 = vmatmul.msk.bf16.gmra.mxu1 %vm726_vm1, %v8694_v13  ;;  %v605_v55 = vor.u32 %v603_v27, %v601_v62 }
  0xec   : > { %v2291_v38 = vadd.f32 %v8802_v31, %v2234_v36  ;;  %7477 = vmatmul.msk.bf16.gmra.mxu2 %vm726_vm1, %v1479_v1  ;;  %v1486_v52 = vrot.slane %v1484_v60, 3  ;;  %v8903_v60 = vld [vmem:[%s8461_s18 + $0x80] sm:$0xff] }
  0xed   : > { %7531 = vmatmul.msk.bf16.gmra.mxu3 %vm726_vm1, %v1958_v21  ;;  %v610_v36 = vsel %vm486_vm0, %v605_v55, %v609_v61 }
  0xee   : > { %v2344_v43 = vmax.f32 %v2291_v38, 0.0  ;;  %v1487_v5 = vor.u32 %v1486_v52, %v1483_v8  ;;  %v8917_v52 = vld [vmem:[%s8461_s18 + $0x88] sm:$0xff] }
  0xef   : > { %v1739_v10 = vpop.f32.mrf.mxu2 }
  0xf0   : > { %2398 = vst.msk [vmem:[#allocation2 + $0x18] sm:$0xff] %vm2394_vm4, %v2344_v43  ;;  %v1867_v13 = vadd.f32 %v1739_v10, %v1051_v19  ;;  %v8874_v12 = vpop.f32.mrf.mxu0  ;;  %v1052_v59 = vpop.f32.mrf.mxu1  ;;  %v1488_v62 = vsel %vm1372_vm3, %v1478_v28, %v1487_v5  ;;  %v1490_v28 = vshrl.u32 %v8812_v57, 16 }
  0xf1   : > { %v8878_v35 = vpop.f32.mrf.mxu3  ;;  %v1053_v2 = vadd.f32 %v1052_v59, %v8769_v3  ;;  %v1960_v3 = vsel %vm1929_vm2, %v1957_v20, %v1959_v46  ;;  %v615_v59 = vshll.u32 %v8903_v60, 16 }
  0xf2   : > { %v2235_v14 = vadd.f32 %v8775_v0, %v1867_v13  ;;  %v1492_v45 = vrot.slane %v1490_v28, 2 }
  0xf3   : > { %v617_v55 = vrot.slane %v615_v59, 1 }
  0xf4   : > { %v2292_v50 = vadd.f32 %v8802_v31, %v2235_v14 }
  0xf6   : > { %v2345_v11 = vmax.f32 %v2292_v50, 0.0 }
  0xf7   : > { %v1741_v24 = vpop.f32.mrf.mxu2 }
  0xf8   : > { %2399 = vst.msk [vmem:[#allocation2 + $0x20] sm:$0xff] %vm2394_vm4, %v2345_v11  ;;  %v1868_v34 = vadd.f32 %v1741_v24, %v1053_v2  ;;  %v8888_v1 = vpop.f32.mrf.mxu0  ;;  %v1055_v0 = vpop.f32.mrf.mxu1 }
  0xf9   : > { %v8891_v21 = vpop.f32.mrf.mxu3  ;;  %v1056_v6 = vadd.f32 %v1055_v0, %v8781_v23  ;;  %v611_v23 = vshrl.u32 %v8868_v37, 16  ;;  %v1961_v0 = vrot.slane %v8917_v52, 3 }
  0xfa   : > { %v2236_v38 = vadd.f32 %v8784_v32, %v1868_v34  ;;  %v1493_v32 = vshll.u32 %v8812_v57, 16 }
  0xfb   : > { %7283 = vmatmul.msk.bf16.gmra.mxu0 %vm726_vm1, %v610_v36  ;;  %7323 = vmatmul.msk.bf16.gmra.mxu1 %vm726_vm1, %v8727_v41  ;;  %v613_v50 = vor.u32 %v611_v23, %v609_v61  ;;  %v8290_v61 = vld [vmem:[%s10909_s3 + $0x20] sm:$0xff]  ;;  %v1962_v28 = vsel %vm1929_vm2, %v1959_v46, %v1961_v0 }
  0xfc   : > { %v2293_v19 = vadd.f32 %v8802_v31, %v2236_v38  ;;  %7478 = vmatmul.msk.bf16.gmra.mxu2 %vm726_vm1, %v1488_v62  ;;  %v1495_v8 = vrot.slane %v1493_v32, 3 }
  0xfd   : > { %7532 = vmatmul.msk.bf16.gmra.mxu3 %vm726_vm1, %v1960_v3  ;;  %v618_v38 = vsel %vm486_vm0, %v613_v50, %v617_v55  ;;  %2922 = vmatpush.bf16.msra.mxu2 %v8290_v61  ;;  %v8961_v50 = vld [vmem:[%s8461_s18 + $0x90] sm:$0xff] }
  0xfe   : > { %v2346_v43 = vmax.f32 %v2293_v19, 0.0  ;;  %v1496_v11 = vor.u32 %v1495_v8, %v1492_v45  ;;  %v8286_v45 = vld [vmem:[%s10909_s3] sm:$0xff] }
  0xff   : > { %v1744_v10 = vpop.f32.mrf.mxu2  ;;  %2743 = vmatpush.bf16.msra.mxu1 %v8286_v45 }
 0x100   : > { %2400 = vst.msk [vmem:[#allocation2 + $0x28] sm:$0xff] %vm2394_vm4, %v2346_v43  ;;  %v1869_v41 = vadd.f32 %v1744_v10, %v1056_v6  ;;  %v8909_v20 = vpop.f32.mrf.mxu0  ;;  %v1057_v13 = vpop.f32.mrf.mxu1  ;;  %v1497_v19 = vsel %vm1372_vm3, %v1487_v5, %v1496_v11  ;;  %v8944_v10 = vld [vmem:[%s8461_s18 + $0x88] sm:$0xff]  ;;  %v1499_v5 = vshrl.u32 %v8847_v26, 16 }
 0x101   : > { %v8913_v27 = vpop.f32.mrf.mxu3  ;;  %v1058_v24 = vadd.f32 %v1057_v13, %v8804_v47  ;;  %v8292_v47 = vld [vmem:[%s10909_s3 + $0x30] sm:$0xff]  ;;  %v623_v59 = vshll.u32 %v8944_v10, 16 }
 0x102   : > { %v2237_v57 = vadd.f32 %v8808_v15, %v1869_v41  ;;  %3124 = vmatpush.bf16.msrb.mxu3 %v8292_v47  ;;  %v1501_v8 = vrot.slane %v1499_v5, 2  ;;  %v1963_v47 = vrot.slane %v8961_v50, 3 }
 0x104   : > { %v2294_v14 = vadd.f32 %v8802_v31, %v2237_v57 }
 0x106   : > { %v2347_v2 = vmax.f32 %v2294_v14, 0.0 }
 0x107   : > { %v1746_v34 = vpop.f32.mrf.mxu2 }
 0x108   : > { %2401 = vst.msk [vmem:[#allocation2 + $0x30] sm:$0xff] %vm2394_vm4, %v2347_v2  ;;  %v1870_v36 = vadd.f32 %v1746_v34, %v1058_v24  ;;  %v8923_v62 = vpop.f32.mrf.mxu0  ;;  %v1060_v15 = vpop.f32.mrf.mxu1  ;;  %v625_v34 = vrot.slane %v623_v59, 1  ;;  %v8288_v59 = vld [vmem:[%s10909_s3 + $0x10] sm:$0xff] }
 0x109   : > { %v8932_v3 = vpop.f32.mrf.mxu3  ;;  %v1061_v43 = vadd.f32 %v1060_v15, %v8818_v58  ;;  %v619_v58 = vshrl.u32 %v8903_v60, 16  ;;  %2627 = vmatpush.bf16.msrb.mxu0 %v8288_v59 }
 0x10a   : > { %v2238_v6 = vadd.f32 %v8821_v30, %v1870_v36  ;;  %v1502_v30 = vshll.u32 %v8847_v26, 16 }
 0x10b   : > { %7284 = vmatmul.msk.bf16.gmra.mxu0 %vm726_vm1, %v618_v38  ;;  %7324 = vmatmul.msk.bf16.gmra.mxu1 %vm726_vm1, %v8762_v63  ;;  %v621_v24 = vor.u32 %v619_v58, %v617_v55 }
 0x10c   : > { %v2295_v32 = vadd.f32 %v8802_v31, %v2238_v6  ;;  %7479 = vmatmul.msk.bf16.gmra.mxu2 %vm726_vm1, %v1497_v19  ;;  %v1504_v57 = vrot.slane %v1502_v30, 3 }
 0x10d   : > { %7533 = vmatmul.msk.bf16.gmra.mxu3 %vm726_vm1, %v1962_v28  ;;  %v626_v28 = vsel %vm486_vm0, %v621_v24, %v625_v34 }
 0x10e   : > { %v2348_v41 = vmax.f32 %v2295_v32, 0.0  ;;  %v1505_v36 = vor.u32 %v1504_v57, %v1501_v8 }
 0x10f   : > { %v1749_v13 = vpop.f32.mrf.mxu2 }
 0x110   : > { %2402 = vst.msk [vmem:[#allocation2 + $0x38] sm:$0xff] %vm2394_vm4, %v2348_v41  ;;  %v1871_v63 = vadd.f32 %v1749_v13, %v1061_v43  ;;  %v8950_v46 = vpop.f32.mrf.mxu0  ;;  %v1062_v23 = vpop.f32.mrf.mxu1  ;;  %v1506_v55 = vsel %vm1372_vm3, %v1496_v11, %v1505_v36  ;;  %v8982_v41 = vld [vmem:[%s8461_s18 + $0x90] sm:$0xff]  ;;  %v1508_v13 = vshrl.u32 %v8882_v53, 16  ;;  %v1511_v11 = vshll.u32 %v8882_v53, 16 }
 0x111   : > { %v8957_v26 = vpop.f32.mrf.mxu3  ;;  %v1063_v38 = vadd.f32 %v1062_v23, %v8839_v22  ;;  %v1964_v22 = vsel %vm1929_vm2, %v1961_v0, %v1963_v47  ;;  %v631_v58 = vshll.u32 %v8982_v41, 16 }
 0x112   : > { %v2239_v14 = vadd.f32 %v8843_v49, %v1871_v63  ;;  %v1510_v45 = vrot.slane %v1508_v13, 2  ;;  %v1513_v8 = vrot.slane %v1511_v11, 3 }
 0x114   : > { %v2296_v2 = vadd.f32 %v8802_v31, %v2239_v14  ;;  %v8999_v14 = vld [vmem:[%s8461_s18 + $0x98] sm:$0xff] }
 0x116   : > { %v2349_v15 = vmax.f32 %v2296_v2, 0.0 }
 0x117   : > { %v1751_v61 = vpop.f32.mrf.mxu2 }
 0x118   : > { %2403 = vst.msk [vmem:[#allocation2 + $0x40] sm:$0xff] %vm2394_vm4, %v2349_v15  ;;  %v1872_v19 = vadd.f32 %v1751_v61, %v1063_v38  ;;  %v8967_v6 = vpop.f32.mrf.mxu0  ;;  %v1065_v49 = vpop.f32.mrf.mxu1  ;;  %v633_v15 = vrot.slane %v631_v58, 1  ;;  %v1514_v38 = vor.u32 %v1513_v8, %v1510_v45  ;;  %v9034_v8 = vld [vmem:[%s8461_s18 + $0xa0] sm:$0xff] }
 0x119   : > { %v8970_v32 = vpop.f32.mrf.mxu3  ;;  %v1066_v30 = vadd.f32 %v1065_v49, %v8853_v16  ;;  %v627_v16 = vshrl.u32 %v8944_v10, 16 }
 0x11a   : > { %v2240_v43 = vadd.f32 %v8856_v7, %v1872_v19 }
 0x11b   : > { %7285 = vmatmul.msk.bf16.gmra.mxu0 %vm726_vm1, %v626_v28  ;;  %7325 = vmatmul.msk.bf16.gmra.mxu1 %vm726_vm1, %v8794_v39  ;;  %v629_v24 = vor.u32 %v627_v16, %v625_v34  ;;  %v1965_v28 = vrot.slane %v8999_v14, 3  ;;  %v1515_v34 = vsel %vm1372_vm3, %v1505_v36, %v1514_v38  ;;  %v1517_v36 = vshrl.u32 %v8917_v52, 16 }
 0x11c   : > { %v2297_v5 = vadd.f32 %v8802_v31, %v2240_v43  ;;  %7480 = vmatmul.msk.bf16.gmra.mxu2 %vm726_vm1, %v1506_v55 }
 0x11d   : > { %7534 = vmatmul.msk.bf16.gmra.mxu3 %vm726_vm1, %v1964_v22  ;;  %v634_v22 = vsel %vm486_vm0, %v629_v24, %v633_v15  ;;  %v1519_v59 = vrot.slane %v1517_v36, 2 }
 0x11e   : > { %v2350_v7 = vmax.f32 %v2297_v5, 0.0 }
 0x11f   : > { %v1754_v63 = vpop.f32.mrf.mxu2 }
 0x120   : > { %2404 = vst.msk [vmem:[#allocation2 + $0x48] sm:$0xff] %vm2394_vm4, %v2350_v7  ;;  %v1873_v39 = vadd.f32 %v1754_v63, %v1066_v30  ;;  %v8988_v0 = vpop.f32.mrf.mxu0  ;;  %v1067_v23 = vpop.f32.mrf.mxu1  ;;  %v9020_v7 = vld [vmem:[%s8461_s18 + $0x98] sm:$0xff] }
 0x121   : > { %v8995_v53 = vpop.f32.mrf.mxu3  ;;  %v1068_v19 = vadd.f32 %v1067_v23, %v8874_v12  ;;  %v1966_v12 = vsel %vm1929_vm2, %v1963_v47, %v1965_v28  ;;  %v639_v16 = vshll.u32 %v9020_v7, 16 }
 0x122   : > { %v2241_v57 = vadd.f32 %v8878_v35, %v1873_v39 }
 0x123   : > { %v641_v24 = vrot.slane %v639_v16, 1 }
 0x124   : > { %v2298_v2 = vadd.f32 %v8802_v31, %v2241_v57 }
 0x126   : > { %v2351_v61 = vmax.f32 %v2298_v2, 0.0 }
 0x127   : > { %v1756_v49 = vpop.f32.mrf.mxu2 }
 0x128   : > { %2405 = vst.msk [vmem:[#allocation2 + $0x50] sm:$0xff] %vm2394_vm4, %v2351_v61  ;;  %v1874_v55 = vadd.f32 %v1756_v49, %v1068_v19  ;;  %v9005_v43 = vpop.f32.mrf.mxu0  ;;  %v1070_v35 = vpop.f32.mrf.mxu1 }
 0x129   : > { %v9008_v5 = vpop.f32.mrf.mxu3  ;;  %v1071_v11 = vadd.f32 %v1070_v35, %v8888_v1  ;;  %v635_v1 = vshrl.u32 %v8982_v41, 16  ;;  %v1967_v35 = vrot.slane %v9034_v8, 3 }
 0x12a   : > { %v2242_v30 = vadd.f32 %v8891_v21, %v1874_v55  ;;  %v1520_v21 = vshll.u32 %v8917_v52, 16 }
 0x12b   : > { %7286 = vmatmul.msk.bf16.gmra.mxu0 %vm726_vm1, %v634_v22  ;;  %7326 = vmatmul.msk.bf16.gmra.mxu1 %vm726_vm1, %v8833_v42  ;;  %v637_v2 = vor.u32 %v635_v1, %v633_v15 }
 0x12c   : > { %v2299_v13 = vadd.f32 %v8802_v31, %v2242_v30  ;;  %7481 = vmatmul.msk.bf16.gmra.mxu2 %vm726_vm1, %v1515_v34  ;;  %v1522_v45 = vrot.slane %v1520_v21, 3  ;;  %v9055_v21 = vld [vmem:[%s8461_s18 + $0xa0] sm:$0xff] }
 0x12d   : > { %7535 = vmatmul.msk.bf16.gmra.mxu3 %vm726_vm1, %v1966_v12  ;;  %v642_v30 = vsel %vm486_vm0, %v637_v2, %v641_v24 }
 0x12e   : > { %v2352_v63 = vmax.f32 %v2299_v13, 0.0  ;;  %v1523_v61 = vor.u32 %v1522_v45, %v1519_v59  ;;  %v9069_v45 = vld [vmem:[%s8461_s18 + $0xa8] sm:$0xff] }
 0x12f   : > { %v1759_v39 = vpop.f32.mrf.mxu2 }
 0x130   : > { %2406 = vst.msk [vmem:[#allocation2 + $0x58] sm:$0xff] %vm2394_vm4, %v2352_v63  ;;  %v1875_v42 = vadd.f32 %v1759_v39, %v1071_v11  ;;  %v9026_v47 = vpop.f32.mrf.mxu0  ;;  %v1072_v23 = vpop.f32.mrf.mxu1  ;;  %v1524_v15 = vsel %vm1372_vm3, %v1514_v38, %v1523_v61  ;;  %v1526_v38 = vshrl.u32 %v8961_v50, 16 }
 0x131   : > { %v9030_v58 = vpop.f32.mrf.mxu3  ;;  %v1073_v49 = vadd.f32 %v1072_v23, %v8909_v20  ;;  %v1968_v20 = vsel %vm1929_vm2, %v1965_v28, %v1967_v35  ;;  %v647_v23 = vshll.u32 %v9055_v21, 16 }
 0x132   : > { %v2243_v52 = vadd.f32 %v8913_v27, %v1875_v42  ;;  %v1528_v16 = vrot.slane %v1526_v38, 2 }
 0x133   : > { %v649_v2 = vrot.slane %v647_v23, 1 }
 0x134   : > { %v2300_v57 = vadd.f32 %v8802_v31, %v2243_v52 }
 0x136   : > { %v2353_v19 = vmax.f32 %v2300_v57, 0.0 }
 0x137   : > { %v1761_v55 = vpop.f32.mrf.mxu2 }
 0x138   : > { %2407 = vst.msk [vmem:[#allocation2 + $0x60] sm:$0xff] %vm2394_vm4, %v2353_v19  ;;  %v1876_v22 = vadd.f32 %v1761_v55, %v1073_v49  ;;  %v9040_v34 = vpop.f32.mrf.mxu0  ;;  %v1075_v27 = vpop.f32.mrf.mxu1 }
 0x139   : > { %v9043_v12 = vpop.f32.mrf.mxu3  ;;  %v1076_v36 = vadd.f32 %v1075_v27, %v8923_v62  ;;  %v643_v62 = vshrl.u32 %v9020_v7, 16  ;;  %v1969_v27 = vrot.slane %v9069_v45, 3 }
 0x13a   : > { %v2244_v13 = vadd.f32 %v8932_v3, %v1876_v22  ;;  %v1529_v3 = vshll.u32 %v8961_v50, 16 }
 0x13b   : > { %7287 = vmatmul.msk.bf16.gmra.mxu0 %vm726_vm1, %v642_v30  ;;  %7327 = vmatmul.msk.bf16.gmra.mxu1 %vm726_vm1, %v8868_v37  ;;  %v645_v57 = vor.u32 %v643_v62, %v641_v24 }
 0x13c   : > { %v2301_v11 = vadd.f32 %v8802_v31, %v2244_v13  ;;  %7482 = vmatmul.msk.bf16.gmra.mxu2 %vm726_vm1, %v1524_v15  ;;  %v1531_v59 = vrot.slane %v1529_v3, 3  ;;  %v1535_v3 = vshrl.u32 %v8999_v14, 16 }
 0x13d   : > { %7536 = vmatmul.msk.bf16.gmra.mxu3 %vm726_vm1, %v1968_v20 }
 0x13e   : > { %v2354_v63 = vmax.f32 %v2301_v11, 0.0  ;;  %v1532_v19 = vor.u32 %v1531_v59, %v1528_v16  ;;  %v9100_v16 = vld [vmem:[%s8461_s18 + $0xb0] sm:$0xff] }
 0x13f   : > { %v1764_v39 = vpop.f32.mrf.mxu2 }
 0x140   : > { %2408 = vst.msk [vmem:[#allocation2 + $0x68] sm:$0xff] %vm2394_vm4, %v2354_v63  ;;  %v1877_v37 = vadd.f32 %v1764_v39, %v1076_v36  ;;  %v9061_v28 = vpop.f32.mrf.mxu0  ;;  %v1077_v42 = vpop.f32.mrf.mxu1  ;;  %v1533_v24 = vsel %vm1372_vm3, %v1523_v61, %v1532_v19  ;;  %v1538_v61 = vshll.u32 %v8999_v14, 16 }
 0x141   : > { %v9065_v1 = vpop.f32.mrf.mxu3  ;;  %v1078_v55 = vadd.f32 %v1077_v42, %v8950_v46  ;;  %v1970_v46 = vsel %vm1929_vm2, %v1967_v35, %v1969_v27  ;;  %v1537_v42 = vrot.slane %v1535_v3, 2 }
 0x142   : > { %v2245_v50 = vadd.f32 %v8957_v26, %v1877_v37  ;;  %v650_v26 = vsel %vm486_vm0, %v645_v57, %v649_v2  ;;  %v651_v37 = vshrl.u32 %v9055_v21, 16  ;;  %v1540_v62 = vrot.slane %v1538_v61, 3 }
 0x144   : > { %v2302_v52 = vadd.f32 %v8802_v31, %v2245_v50  ;;  %v653_v59 = vor.u32 %v651_v37, %v649_v2  ;;  %v1541_v50 = vor.u32 %v1540_v62, %v1537_v42  ;;  %v2512_v42 = vld [vmem:[#allocation2 + $0x11] ss:$2 sm:$0xff] }
 0x146   : > { %v2355_v49 = vmax.f32 %v2302_v52, 0.0  ;;  %v1542_v2 = vsel %vm1372_vm3, %v1532_v19, %v1541_v50  ;;  %v1547_v19 = vshll.u32 %v9034_v8, 16 }
 0x147   : > { %v1766_v22 = vpop.f32.mrf.mxu2 }
 0x148   : > { %2409 = vst.msk [vmem:[#allocation2 + $0x70] sm:$0xff] %vm2394_vm4, %v2355_v49  ;;  %v1878_v30 = vadd.f32 %v1766_v22, %v1078_v55  ;;  %v9075_v15 = vpop.f32.mrf.mxu0  ;;  %v1080_v13 = vpop.f32.mrf.mxu1  ;;  %v1971_v55 = vrot.slane %v9100_v16, 3 }
 0x149   : > { %v9078_v20 = vpop.f32.mrf.mxu3  ;;  %v1081_v38 = vadd.f32 %v1080_v13, %v8967_v6 }
 0x14a   : > { %v2246_v11 = vadd.f32 %v8970_v32, %v1878_v30 }
 0x14b   : > { %7288 = vmatmul.msk.bf16.gmra.mxu0 %vm726_vm1, %v650_v26  ;;  %7328 = vmatmul.msk.bf16.gmra.mxu1 %vm726_vm1, %v8903_v60 }
 0x14c   : > { %v2303_v36 = vadd.f32 %v8802_v31, %v2246_v11  ;;  %7483 = vmatmul.msk.bf16.gmra.mxu2 %vm726_vm1, %v1533_v24 }
 0x14d   : > { %7537 = vmatmul.msk.bf16.gmra.mxu3 %vm726_vm1, %v1970_v46 }
 0x14e   : > { %v2356_v63 = vmax.f32 %v2303_v36, 0.0 }
 0x14f   : > { %v1769_v32 = vpop.f32.mrf.mxu2 }
 0x150   : > { %2410 = vst.msk [vmem:[#allocation2 + $0x78] sm:$0xff] %vm2394_vm4, %v2356_v63  ;;  %v1879_v60 = vadd.f32 %v1769_v32, %v1081_v38  ;;  %v9093_v39 = vpop.f32.mrf.mxu0  ;;  %v1082_v35 = vpop.f32.mrf.mxu1  ;;  %v9131_v32 = vld [vmem:[%s8461_s18 + $0xb8] sm:$0xff] }
 0x151   : > { %v9096_v6 = vpop.f32.mrf.mxu3  ;;  %v1083_v57 = vadd.f32 %v1082_v35, %v8988_v0  ;;  %v1972_v0 = vsel %vm1929_vm2, %v1969_v27, %v1971_v55 }
 0x152   : > { %v2247_v23 = vadd.f32 %v8995_v53, %v1879_v60  ;;  %v658_v53 = vsel %vm486_vm0, %v653_v59, %v8490_v25  ;;  %v1544_v25 = vshrl.u32 %v9034_v8, 16  ;;  %vm6998_vm0 = vcmask 1041408  }
 0x154   : > { %v2304_v14 = vadd.f32 %v8802_v31, %v2247_v23  ;;  %v1546_v61 = vrot.slane %v1544_v25, 2  ;;  %v1973_v23 = vrot.slane %v9131_v32, 3 }
 0x156   : > { %v2357_v52 = vmax.f32 %v2304_v14, 0.0 }
 0x157   : > { %v1771_v49 = vpop.f32.mrf.mxu2 }
 0x158   : > { %2411 = vst.msk [vmem:[#allocation2 + $0x80] sm:$0xff] %vm2394_vm4, %v2357_v52  ;;  %v1880_v22 = vadd.f32 %v1771_v49, %v1083_v57  ;;  %v9106_v30 = vpop.f32.mrf.mxu0  ;;  %v1085_v13 = vpop.f32.mrf.mxu1  ;;  %v2510_v57 = vld [vmem:[#allocation2 + $0x1] ss:$2 sm:$0xff] }
 0x159   : > { %v9110_v26 = vpop.f32.mrf.mxu3  ;;  %v1086_v46 = vadd.f32 %v1085_v13, %v9005_v43  ;;  %v1549_v43 = vrot.slane %v1547_v19, 3 }
 0x15a   : > { %v2248_v24 = vadd.f32 %v9008_v5, %v1880_v22  ;;  %v2555_v22 = vpack.c.bf16 %v2512_v42, %v2510_v57  ;;  %v2514_v42 = vld [vmem:[#allocation2 + $0x21] ss:$2 sm:$0xff] }
 0x15b   : > { %7289 = vmatmul.msk.bf16.gmra.mxu0 %vm726_vm1, %v658_v53  ;;  %7329 = vmatmul.msk.bf16.gmra.mxu1 %vm726_vm1, %v8944_v10  ;;  %v1550_v60 = vor.u32 %v1549_v43, %v1546_v61  ;;  %v2516_v61 = vld [vmem:[#allocation2 + $0x31] ss:$2 sm:$0xff] }
 0x15c   : > { %v2305_v11 = vadd.f32 %v8802_v31, %v2248_v24  ;;  %7484 = vmatmul.msk.bf16.gmra.mxu2 %vm726_vm1, %v1542_v2  ;;  %v1553_v24 = vshrl.u32 %v9069_v45, 16 }
 0x15d   : > { %7538 = vmatmul.msk.bf16.gmra.mxu3 %vm726_vm1, %v1972_v0  ;;  %v1551_v49 = vsel %vm1372_vm3, %v1541_v50, %v1550_v60  ;;  %v1556_v50 = vshll.u32 %v9069_v45, 16 }
 0x15e   : > { %v2358_v36 = vmax.f32 %v2305_v11, 0.0  ;;  %v1555_v25 = vrot.slane %v1553_v24, 2 }
 0x15f   : > { %v1774_v5 = vpop.f32.mrf.mxu2 }
 0x160   : > { %2412 = vst.msk [vmem:[#allocation2 + $0x88] sm:$0xff] %vm2394_vm4, %v2358_v36  ;;  %v1881_v10 = vadd.f32 %v1774_v5, %v1086_v46  ;;  %v9125_v38 = vpop.f32.mrf.mxu0  ;;  %v1087_v27 = vpop.f32.mrf.mxu1  ;;  %v9160_v36 = vld [vmem:[%s8461_s18 + $0xc0] sm:$0xff] }
 0x161   : > { %v9127_v3 = vpop.f32.mrf.mxu3  ;;  %v1088_v37 = vadd.f32 %v1087_v27, %v9026_v47  ;;  %v1974_v47 = vsel %vm1929_vm2, %v1971_v55, %v1973_v23 }
 0x162   : > { %v2249_v63 = vadd.f32 %v9030_v58, %v1881_v10 }
 0x164   : > { %v2306_v8 = vadd.f32 %v8802_v31, %v2249_v63  ;;  %v1975_v63 = vrot.slane %v9160_v36, 3 }
 0x166   : > { %v2359_v35 = vmax.f32 %v2306_v8, 0.0 }
 0x167   : > { %v1776_v62 = vpop.f32.mrf.mxu2 }
 0x168   : > { %2413 = vst.msk [vmem:[#allocation2 + $0x90] sm:$0xff] %vm2394_vm4, %v2359_v35  ;;  %v1882_v14 = vadd.f32 %v1776_v62, %v1088_v37  ;;  %v9137_v59 = vpop.f32.mrf.mxu0  ;;  %v1090_v52 = vpop.f32.mrf.mxu1 }
 0x169   : > { %v9139_v58 = vpop.f32.mrf.mxu3  ;;  %v1091_v2 = vadd.f32 %v1090_v52, %v9040_v34  ;;  %v1558_v34 = vrot.slane %v1556_v50, 3  ;;  %v9189_v50 = vld [vmem:[%s8461_s18 + $0xc8] sm:$0xff] }
 0x16a   : > { %v2250_v13 = vadd.f32 %v9043_v12, %v1882_v14  ;;  %v2556_v14 = vpack.c.bf16 %v2516_v61, %v2514_v42 }
 0x16b   : > { %7330 = vmatmul.msk.bf16.gmra.mxu1 %vm726_vm1, %v8982_v41  ;;  %7557 = vmatmul.msk.bf16.vlgmr.msrb.gmra.mxu0 %vm2394_vm4, %v2555_v22  ;;  %v1559_v5 = vor.u32 %v1558_v34, %v1555_v25  ;;  %v1562_v22 = vshrl.u32 %v9100_v16, 16  ;;  %v1977_v34 = vrot.slane %v9189_v50, 3 }
 0x16c   : > { %v2307_v53 = vadd.f32 %v8802_v31, %v2250_v13  ;;  %7485 = vmatmul.msk.bf16.gmra.mxu2 %vm726_vm1, %v1551_v49 }
 0x16d   : > { %7539 = vmatmul.msk.bf16.gmra.mxu3 %vm726_vm1, %v1974_v47  ;;  %v1560_v62 = vsel %vm1372_vm3, %v1550_v60, %v1559_v5  ;;  %v1565_v60 = vshll.u32 %v9100_v16, 16 }
 0x16e   : > { %v2360_v0 = vmax.f32 %v2307_v53, 0.0 }
 0x16f   : > { %v1779_v12 = vpop.f32.mrf.mxu2 }
 0x170   : > { %2414 = vst.msk [vmem:[#allocation2 + $0x98] sm:$0xff] %vm2394_vm4, %v2360_v0  ;;  %v1883_v41 = vadd.f32 %v1779_v12, %v1091_v2  ;;  %v9154_v55 = vpop.f32.mrf.mxu0  ;;  %v1092_v11 = vpop.f32.mrf.mxu1  ;;  %v1564_v2 = vrot.slane %v1562_v22, 2  ;;  %v9218_v22 = vld [vmem:[%s8461_s18 + $0xd0] sm:$0xff] }
 0x171   : > { %v9156_v46 = vpop.f32.mrf.mxu3  ;;  %v1093_v27 = vadd.f32 %v1092_v11, %v9061_v28  ;;  %v1976_v28 = vsel %vm1929_vm2, %v1973_v23, %v1975_v63  ;;  %v2520_v11 = vld [vmem:[#allocation2 + $0x51] ss:$2 sm:$0xff] }
 0x172   : > { %v2251_v19 = vadd.f32 %v9065_v1, %v1883_v41 }
 0x174   : > { %v2308_v45 = vadd.f32 %v8802_v31, %v2251_v19 }
 0x176   : > { %v2361_v10 = vmax.f32 %v2308_v45, 0.0 }
 0x177   : > { %v1781_v43 = vpop.f32.mrf.mxu2 }
 0x178   : > { %2415 = vst.msk [vmem:[#allocation2 + $0xa0] sm:$0xff] %vm2394_vm4, %v2361_v10  ;;  %v1884_v8 = vadd.f32 %v1781_v43, %v1093_v27  ;;  %v9166_v35 = vpop.f32.mrf.mxu0  ;;  %v1095_v37 = vpop.f32.mrf.mxu1  ;;  %v2518_v27 = vld [vmem:[#allocation2 + $0x41] ss:$2 sm:$0xff] }
 0x179   : > { %v9168_v1 = vpop.f32.mrf.mxu3  ;;  %v1096_v49 = vadd.f32 %v1095_v37, %v9075_v15  ;;  %v1567_v15 = vrot.slane %v1565_v60, 3  ;;  %v2557_v43 = vpack.c.bf16 %v2520_v11, %v2518_v27 }
 0x17a   : > { %v2252_v52 = vadd.f32 %v9078_v20, %v1884_v8 }
 0x17b   : > { %7331 = vmatmul.msk.bf16.gmra.mxu1 %vm726_vm1, %v9020_v7  ;;  %7558 = vmatmul.msk.bf16.gmra.mxu0 %vm2394_vm4, %v2556_v14  ;;  %v1568_v0 = vor.u32 %v1567_v15, %v1564_v2  ;;  %v1979_v2 = vrot.slane %v9218_v22, 3 }
 0x17c   : > { %v2309_v57 = vadd.f32 %v8802_v31, %v2252_v52  ;;  %7486 = vmatmul.msk.bf16.gmra.mxu2 %vm726_vm1, %v1560_v62  ;;  %v1571_v62 = vshrl.u32 %v9131_v32, 16 }
 0x17d   : > { %7540 = vmatmul.msk.bf16.gmra.mxu3 %vm726_vm1, %v1976_v28  ;;  %v1569_v61 = vsel %vm1372_vm3, %v1559_v5, %v1568_v0  ;;  %v1574_v5 = vshll.u32 %v9131_v32, 16 }
 0x17e   : > { %v2362_v13 = vmax.f32 %v2309_v57, 0.0  ;;  %v1573_v57 = vrot.slane %v1571_v62, 2 }
 0x17f   : > { %v1784_v20 = vpop.f32.mrf.mxu2 }
 0x180   : > { %2416 = vst.msk [vmem:[#allocation2 + $0xa8] sm:$0xff] %vm2394_vm4, %v2362_v13  ;;  %v1885_v7 = vadd.f32 %v1784_v20, %v1096_v49  ;;  %v9183_v23 = vpop.f32.mrf.mxu0  ;;  %v1097_v47 = vpop.f32.mrf.mxu1 }
 0x181   : > { %v9185_v53 = vpop.f32.mrf.mxu3  ;;  %v1098_v41 = vadd.f32 %v1097_v47, %v9093_v39  ;;  %v1978_v39 = vsel %vm1929_vm2, %v1975_v63, %v1977_v34 }
 0x182   : > { %v2253_v24 = vadd.f32 %v9096_v6, %v1885_v7  ;;  %v2524_v7 = vld [vmem:[#allocation2 + $0x71] ss:$2 sm:$0xff] }
 0x184   : > { %v2310_v16 = vadd.f32 %v8802_v31, %v2253_v24 }
 0x186   : > { %v2363_v12 = vmax.f32 %v2310_v16, 0.0 }
 0x187   : > { %v1786_v25 = vpop.f32.mrf.mxu2 }
 0x188   : > { %2417 = vst.msk [vmem:[#allocation2 + $0xb0] sm:$0xff] %vm2394_vm4, %v2363_v12  ;;  %v1886_v19 = vadd.f32 %v1786_v25, %v1098_v41  ;;  %v9195_v45 = vpop.f32.mrf.mxu0  ;;  %v1100_v10 = vpop.f32.mrf.mxu1 }
 0x189   : > { %v9197_v6 = vpop.f32.mrf.mxu3  ;;  %v1101_v42 = vadd.f32 %v1100_v10, %v9106_v30  ;;  %v1576_v30 = vrot.slane %v1574_v5, 3 }
 0x18a   : > { %v2254_v8 = vadd.f32 %v9110_v26, %v1886_v19  ;;  %v8375_v19 = vld [vmem:[%s8461_s18 + $0xa8] sm:$0xff] }
 0x18b   : > { %7332 = vmatmul.msk.bf16.gmra.mxu1 %vm726_vm1, %v9055_v21  ;;  %7559 = vmatmul.msk.bf16.gmra.mxu0 %vm2394_vm4, %v2557_v43  ;;  %v1577_v60 = vor.u32 %v1576_v30, %v1573_v57  ;;  %v2528_v30 = vld [vmem:[#allocation2 + $0x91] ss:$2 sm:$0xff] }
 0x18c   : > { %v2311_v37 = vadd.f32 %v8802_v31, %v2254_v8  ;;  %7487 = vmatmul.msk.bf16.gmra.mxu2 %vm726_vm1, %v1569_v61  ;;  %v1583_v61 = vshll.u32 %v9160_v36, 16 }
 0x18d   : > { %7541 = vmatmul.msk.bf16.gmra.mxu3 %vm726_vm1, %v1978_v39  ;;  %v1578_v41 = vsel %vm1372_vm3, %v1568_v0, %v1577_v60  ;;  %v1580_v0 = vshrl.u32 %v9160_v36, 16 }
 0x18e   : > { %v2364_v14 = vmax.f32 %v2311_v37, 0.0  ;;  %v7449_v37 = vld [vmem:[%s8461_s18 + $0xd8] sm:$0xf]  ;;  %v1585_v5 = vrot.slane %v1583_v61, 3 }
 0x18f   : > { %v1789_v26 = vpop.f32.mrf.mxu2 }
 0x190   : > { %2418 = vst.msk [vmem:[#allocation2 + $0xb8] sm:$0xff] %vm2394_vm4, %v2364_v14  ;;  %v1887_v21 = vadd.f32 %v1789_v26, %v1101_v42  ;;  %v9212_v63 = vpop.f32.mrf.mxu0  ;;  %v1102_v52 = vpop.f32.mrf.mxu1  ;;  %v8277_v42 = vld [vmem:[%s8461_s18 + $0xd8] sm:$0x70] }
 0x191   : > { %v9214_v28 = vpop.f32.mrf.mxu3  ;;  %v1103_v20 = vadd.f32 %v1102_v52, %v9125_v38  ;;  %v1980_v38 = vsel %vm1929_vm2, %v1977_v34, %v1979_v2  ;;  %v9248_v26 = vor.u32 %v8277_v42, %v7449_v37 }
 0x192   : > { %v2255_v49 = vadd.f32 %v9127_v3, %v1887_v21  ;;  %v2522_v3 = vld [vmem:[#allocation2 + $0x61] ss:$2 sm:$0xff] }
 0x193   : > { %v2558_v11 = vpack.c.bf16 %v2524_v7, %v2522_v3  ;;  %v8376_v3 = vld [vmem:[%s8461_s18 + $0xb0] sm:$0xff] }
 0x194   : > { %v2312_v32 = vadd.f32 %v8802_v31, %v2255_v49 }
 0x196   : > { %v2365_v13 = vmax.f32 %v2312_v32, 0.0  ;;  %v1981_v32 = vrot.slane %v9248_v26, 3 }
 0x197   : > { %v1791_v47 = vpop.f32.mrf.mxu2  ;;  %v2532_v37 = vld [vmem:[#allocation2 + $0xb1] ss:$2 sm:$0xff] }
 0x198   : > { %2419 = vst.msk [vmem:[#allocation2 + $0xc0] sm:$0xff] %vm2394_vm4, %v2365_v13  ;;  %v1888_v15 = vadd.f32 %v1791_v47, %v1103_v20  ;;  %v9224_v24 = vpop.f32.mrf.mxu0  ;;  %v1105_v16 = vpop.f32.mrf.mxu1 }
 0x199   : > { %v9226_v12 = vpop.f32.mrf.mxu3  ;;  %v1106_v27 = vadd.f32 %v1105_v16, %v9137_v59  ;;  %v1582_v59 = vrot.slane %v1580_v0, 2 }
 0x19a   : > { %v2256_v25 = vadd.f32 %v9139_v58, %v1888_v15 }
 0x19b   : > { %7333 = vmatmul.msk.bf16.gmra.mxu1 %vm726_vm1, %v8375_v19  ;;  %7560 = vmatmul.msk.bf16.gmra.mxu0 %vm2394_vm4, %v2558_v11  ;;  %v1586_v21 = vor.u32 %v1585_v5, %v1582_v59 }
 0x19c   : > { %v2313_v10 = vadd.f32 %v8802_v31, %v2256_v25  ;;  %7488 = vmatmul.msk.bf16.gmra.mxu2 %vm726_vm1, %v1578_v41  ;;  %v9267_v41 = vld [vmem:[%s10908_s2] ss:$0 sm:$0xff] }
 0x19d   : > { %7542 = vmatmul.msk.bf16.gmra.mxu3 %vm726_vm1, %v1980_v38 }
 0x19e   : > { %v2366_v58 = vmax.f32 %v2313_v10, 0.0 }
 0x19f   : > { %v1794_v43 = vpop.f32.mrf.mxu2 }
 0x1a0   : > { %2420 = vst.msk [vmem:[#allocation2 + $0xc8] sm:$0xff] %vm2394_vm4, %v2366_v58  ;;  %v1889_v8 = vadd.f32 %v1794_v43, %v1106_v27  ;;  %v9241_v34 = vpop.f32.mrf.mxu0  ;;  %v1107_v39 = vpop.f32.mrf.mxu1 }
 0x1a1   : > { %v9245_v62 = vpop.f32.mrf.mxu3  ;;  %v1108_v57 = vadd.f32 %v1107_v39, %v9154_v55  ;;  %v1982_v55 = vsel %vm1929_vm2, %v1979_v2, %v1981_v32  ;;  %vm7010_vm2 = vsmask.f32 2304 }
 0x1a2   : > { %v2257_v14 = vadd.f32 %v9156_v46, %v1889_v8  ;;  %v2526_v46 = vld [vmem:[#allocation2 + $0x81] ss:$2 sm:$0xff] }
 0x1a3   : > { %v2559_v15 = vpack.c.bf16 %v2528_v30, %v2526_v46  ;;  %v1601_v46 = vshll.u32 %v9218_v22, 16 }
 0x1a4   : > { %v2314_v36 = vadd.f32 %v8802_v31, %v2257_v14  ;;  %v1587_v31 = vsel %vm1372_vm3, %v1577_v60, %v1586_v21  ;;  %v1592_v60 = vshll.u32 %v9189_v50, 16  ;;  %v2530_v14 = vld [vmem:[#allocation2 + $0xa1] ss:$2 sm:$0xff] }
 0x1a6   : > { %v2367_v52 = vmax.f32 %v2314_v36, 0.0 }
 0x1a7   : > { %v1796_v49 = vpop.f32.mrf.mxu2 }
 0x1a8   : > { %2421 = vst.msk [vmem:[#allocation2 + $0xd0] sm:$0xff] %vm2394_vm4, %v2367_v52  ;;  %v1890_v13 = vadd.f32 %v1796_v49, %v1108_v57  ;;  %v9254_v20 = vpop.f32.mrf.mxu0  ;;  %v1110_v7 = vpop.f32.mrf.mxu1  ;;  %v2560_v57 = vpack.c.bf16 %v2532_v37, %v2530_v14  ;;  %v8378_v49 = vld [vmem:[%s8461_s18 + $0xb8] sm:$0xff] }
 0x1a9   : > { %v9256_v47 = vpop.f32.mrf.mxu3  ;;  %v1111_v25 = vadd.f32 %v1110_v7, %v9166_v35  ;;  %v1594_v35 = vrot.slane %v1592_v60, 3  ;;  %v1598_v7 = vshrl.u32 %v9218_v22, 16 }
 0x1aa   : > { %v2258_v16 = vadd.f32 %v9168_v1, %v1890_v13  ;;  %v1589_v1 = vshrl.u32 %v9189_v50, 16 }
 0x1ab   : > { %7334 = vmatmul.msk.bf16.gmra.mxu1 %vm726_vm1, %v8376_v3  ;;  %7561 = vmatmul.msk.bf16.gmra.mxu0 %vm2394_vm4, %v2559_v15  ;;  %v1600_v3 = vrot.slane %v1598_v7, 2 }
 0x1ac   : > { %v2315_v11 = vadd.f32 %v9267_v41, %v2258_v16  ;;  %7489 = vmatmul.msk.bf16.gmra.mxu2 %vm726_vm1, %v1587_v31  ;;  %v1591_v61 = vrot.slane %v1589_v1, 2 }
 0x1ad   : > { %7543 = vmatmul.msk.bf16.gmra.mxu3 %vm726_vm1, %v1982_v55  ;;  %v1603_v55 = vrot.slane %v1601_v46, 3 }
 0x1ae   : > { %v2368_v19 = vmax.f32 %v2315_v11, 0.0  ;;  %v1595_v50 = vor.u32 %v1594_v35, %v1591_v61 }
 0x1af   : > { %v1799_v2 = vpop.f32.mrf.mxu2  ;;  %v1604_v1 = vor.u32 %v1603_v55, %v1600_v3 }
 0x1b0   : > { %2422 = vst.msk [vmem:[#allocation2 + $0xd8] sm:$0xff] %vm2394_vm4, %v2368_v19  ;;  %v1891_v38 = vadd.f32 %v1799_v2, %v1111_v25  ;;  %v9276_v10 = vpop.f32.mrf.mxu0  ;;  %v1112_v27 = vpop.f32.mrf.mxu1 }
 0x1b1   : > { %v9278_v0 = vpop.f32.mrf.mxu3  ;;  %v1113_v39 = vadd.f32 %v1112_v27, %v9183_v23  ;;  %v2534_v27 = vld [vmem:[#allocation2 + $0xc1] ss:$2 sm:$0xff]  ;;  %v1605_v35 = vsel %vm1372_vm3, %v1595_v50, %v1604_v1 }
 0x1b2   : > { %v2259_v58 = vadd.f32 %v9185_v53, %v1891_v38  ;;  %v1596_v53 = vsel %vm1372_vm3, %v1586_v21, %v1595_v50  ;;  %v1607_v50 = vshrl.u32 %v9248_v26, 16 }
 0x1b4   : > { %v2316_v43 = vadd.f32 %v9267_v41, %v2259_v58 }
 0x1b6   : > { %v2369_v8 = vmax.f32 %v2316_v43, 0.0  ;;  %v3009_v43 = vld [vmem:[#allocation2 + $0x13] ss:$2 sm:$0xff] }
 0x1b7   : > { %v1801_v42 = vpop.f32.mrf.mxu2  ;;  %v2536_v60 = vld [vmem:[#allocation2 + $0xd1] ss:$2 sm:$0xff] }
 0x1b8   : > { %2423 = vst.msk [vmem:[#allocation2 + $0xe0] sm:$0xff] %vm2394_vm4, %v2369_v8  ;;  %v1892_v59 = vadd.f32 %v1801_v42, %v1113_v39  ;;  %v1115_v5 = vpop.f32.mrf.mxu1  ;;  %v9286_v52 = vpop.f32.mrf.mxu0  ;;  %v2561_v58 = vpack.c.bf16 %v2536_v60, %v2534_v27  ;;  %v3007_v39 = vld [vmem:[#allocation2 + $0x3] ss:$2 sm:$0xff] }
 0x1b9   : > { %v9284_v36 = vpop.f32.mrf.mxu3  ;;  %v1116_v13 = vadd.f32 %v1115_v5, %v9195_v45 }
 0x1ba   : > { %v2260_v30 = vadd.f32 %v9197_v6, %v1892_v59  ;;  %v3052_v59 = vpack.c.bf16 %v3009_v43, %v3007_v39  ;;  %v8301_v43 = vld [vmem:[%s10909_s3 + $0x78] sm:$0xff] }
 0x1bb   : > { %7335 = vmatmul.msk.bf16.gmra.mxu1 %vm726_vm1, %v8378_v49  ;;  %7562 = vmatmul.msk.bf16.gmra.mxu0 %vm2394_vm4, %v2560_v57 }
 0x1bc   : > { %v2317_v23 = vadd.f32 %v9267_v41, %v2260_v30  ;;  %7490 = vmatmul.msk.bf16.gmra.mxu2 %vm726_vm1, %v1596_v53  ;;  %3931 = vmatpush.bf16.msra.mxu3 %v8301_v43 }
 0x1bd   : > { %7544 = vmatmul.msk.bf16.gmra.mxu3 %vm726_vm1, %v1981_v32 }
 0x1be   : > { %v2370_v31 = vmax.f32 %v2317_v23, 0.0 }
 0x1bf   : > { %v1804_v21 = vpop.f32.mrf.mxu2 }
 0x1c0   : > { %2424 = vst.msk [vmem:[#allocation2 + $0xe8] sm:$0xff] %vm2394_vm4, %v2370_v31  ;;  %v1893_v6 = vadd.f32 %v1804_v21, %v1116_v13  ;;  %v1117_v15 = vpop.f32.mrf.mxu1  ;;  %v9303_v11 = vpop.f32.mrf.mxu0 }
 0x1c1   : > { %v9300_v16 = vpop.f32.mrf.mxu3  ;;  %v1118_v32 = vadd.f32 %v1117_v15, %v9212_v63  ;;  %v8379_v63 = vld [vmem:[%s8461_s18 + $0xc0] sm:$0xff] }
 0x1c2   : > { %v2261_v45 = vadd.f32 %v9214_v28, %v1893_v6  ;;  %v8295_v28 = vld [vmem:[%s10909_s3 + $0x48] sm:$0xff] }
 0x1c3   : > { %3325 = vmatpush.bf16.msra.mxu0 %v8295_v28 }
 0x1c4   : > { %v2318_v25 = vadd.f32 %v9267_v41, %v2261_v45 }
 0x1c6   : > { %v2371_v22 = vmax.f32 %v2318_v25, 0.0 }
 0x1c7   : > { %v1806_v19 = vpop.f32.mrf.mxu2  ;;  %v2538_v45 = vld [vmem:[#allocation2 + $0xe1] ss:$2 sm:$0xff] }
 0x1c8   : > { %2425 = vst.msk [vmem:[#allocation2 + $0xf0] sm:$0xff] %vm2394_vm4, %v2371_v22  ;;  %v1894_v2 = vadd.f32 %v1806_v19, %v1118_v32  ;;  %v1120_v38 = vpop.f32.mrf.mxu1  ;;  %v9321_v5 = vpop.f32.mrf.mxu0  ;;  %v3013_v32 = vld [vmem:[#allocation2 + $0x33] ss:$2 sm:$0xff]  ;;  %v8380_v19 = vld [vmem:[%s8461_s18 + $0xc8] sm:$0xff] }
 0x1c9   : > { %v9311_v61 = vpop.f32.mrf.mxu3  ;;  %v1121_v42 = vadd.f32 %v1120_v38, %v9224_v24  ;;  %v1609_v24 = vrot.slane %v1607_v50, 2  ;;  %v951_v50 = vpack.c.b16 %v8521_v48, %v8521_v48 }
 0x1ca   : > { %v2262_v8 = vadd.f32 %v9226_v12, %v1894_v2  ;;  %v1610_v12 = vshll.u32 %v9248_v26, 16 }
 0x1cb   : > { %7336 = vmatmul.msk.bf16.gmra.mxu1 %vm726_vm1, %v8379_v63  ;;  %7563 = vmatmul.msk.bf16.gmra.mxu0 %vm2394_vm4, %v2561_v58  ;;  %v8299_v58 = vld [vmem:[%s10909_s3 + $0x68] sm:$0xff] }
 0x1cc   : > { %v2319_v37 = vadd.f32 %v9267_v41, %v2262_v8  ;;  %7491 = vmatmul.msk.bf16.gmra.mxu2 %vm726_vm1, %v1605_v35  ;;  %v1612_v23 = vrot.slane %v1610_v12, 3 }
 0x1cd   : > { %7625 = vmatmul.msk.bf16.vlgmr.msrb.gmra.mxu3 %vm2394_vm4, %v3052_v59  ;;  %3729 = vmatpush.bf16.msrb.mxu2 %v8299_v58 }
 0x1ce   : > { %v2372_v14 = vmax.f32 %v2319_v37, 0.0  ;;  %v1613_v46 = vor.u32 %v1612_v23, %v1609_v24 }
 0x1cf   : > { %v1809_v53 = vpop.f32.mrf.mxu2 }
 0x1d0   : > { %2426 = vst.msk [vmem:[#allocation2 + $0xf8] sm:$0xff] %vm2394_vm4, %v2372_v14  ;;  %v1895_v57 = vadd.f32 %v1809_v53, %v1121_v42  ;;  %v1122_v30 = vpop.f32.mrf.mxu1  ;;  %v9332_v21 = vpop.f32.mrf.mxu0  ;;  %v8297_v53 = vld [vmem:[%s10909_s3 + $0x58] sm:$0xff] }
 0x1d1   : > { %v9327_v49 = vpop.f32.mrf.mxu3  ;;  %v1123_v26 = vadd.f32 %v1122_v30, %v9241_v34  ;;  %v3011_v34 = vld [vmem:[#allocation2 + $0x23] ss:$2 sm:$0xff]  ;;  %3527 = vmatpush.bf16.msrb.mxu1 %v8297_v53 }
 0x1d2   : > { %v2263_v13 = vadd.f32 %v9245_v62, %v1895_v57  ;;  %v1614_v62 = vsel %vm1372_vm3, %v1604_v1, %v1613_v46  ;;  %v3053_v27 = vpack.c.bf16 %v3013_v32, %v3011_v34  ;;  %v3017_v57 = vld [vmem:[#allocation2 + $0x53] ss:$2 sm:$0xff] }
 0x1d4   : > { %v2320_v7 = vadd.f32 %v9267_v41, %v2263_v13 }
 0x1d6   : > { %v2373_v31 = vmax.f32 %v2320_v7, 0.0 }
 0x1d7   : > { %v1811_v6 = vpop.f32.mrf.mxu2  ;;  %v2540_v15 = vld [vmem:[#allocation2 + $0xf1] ss:$2 sm:$0xff] }
 0x1d8   : > { %2427 = vst.msk [vmem:[#allocation2 + $0x100] sm:$0xff] %vm2394_vm4, %v2373_v31  ;;  %v1896_v3 = vadd.f32 %v1811_v6, %v1123_v26  ;;  %v1125_v55 = vpop.f32.mrf.mxu1  ;;  %v2562_v22 = vpack.c.bf16 %v2540_v15, %v2538_v45  ;;  %v2450_v45 = vld [vmem:[#allocation2 + $0x10] ss:$2 sm:$0xff] }
 0x1d9   : > { %v9335_v25 = vpop.f32.mrf.mxu3  ;;  %v1126_v38 = vadd.f32 %v1125_v55, %v9254_v20  ;;  %v9353_v20 = vpop.f32.mrf.mxu0 }
 0x1da   : > { %v2264_v60 = vadd.f32 %v9256_v47, %v1896_v3 }
 0x1db   : > { %7337 = vmatmul.msk.bf16.gmra.mxu1 %vm726_vm1, %v8380_v19  ;;  %7564 = vmatmul.msk.bf16.gmra.mxu0 %vm2394_vm4, %v2562_v22 }
 0x1dc   : > { %v2321_v2 = vadd.f32 %v9267_v41, %v2264_v60  ;;  %7492 = vmatmul.msk.bf16.gmra.mxu2 %vm726_vm1, %v1614_v62  ;;  %v2807_v60 = vld [vmem:[#allocation2 + $0x12] ss:$2 sm:$0xff] }
 0x1dd   : > { %7626 = vmatmul.msk.bf16.gmra.mxu3 %vm2394_vm4, %v3053_v27 }
 0x1de   : > { %v2374_v28 = vmax.f32 %v2321_v2, 0.0 }
 0x1df   : > { %v1814_v1 = vpop.f32.mrf.mxu2 }
 0x1e0   : > { %2428 = vst.msk [vmem:[#allocation2 + $0x108] sm:$0xff] %vm2394_vm4, %v2374_v28  ;;  %v1897_v47 = vadd.f32 %v1814_v1, %v1126_v38  ;;  %v1127_v35 = vpop.f32.mrf.mxu1  ;;  %v2448_v38 = vld [vmem:[#allocation2] ss:$2 sm:$0xff]  ;;  %v3021_v1 = vld [vmem:[#allocation2 + $0x73] ss:$2 sm:$0xff] }
 0x1e1   : > { %v9355_v8 = vpop.f32.mrf.mxu3  ;;  %v1128_v42 = vadd.f32 %v1127_v35, %v9276_v10  ;;  %v9369_v24 = vpop.f32.mrf.mxu0  ;;  %v3015_v10 = vld [vmem:[#allocation2 + $0x43] ss:$2 sm:$0xff]  ;;  %v2805_v28 = vld [vmem:[#allocation2 + $0x2] ss:$2 sm:$0xff] }
 0x1e2   : > { %v2265_v63 = vadd.f32 %v9278_v0, %v1897_v47  ;;  %v3054_v13 = vpack.c.bf16 %v3017_v57, %v3015_v10  ;;  %v3019_v35 = vld [vmem:[#allocation2 + $0x63] ss:$2 sm:$0xff]  ;;  %v2454_v57 = vld [vmem:[#allocation2 + $0x30] ss:$2 sm:$0xff] }
 0x1e3   : > { %v2811_v10 = vld [vmem:[#allocation2 + $0x32] ss:$2 sm:$0xff] }
 0x1e4   : > { %v2322_v39 = vadd.f32 %v9267_v41, %v2265_v63  ;;  %v3055_v63 = vpack.c.bf16 %v3021_v1, %v3019_v35 }
 0x1e6   : > { %v2375_v37 = vmax.f32 %v2322_v39, 0.0 }
 0x1e7   : > { %v1816_v59 = vpop.f32.mrf.mxu2  ;;  %v2542_v22 = vld [vmem:[#allocation2 + $0x101] ss:$2 sm:$0xff] }
 0x1e8   : > { %2429 = vst.msk [vmem:[#allocation2 + $0x110] sm:$0xff] %vm2394_vm4, %v2375_v37  ;;  %v1898_v12 = vadd.f32 %v1816_v59, %v1128_v42  ;;  %v1130_v14 = vpop.f32.mrf.mxu1 }
 0x1e9   : > { %v9366_v0 = vpop.f32.mrf.mxu3  ;;  %v1131_v23 = vadd.f32 %v1130_v14, %v9286_v52  ;;  %v9381_v55 = vpop.f32.mrf.mxu0 }
 0x1ea   : > { %v2266_v30 = vadd.f32 %v9284_v36, %v1898_v12 }
 0x1eb   : > { %7338 = vmatmul.msk.bf16.gmra.mxu1 %vm726_vm1, %v951_v50 }
 0x1ec   : > { %v2323_v48 = vadd.f32 %v9267_v41, %v2266_v30  ;;  %7493 = vmatmul.msk.bf16.gmra.mxu2 %vm726_vm1, %v1613_v46 }
 0x1ed   : > { %7627 = vmatmul.msk.bf16.gmra.mxu3 %vm2394_vm4, %v3054_v13  ;;  %v2452_v13 = vld [vmem:[#allocation2 + $0x20] ss:$2 sm:$0xff] }
 0x1ee   : > { %v2376_v7 = vmax.f32 %v2323_v48, 0.0 }
 0x1ef   : > { %v1819_v31 = vpop.f32.mrf.mxu2 }
 0x1f0   : > { %2430 = vst.msk [vmem:[#allocation2 + $0x118] sm:$0xff] %vm2394_vm4, %v2376_v7  ;;  %v1899_v36 = vadd.f32 %v1819_v31, %v1131_v23  ;;  %v1132_v26 = vpop.f32.mrf.mxu1 }
 0x1f1   : > { %v9377_v6 = vpop.f32.mrf.mxu3  ;;  %v1133_v46 = vadd.f32 %v1132_v26, %v9303_v11  ;;  %v2850_v11 = vpack.c.bf16 %v2807_v60, %v2805_v28  ;;  %v9394_v37 = vpop.f32.mrf.mxu0  ;;  %v2809_v26 = vld [vmem:[#allocation2 + $0x22] ss:$2 sm:$0xff] }
 0x1f2   : > { %v2267_v15 = vadd.f32 %v9300_v16, %v1899_v36  ;;  %v2493_v16 = vpack.c.bf16 %v2450_v45, %v2448_v38  ;;  %v2494_v36 = vpack.c.bf16 %v2454_v57, %v2452_v13 }
 0x1f4   : > { %v2324_v3 = vadd.f32 %v9267_v41, %v2267_v15 }
 0x1f6   : > { %v2377_v52 = vmax.f32 %v2324_v3, 0.0  ;;  %v2851_v3 = vpack.c.bf16 %v2811_v10, %v2809_v26 }
 0x1f7   : > { %v1821_v62 = vpop.f32.mrf.mxu2  ;;  %v2544_v32 = vld [vmem:[#allocation2 + $0x111] ss:$2 sm:$0xff] }
 0x1f8   : > { %2431 = vst.msk [vmem:[#allocation2 + $0x120] sm:$0xff] %vm2394_vm4, %v2377_v52  ;;  %v1900_v19 = vadd.f32 %v1821_v62, %v1133_v46  ;;  %v1135_v34 = vpop.f32.mrf.mxu1  ;;  %v2563_v2 = vpack.c.bf16 %v2544_v32, %v2542_v22 }
 0x1f9   : > { %v9385_v27 = vpop.f32.mrf.mxu3  ;;  %v1136_v43 = vadd.f32 %v1135_v34, %v9321_v5  ;;  %v9403_v7 = vpop.f32.mrf.mxu0 }
 0x1fa   : > { %v2268_v47 = vadd.f32 %v9311_v61, %v1900_v19  ;;  %7565 = vmatmul.msk.bf16.gmra.mxu0 %vm2394_vm4, %v2563_v2 }
 0x1fb   : > { %7577 = vmatmul.msk.bf16.vlgmr.msra.gmra.mxu1 %vm2394_vm4, %v2493_v16  ;;  %v2458_v16 = vld [vmem:[#allocation2 + $0x50] ss:$2 sm:$0xff] }
 0x1fc   : > { %v2325_v58 = vadd.f32 %v9267_v41, %v2268_v47  ;;  %7601 = vmatmul.msk.bf16.vlgmr.msra.gmra.mxu2 %vm2394_vm4, %v2850_v11  ;;  %v2815_v11 = vld [vmem:[#allocation2 + $0x52] ss:$2 sm:$0xff] }
 0x1fd   : > { %7628 = vmatmul.msk.bf16.gmra.mxu3 %vm2394_vm4, %v3055_v63  ;;  %v2456_v63 = vld [vmem:[#allocation2 + $0x40] ss:$2 sm:$0xff] }
 0x1fe   : > { %v2378_v39 = vmax.f32 %v2325_v58, 0.0 }
 0x1ff   : > { %v1824_v42 = vpop.f32.mrf.mxu2 }
 0x200   : > { %2432 = vst.msk [vmem:[#allocation2 + $0x128] sm:$0xff] %vm2394_vm4, %v2378_v39  ;;  %v1901_v61 = vadd.f32 %v1824_v42, %v1136_v43  ;;  %v1137_v59 = vpop.f32.mrf.mxu1  ;;  %v2813_v42 = vld [vmem:[#allocation2 + $0x42] ss:$2 sm:$0xff] }
 0x201   : > { %v9397_v50 = vpop.f32.mrf.mxu3  ;;  %v1138_v53 = vadd.f32 %v1137_v59, %v9332_v21  ;;  %v3023_v21 = vld [vmem:[#allocation2 + $0x83] ss:$2 sm:$0xff]  ;;  %v9417_v34 = vpop.f32.mrf.mxu0 }
 0x202   : > { %v2269_v12 = vadd.f32 %v9327_v49, %v1901_v61  ;;  %v3025_v49 = vld [vmem:[#allocation2 + $0x93] ss:$2 sm:$0xff] }
 0x203   : > { %v3056_v45 = vpack.c.bf16 %v3025_v49, %v3023_v21  ;;  %v3029_v61 = vld [vmem:[#allocation2 + $0xb3] ss:$2 sm:$0xff]  ;;  %v2819_v21 = vld [vmem:[#allocation2 + $0x72] ss:$2 sm:$0xff] }
 0x204   : > { %v2326_v14 = vadd.f32 %v9267_v41, %v2269_v12  ;;  %v3027_v12 = vld [vmem:[#allocation2 + $0xa3] ss:$2 sm:$0xff] }
 0x206   : > { %v2379_v5 = vmax.f32 %v2326_v14, 0.0 }
 0x207   : > { %v1826_v30 = vpop.f32.mrf.mxu2  ;;  %v2546_v1 = vld [vmem:[#allocation2 + $0x121] ss:$2 sm:$0xff] }
 0x208   : > { %2433 = vst.msk [vmem:[#allocation2 + $0x130] sm:$0xff] %vm2394_vm4, %v2379_v5  ;;  %v1902_v48 = vadd.f32 %v1826_v30, %v1138_v53  ;;  %v1140_v23 = vpop.f32.mrf.mxu1  ;;  %v3057_v5 = vpack.c.bf16 %v3029_v61, %v3027_v12 }
 0x209   : > { %v9405_v31 = vpop.f32.mrf.mxu3  ;;  %v1141_v46 = vadd.f32 %v1140_v23, %v9353_v20  ;;  %v9429_v53 = vpop.f32.mrf.mxu0 }
 0x20a   : > { %v2270_v15 = vadd.f32 %v9335_v25, %v1902_v48 }
 0x20b   : > { %7578 = vmatmul.msk.bf16.gmra.mxu1 %vm2394_vm4, %v2494_v36 }
 0x20c   : > { %v2327_v52 = vadd.f32 %v9267_v41, %v2270_v15  ;;  %7602 = vmatmul.msk.bf16.gmra.mxu2 %vm2394_vm4, %v2851_v3  ;;  %v2462_v15 = vld [vmem:[#allocation2 + $0x70] ss:$2 sm:$0xff] }
 0x20d   : > { %7629 = vmatmul.msk.bf16.gmra.mxu3 %vm2394_vm4, %v3056_v45  ;;  %v2460_v45 = vld [vmem:[#allocation2 + $0x60] ss:$2 sm:$0xff] }
 0x20e   : > { %v2380_v62 = vmax.f32 %v2327_v52, 0.0 }
 0x20f   : > { %v1829_v22 = vpop.f32.mrf.mxu2 }
 0x210   : > { %2434 = vst.msk [vmem:[#allocation2 + $0x138] sm:$0xff] %vm2394_vm4, %v2380_v62  ;;  %v1903_v32 = vadd.f32 %v1829_v22, %v1141_v46  ;;  %v1142_v60 = vpop.f32.mrf.mxu1  ;;  %v8294_v62 = vld [vmem:[%s10909_s3 + $0x40] sm:$0xff]  ;;  %v2496_v22 = vpack.c.bf16 %v2462_v15, %v2460_v45  ;;  %v8300_v45 = vld [vmem:[%s10909_s3 + $0x70] sm:$0xff] }
 0x211   : > { %v9414_v25 = vpop.f32.mrf.mxu3  ;;  %v1143_v38 = vadd.f32 %v1142_v60, %v9369_v24  ;;  %v2852_v24 = vpack.c.bf16 %v2815_v11, %v2813_v42  ;;  %v9439_v3 = vpop.f32.mrf.mxu0  ;;  %v3033_v60 = vld [vmem:[#allocation2 + $0xd3] ss:$2 sm:$0xff]  ;;  %3326 = vmatpush.bf16.msra.mxu0 %v8294_v62  ;;  %v2466_v42 = vld [vmem:[#allocation2 + $0x90] ss:$2 sm:$0xff]  ;;  %3932 = vmatpush.bf16.msra.mxu3 %v8300_v45 }
 0x212   : > { %v2271_v19 = vadd.f32 %v9355_v8, %v1903_v32  ;;  %v2495_v8 = vpack.c.bf16 %v2458_v16, %v2456_v63  ;;  %v2817_v32 = vld [vmem:[#allocation2 + $0x62] ss:$2 sm:$0xff] }
 0x213   : > { %v2829_v45 = vld [vmem:[#allocation2 + $0xc2] ss:$2 sm:$0xff] }
 0x214   : > { %v2328_v2 = vadd.f32 %v9267_v41, %v2271_v19  ;;  %v2853_v19 = vpack.c.bf16 %v2819_v21, %v2817_v32 }
 0x216   : > { %v2381_v20 = vmax.f32 %v2328_v2, 0.0  ;;  %v3031_v2 = vld [vmem:[#allocation2 + $0xc3] ss:$2 sm:$0xff] }
 0x217   : > { %v1831_v28 = vpop.f32.mrf.mxu2  ;;  %v2548_v47 = vld [vmem:[#allocation2 + $0x131] ss:$2 sm:$0xff] }
 0x218   : > { %2435 = vst.msk [vmem:[#allocation2 + $0x140] sm:$0xff] %vm2394_vm4, %v2381_v20  ;;  %v1904_v35 = vadd.f32 %v1831_v28, %v1143_v38  ;;  %v1145_v58 = vpop.f32.mrf.mxu1  ;;  %v2564_v43 = vpack.c.bf16 %v2548_v47, %v2546_v1  ;;  %v3058_v38 = vpack.c.bf16 %v3033_v60, %v3031_v2  ;;  %v2470_v2 = vld [vmem:[#allocation2 + $0xb0] ss:$2 sm:$0xff] }
 0x219   : > { %v9422_v39 = vpop.f32.mrf.mxu3  ;;  %v1146_v30 = vadd.f32 %v1145_v58, %v8684_v9  ;;  %v9454_v11 = vpop.f32.mrf.mxu0 }
 0x21a   : > { %v2272_v59 = vadd.f32 %v9366_v0, %v1904_v35  ;;  %7566 = vmatmul.msk.bf16.gmra.mxu0 %vm2394_vm4, %v2564_v43 }
 0x21b   : > { %7579 = vmatmul.msk.bf16.gmra.mxu1 %vm2394_vm4, %v2495_v8 }
 0x21c   : > { %v2329_v14 = vadd.f32 %v9267_v41, %v2272_v59  ;;  %7603 = vmatmul.msk.bf16.gmra.mxu2 %vm2394_vm4, %v2852_v24  ;;  %v2823_v24 = vld [vmem:[#allocation2 + $0x92] ss:$2 sm:$0xff] }
 0x21d   : > { %7630 = vmatmul.msk.bf16.gmra.mxu3 %vm2394_vm4, %v3057_v5 }
 0x21e   : > { %v2382_v57 = vmax.f32 %v2329_v14, 0.0 }
 0x21f   : > { %v1834_v10 = vpop.f32.mrf.mxu2 }
 0x220   : > { %2436 = vst.msk [vmem:[#allocation2 + $0x148] sm:$0xff] %vm2394_vm4, %v2382_v57  ;;  %v1905_v0 = vadd.f32 %v1834_v10, %v1146_v30  ;;  %v1147_v48 = vpop.f32.mrf.mxu1  ;;  %v2464_v57 = vld [vmem:[#allocation2 + $0x80] ss:$2 sm:$0xff] }
 0x221   : > { %v9434_v23 = vpop.f32.mrf.mxu3  ;;  %v1148_v49 = vadd.f32 %v1147_v48, %v8701_v18  ;;  %v2497_v10 = vpack.c.bf16 %v2466_v42, %v2464_v57  ;;  %v3039_v42 = vld [vmem:[#allocation2 + $0x103] ss:$2 sm:$0xff] }
 0x222   : > { %v2273_v13 = vadd.f32 %v9377_v6, %v1905_v0  ;;  %v3037_v0 = vld [vmem:[#allocation2 + $0xf3] ss:$2 sm:$0xff] }
 0x224   : > { %v2330_v36 = vadd.f32 %v9267_v41, %v2273_v13  ;;  %v9466_v13 = vpop.f32.mrf.mxu0 }
 0x226   : > { %v2383_v26 = vmax.f32 %v2330_v36, 0.0  ;;  %v3035_v36 = vld [vmem:[#allocation2 + $0xe3] ss:$2 sm:$0xff] }
 0x227   : > { %v1836_v9 = vpop.f32.mrf.mxu2  ;;  %v2550_v61 = vld [vmem:[#allocation2 + $0x141] ss:$2 sm:$0xff] }
 0x228   : > { %2437 = vst.msk [vmem:[#allocation2 + $0x150] sm:$0xff] %vm2394_vm4, %v2383_v26  ;;  %v1906_v52 = vadd.f32 %v1836_v9, %v1148_v49  ;;  %v1150_v46 = vpop.f32.mrf.mxu1  ;;  %v3059_v49 = vpack.c.bf16 %v3037_v0, %v3035_v36  ;;  %v3211_v0 = vld [vmem:[#allocation2 + $0x25] ss:$2 sm:$0xff] }
 0x229   : > { %v9445_v6 = vpop.f32.mrf.mxu3  ;;  %v1151_v28 = vadd.f32 %v1150_v46, %v8715_v51  ;;  %v8298_v46 = vld [vmem:[%s10909_s3 + $0x60] sm:$0xff] }
 0x22a   : > { %v2274_v18 = vadd.f32 %v9385_v27, %v1906_v52  ;;  %3730 = vmatpush.bf16.msrb.mxu2 %v8298_v46 }
 0x22b   : > { %7580 = vmatmul.msk.bf16.gmra.mxu1 %vm2394_vm4, %v2496_v22 }
 0x22c   : > { %v2331_v20 = vadd.f32 %v9267_v41, %v2274_v18  ;;  %7604 = vmatmul.msk.bf16.gmra.mxu2 %vm2394_vm4, %v2853_v19  ;;  %v9484_v32 = vpop.f32.mrf.mxu0 }
 0x22d   : > { %7631 = vmatmul.msk.bf16.gmra.mxu3 %vm2394_vm4, %v3058_v38  ;;  %v2827_v38 = vld [vmem:[#allocation2 + $0xb2] ss:$2 sm:$0xff] }
 0x22e   : > { %v2384_v16 = vmax.f32 %v2331_v20, 0.0 }
 0x22f   : > { %v1839_v1 = vpop.f32.mrf.mxu2 }
 0x230   : > { %2438 = vst.msk [vmem:[#allocation2 + $0x158] sm:$0xff] %vm2394_vm4, %v2384_v16  ;;  %v1907_v47 = vadd.f32 %v1839_v1, %v1151_v28  ;;  %v1152_v27 = vpop.f32.mrf.mxu1 }
 0x231   : > { %v9456_v35 = vpop.f32.mrf.mxu3  ;;  %v1153_v8 = vadd.f32 %v1152_v27, %v8736_v44 }
 0x232   : > { %v2275_v58 = vadd.f32 %v9397_v50, %v1907_v47  ;;  %v2821_v50 = vld [vmem:[#allocation2 + $0x82] ss:$2 sm:$0xff] }
 0x233   : > { %v2854_v44 = vpack.c.bf16 %v2823_v24, %v2821_v50  ;;  %v2468_v47 = vld [vmem:[#allocation2 + $0xa0] ss:$2 sm:$0xff] }
 0x234   : > { %v2332_v43 = vadd.f32 %v9267_v41, %v2275_v58  ;;  %v2498_v58 = vpack.c.bf16 %v2470_v2, %v2468_v47 }
 0x236   : > { %v2385_v63 = vmax.f32 %v2332_v43, 0.0  ;;  %v2825_v43 = vld [vmem:[#allocation2 + $0xa2] ss:$2 sm:$0xff] }
 0x237   : > { %v1841_v51 = vpop.f32.mrf.mxu2  ;;  %v2552_v59 = vld [vmem:[#allocation2 + $0x151] ss:$2 sm:$0xff] }
 0x238   : > { %2439 = vst.msk [vmem:[#allocation2 + $0x160] sm:$0xff] %vm2394_vm4, %v2385_v63  ;;  %v1908_v12 = vadd.f32 %v1841_v51, %v1153_v8  ;;  %v1155_v14 = vpop.f32.mrf.mxu1  ;;  %v2565_v5 = vpack.c.bf16 %v2552_v59, %v2550_v61  ;;  %v3041_v63 = vld [vmem:[#allocation2 + $0x113] ss:$2 sm:$0xff] }
 0x239   : > { %v9462_v30 = vpop.f32.mrf.mxu3  ;;  %v1156_v9 = vadd.f32 %v1155_v14, %v8750_v56  ;;  %v3060_v61 = vpack.c.bf16 %v3041_v63, %v3039_v42 }
 0x23a   : > { %v2276_v48 = vadd.f32 %v9405_v31, %v1908_v12  ;;  %7567 = vmatmul.msk.bf16.gmra.mxu0 %vm2394_vm4, %v2565_v5  ;;  %v9498_v12 = vpop.f32.mrf.mxu0 }
 0x23b   : > { %7581 = vmatmul.msk.bf16.gmra.mxu1 %vm2394_vm4, %v2497_v10 }
 0x23c   : > { %v2333_v26 = vadd.f32 %v9267_v41, %v2276_v48  ;;  %7605 = vmatmul.msk.bf16.gmra.mxu2 %vm2394_vm4, %v2854_v44 }
 0x23d   : > { %7632 = vmatmul.msk.bf16.gmra.mxu3 %vm2394_vm4, %v3059_v49  ;;  %v2831_v49 = vld [vmem:[#allocation2 + $0xd2] ss:$2 sm:$0xff] }
 0x23e   : > { %v2386_v15 = vmax.f32 %v2333_v26, 0.0  ;;  %v3209_v26 = vld [vmem:[#allocation2 + $0x15] ss:$2 sm:$0xff] }
 0x23f   : > { %v1844_v21 = vpop.f32.mrf.mxu2  ;;  %v2554_v60 = vld [vmem:[#allocation2 + $0x161] ss:$2 sm:$0x1] }
 0x240   : > { %2440 = vst.msk [vmem:[#allocation2 + $0x168] sm:$0xff] %vm2394_vm4, %v2386_v15  ;;  %v1909_v31 = vadd.f32 %v1844_v21, %v1156_v9  ;;  %v1157_v52 = vpop.f32.mrf.mxu1  ;;  %v2566_v1 = vpack.c.bf16 %v2554_v60, %v2554_v60  ;;  %v3254_v21 = vpack.c.bf16 %v3211_v0, %v3209_v26  ;;  %v3043_v60 = vld [vmem:[#allocation2 + $0x123] ss:$2 sm:$0xff] }
 0x241   : > { %v9480_v62 = vpop.f32.mrf.mxu3  ;;  %v1158_v19 = vadd.f32 %v1157_v52, %v8771_v4  ;;  %v2855_v4 = vpack.c.bf16 %v2827_v38, %v2825_v43 }
 0x242   : > { %v2277_v22 = vadd.f32 %v9414_v25, %v1909_v31  ;;  %v8296_v25 = vld [vmem:[%s10909_s3 + $0x50] sm:$0xff]  ;;  %v2472_v31 = vld [vmem:[#allocation2 + $0xc0] ss:$2 sm:$0xff]  ;;  %v9507_v52 = vpop.f32.mrf.mxu0 }
 0x243   : > { %3528 = vmatpush.bf16.msrb.mxu1 %v8296_v25 }
 0x244   : > { %v2334_v56 = vadd.f32 %v9267_v41, %v2277_v22  ;;  %v3045_v22 = vld [vmem:[#allocation2 + $0x133] ss:$2 sm:$0xff] }
 0x246   : > { %v2387_v18 = vmax.f32 %v2334_v56, 0.0 }
 0x247   : > { %v1846_v20 = vpop.f32.mrf.mxu2 }
 0x248   : > { %2441 = vst.msk [vmem:[#allocation2 + $0x170] sm:$0xff] %vm2394_vm4, %v2387_v18  ;;  %v1910_v16 = vadd.f32 %v1846_v20, %v1158_v19  ;;  %v1160_v28 = vpop.f32.mrf.mxu1  ;;  %v3061_v19 = vpack.c.bf16 %v3045_v22, %v3043_v60 }
 0x249   : > { %v2229_v27 = vpop.f32.mrf.mxu3  ;;  %v1161_v24 = vadd.f32 %v1160_v28, %v8697_v17  ;;  %v2474_v17 = vld [vmem:[#allocation2 + $0xd0] ss:$2 sm:$0xff] }
 0x24a   : > { %v2278_v8 = vadd.f32 %v9422_v39, %v1910_v16  ;;  %7568 = vmatmul.msk.bf16.gmra.mxu0 %vm2394_vm4, %v2566_v1  ;;  %v9522_v47 = vpop.f32.mrf.mxu0  ;;  %v3215_v27 = vld [vmem:[#allocation2 + $0x45] ss:$2 sm:$0xff] }
 0x24b   : > { %7582 = vmatmul.msk.bf16.gmra.mxu1 %vm2394_vm4, %v2498_v58 }
 0x24c   : > { %v2335_v51 = vadd.f32 %v9267_v41, %v2278_v8  ;;  %7606 = vmatmul.msk.bf16.gmra.mxu2 %vm2394_vm4, %v2855_v4  ;;  %v3213_v8 = vld [vmem:[#allocation2 + $0x35] ss:$2 sm:$0xff]  ;;  %v2835_v4 = vld [vmem:[#allocation2 + $0xf2] ss:$2 sm:$0xff] }
 0x24d   : > { %7633 = vmatmul.msk.bf16.gmra.mxu3 %vm2394_vm4, %v3060_v61  ;;  %v3255_v61 = vpack.c.bf16 %v3215_v27, %v3213_v8  ;;  %v2486_v8 = vld [vmem:[#allocation2 + $0x130] ss:$2 sm:$0xff] }
 0x24e   : > { %v2388_v59 = vmax.f32 %v2335_v51, 0.0 }
 0x24f   : > { %v1849_v39 = vpop.f32.mrf.mxu2 }
 0x250   : > { %2442 = vst.msk [vmem:[#allocation2 + $0x178] sm:$0xff] %vm2394_vm4, %v2388_v59  ;;  %v1911_v14 = vadd.f32 %v1849_v39, %v1161_v24  ;;  %v1162_v5 = vpop.f32.mrf.mxu1  ;;  %v2476_v59 = vld [vmem:[#allocation2 + $0xe0] ss:$2 sm:$0xff] }
 0x251   : > { %v9501_v57 = vpop.f32.mrf.mxu3  ;;  %v1163_v44 = vadd.f32 %v1162_v5, %v8710_v33  ;;  %v2856_v33 = vpack.c.bf16 %v2831_v49, %v2829_v45  ;;  %v2833_v39 = vld [vmem:[#allocation2 + $0xe2] ss:$2 sm:$0xff] }
 0x252   : > { %v2279_v10 = vadd.f32 %v9434_v23, %v1911_v14  ;;  %v2499_v23 = vpack.c.bf16 %v2474_v17, %v2472_v31  ;;  %v3049_v14 = vld [vmem:[#allocation2 + $0x153] ss:$2 sm:$0xff] }
 0x254   : > { %v2336_v50 = vadd.f32 %v9267_v41, %v2279_v10  ;;  %v3047_v10 = vld [vmem:[#allocation2 + $0x143] ss:$2 sm:$0xff] }
 0x255   : > { %v3062_v0 = vpack.c.bf16 %v3049_v14, %v3047_v10  ;;  %v3817_v10 = vld [vmem:[#allocation2 + $0x28] ss:$2 sm:$0xff] }
 0x256   : > { %v2389_v48 = vmax.f32 %v2336_v50, 0.0 }
 0x257   : > { %v1851_v36 = vpop.f32.mrf.mxu2 }
 0x258   : > { %2443 = vst.msk [vmem:[#allocation2 + $0x180] sm:$0xff] %vm2394_vm4, %v2389_v48  ;;  %v1912_v15 = vadd.f32 %v1851_v36, %v1163_v44  ;;  %v1165_v9 = vpop.f32.mrf.mxu1  ;;  %v9534_v48 = vpop.f32.mrf.mxu0 }
 0x259   : > { %v9509_v46 = vpop.f32.mrf.mxu3  ;;  %v1166_v20 = vadd.f32 %v1165_v9, %v8732_v29  ;;  %v2478_v29 = vld [vmem:[#allocation2 + $0xf0] ss:$2 sm:$0xff] }
 0x25a   : > { %v2280_v56 = vadd.f32 %v9445_v6, %v1912_v15  ;;  %7649 = vmatmul.msk.bf16.vlgmr.msra.gmra.mxu0 %vm2394_vm4, %v3254_v21  ;;  %v3219_v21 = vld [vmem:[#allocation2 + $0x65] ss:$2 sm:$0xff] }
 0x25b   : > { %7583 = vmatmul.msk.bf16.gmra.mxu1 %vm2394_vm4, %v2499_v23  ;;  %v2482_v23 = vld [vmem:[#allocation2 + $0x110] ss:$2 sm:$0xff] }
 0x25c   : > { %v2337_v18 = vadd.f32 %v9267_v41, %v2280_v56  ;;  %7607 = vmatmul.msk.bf16.gmra.mxu2 %vm2394_vm4, %v2856_v33  ;;  %v2839_v56 = vld [vmem:[#allocation2 + $0x112] ss:$2 sm:$0xff] }
 0x25d   : > { %7634 = vmatmul.msk.bf16.gmra.mxu3 %vm2394_vm4, %v3061_v19 }
 0x25e   : > { %v2390_v2 = vmax.f32 %v2337_v18, 0.0  ;;  %v2480_v18 = vld [vmem:[#allocation2 + $0x100] ss:$2 sm:$0xff] }
 0x25f   : > { %v1854_v38 = vpop.f32.mrf.mxu2 }
 0x260   : > { %2444 = vst.msk [vmem:[#allocation2 + $0x188] sm:$0xff] %vm2394_vm4, %v2390_v2  ;;  %v1913_v6 = vadd.f32 %v1854_v38, %v1166_v20  ;;  %v1167_v16 = vpop.f32.mrf.mxu1  ;;  %v9543_v45 = vpop.f32.mrf.mxu0  ;;  %v2501_v2 = vpack.c.bf16 %v2482_v23, %v2480_v18  ;;  %v2837_v20 = vld [vmem:[#allocation2 + $0x102] ss:$2 sm:$0xff] }
 0x261   : > { %v9519_v28 = vpop.f32.mrf.mxu3  ;;  %v1168_v43 = vadd.f32 %v1167_v16, %v8745_v54  ;;  %v2857_v54 = vpack.c.bf16 %v2835_v4, %v2833_v39  ;;  %v2484_v39 = vld [vmem:[#allocation2 + $0x120] ss:$2 sm:$0xff]  ;;  %v2490_v23 = vld [vmem:[#allocation2 + $0x150] ss:$2 sm:$0xff] }
 0x262   : > { %v2281_v1 = vadd.f32 %v9456_v35, %v1913_v6  ;;  %v2500_v35 = vpack.c.bf16 %v2478_v29, %v2476_v59  ;;  %v2488_v18 = vld [vmem:[#allocation2 + $0x140] ss:$2 sm:$0xff] }
 0x264   : > { %v2338_v25 = vadd.f32 %v9267_v41, %v2281_v1 }
 0x266   : > { %v2391_v58 = vmax.f32 %v2338_v25, 0.0 }
 0x267   : > { %v1856_v63 = vpop.f32.mrf.mxu2 }
 0x268   : > { %2445 = vst.msk [vmem:[#allocation2 + $0x190] sm:$0xff] %vm2394_vm4, %v2391_v58  ;;  %v1914_v42 = vadd.f32 %v1856_v63, %v1168_v43  ;;  %v1170_v51 = vpop.f32.mrf.mxu1  ;;  %v9553_v27 = vpop.f32.mrf.mxu0  ;;  %v8303_v43 = vld [vmem:[%s10909_s3 + $0x88] sm:$0xff] }
 0x269   : > { %v9527_v24 = vpop.f32.mrf.mxu3  ;;  %v1171_v17 = vadd.f32 %v1170_v51, %v8767_v40  ;;  %v3217_v40 = vld [vmem:[#allocation2 + $0x55] ss:$2 sm:$0xff]  ;;  %4133 = vmatpush.bf16.msrb.mxu0 %v8303_v43  ;;  %v3223_v63 = vld [vmem:[#allocation2 + $0x85] ss:$2 sm:$0xff]  ;;  %v2843_v51 = vld [vmem:[#allocation2 + $0x132] ss:$2 sm:$0xff] }
 0x26a   : > { %v2282_v5 = vadd.f32 %v9462_v30, %v1914_v42  ;;  %7650 = vmatmul.msk.bf16.gmra.mxu0 %vm2394_vm4, %v3255_v61  ;;  %v3256_v60 = vpack.c.bf16 %v3219_v21, %v3217_v40  ;;  %v3221_v42 = vld [vmem:[#allocation2 + $0x75] ss:$2 sm:$0xff]  ;;  %v3227_v21 = vld [vmem:[#allocation2 + $0xa5] ss:$2 sm:$0xff] }
 0x26b   : > { %7584 = vmatmul.msk.bf16.gmra.mxu1 %vm2394_vm4, %v2500_v35  ;;  %v3257_v35 = vpack.c.bf16 %v3223_v63, %v3221_v42  ;;  %v3225_v40 = vld [vmem:[#allocation2 + $0x95] ss:$2 sm:$0xff] }
 0x26c   : > { %v2339_v50 = vadd.f32 %v9267_v41, %v2282_v5  ;;  %7608 = vmatmul.msk.bf16.gmra.mxu2 %vm2394_vm4, %v2857_v54  ;;  %v2502_v5 = vpack.c.bf16 %v2486_v8, %v2484_v39  ;;  %v2841_v54 = vld [vmem:[#allocation2 + $0x122] ss:$2 sm:$0xff]  ;;  %v3229_v39 = vld [vmem:[#allocation2 + $0xb5] ss:$2 sm:$0xff] }
 0x26d   : > { %7635 = vmatmul.msk.bf16.gmra.mxu3 %vm2394_vm4, %v3062_v0  ;;  %v3815_v0 = vld [vmem:[#allocation2 + $0x18] ss:$2 sm:$0xff] }
 0x26e   : > { %v2392_v44 = vmax.f32 %v2339_v50, 0.0 }
 0x26f   : > { %v1859_v36 = vpop.f32.mrf.mxu2 }
 0x270   : > { %2446 = vst.msk [vmem:[#allocation2 + $0x198] sm:$0xff] %vm2394_vm4, %v2392_v44  ;;  %v1915_v30 = vadd.f32 %v1859_v36, %v1171_v17  ;;  %v1172_v26 = vpop.f32.mrf.mxu1  ;;  %v3860_v44 = vpack.c.bf16 %v3817_v10, %v3815_v0 }
 0x271   : > { %v9539_v49 = vpop.f32.mrf.mxu3 }
 0x272   : > { %v2283_v15 = vadd.f32 %v9480_v62, %v1915_v30  ;;  %v3051_v62 = vld [vmem:[#allocation2 + $0x163] ss:$2 sm:$0x1] }
 0x273   : > { %v3063_v38 = vpack.c.bf16 %v3051_v62, %v3051_v62  ;;  %v2845_v62 = vld [vmem:[#allocation2 + $0x142] ss:$2 sm:$0xff] }
 0x274   : > { %v2340_v9 = vadd.f32 %v9267_v41, %v2283_v15  ;;  %v2858_v41 = vpack.c.bf16 %v2839_v56, %v2837_v20  ;;  %v2847_v56 = vld [vmem:[#allocation2 + $0x152] ss:$2 sm:$0xff]  ;;  %v2503_v20 = vpack.c.bf16 %v2490_v23, %v2488_v18 }
 0x276   : > { %v2393_v31 = vmax.f32 %v2340_v9, 0.0 }
 0x277   : > { %v1861_v22 = vpop.f32.mrf.mxu2 }
 0x278   : > { %2447 = vst.msk [vmem:[#allocation2 + $0x1a0] sm:$0xff] %vm2394_vm4, %v2393_v31  ;;  %v2745_v33 = vpop.f32.mrf.mxu1 }
 0x279   : > { %v9546_v19 = vpop.f32.mrf.mxu3  ;;  %v2746_v6 = vadd.f32 %v2745_v33, %v9381_v55 }
 0x27a   : > { %7651 = vmatmul.msk.bf16.gmra.mxu0 %vm2394_vm4, %v3256_v60  ;;  %v3258_v60 = vpack.c.bf16 %v3227_v21, %v3225_v40 }
 0x27b   : > { %7585 = vmatmul.msk.bf16.gmra.mxu1 %vm2394_vm4, %v2501_v2 }
 0x27c   : > { %7609 = vmatmul.msk.bf16.gmra.mxu2 %vm2394_vm4, %v2858_v41  ;;  %v3821_v41 = vld [vmem:[#allocation2 + $0x48] ss:$2 sm:$0xff] }
 0x27d   : > { %7636 = vmatmul.msk.bf16.gmra.mxu3 %vm2394_vm4, %v3063_v38 }
 0x27f   : > { %v2924_v16 = vpop.f32.mrf.mxu2 }
 0x280   : > { %v2983_v1 = vadd.f32 %v2924_v16, %v2746_v6  ;;  %v2747_v25 = vpop.f32.mrf.mxu1 }
 0x281   : > { %v9555_v58 = vpop.f32.mrf.mxu3  ;;  %v2748_v55 = vadd.f32 %v2747_v25, %v9394_v37  ;;  %v9570_v37 = vpop.f32.mrf.mxu0  ;;  %v8307_v25 = vld [vmem:[%s10909_s3 + $0xa8] sm:$0xff] }
 0x282   : > { %v9561_v29 = vadd.f32 %v9501_v57, %v2983_v1  ;;  %v2859_v57 = vpack.c.bf16 %v2843_v51, %v2841_v54  ;;  %4537 = vmatpush.bf16.msra.mxu2 %v8307_v25  ;;  %v3231_v51 = vld [vmem:[#allocation2 + $0xc5] ss:$2 sm:$0xff] }
 0x283   : > { %v3613_v25 = vld [vmem:[#allocation2 + $0x17] ss:$2 sm:$0xff] }
 0x287   : > { %v2926_v4 = vpop.f32.mrf.mxu2 }
 0x288   : > { %v2984_v61 = vadd.f32 %v2926_v4, %v2748_v55  ;;  %v2750_v59 = vpop.f32.mrf.mxu1 }
 0x289   : > { %v9564_v14 = vpop.f32.mrf.mxu3  ;;  %v2751_v17 = vadd.f32 %v2750_v59, %v9403_v7  ;;  %v9581_v9 = vpop.f32.mrf.mxu0  ;;  %v2492_v59 = vld [vmem:[#allocation2 + $0x160] ss:$2 sm:$0x1] }
 0x28a   : > { %7652 = vmatmul.msk.bf16.gmra.mxu0 %vm2394_vm4, %v3257_v35  ;;  %v9568_v50 = vadd.f32 %v9509_v46, %v2984_v61 }
 0x28b   : > { %7586 = vmatmul.msk.bf16.gmra.mxu1 %vm2394_vm4, %v2502_v5  ;;  %v2849_v5 = vld [vmem:[#allocation2 + $0x162] ss:$2 sm:$0x1] }
 0x28c   : > { %7610 = vmatmul.msk.bf16.gmra.mxu2 %vm2394_vm4, %v2859_v57  ;;  %v3259_v57 = vpack.c.bf16 %v3231_v51, %v3229_v39  ;;  %v3239_v39 = vld [vmem:[#allocation2 + $0x105] ss:$2 sm:$0xff] }
 0x28d   : > { %7721 = vmatmul.msk.bf16.vlgmr.msra.gmra.mxu3 %vm2394_vm4, %v3860_v44  ;;  %v2504_v44 = vpack.c.bf16 %v2492_v59, %v2492_v59 }
 0x28f   : > { %v2929_v36 = vpop.f32.mrf.mxu2 }
 0x290   : > { %v2985_v30 = vadd.f32 %v2929_v36, %v2751_v17  ;;  %v2752_v26 = vpop.f32.mrf.mxu1  ;;  %v3825_v17 = vld [vmem:[#allocation2 + $0x68] ss:$2 sm:$0xff] }
 0x291   : > { %v9576_v15 = vpop.f32.mrf.mxu3  ;;  %v2753_v31 = vadd.f32 %v2752_v26, %v9417_v34  ;;  %v3819_v34 = vld [vmem:[#allocation2 + $0x38] ss:$2 sm:$0xff]  ;;  %v9592_v16 = vpop.f32.mrf.mxu0 }
 0x292   : > { %v9579_v46 = vadd.f32 %v9519_v28, %v2985_v30  ;;  %v2860_v28 = vpack.c.bf16 %v2847_v56, %v2845_v62  ;;  %v3861_v6 = vpack.c.bf16 %v3821_v41, %v3819_v34  ;;  %v3235_v56 = vld [vmem:[#allocation2 + $0xe5] ss:$2 sm:$0xff]  ;;  %v3411_v34 = vld [vmem:[#allocation2 + $0x16] ss:$2 sm:$0xff] }
 0x297   : > { %v2931_v22 = vpop.f32.mrf.mxu2 }
 0x298   : > { %v2986_v7 = vadd.f32 %v2931_v22, %v2753_v31  ;;  %v2755_v33 = vpop.f32.mrf.mxu1 }
 0x299   : > { %v9584_v2 = vpop.f32.mrf.mxu3  ;;  %v2756_v1 = vadd.f32 %v2755_v33, %v9429_v53  ;;  %v8305_v53 = vld [vmem:[%s10909_s3 + $0x98] sm:$0xff]  ;;  %v9610_v42 = vpop.f32.mrf.mxu0  ;;  %v3413_v33 = vld [vmem:[#allocation2 + $0x26] ss:$2 sm:$0xff] }
 0x29a   : > { %7653 = vmatmul.msk.bf16.gmra.mxu0 %vm2394_vm4, %v3258_v60  ;;  %v9588_v38 = vadd.f32 %v9527_v24, %v2986_v7  ;;  %v8309_v24 = vld [vmem:[%s10909_s3 + $0xb8] sm:$0xff]  ;;  %4335 = vmatpush.bf16.msra.mxu1 %v8305_v53 }
 0x29b   : > { %7587 = vmatmul.msk.bf16.gmra.mxu1 %vm2394_vm4, %v2503_v20  ;;  %4739 = vmatpush.bf16.msrb.mxu3 %v8309_v24  ;;  %v3615_v20 = vld [vmem:[#allocation2 + $0x27] ss:$2 sm:$0xff]  ;;  %v3829_v24 = vld [vmem:[#allocation2 + $0x88] ss:$2 sm:$0xff] }
 0x29c   : > { %7611 = vmatmul.msk.bf16.gmra.mxu2 %vm2394_vm4, %v2860_v28 }
 0x29d   : > { %7722 = vmatmul.msk.bf16.gmra.mxu3 %vm2394_vm4, %v3861_v6 }
 0x29f   : > { %v2934_v43 = vpop.f32.mrf.mxu2 }
 0x2a0   : > { %v2987_v63 = vadd.f32 %v2934_v43, %v2756_v1  ;;  %v2757_v55 = vpop.f32.mrf.mxu1  ;;  %v3456_v1 = vpack.c.bf16 %v3413_v33, %v3411_v34  ;;  %v3827_v43 = vld [vmem:[#allocation2 + $0x78] ss:$2 sm:$0xff] }
 0x2a1   : > { %v9602_v8 = vpop.f32.mrf.mxu3  ;;  %v2758_v61 = vadd.f32 %v2757_v55, %v9439_v3  ;;  %v3823_v3 = vld [vmem:[#allocation2 + $0x58] ss:$2 sm:$0xff]  ;;  %v9623_v21 = vpop.f32.mrf.mxu0 }
 0x2a2   : > { %v9608_v4 = vadd.f32 %v9539_v49, %v2987_v63  ;;  %v2861_v49 = vpack.c.bf16 %v2849_v5, %v2849_v5  ;;  %v3862_v30 = vpack.c.bf16 %v3825_v17, %v3823_v3  ;;  %v3863_v63 = vpack.c.bf16 %v3829_v24, %v3827_v43  ;;  %v3623_v43 = vld [vmem:[#allocation2 + $0x67] ss:$2 sm:$0xff] }
 0x2a7   : > { %v2936_v35 = vpop.f32.mrf.mxu2 }
 0x2a8   : > { %v2988_v54 = vadd.f32 %v2936_v35, %v2758_v61  ;;  %v2760_v10 = vpop.f32.mrf.mxu1 }
 0x2a9   : > { %v9613_v0 = vpop.f32.mrf.mxu3  ;;  %v2761_v26 = vadd.f32 %v2760_v10, %v9454_v11  ;;  %v3233_v11 = vld [vmem:[#allocation2 + $0xd5] ss:$2 sm:$0xff] }
 0x2aa   : > { %7654 = vmatmul.msk.bf16.gmra.mxu0 %vm2394_vm4, %v3259_v57  ;;  %v9617_v36 = vadd.f32 %v9546_v19, %v2988_v54  ;;  %v3260_v28 = vpack.c.bf16 %v3235_v56, %v3233_v11  ;;  %v3417_v54 = vld [vmem:[#allocation2 + $0x46] ss:$2 sm:$0xff] }
 0x2ab   : > { %7588 = vmatmul.msk.bf16.gmra.mxu1 %vm2394_vm4, %v2504_v44  ;;  %v3619_v44 = vld [vmem:[#allocation2 + $0x47] ss:$2 sm:$0xff]  ;;  %v3831_v56 = vld [vmem:[#allocation2 + $0x98] ss:$2 sm:$0xff] }
 0x2ac   : > { %7612 = vmatmul.msk.bf16.gmra.mxu2 %vm2394_vm4, %v2861_v49 }
 0x2ad   : > { %7723 = vmatmul.msk.bf16.gmra.mxu3 %vm2394_vm4, %v3862_v30  ;;  %v3415_v30 = vld [vmem:[#allocation2 + $0x36] ss:$2 sm:$0xff] }
 0x2af   : > { %v2939_v31 = vpop.f32.mrf.mxu2 }
 0x2b0   : > { %v2989_v23 = vadd.f32 %v2939_v31, %v2761_v26  ;;  %v2762_v22 = vpop.f32.mrf.mxu1  ;;  %v3457_v31 = vpack.c.bf16 %v3417_v54, %v3415_v30 }
 0x2b1   : > { %v9625_v40 = vpop.f32.mrf.mxu3  ;;  %v2763_v7 = vadd.f32 %v2762_v22, %v9466_v13  ;;  %v3833_v22 = vld [vmem:[#allocation2 + $0xa8] ss:$2 sm:$0xff] }
 0x2b2   : > { %v9628_v19 = vadd.f32 %v9555_v58, %v2989_v23  ;;  %v3658_v58 = vpack.c.bf16 %v3615_v20, %v3613_v25  ;;  %v3617_v23 = vld [vmem:[#allocation2 + $0x37] ss:$2 sm:$0xff] }
 0x2b7   : > { %v9631_v60 = vpop.f32.mrf.mxu0  ;;  %v2941_v18 = vpop.f32.mrf.mxu2 }
 0x2b8   : > { %v2990_v62 = vadd.f32 %v2941_v18, %v2763_v7  ;;  %v2765_v41 = vpop.f32.mrf.mxu1  ;;  %v3864_v7 = vpack.c.bf16 %v3833_v22, %v3831_v56 }
 0x2b9   : > { %v9633_v6 = vpop.f32.mrf.mxu3  ;;  %v2766_v55 = vadd.f32 %v2765_v41, %v9484_v32  ;;  %v3237_v32 = vld [vmem:[#allocation2 + $0xf5] ss:$2 sm:$0xff] }
 0x2ba   : > { %7655 = vmatmul.msk.bf16.gmra.mxu0 %vm2394_vm4, %v3260_v28  ;;  %v9637_v13 = vadd.f32 %v9564_v14, %v2990_v62  ;;  %v3261_v3 = vpack.c.bf16 %v3239_v39, %v3237_v32 }
 0x2bb   : > { %7673 = vmatmul.msk.bf16.vlgmr.msrb.gmra.mxu1 %vm2394_vm4, %v3456_v1  ;;  %v3421_v1 = vld [vmem:[#allocation2 + $0x66] ss:$2 sm:$0xff] }
 0x2bc   : > { %7697 = vmatmul.msk.bf16.vlgmr.msrb.gmra.mxu2 %vm2394_vm4, %v3658_v58  ;;  %v3241_v58 = vld [vmem:[#allocation2 + $0x115] ss:$2 sm:$0xff] }
 0x2bd   : > { %7724 = vmatmul.msk.bf16.gmra.mxu3 %vm2394_vm4, %v3863_v63 }
 0x2bf   : > { %v9643_v53 = vpop.f32.mrf.mxu0  ;;  %v2944_v51 = vpop.f32.mrf.mxu2 }
 0x2c0   : > { %v2991_v61 = vadd.f32 %v2944_v51, %v2766_v55  ;;  %v2767_v59 = vpop.f32.mrf.mxu1 }
 0x2c1   : > { %v9645_v35 = vpop.f32.mrf.mxu3  ;;  %v2768_v5 = vadd.f32 %v2767_v59, %v9498_v12 }
 0x2c2   : > { %v9648_v14 = vadd.f32 %v9576_v15, %v2991_v61  ;;  %v3659_v15 = vpack.c.bf16 %v3619_v44, %v3617_v23  ;;  %v3419_v61 = vld [vmem:[#allocation2 + $0x56] ss:$2 sm:$0xff] }
 0x2c3   : > { %v3458_v39 = vpack.c.bf16 %v3421_v1, %v3419_v61  ;;  %v3625_v1 = vld [vmem:[#allocation2 + $0x77] ss:$2 sm:$0xff] }
 0x2c7   : > { %v9651_v10 = vpop.f32.mrf.mxu0  ;;  %v2946_v57 = vpop.f32.mrf.mxu2 }
 0x2c8   : > { %v2992_v17 = vadd.f32 %v2946_v57, %v2768_v5  ;;  %v2770_v49 = vpop.f32.mrf.mxu1  ;;  %v3837_v5 = vld [vmem:[#allocation2 + $0xc8] ss:$2 sm:$0xff]  ;;  %v3835_v57 = vld [vmem:[#allocation2 + $0xb8] ss:$2 sm:$0xff] }
 0x2c9   : > { %v9653_v26 = vpop.f32.mrf.mxu3  ;;  %v2771_v33 = vadd.f32 %v2770_v49, %v9507_v52 }
 0x2ca   : > { %7656 = vmatmul.msk.bf16.gmra.mxu0 %vm2394_vm4, %v3261_v3  ;;  %v9657_v12 = vadd.f32 %v9584_v2, %v2992_v17  ;;  %v3243_v2 = vld [vmem:[#allocation2 + $0x125] ss:$2 sm:$0xff] }
 0x2cb   : > { %7674 = vmatmul.msk.bf16.gmra.mxu1 %vm2394_vm4, %v3457_v31  ;;  %v3262_v51 = vpack.c.bf16 %v3243_v2, %v3241_v58  ;;  %v3423_v2 = vld [vmem:[#allocation2 + $0x76] ss:$2 sm:$0xff] }
 0x2cc   : > { %7698 = vmatmul.msk.bf16.gmra.mxu2 %vm2394_vm4, %v3659_v15  ;;  %v3425_v15 = vld [vmem:[#allocation2 + $0x86] ss:$2 sm:$0xff] }
 0x2cd   : > { %7725 = vmatmul.msk.bf16.gmra.mxu3 %vm2394_vm4, %v3864_v7  ;;  %v3839_v58 = vld [vmem:[#allocation2 + $0xd8] ss:$2 sm:$0xff] }
 0x2cf   : > { %v2686_v18 = vpop.f32.mrf.mxu0  ;;  %v2949_v11 = vpop.f32.mrf.mxu2 }
 0x2d0   : > { %v2993_v20 = vadd.f32 %v2949_v11, %v2771_v33  ;;  %v2772_v62 = vpop.f32.mrf.mxu1  ;;  %v3245_v33 = vld [vmem:[#allocation2 + $0x135] ss:$2 sm:$0xff] }
 0x2d1   : > { %v9663_v41 = vpop.f32.mrf.mxu3  ;;  %v2773_v34 = vadd.f32 %v2772_v62, %v9522_v47 }
 0x2d2   : > { %v9666_v28 = vadd.f32 %v9602_v8, %v2993_v20  ;;  %v3621_v8 = vld [vmem:[#allocation2 + $0x57] ss:$2 sm:$0xff] }
 0x2d3   : > { %v3660_v47 = vpack.c.bf16 %v3623_v43, %v3621_v8 }
 0x2d7   : > { %v2951_v25 = vpop.f32.mrf.mxu2  ;;  %v3328_v24 = vpop.f32.mrf.mxu0 }
 0x2d8   : > { %v2994_v52 = vadd.f32 %v2951_v25, %v2773_v34  ;;  %v9670_v63 = vadd.f32 %v3328_v24, %v9561_v29  ;;  %v2775_v55 = vpop.f32.mrf.mxu1  ;;  %v3865_v29 = vpack.c.bf16 %v3837_v5, %v3835_v57  ;;  %v3841_v25 = vld [vmem:[#allocation2 + $0xe8] ss:$2 sm:$0xff]  ;;  %v3251_v5 = vld [vmem:[#allocation2 + $0x165] ss:$2 sm:$0xff] }
 0x2d9   : > { %v9672_v59 = vpop.f32.mrf.mxu3  ;;  %v2776_v32 = vadd.f32 %v2775_v55, %v9534_v48  ;;  %v3247_v48 = vld [vmem:[#allocation2 + $0x145] ss:$2 sm:$0xff]  ;;  %v3429_v57 = vld [vmem:[#allocation2 + $0xa6] ss:$2 sm:$0xff] }
 0x2da   : > { %7657 = vmatmul.msk.bf16.gmra.mxu0 %vm2394_vm4, %v3262_v51  ;;  %v9676_v54 = vadd.f32 %v9613_v0, %v2994_v52  ;;  %v8302_v0 = vld [vmem:[%s10909_s3 + $0x80] sm:$0xff]  ;;  %v3263_v62 = vpack.c.bf16 %v3247_v48, %v3245_v33 }
 0x2db   : > { %7675 = vmatmul.msk.bf16.gmra.mxu1 %vm2394_vm4, %v3458_v39  ;;  %4134 = vmatpush.bf16.msrb.mxu0 %v8302_v0  ;;  %v3427_v0 = vld [vmem:[#allocation2 + $0x96] ss:$2 sm:$0xff] }
 0x2dc   : > { %7699 = vmatmul.msk.bf16.gmra.mxu2 %vm2394_vm4, %v3660_v47 }
 0x2dd   : > { %7726 = vmatmul.msk.bf16.gmra.mxu3 %vm2394_vm4, %v3865_v29 }
 0x2df   : > { %v2954_v44 = vpop.f32.mrf.mxu2  ;;  %v3330_v17 = vpop.f32.mrf.mxu0 }
 0x2e0   : > { %v2995_v49 = vadd.f32 %v2954_v44, %v2776_v32  ;;  %v9683_v3 = vadd.f32 %v3330_v17, %v9568_v50  ;;  %v2777_v30 = vpop.f32.mrf.mxu1  ;;  %v3627_v50 = vld [vmem:[#allocation2 + $0x87] ss:$2 sm:$0xff] }
 0x2e1   : > { %v9685_v31 = vpop.f32.mrf.mxu3  ;;  %v2778_v22 = vadd.f32 %v2777_v30, %v9543_v45  ;;  %v3661_v45 = vpack.c.bf16 %v3627_v50, %v3625_v1  ;;  %v3249_v32 = vld [vmem:[#allocation2 + $0x155] ss:$2 sm:$0xff] }
 0x2e2   : > { %v9691_v23 = vadd.f32 %v9625_v40, %v2995_v49  ;;  %v3459_v40 = vpack.c.bf16 %v3425_v15, %v3423_v2  ;;  %v3631_v44 = vld [vmem:[#allocation2 + $0xa7] ss:$2 sm:$0xff]  ;;  %v3264_v30 = vpack.c.bf16 %v3251_v5, %v3249_v32  ;;  %v3845_v15 = vld [vmem:[#allocation2 + $0x108] ss:$2 sm:$0xff] }
 0x2e3   : > { %v8306_v50 = vld [vmem:[%s10909_s3 + $0xa0] sm:$0xff]  ;;  %v8304_v1 = vld [vmem:[%s10909_s3 + $0x90] sm:$0xff] }
 0x2e4   : > { %4538 = vmatpush.bf16.msra.mxu2 %v8306_v50  ;;  %4336 = vmatpush.bf16.msra.mxu1 %v8304_v1  ;;  %v4017_v50 = vld [vmem:[#allocation2 + $0x2a] ss:$2 sm:$0xff] }
 0x2e7   : > { %v2956_v56 = vpop.f32.mrf.mxu2  ;;  %v3333_v7 = vpop.f32.mrf.mxu0 }
 0x2e8   : > { %v2996_v18 = vadd.f32 %v2956_v56, %v2778_v22  ;;  %v9695_v11 = vadd.f32 %v3333_v7, %v9579_v46  ;;  %v2780_v20 = vpop.f32.mrf.mxu1  ;;  %v3866_v46 = vpack.c.bf16 %v3841_v25, %v3839_v58  ;;  %v3460_v22 = vpack.c.bf16 %v3429_v57, %v3427_v0  ;;  %v3843_v7 = vld [vmem:[#allocation2 + $0xf8] ss:$2 sm:$0xff] }
 0x2e9   : > { %v9697_v34 = vpop.f32.mrf.mxu3  ;;  %v2781_v43 = vadd.f32 %v2780_v20, %v9553_v27 }
 0x2ea   : > { %7658 = vmatmul.msk.bf16.gmra.mxu0 %vm2394_vm4, %v3263_v62  ;;  %v9701_v24 = vadd.f32 %v9633_v6, %v2996_v18  ;;  %v8308_v18 = vld [vmem:[%s10909_s3 + $0xb0] sm:$0xff] }
 0x2eb   : > { %7676 = vmatmul.msk.bf16.gmra.mxu1 %vm2394_vm4, %v3459_v40  ;;  %4740 = vmatpush.bf16.msrb.mxu3 %v8308_v18  ;;  %v3639_v18 = vld [vmem:[#allocation2 + $0xe7] ss:$2 sm:$0xff] }
 0x2ec   : > { %7700 = vmatmul.msk.bf16.gmra.mxu2 %vm2394_vm4, %v3661_v45  ;;  %v3253_v45 = vld [vmem:[#allocation2 + $0x175] ss:$2 sm:$0x1] }
 0x2ed   : > { %7727 = vmatmul.msk.bf16.gmra.mxu3 %vm2394_vm4, %v3866_v46  ;;  %v3433_v46 = vld [vmem:[#allocation2 + $0xc6] ss:$2 sm:$0xff]  ;;  %v3265_v5 = vpack.c.bf16 %v3253_v45, %v3253_v45 }
 0x2ef   : > { %v2959_v52 = vpop.f32.mrf.mxu2  ;;  %v3335_v55 = vpop.f32.mrf.mxu0 }
 0x2f0   : > { %v2997_v51 = vadd.f32 %v2959_v52, %v2781_v43  ;;  %v9708_v61 = vadd.f32 %v3335_v55, %v9588_v38  ;;  %v2782_v39 = vpop.f32.mrf.mxu1  ;;  %v3635_v52 = vld [vmem:[#allocation2 + $0xc7] ss:$2 sm:$0xff] }
 0x2f1   : > { %v9710_v8 = vpop.f32.mrf.mxu3  ;;  %v2783_v47 = vadd.f32 %v2782_v39, %v9570_v37 }
 0x2f2   : > { %v9713_v6 = vadd.f32 %v9645_v35, %v2997_v51  ;;  %v3629_v35 = vld [vmem:[#allocation2 + $0x97] ss:$2 sm:$0xff] }
 0x2f3   : > { %v3662_v37 = vpack.c.bf16 %v3631_v44, %v3629_v35  ;;  %v3847_v44 = vld [vmem:[#allocation2 + $0x118] ss:$2 sm:$0xff] }
 0x2f7   : > { %v2961_v29 = vpop.f32.mrf.mxu2  ;;  %v3338_v27 = vpop.f32.mrf.mxu0 }
 0x2f8   : > { %v2998_v17 = vadd.f32 %v2961_v29, %v2783_v47  ;;  %v9717_v49 = vadd.f32 %v3338_v27, %v9608_v4  ;;  %v2785_v38 = vpop.f32.mrf.mxu1  ;;  %v3867_v4 = vpack.c.bf16 %v3845_v15, %v3843_v7  ;;  %v3431_v47 = vld [vmem:[#allocation2 + $0xb6] ss:$2 sm:$0xff]  ;;  %v3633_v27 = vld [vmem:[#allocation2 + $0xb7] ss:$2 sm:$0xff] }
 0x2f9   : > { %v9719_v48 = vpop.f32.mrf.mxu3  ;;  %v2786_v33 = vadd.f32 %v2785_v38, %v9581_v9  ;;  %v3461_v29 = vpack.c.bf16 %v3433_v46, %v3431_v47  ;;  %v3663_v32 = vpack.c.bf16 %v3635_v52, %v3633_v27 }
 0x2fa   : > { %7659 = vmatmul.msk.bf16.gmra.mxu0 %vm2394_vm4, %v3264_v30  ;;  %v9723_v56 = vadd.f32 %v9653_v26, %v2998_v17 }
 0x2fb   : > { %7677 = vmatmul.msk.bf16.gmra.mxu1 %vm2394_vm4, %v3460_v22 }
 0x2fc   : > { %7701 = vmatmul.msk.bf16.gmra.mxu2 %vm2394_vm4, %v3662_v37  ;;  %v4019_v37 = vld [vmem:[#allocation2 + $0x3a] ss:$2 sm:$0xff] }
 0x2fd   : > { %7728 = vmatmul.msk.bf16.gmra.mxu3 %vm2394_vm4, %v3867_v4  ;;  %v3437_v4 = vld [vmem:[#allocation2 + $0xe6] ss:$2 sm:$0xff] }
 0x2ff   : > { %v2964_v26 = vpop.f32.mrf.mxu2  ;;  %v3340_v20 = vpop.f32.mrf.mxu0 }
 0x300   : > { %v2999_v62 = vadd.f32 %v2964_v26, %v2786_v33  ;;  %v9736_v2 = vadd.f32 %v3340_v20, %v9617_v36  ;;  %v2787_v40 = vpop.f32.mrf.mxu1 }
 0x301   : > { %v9738_v9 = vpop.f32.mrf.mxu3  ;;  %v2788_v58 = vadd.f32 %v2787_v40, %v9592_v16  ;;  %v3435_v40 = vld [vmem:[#allocation2 + $0xd6] ss:$2 sm:$0xff] }
 0x302   : > { %v9744_v25 = vadd.f32 %v9663_v41, %v2999_v62  ;;  %v3849_v41 = vld [vmem:[#allocation2 + $0x128] ss:$2 sm:$0xff]  ;;  %v4062_v62 = vpack.c.bf16 %v4019_v37, %v4017_v50  ;;  %v3462_v45 = vpack.c.bf16 %v3437_v4, %v3435_v40 }
 0x307   : > { %v2966_v43 = vpop.f32.mrf.mxu2  ;;  %v3343_v36 = vpop.f32.mrf.mxu0 }
 0x308   : > { %v3000_v55 = vadd.f32 %v2966_v43, %v2788_v58  ;;  %v9748_v51 = vadd.f32 %v3343_v36, %v9628_v19  ;;  %v2790_v39 = vpop.f32.mrf.mxu1  ;;  %v3868_v19 = vpack.c.bf16 %v3849_v41, %v3847_v44  ;;  %v3853_v58 = vld [vmem:[#allocation2 + $0x148] ss:$2 sm:$0xff]  ;;  %v3851_v43 = vld [vmem:[#allocation2 + $0x138] ss:$2 sm:$0xff] }
 0x309   : > { %v3183_v57 = vpop.f32.mrf.mxu3  ;;  %v2791_v17 = vadd.f32 %v2790_v39, %v9610_v42  ;;  %v3441_v41 = vld [vmem:[#allocation2 + $0x106] ss:$2 sm:$0xff] }
 0x30a   : > { %7660 = vmatmul.msk.bf16.gmra.mxu0 %vm2394_vm4, %v3265_v5  ;;  %v9752_v16 = vadd.f32 %v9672_v59, %v3000_v55  ;;  %v4021_v44 = vld [vmem:[#allocation2 + $0x4a] ss:$2 sm:$0xff] }
 0x30b   : > { %7678 = vmatmul.msk.bf16.gmra.mxu1 %vm2394_vm4, %v3461_v29  ;;  %v4023_v29 = vld [vmem:[#allocation2 + $0x5a] ss:$2 sm:$0xff] }
 0x30c   : > { %7702 = vmatmul.msk.bf16.gmra.mxu2 %vm2394_vm4, %v3663_v32 }
 0x30d   : > { %7729 = vmatmul.msk.bf16.gmra.mxu3 %vm2394_vm4, %v3868_v19  ;;  %v3643_v19 = vld [vmem:[#allocation2 + $0x107] ss:$2 sm:$0xff] }
 0x30f   : > { %v2969_v38 = vpop.f32.mrf.mxu2  ;;  %v3345_v30 = vpop.f32.mrf.mxu0 }
 0x310   : > { %v3001_v0 = vadd.f32 %v2969_v38, %v2791_v17  ;;  %v9759_v22 = vadd.f32 %v3345_v30, %v9637_v13  ;;  %v2792_v35 = vpop.f32.mrf.mxu1  ;;  %v4063_v30 = vpack.c.bf16 %v4023_v29, %v4021_v44  ;;  %v3645_v29 = vld [vmem:[#allocation2 + $0x117] ss:$2 sm:$0xff] }
 0x311   : > { %v9761_v15 = vpop.f32.mrf.mxu3  ;;  %v2793_v7 = vadd.f32 %v2792_v35, %v9623_v21 }
 0x312   : > { %v9764_v59 = vadd.f32 %v9685_v31, %v3001_v0  ;;  %v3637_v31 = vld [vmem:[#allocation2 + $0xd7] ss:$2 sm:$0xff]  ;;  %v3439_v0 = vld [vmem:[#allocation2 + $0xf6] ss:$2 sm:$0xff] }
 0x313   : > { %v3664_v21 = vpack.c.bf16 %v3639_v18, %v3637_v31  ;;  %v3463_v37 = vpack.c.bf16 %v3441_v41, %v3439_v0  ;;  %v3445_v31 = vld [vmem:[#allocation2 + $0x126] ss:$2 sm:$0xff] }
 0x314   : > { %v4031_v0 = vld [vmem:[#allocation2 + $0x9a] ss:$2 sm:$0xff] }
 0x317   : > { %v2971_v33 = vpop.f32.mrf.mxu2  ;;  %v3348_v42 = vpop.f32.mrf.mxu0 }
 0x318   : > { %v3002_v26 = vadd.f32 %v2971_v33, %v2793_v7  ;;  %v9768_v20 = vadd.f32 %v3348_v42, %v9648_v14  ;;  %v2795_v13 = vpop.f32.mrf.mxu1  ;;  %v3869_v14 = vpack.c.bf16 %v3853_v58, %v3851_v43  ;;  %v3857_v7 = vld [vmem:[#allocation2 + $0x168] ss:$2 sm:$0xff]  ;;  %v3855_v33 = vld [vmem:[#allocation2 + $0x158] ss:$2 sm:$0xff] }
 0x319   : > { %v9770_v1 = vpop.f32.mrf.mxu3  ;;  %v2796_v36 = vadd.f32 %v2795_v13, %v9631_v60  ;;  %v4025_v43 = vld [vmem:[#allocation2 + $0x6a] ss:$2 sm:$0xff] }
 0x31a   : > { %7745 = vmatmul.msk.bf16.vlgmr.msrb.gmra.mxu0 %vm2394_vm4, %v4062_v62  ;;  %v9774_v46 = vadd.f32 %v9697_v34, %v3002_v26 }
 0x31b   : > { %7679 = vmatmul.msk.bf16.gmra.mxu1 %vm2394_vm4, %v3462_v45  ;;  %v4027_v45 = vld [vmem:[#allocation2 + $0x7a] ss:$2 sm:$0xff] }
 0x31c   : > { %7703 = vmatmul.msk.bf16.gmra.mxu2 %vm2394_vm4, %v3664_v21 }
 0x31d   : > { %7730 = vmatmul.msk.bf16.gmra.mxu3 %vm2394_vm4, %v3869_v14 }
 0x31f   : > { %v2974_v52 = vpop.f32.mrf.mxu2  ;;  %v3350_v55 = vpop.f32.mrf.mxu0 }
 0x320   : > { %v3003_v39 = vadd.f32 %v2974_v52, %v2796_v36  ;;  %v9781_v5 = vadd.f32 %v3350_v55, %v9657_v12  ;;  %v2797_v47 = vpop.f32.mrf.mxu1  ;;  %v4064_v52 = vpack.c.bf16 %v4027_v45, %v4025_v43  ;;  %v3443_v55 = vld [vmem:[#allocation2 + $0x116] ss:$2 sm:$0xff]  ;;  %v4625_v45 = vld [vmem:[#allocation2 + $0x3d] ss:$2 sm:$0xff] }
 0x321   : > { %v9783_v57 = vpop.f32.mrf.mxu3  ;;  %v2798_v27 = vadd.f32 %v2797_v47, %v9643_v53  ;;  %v3464_v47 = vpack.c.bf16 %v3445_v31, %v3443_v55 }
 0x322   : > { %v9786_v34 = vadd.f32 %v9710_v8, %v3003_v39  ;;  %v3641_v8 = vld [vmem:[#allocation2 + $0xf7] ss:$2 sm:$0xff] }
 0x323   : > { %v3665_v53 = vpack.c.bf16 %v3643_v19, %v3641_v8 }
 0x327   : > { %v2976_v32 = vpop.f32.mrf.mxu2  ;;  %v3353_v60 = vpop.f32.mrf.mxu0 }
 0x328   : > { %v3004_v17 = vadd.f32 %v2976_v32, %v2798_v27  ;;  %v9790_v38 = vadd.f32 %v3353_v60, %v9666_v28  ;;  %v2800_v12 = vpop.f32.mrf.mxu1  ;;  %v3870_v28 = vpack.c.bf16 %v3857_v7, %v3855_v33 }
 0x329   : > { %v9792_v35 = vpop.f32.mrf.mxu3  ;;  %v2801_v42 = vadd.f32 %v2800_v12, %v9651_v10  ;;  %v3647_v10 = vld [vmem:[#allocation2 + $0x127] ss:$2 sm:$0xff] }
 0x32a   : > { %7746 = vmatmul.msk.bf16.gmra.mxu0 %vm2394_vm4, %v4063_v30  ;;  %v9796_v4 = vadd.f32 %v9719_v48, %v3004_v17  ;;  %v3666_v27 = vpack.c.bf16 %v3647_v10, %v3645_v29  ;;  %v8311_v12 = vld [vmem:[%s10909_s3 + $0xc8] sm:$0xff] }
 0x32b   : > { %7680 = vmatmul.msk.bf16.gmra.mxu1 %vm2394_vm4, %v3463_v37  ;;  %4941 = vmatpush.bf16.msra.mxu0 %v8311_v12  ;;  %v3449_v37 = vld [vmem:[#allocation2 + $0x146] ss:$2 sm:$0xff] }
 0x32c   : > { %7704 = vmatmul.msk.bf16.gmra.mxu2 %vm2394_vm4, %v3665_v53  ;;  %v3651_v53 = vld [vmem:[#allocation2 + $0x147] ss:$2 sm:$0xff]  ;;  %v3453_v29 = vld [vmem:[#allocation2 + $0x166] ss:$2 sm:$0xff] }
 0x32d   : > { %7731 = vmatmul.msk.bf16.gmra.mxu3 %vm2394_vm4, %v3870_v28 }
 0x32f   : > { %v2979_v50 = vpop.f32.mrf.mxu2  ;;  %v3355_v18 = vpop.f32.mrf.mxu0 }
 0x330   : > { %v3005_v26 = vadd.f32 %v2979_v50, %v2801_v42  ;;  %v9803_v13 = vadd.f32 %v3355_v18, %v9676_v54  ;;  %v2802_v62 = vpop.f32.mrf.mxu1  ;;  %v3447_v50 = vld [vmem:[#allocation2 + $0x136] ss:$2 sm:$0xff] }
 0x331   : > { %v9805_v40 = vpop.f32.mrf.mxu3  ;;  %v3649_v62 = vld [vmem:[#allocation2 + $0x137] ss:$2 sm:$0xff] }
 0x332   : > { %v9808_v48 = vadd.f32 %v9738_v9, %v3005_v26  ;;  %v3859_v9 = vld [vmem:[#allocation2 + $0x178] ss:$2 sm:$0x1]  ;;  %v3667_v31 = vpack.c.bf16 %v3651_v53, %v3649_v62 }
 0x333   : > { %v3871_v41 = vpack.c.bf16 %v3859_v9, %v3859_v9  ;;  %v8317_v53 = vld [vmem:[%s10909_s3 + $0xf8] sm:$0xff] }
 0x334   : > { %5490 = vmatpush.bf16.msra.mxu3 %v8317_v53  ;;  %v8313_v62 = vld [vmem:[%s10909_s3 + $0xd8] sm:$0xff] }
 0x335   : > { %5124 = vmatpush.bf16.msrb.mxu1 %v8313_v62  ;;  %v4637_v62 = vld [vmem:[#allocation2 + $0x9d] ss:$2 sm:$0xff] }
 0x337   : > { %v2981_v58 = vpop.f32.mrf.mxu2  ;;  %v3358_v21 = vpop.f32.mrf.mxu0 }
 0x338   : > { %v9811_v14 = vadd.f32 %v3358_v21, %v9691_v23  ;;  %v3530_v36 = vpop.f32.mrf.mxu1 }
 0x339   : > { %v9813_v54 = vpop.f32.mrf.mxu3  ;;  %v3589_v39 = vadd.f32 %v3530_v36, %v9670_v63 }
 0x33a   : > { %7747 = vmatmul.msk.bf16.gmra.mxu0 %vm2394_vm4, %v4064_v52 }
 0x33b   : > { %7681 = vmatmul.msk.bf16.gmra.mxu1 %vm2394_vm4, %v3464_v47  ;;  %v4035_v47 = vld [vmem:[#allocation2 + $0xba] ss:$2 sm:$0xff] }
 0x33c   : > { %7705 = vmatmul.msk.bf16.gmra.mxu2 %vm2394_vm4, %v3666_v27 }
 0x33d   : > { %7732 = vmatmul.msk.bf16.gmra.mxu3 %vm2394_vm4, %v3871_v41  ;;  %v4033_v41 = vld [vmem:[#allocation2 + $0xaa] ss:$2 sm:$0xff] }
 0x33f   : > { %v3360_v23 = vpop.f32.mrf.mxu0  ;;  %v3732_v32 = vpop.f32.mrf.mxu2 }
 0x340   : > { %v9821_v60 = vadd.f32 %v3360_v23, %v9701_v24  ;;  %v3791_v44 = vadd.f32 %v3732_v32, %v3589_v39  ;;  %v3532_v63 = vpop.f32.mrf.mxu1  ;;  %v4029_v24 = vld [vmem:[#allocation2 + $0x8a] ss:$2 sm:$0xff]  ;;  %v3655_v23 = vld [vmem:[#allocation2 + $0x167] ss:$2 sm:$0xff] }
 0x341   : > { %v9823_v19 = vpop.f32.mrf.mxu3  ;;  %v3590_v17 = vadd.f32 %v3532_v63, %v9683_v3  ;;  %v4065_v3 = vpack.c.bf16 %v4031_v0, %v4029_v24  ;;  %v4066_v63 = vpack.c.bf16 %v4035_v47, %v4033_v41 }
 0x342   : > { %v9830_v30 = vadd.f32 %v9761_v15, %v3791_v44  ;;  %v3465_v15 = vpack.c.bf16 %v3449_v37, %v3447_v50  ;;  %v4629_v37 = vld [vmem:[#allocation2 + $0x5d] ss:$2 sm:$0xff] }
 0x347   : > { %v3363_v8 = vpop.f32.mrf.mxu0  ;;  %v3734_v7 = vpop.f32.mrf.mxu2 }
 0x348   : > { %v9833_v33 = vadd.f32 %v3363_v8, %v9713_v6  ;;  %v3792_v28 = vadd.f32 %v3734_v7, %v3590_v17  ;;  %v3535_v42 = vpop.f32.mrf.mxu1  ;;  %v4623_v6 = vld [vmem:[#allocation2 + $0x2d] ss:$2 sm:$0xff]  ;;  %v3451_v17 = vld [vmem:[#allocation2 + $0x156] ss:$2 sm:$0xff] }
 0x349   : > { %v9835_v18 = vpop.f32.mrf.mxu3  ;;  %v3591_v26 = vadd.f32 %v3535_v42, %v9695_v11  ;;  %v4668_v21 = vpack.c.bf16 %v4625_v45, %v4623_v6  ;;  %v3466_v0 = vpack.c.bf16 %v3453_v29, %v3451_v17  ;;  %v3455_v6 = vld [vmem:[#allocation2 + $0x176] ss:$2 sm:$0x1] }
 0x34a   : > { %7748 = vmatmul.msk.bf16.gmra.mxu0 %vm2394_vm4, %v4065_v3  ;;  %v9840_v58 = vadd.f32 %v9770_v1, %v3792_v28 }
 0x34b   : > { %7682 = vmatmul.msk.bf16.gmra.mxu1 %vm2394_vm4, %v3465_v15 }
 0x34c   : > { %7706 = vmatmul.msk.bf16.gmra.mxu2 %vm2394_vm4, %v3667_v31  ;;  %v4039_v31 = vld [vmem:[#allocation2 + $0xda] ss:$2 sm:$0xff] }
 0x34d   : > { %7817 = vmatmul.msk.bf16.vlgmr.msrb.gmra.mxu3 %vm2394_vm4, %v4668_v21 }
 0x34f   : > { %v3365_v43 = vpop.f32.mrf.mxu0  ;;  %v3737_v10 = vpop.f32.mrf.mxu2 }
 0x350   : > { %v9846_v11 = vadd.f32 %v3365_v43, %v9723_v56  ;;  %v3793_v36 = vadd.f32 %v3737_v10, %v3591_v26  ;;  %v3537_v52 = vpop.f32.mrf.mxu1  ;;  %v4037_v43 = vld [vmem:[#allocation2 + $0xca] ss:$2 sm:$0xff]  ;;  %v3657_v10 = vld [vmem:[#allocation2 + $0x177] ss:$2 sm:$0x1] }
 0x351   : > { %v9848_v55 = vpop.f32.mrf.mxu3  ;;  %v3592_v1 = vadd.f32 %v3537_v52, %v9708_v61 }
 0x352   : > { %v9852_v39 = vadd.f32 %v9783_v57, %v3793_v36  ;;  %v3653_v57 = vld [vmem:[#allocation2 + $0x157] ss:$2 sm:$0xff] }
 0x353   : > { %v3668_v8 = vpack.c.bf16 %v3655_v23, %v3653_v57  ;;  %v4631_v23 = vld [vmem:[#allocation2 + $0x6d] ss:$2 sm:$0xff]  ;;  %v4043_v57 = vld [vmem:[#allocation2 + $0xfa] ss:$2 sm:$0xff] }
 0x357   : > { %v3368_v9 = vpop.f32.mrf.mxu0  ;;  %v3739_v27 = vpop.f32.mrf.mxu2 }
 0x358   : > { %v9855_v32 = vadd.f32 %v3368_v9, %v9744_v25  ;;  %v3794_v56 = vadd.f32 %v3739_v27, %v3592_v1  ;;  %v3540_v44 = vpop.f32.mrf.mxu1  ;;  %v4627_v25 = vld [vmem:[#allocation2 + $0x4d] ss:$2 sm:$0xff]  ;;  %v3467_v9 = vpack.c.bf16 %v3455_v6, %v3455_v6  ;;  %v3669_v27 = vpack.c.bf16 %v3657_v10, %v3657_v10 }
 0x359   : > { %v9857_v12 = vpop.f32.mrf.mxu3  ;;  %v3593_v61 = vadd.f32 %v3540_v44, %v9717_v49  ;;  %v4669_v24 = vpack.c.bf16 %v4629_v37, %v4627_v25  ;;  %v8315_v49 = vld [vmem:[%s10909_s3 + $0xe8] sm:$0xff] }
 0x35a   : > { %7749 = vmatmul.msk.bf16.gmra.mxu0 %vm2394_vm4, %v4066_v63  ;;  %v9862_v7 = vadd.f32 %v9792_v35, %v3794_v56  ;;  %5307 = vmatpush.bf16.msrb.mxu2 %v8315_v49  ;;  %v4221_v37 = vld [vmem:[#allocation2 + $0x3b] ss:$2 sm:$0xff]  ;;  %v4423_v49 = vld [vmem:[#allocation2 + $0x3c] ss:$2 sm:$0xff] }
 0x35b   : > { %7683 = vmatmul.msk.bf16.gmra.mxu1 %vm2394_vm4, %v3466_v0 }
 0x35c   : > { %7707 = vmatmul.msk.bf16.gmra.mxu2 %vm2394_vm4, %v3668_v8 }
 0x35d   : > { %7818 = vmatmul.msk.bf16.gmra.mxu3 %vm2394_vm4, %v4669_v24  ;;  %v4041_v24 = vld [vmem:[#allocation2 + $0xea] ss:$2 sm:$0xff] }
 0x35f   : > { %v3370_v28 = vpop.f32.mrf.mxu0  ;;  %v3742_v42 = vpop.f32.mrf.mxu2 }
 0x360   : > { %v9874_v35 = vadd.f32 %v3370_v28, %v9752_v16  ;;  %v3795_v3 = vadd.f32 %v3742_v42, %v3593_v61  ;;  %v3542_v50 = vpop.f32.mrf.mxu1  ;;  %v4068_v42 = vpack.c.bf16 %v4043_v57, %v4041_v24 }
 0x361   : > { %v9876_v26 = vpop.f32.mrf.mxu3  ;;  %v3594_v15 = vadd.f32 %v3542_v50, %v9736_v2  ;;  %v4067_v2 = vpack.c.bf16 %v4039_v31, %v4037_v43 }
 0x362   : > { %v9883_v45 = vadd.f32 %v9805_v40, %v3795_v3  ;;  %v4633_v40 = vld [vmem:[#allocation2 + $0x7d] ss:$2 sm:$0xff] }
 0x363   : > { %v4219_v3 = vld [vmem:[#allocation2 + $0x2b] ss:$2 sm:$0xff] }
 0x367   : > { %v3373_v16 = vpop.f32.mrf.mxu0  ;;  %v3744_v21 = vpop.f32.mrf.mxu2 }
 0x368   : > { %v9886_v36 = vadd.f32 %v3373_v16, %v9764_v59  ;;  %v3796_v52 = vadd.f32 %v3744_v21, %v3594_v15  ;;  %v3545_v1 = vpop.f32.mrf.mxu1  ;;  %v4670_v59 = vpack.c.bf16 %v4633_v40, %v4631_v23  ;;  %v4264_v15 = vpack.c.bf16 %v4221_v37, %v4219_v3  ;;  %v4045_v23 = vld [vmem:[#allocation2 + $0x10a] ss:$2 sm:$0xff]  ;;  %v4641_v37 = vld [vmem:[#allocation2 + $0xbd] ss:$2 sm:$0xff] }
 0x369   : > { %v9888_v47 = vpop.f32.mrf.mxu3  ;;  %v3595_v29 = vadd.f32 %v3545_v1, %v9748_v51 }
 0x36a   : > { %7750 = vmatmul.msk.bf16.gmra.mxu0 %vm2394_vm4, %v4067_v2  ;;  %v9893_v41 = vadd.f32 %v9813_v54, %v3796_v52 }
 0x36b   : > { %7684 = vmatmul.msk.bf16.gmra.mxu1 %vm2394_vm4, %v3467_v9  ;;  %v4225_v9 = vld [vmem:[#allocation2 + $0x5b] ss:$2 sm:$0xff] }
 0x36c   : > { %7708 = vmatmul.msk.bf16.gmra.mxu2 %vm2394_vm4, %v3669_v27 }
 0x36d   : > { %7819 = vmatmul.msk.bf16.gmra.mxu3 %vm2394_vm4, %v4670_v59  ;;  %v4427_v59 = vld [vmem:[#allocation2 + $0x5c] ss:$2 sm:$0xff] }
 0x36f   : > { %v3375_v56 = vpop.f32.mrf.mxu0  ;;  %v3747_v44 = vpop.f32.mrf.mxu2 }
 0x370   : > { %v9899_v51 = vadd.f32 %v3375_v56, %v9774_v46  ;;  %v3797_v63 = vadd.f32 %v3747_v44, %v3595_v29  ;;  %v3547_v17 = vpop.f32.mrf.mxu1  ;;  %v4047_v29 = vld [vmem:[#allocation2 + $0x11a] ss:$2 sm:$0xff] }
 0x371   : > { %v9901_v61 = vpop.f32.mrf.mxu3  ;;  %v3596_v54 = vadd.f32 %v3547_v17, %v9759_v22  ;;  %v4223_v17 = vld [vmem:[#allocation2 + $0x4b] ss:$2 sm:$0xff] }
 0x372   : > { %v9905_v0 = vadd.f32 %v9823_v19, %v3797_v63  ;;  %v4421_v19 = vld [vmem:[#allocation2 + $0x2c] ss:$2 sm:$0xff]  ;;  %v4069_v63 = vpack.c.bf16 %v4047_v29, %v4045_v23  ;;  %v4265_v57 = vpack.c.bf16 %v4225_v9, %v4223_v17  ;;  %v4645_v9 = vld [vmem:[#allocation2 + $0xdd] ss:$2 sm:$0xff] }
 0x373   : > { %v4466_v31 = vpack.c.bf16 %v4423_v49, %v4421_v19 }
 0x377   : > { %v3378_v8 = vpop.f32.mrf.mxu0  ;;  %v3749_v25 = vpop.f32.mrf.mxu2 }
 0x378   : > { %v9908_v53 = vadd.f32 %v3378_v8, %v9786_v34  ;;  %v3798_v46 = vadd.f32 %v3749_v25, %v3596_v54  ;;  %v3550_v28 = vpop.f32.mrf.mxu1  ;;  %v4635_v34 = vld [vmem:[#allocation2 + $0x8d] ss:$2 sm:$0xff] }
 0x379   : > { %v9910_v50 = vpop.f32.mrf.mxu3  ;;  %v3597_v22 = vadd.f32 %v3550_v28, %v9768_v20  ;;  %v4671_v16 = vpack.c.bf16 %v4637_v62, %v4635_v34  ;;  %v4431_v34 = vld [vmem:[#allocation2 + $0x7c] ss:$2 sm:$0xff] }
 0x37a   : > { %7751 = vmatmul.msk.bf16.gmra.mxu0 %vm2394_vm4, %v4068_v42  ;;  %v9915_v6 = vadd.f32 %v9835_v18, %v3798_v46 }
 0x37b   : > { %7769 = vmatmul.msk.bf16.vlgmr.msra.gmra.mxu1 %vm2394_vm4, %v4264_v15  ;;  %v4229_v15 = vld [vmem:[#allocation2 + $0x7b] ss:$2 sm:$0xff] }
 0x37c   : > { %7793 = vmatmul.msk.bf16.vlgmr.msra.gmra.mxu2 %vm2394_vm4, %v4466_v31  ;;  %v4049_v31 = vld [vmem:[#allocation2 + $0x12a] ss:$2 sm:$0xff] }
 0x37d   : > { %7820 = vmatmul.msk.bf16.gmra.mxu3 %vm2394_vm4, %v4671_v16 }
 0x37f   : > { %v3380_v21 = vpop.f32.mrf.mxu0  ;;  %v3752_v43 = vpop.f32.mrf.mxu2 }
 0x380   : > { %v9921_v20 = vadd.f32 %v3380_v21, %v9796_v4  ;;  %v3799_v10 = vadd.f32 %v3752_v43, %v3597_v22  ;;  %v3552_v52 = vpop.f32.mrf.mxu1 }
 0x381   : > { %v9923_v1 = vpop.f32.mrf.mxu3  ;;  %v3598_v18 = vadd.f32 %v3552_v52, %v9781_v5  ;;  %v4227_v52 = vld [vmem:[#allocation2 + $0x6b] ss:$2 sm:$0xff] }
 0x382   : > { %v9927_v2 = vadd.f32 %v9848_v55, %v3799_v10  ;;  %v4425_v55 = vld [vmem:[#allocation2 + $0x4c] ss:$2 sm:$0xff]  ;;  %v4266_v29 = vpack.c.bf16 %v4229_v15, %v4227_v52 }
 0x383   : > { %v4467_v8 = vpack.c.bf16 %v4427_v59, %v4425_v55  ;;  %v4055_v55 = vld [vmem:[#allocation2 + $0x15a] ss:$2 sm:$0xff] }
 0x384   : > { %v4433_v15 = vld [vmem:[#allocation2 + $0x8c] ss:$2 sm:$0xff] }
 0x387   : > { %v3383_v40 = vpop.f32.mrf.mxu0  ;;  %v3754_v27 = vpop.f32.mrf.mxu2 }
 0x388   : > { %v9930_v56 = vadd.f32 %v3383_v40, %v9808_v48  ;;  %v3800_v4 = vadd.f32 %v3754_v27, %v3598_v18  ;;  %v3555_v44 = vpop.f32.mrf.mxu1  ;;  %v4639_v48 = vld [vmem:[#allocation2 + $0xad] ss:$2 sm:$0xff] }
 0x389   : > { %v9932_v54 = vpop.f32.mrf.mxu3  ;;  %v3599_v5 = vadd.f32 %v3555_v44, %v9790_v38  ;;  %v4672_v24 = vpack.c.bf16 %v4641_v37, %v4639_v48  ;;  %v4233_v37 = vld [vmem:[#allocation2 + $0x9b] ss:$2 sm:$0xff] }
 0x38a   : > { %7752 = vmatmul.msk.bf16.gmra.mxu0 %vm2394_vm4, %v4069_v63  ;;  %v9937_v25 = vadd.f32 %v9857_v12, %v3800_v4  ;;  %v4051_v12 = vld [vmem:[#allocation2 + $0x13a] ss:$2 sm:$0xff] }
 0x38b   : > { %7770 = vmatmul.msk.bf16.gmra.mxu1 %vm2394_vm4, %v4265_v57  ;;  %v4070_v10 = vpack.c.bf16 %v4051_v12, %v4049_v31 }
 0x38c   : > { %7794 = vmatmul.msk.bf16.gmra.mxu2 %vm2394_vm4, %v4467_v8 }
 0x38d   : > { %7821 = vmatmul.msk.bf16.gmra.mxu3 %vm2394_vm4, %v4672_v24  ;;  %v4053_v24 = vld [vmem:[#allocation2 + $0x14a] ss:$2 sm:$0xff] }
 0x38f   : > { %v3385_v49 = vpop.f32.mrf.mxu0  ;;  %v3757_v46 = vpop.f32.mrf.mxu2 }
 0x390   : > { %v3801_v38 = vadd.f32 %v3757_v46, %v3599_v5  ;;  %v3557_v28 = vpop.f32.mrf.mxu1  ;;  %v8310_v5 = vld [vmem:[%s10909_s3 + $0xc0] sm:$0xff] }
 0x391   : > { %v9942_v42 = vpop.f32.mrf.mxu3  ;;  %v3600_v3 = vadd.f32 %v3557_v28, %v9803_v13  ;;  %4942 = vmatpush.bf16.msra.mxu0 %v8310_v5  ;;  %v4231_v28 = vld [vmem:[#allocation2 + $0x8b] ss:$2 sm:$0xff] }
 0x392   : > { %v9946_v22 = vadd.f32 %v9876_v26, %v3801_v38  ;;  %v4429_v26 = vld [vmem:[#allocation2 + $0x6c] ss:$2 sm:$0xff] }
 0x393   : > { %v4468_v40 = vpack.c.bf16 %v4431_v34, %v4429_v26  ;;  %v4059_v26 = vld [vmem:[#allocation2 + $0x17a] ss:$2 sm:$0xff] }
 0x397   : > { %v3759_v19 = vpop.f32.mrf.mxu2  ;;  %v4136_v62 = vpop.f32.mrf.mxu0 }
 0x398   : > { %v3802_v16 = vadd.f32 %v3759_v19, %v3600_v3  ;;  %v9949_v21 = vadd.f32 %v4136_v62, %v9830_v30  ;;  %v3560_v43 = vpop.f32.mrf.mxu1  ;;  %v4643_v30 = vld [vmem:[#allocation2 + $0xcd] ss:$2 sm:$0xff]  ;;  %v4649_v19 = vld [vmem:[#allocation2 + $0xfd] ss:$2 sm:$0xff] }
 0x399   : > { %v9951_v18 = vpop.f32.mrf.mxu3  ;;  %v3601_v13 = vadd.f32 %v3560_v43, %v9811_v14  ;;  %v4673_v23 = vpack.c.bf16 %v4645_v9, %v4643_v30  ;;  %v4237_v9 = vld [vmem:[#allocation2 + $0xbb] ss:$2 sm:$0xff] }
 0x39a   : > { %7753 = vmatmul.msk.bf16.gmra.mxu0 %vm2394_vm4, %v4070_v10  ;;  %v9956_v27 = vadd.f32 %v9888_v47, %v3802_v16 }
 0x39b   : > { %7771 = vmatmul.msk.bf16.gmra.mxu1 %vm2394_vm4, %v4266_v29 }
 0x39c   : > { %7795 = vmatmul.msk.bf16.gmra.mxu2 %vm2394_vm4, %v4468_v40 }
 0x39d   : > { %7822 = vmatmul.msk.bf16.gmra.mxu3 %vm2394_vm4, %v4673_v23  ;;  %v4057_v23 = vld [vmem:[#allocation2 + $0x16a] ss:$2 sm:$0xff] }
 0x39f   : > { %v3762_v59 = vpop.f32.mrf.mxu2  ;;  %v4138_v4 = vpop.f32.mrf.mxu0 }
 0x3a0   : > { %v3803_v14 = vadd.f32 %v3762_v59, %v3601_v13  ;;  %v9962_v44 = vadd.f32 %v4138_v4, %v9840_v58  ;;  %v3562_v63 = vpop.f32.mrf.mxu1  ;;  %v4435_v58 = vld [vmem:[#allocation2 + $0x9c] ss:$2 sm:$0xff] }
 0x3a1   : > { %v9964_v17 = vpop.f32.mrf.mxu3  ;;  %v3602_v47 = vadd.f32 %v3562_v63, %v9821_v60  ;;  %v4071_v60 = vpack.c.bf16 %v4055_v55, %v4053_v24  ;;  %v4469_v62 = vpack.c.bf16 %v4435_v58, %v4433_v15  ;;  %v4439_v59 = vld [vmem:[#allocation2 + $0xbc] ss:$2 sm:$0xff]  ;;  %v4072_v63 = vpack.c.bf16 %v4059_v26, %v4057_v23  ;;  %v8316_v58 = vld [vmem:[%s10909_s3 + $0xf0] sm:$0xff] }
 0x3a2   : > { %v9971_v57 = vadd.f32 %v9901_v61, %v3803_v14  ;;  %v4267_v61 = vpack.c.bf16 %v4233_v37, %v4231_v28  ;;  %v4653_v37 = vld [vmem:[#allocation2 + $0x11d] ss:$2 sm:$0xff]  ;;  %5491 = vmatpush.bf16.msra.mxu3 %v8316_v58  ;;  %v8312_v15 = vld [vmem:[%s10909_s3 + $0xd0] sm:$0xff]  ;;  %v4447_v58 = vld [vmem:[#allocation2 + $0xfc] ss:$2 sm:$0xff] }
 0x3a3   : > { %5125 = vmatpush.bf16.msrb.mxu1 %v8312_v15 }
 0x3a7   : > { %v3764_v8 = vpop.f32.mrf.mxu2  ;;  %v4141_v48 = vpop.f32.mrf.mxu0 }
 0x3a8   : > { %v3804_v49 = vadd.f32 %v3764_v8, %v3602_v47  ;;  %v9974_v46 = vadd.f32 %v4141_v48, %v9852_v39  ;;  %v3565_v38 = vpop.f32.mrf.mxu1  ;;  %v4647_v39 = vld [vmem:[#allocation2 + $0xed] ss:$2 sm:$0xff] }
 0x3a9   : > { %v9976_v3 = vpop.f32.mrf.mxu3  ;;  %v3603_v12 = vadd.f32 %v3565_v38, %v9833_v33  ;;  %v4674_v34 = vpack.c.bf16 %v4649_v19, %v4647_v39  ;;  %v4235_v47 = vld [vmem:[#allocation2 + $0xab] ss:$2 sm:$0xff]  ;;  %v4241_v39 = vld [vmem:[#allocation2 + $0xdb] ss:$2 sm:$0xff] }
 0x3aa   : > { %7754 = vmatmul.msk.bf16.gmra.mxu0 %vm2394_vm4, %v4071_v60  ;;  %v9981_v31 = vadd.f32 %v9910_v50, %v3804_v49  ;;  %v4268_v55 = vpack.c.bf16 %v4237_v9, %v4235_v47 }
 0x3ab   : > { %7772 = vmatmul.msk.bf16.gmra.mxu1 %vm2394_vm4, %v4267_v61 }
 0x3ac   : > { %7796 = vmatmul.msk.bf16.gmra.mxu2 %vm2394_vm4, %v4469_v62  ;;  %v4061_v62 = vld [vmem:[#allocation2 + $0x18a] ss:$2 sm:$0x1] }
 0x3ad   : > { %7823 = vmatmul.msk.bf16.gmra.mxu3 %vm2394_vm4, %v4674_v34 }
 0x3af   : > { %v3767_v16 = vpop.f32.mrf.mxu2  ;;  %v4143_v43 = vpop.f32.mrf.mxu0 }
 0x3b0   : > { %v3805_v33 = vadd.f32 %v3767_v16, %v3603_v12  ;;  %v9987_v10 = vadd.f32 %v4143_v43, %v9862_v7  ;;  %v3567_v52 = vpop.f32.mrf.mxu1  ;;  %v4443_v16 = vld [vmem:[#allocation2 + $0xdc] ss:$2 sm:$0xff] }
 0x3b1   : > { %v9989_v13 = vpop.f32.mrf.mxu3  ;;  %v3604_v50 = vadd.f32 %v3567_v52, %v9846_v11 }
 0x3b2   : > { %v9993_v29 = vadd.f32 %v9923_v1, %v3805_v33  ;;  %v4437_v1 = vld [vmem:[#allocation2 + $0xac] ss:$2 sm:$0xff] }
 0x3b3   : > { %v4470_v8 = vpack.c.bf16 %v4439_v59, %v4437_v1 }
 0x3b7   : > { %v3769_v40 = vpop.f32.mrf.mxu2  ;;  %v4146_v30 = vpop.f32.mrf.mxu0 }
 0x3b8   : > { %v3806_v4 = vadd.f32 %v3769_v40, %v3604_v50  ;;  %v9996_v14 = vadd.f32 %v4146_v30, %v9883_v45  ;;  %v3570_v7 = vpop.f32.mrf.mxu1  ;;  %v4651_v45 = vld [vmem:[#allocation2 + $0x10d] ss:$2 sm:$0xff]  ;;  %v4073_v50 = vpack.c.bf16 %v4061_v62, %v4061_v62  ;;  %v4441_v30 = vld [vmem:[#allocation2 + $0xcc] ss:$2 sm:$0xff]  ;;  %v4661_v62 = vld [vmem:[#allocation2 + $0x15d] ss:$2 sm:$0xff] }
 0x3b9   : > { %v9998_v5 = vpop.f32.mrf.mxu3  ;;  %v3605_v11 = vadd.f32 %v3570_v7, %v9855_v32  ;;  %v4675_v24 = vpack.c.bf16 %v4653_v37, %v4651_v45  ;;  %v8314_v32 = vld [vmem:[%s10909_s3 + $0xe0] sm:$0xff]  ;;  %v4471_v23 = vpack.c.bf16 %v4443_v16, %v4441_v30  ;;  %v4827_v37 = vld [vmem:[#allocation2 + $0x4f] ss:$2 sm:$0xff] }
 0x3ba   : > { %7755 = vmatmul.msk.bf16.gmra.mxu0 %vm2394_vm4, %v4072_v63  ;;  %v10003_v48 = vadd.f32 %v9932_v54, %v3806_v4  ;;  %5308 = vmatpush.bf16.msrb.mxu2 %v8314_v32  ;;  %v4655_v4 = vld [vmem:[#allocation2 + $0x12d] ss:$2 sm:$0xff] }
 0x3bb   : > { %7773 = vmatmul.msk.bf16.gmra.mxu1 %vm2394_vm4, %v4268_v55  ;;  %v4825_v32 = vld [vmem:[#allocation2 + $0x3f] ss:$2 sm:$0xff] }
 0x3bc   : > { %7797 = vmatmul.msk.bf16.gmra.mxu2 %vm2394_vm4, %v4470_v8  ;;  %v4245_v8 = vld [vmem:[#allocation2 + $0xfb] ss:$2 sm:$0xff] }
 0x3bd   : > { %7824 = vmatmul.msk.bf16.gmra.mxu3 %vm2394_vm4, %v4675_v24 }
 0x3bf   : > { %v3772_v49 = vpop.f32.mrf.mxu2  ;;  %v4148_v38 = vpop.f32.mrf.mxu0 }
 0x3c0   : > { %v3807_v54 = vadd.f32 %v3772_v49, %v3605_v11  ;;  %v10015_v60 = vadd.f32 %v4148_v38, %v9893_v41  ;;  %v3572_v28 = vpop.f32.mrf.mxu1 }
 0x3c1   : > { %v10017_v12 = vpop.f32.mrf.mxu3  ;;  %v3606_v61 = vadd.f32 %v3572_v28, %v9874_v35  ;;  %v4239_v35 = vld [vmem:[#allocation2 + $0xcb] ss:$2 sm:$0xff] }
 0x3c2   : > { %v10024_v19 = vadd.f32 %v9942_v42, %v3807_v54  ;;  %v4269_v40 = vpack.c.bf16 %v4241_v39, %v4239_v35  ;;  %v4657_v42 = vld [vmem:[#allocation2 + $0x13d] ss:$2 sm:$0xff]  ;;  %v4870_v54 = vpack.c.bf16 %v4827_v37, %v4825_v32 }
 0x3c3   : > { %v4243_v28 = vld [vmem:[#allocation2 + $0xeb] ss:$2 sm:$0xff] }
 0x3c4   : > { %v4270_v15 = vpack.c.bf16 %v4245_v8, %v4243_v28  ;;  %v4665_v37 = vld [vmem:[#allocation2 + $0x17d] ss:$2 sm:$0xff] }
 0x3c5   : > { %v4835_v28 = vld [vmem:[#allocation2 + $0x8f] ss:$2 sm:$0xff] }
 0x3c7   : > { %v3774_v34 = vpop.f32.mrf.mxu2  ;;  %v4151_v41 = vpop.f32.mrf.mxu0 }
 0x3c8   : > { %v3808_v43 = vadd.f32 %v3774_v34, %v3606_v61  ;;  %v10027_v33 = vadd.f32 %v4151_v41, %v9905_v0  ;;  %v3575_v52 = vpop.f32.mrf.mxu1  ;;  %v4676_v0 = vpack.c.bf16 %v4657_v42, %v4655_v4  ;;  %v4451_v4 = vld [vmem:[#allocation2 + $0x11c] ss:$2 sm:$0xff] }
 0x3c9   : > { %v3991_v26 = vpop.f32.mrf.mxu3  ;;  %v3607_v9 = vadd.f32 %v3575_v52, %v9886_v36 }
 0x3ca   : > { %7756 = vmatmul.msk.bf16.gmra.mxu0 %vm2394_vm4, %v4073_v50  ;;  %v10032_v59 = vadd.f32 %v9951_v18, %v3808_v43 }
 0x3cb   : > { %7774 = vmatmul.msk.bf16.gmra.mxu1 %vm2394_vm4, %v4269_v40  ;;  %v4249_v40 = vld [vmem:[#allocation2 + $0x11b] ss:$2 sm:$0xff] }
 0x3cc   : > { %7798 = vmatmul.msk.bf16.gmra.mxu2 %vm2394_vm4, %v4471_v23  ;;  %v4829_v23 = vld [vmem:[#allocation2 + $0x5f] ss:$2 sm:$0xff] }
 0x3cd   : > { %7825 = vmatmul.msk.bf16.gmra.mxu3 %vm2394_vm4, %v4676_v0 }
 0x3cf   : > { %v3777_v7 = vpop.f32.mrf.mxu2  ;;  %v4153_v63 = vpop.f32.mrf.mxu0 }
 0x3d0   : > { %v3809_v36 = vadd.f32 %v3777_v7, %v3607_v9  ;;  %v10038_v47 = vadd.f32 %v4153_v63, %v9915_v6  ;;  %v3577_v11 = vpop.f32.mrf.mxu1  ;;  %v4831_v9 = vld [vmem:[#allocation2 + $0x6f] ss:$2 sm:$0xff] }
 0x3d1   : > { %v10040_v55 = vpop.f32.mrf.mxu3  ;;  %v3608_v18 = vadd.f32 %v3577_v11, %v9899_v51  ;;  %v4871_v63 = vpack.c.bf16 %v4831_v9, %v4829_v23 }
 0x3d2   : > { %v10044_v1 = vadd.f32 %v9964_v17, %v3809_v36  ;;  %v4445_v17 = vld [vmem:[#allocation2 + $0xec] ss:$2 sm:$0xff]  ;;  %v4247_v36 = vld [vmem:[#allocation2 + $0x10b] ss:$2 sm:$0xff] }
 0x3d3   : > { %v4472_v39 = vpack.c.bf16 %v4447_v58, %v4445_v17 }
 0x3d7   : > { %v3779_v45 = vpop.f32.mrf.mxu2  ;;  %v4156_v24 = vpop.f32.mrf.mxu0 }
 0x3d8   : > { %v3810_v49 = vadd.f32 %v3779_v45, %v3608_v18  ;;  %v10047_v38 = vadd.f32 %v4156_v24, %v9927_v2  ;;  %v3580_v6 = vpop.f32.mrf.mxu1  ;;  %v4659_v2 = vld [vmem:[#allocation2 + $0x14d] ss:$2 sm:$0xff]  ;;  %v4271_v18 = vpack.c.bf16 %v4249_v40, %v4247_v36 }
 0x3d9   : > { %v10049_v61 = vpop.f32.mrf.mxu3  ;;  %v3609_v51 = vadd.f32 %v3580_v6, %v9908_v53  ;;  %v4677_v41 = vpack.c.bf16 %v4661_v62, %v4659_v2  ;;  %v4833_v62 = vld [vmem:[#allocation2 + $0x7f] ss:$2 sm:$0xff]  ;;  %v4839_v36 = vld [vmem:[#allocation2 + $0xaf] ss:$2 sm:$0xff] }
 0x3da   : > { %7841 = vmatmul.msk.bf16.vlgmr.msra.gmra.mxu0 %vm2394_vm4, %v4870_v54  ;;  %v10054_v34 = vadd.f32 %v9976_v3, %v3810_v49 }
 0x3db   : > { %7775 = vmatmul.msk.bf16.gmra.mxu1 %vm2394_vm4, %v4270_v15 }
 0x3dc   : > { %7799 = vmatmul.msk.bf16.gmra.mxu2 %vm2394_vm4, %v4472_v39  ;;  %v4455_v39 = vld [vmem:[#allocation2 + $0x13c] ss:$2 sm:$0xff] }
 0x3dd   : > { %7826 = vmatmul.msk.bf16.gmra.mxu3 %vm2394_vm4, %v4677_v41 }
 0x3df   : > { %v3782_v16 = vpop.f32.mrf.mxu2  ;;  %v4158_v43 = vpop.f32.mrf.mxu0 }
 0x3e0   : > { %v3811_v53 = vadd.f32 %v3782_v16, %v3609_v51  ;;  %v10060_v52 = vadd.f32 %v4158_v43, %v9937_v25  ;;  %v3582_v50 = vpop.f32.mrf.mxu1  ;;  %v4253_v51 = vld [vmem:[#allocation2 + $0x13b] ss:$2 sm:$0xff]  ;;  %v4872_v16 = vpack.c.bf16 %v4835_v28, %v4833_v62  ;;  %v4251_v43 = vld [vmem:[#allocation2 + $0x12b] ss:$2 sm:$0xff]  ;;  %v5393_v28 = vld [vmem:[#allocation2 + $0x52] ss:$2 sm:$0xff] }
 0x3e1   : > { %v10062_v35 = vpop.f32.mrf.mxu3  ;;  %v3610_v3 = vadd.f32 %v3582_v50, %v9921_v20  ;;  %v4272_v50 = vpack.c.bf16 %v4253_v51, %v4251_v43 }
 0x3e2   : > { %v10066_v26 = vadd.f32 %v9989_v13, %v3811_v53  ;;  %v4449_v13 = vld [vmem:[#allocation2 + $0x10c] ss:$2 sm:$0xff] }
 0x3e3   : > { %v4473_v8 = vpack.c.bf16 %v4451_v4, %v4449_v13 }
 0x3e7   : > { %v3784_v30 = vpop.f32.mrf.mxu2  ;;  %v4161_v42 = vpop.f32.mrf.mxu0 }
 0x3e8   : > { %v3812_v0 = vadd.f32 %v3784_v30, %v3610_v3  ;;  %v10069_v7 = vadd.f32 %v4161_v42, %v9946_v22  ;;  %v3585_v25 = vpop.f32.mrf.mxu1  ;;  %v4663_v22 = vld [vmem:[#allocation2 + $0x16d] ss:$2 sm:$0xff]  ;;  %v4453_v3 = vld [vmem:[#allocation2 + $0x12c] ss:$2 sm:$0xff] }
 0x3e9   : > { %v10071_v11 = vpop.f32.mrf.mxu3  ;;  %v3611_v20 = vadd.f32 %v3585_v25, %v9930_v56  ;;  %v4678_v24 = vpack.c.bf16 %v4665_v37, %v4663_v22  ;;  %v4474_v9 = vpack.c.bf16 %v4455_v39, %v4453_v3  ;;  %v8325_v25 = vld [vmem:[%s10911_s5 + $0x38] sm:$0xff] }
 0x3ea   : > { %7842 = vmatmul.msk.bf16.gmra.mxu0 %vm2394_vm4, %v4871_v63  ;;  %v10076_v45 = vadd.f32 %v9998_v5, %v3812_v0  ;;  %v4459_v37 = vld [vmem:[#allocation2 + $0x15c] ss:$2 sm:$0xff]  ;;  %v4261_v3 = vld [vmem:[#allocation2 + $0x17b] ss:$2 sm:$0xff] }
 0x3eb   : > { %7776 = vmatmul.msk.bf16.gmra.mxu1 %vm2394_vm4, %v4271_v18  ;;  %5773 = vmatpush.bf16.msrb.mxu0 %v8325_v25 }
 0x3ec   : > { %7800 = vmatmul.msk.bf16.gmra.mxu2 %vm2394_vm4, %v4473_v8 }
 0x3ed   : > { %7827 = vmatmul.msk.bf16.gmra.mxu3 %vm2394_vm4, %v4678_v24 }
 0x3ef   : > { %v3787_v32 = vpop.f32.mrf.mxu2  ;;  %v4163_v58 = vpop.f32.mrf.mxu0 }
 0x3f0   : > { %v3813_v56 = vadd.f32 %v3787_v32, %v3611_v20  ;;  %v10082_v49 = vadd.f32 %v4163_v58, %v9956_v27  ;;  %v3587_v6 = vpop.f32.mrf.mxu1  ;;  %v4257_v20 = vld [vmem:[#allocation2 + $0x15b] ss:$2 sm:$0xff]  ;;  %v4255_v32 = vld [vmem:[#allocation2 + $0x14b] ss:$2 sm:$0xff] }
 0x3f1   : > { %v10084_v54 = vpop.f32.mrf.mxu3  ;;  %v4457_v6 = vld [vmem:[#allocation2 + $0x14c] ss:$2 sm:$0xff] }
 0x3f2   : > { %v10087_v5 = vadd.f32 %v10017_v12, %v3813_v56  ;;  %v4667_v12 = vld [vmem:[#allocation2 + $0x18d] ss:$2 sm:$0x1]  ;;  %v4475_v51 = vpack.c.bf16 %v4459_v37, %v4457_v6  ;;  %v4263_v6 = vld [vmem:[#allocation2 + $0x18b] ss:$2 sm:$0x1] }
 0x3f3   : > { %v4679_v40 = vpack.c.bf16 %v4667_v12, %v4667_v12 }
 0x3f7   : > { %v3789_v15 = vpop.f32.mrf.mxu2  ;;  %v4166_v17 = vpop.f32.mrf.mxu0 }
 0x3f8   : > { %v10090_v2 = vadd.f32 %v4166_v17, %v9971_v57  ;;  %v4338_v41 = vpop.f32.mrf.mxu1 }
 0x3f9   : > { %v10092_v27 = vpop.f32.mrf.mxu3  ;;  %v4397_v53 = vadd.f32 %v4338_v41, %v9949_v21 }
 0x3fa   : > { %7843 = vmatmul.msk.bf16.gmra.mxu0 %vm2394_vm4, %v4872_v16 }
 0x3fb   : > { %7777 = vmatmul.msk.bf16.gmra.mxu1 %vm2394_vm4, %v4272_v50  ;;  %v4843_v50 = vld [vmem:[#allocation2 + $0xcf] ss:$2 sm:$0xff] }
 0x3fc   : > { %7801 = vmatmul.msk.bf16.gmra.mxu2 %vm2394_vm4, %v4474_v9 }
 0x3fd   : > { %7828 = vmatmul.msk.bf16.gmra.mxu3 %vm2394_vm4, %v4679_v40  ;;  %v4841_v40 = vld [vmem:[#allocation2 + $0xbf] ss:$2 sm:$0xff] }
 0x3ff   : > { %v4168_v57 = vpop.f32.mrf.mxu0  ;;  %v4540_v30 = vpop.f32.mrf.mxu2 }
 0x400   : > { %v10100_v42 = vadd.f32 %v4168_v57, %v9981_v31  ;;  %v4599_v23 = vadd.f32 %v4540_v30, %v4397_v53  ;;  %v4340_v21 = vpop.f32.mrf.mxu1  ;;  %v4837_v31 = vld [vmem:[#allocation2 + $0x9f] ss:$2 sm:$0xff]  ;;  %v4463_v57 = vld [vmem:[#allocation2 + $0x17c] ss:$2 sm:$0xff] }
 0x401   : > { %v10102_v4 = vpop.f32.mrf.mxu3  ;;  %v4398_v0 = vadd.f32 %v4340_v21, %v9962_v44  ;;  %v4873_v44 = vpack.c.bf16 %v4839_v36, %v4837_v31  ;;  %v4874_v21 = vpack.c.bf16 %v4843_v50, %v4841_v40  ;;  %v5397_v50 = vld [vmem:[#allocation2 + $0x92] ss:$2 sm:$0xff] }
 0x402   : > { %v10109_v63 = vadd.f32 %v10040_v55, %v4599_v23  ;;  %v4273_v55 = vpack.c.bf16 %v4257_v20, %v4255_v32  ;;  %v5395_v20 = vld [vmem:[#allocation2 + $0x72] ss:$2 sm:$0xff] }
 0x407   : > { %v4171_v18 = vpop.f32.mrf.mxu0  ;;  %v4542_v13 = vpop.f32.mrf.mxu2 }
 0x408   : > { %v10112_v8 = vadd.f32 %v4171_v18, %v9993_v29  ;;  %v4600_v22 = vadd.f32 %v4542_v13, %v4398_v0  ;;  %v4343_v24 = vpop.f32.mrf.mxu1  ;;  %v5392_v29 = vld [vmem:[#allocation2 + $0x42] ss:$2 sm:$0xff]  ;;  %v4259_v0 = vld [vmem:[#allocation2 + $0x16b] ss:$2 sm:$0xff] }
 0x409   : > { %v10114_v58 = vpop.f32.mrf.mxu3  ;;  %v4399_v56 = vadd.f32 %v4343_v24, %v9974_v46  ;;  %v5419_v17 = vpack.c.bf16 %v5393_v28, %v5392_v29  ;;  %v4274_v36 = vpack.c.bf16 %v4261_v3, %v4259_v0  ;;  %v4845_v29 = vld [vmem:[#allocation2 + $0xdf] ss:$2 sm:$0xff] }
 0x40a   : > { %7844 = vmatmul.msk.bf16.gmra.mxu0 %vm2394_vm4, %v4873_v44  ;;  %v10119_v15 = vadd.f32 %v10049_v61, %v4600_v22 }
 0x40b   : > { %7778 = vmatmul.msk.bf16.gmra.mxu1 %vm2394_vm4, %v4273_v55  ;;  %v4847_v55 = vld [vmem:[#allocation2 + $0xef] ss:$2 sm:$0xff] }
 0x40c   : > { %7802 = vmatmul.msk.bf16.gmra.mxu2 %vm2394_vm4, %v4475_v51 }
 0x40d   : > { %7913 = vmatmul.msk.bf16.vlgmr.msra.gmra.mxu3 %vm2394_vm4, %v5419_v17  ;;  %v4465_v17 = vld [vmem:[#allocation2 + $0x18c] ss:$2 sm:$0x1] }
 0x40f   : > { %v4173_v62 = vpop.f32.mrf.mxu0  ;;  %v4545_v39 = vpop.f32.mrf.mxu2 }
 0x410   : > { %v10125_v46 = vadd.f32 %v4173_v62, %v10003_v48  ;;  %v4601_v41 = vadd.f32 %v4545_v39, %v4399_v56  ;;  %v4345_v16 = vpop.f32.mrf.mxu1 }
 0x411   : > { %v10127_v43 = vpop.f32.mrf.mxu3  ;;  %v4400_v61 = vadd.f32 %v4345_v16, %v9987_v10 }
 0x412   : > { %v10131_v53 = vadd.f32 %v10062_v35, %v4601_v41  ;;  %v4461_v35 = vld [vmem:[#allocation2 + $0x16c] ss:$2 sm:$0xff]  ;;  %v4875_v41 = vpack.c.bf16 %v4847_v55, %v4845_v29 }
 0x413   : > { %v4476_v18 = vpack.c.bf16 %v4463_v57, %v4461_v35  ;;  %v5399_v55 = vld [vmem:[#allocation2 + $0xb2] ss:$2 sm:$0xff] }
 0x417   : > { %v4176_v12 = vpop.f32.mrf.mxu0  ;;  %v4547_v9 = vpop.f32.mrf.mxu2 }
 0x418   : > { %v10134_v30 = vadd.f32 %v4176_v12, %v10024_v19  ;;  %v4602_v48 = vadd.f32 %v4547_v9, %v4400_v61  ;;  %v4348_v23 = vpop.f32.mrf.mxu1  ;;  %v5394_v19 = vld [vmem:[#allocation2 + $0x62] ss:$2 sm:$0xff] }
 0x419   : > { %v10136_v25 = vpop.f32.mrf.mxu3  ;;  %v4401_v10 = vadd.f32 %v4348_v23, %v9996_v14  ;;  %v5420_v31 = vpack.c.bf16 %v5395_v20, %v5394_v19  ;;  %v5396_v12 = vld [vmem:[#allocation2 + $0x82] ss:$2 sm:$0xff] }
 0x41a   : > { %7845 = vmatmul.msk.bf16.gmra.mxu0 %vm2394_vm4, %v4874_v21  ;;  %v10141_v13 = vadd.f32 %v10071_v11, %v4602_v48  ;;  %v8324_v21 = vld [vmem:[%s10911_s5 + $0x30] sm:$0xff] }
 0x41b   : > { %7779 = vmatmul.msk.bf16.gmra.mxu1 %vm2394_vm4, %v4274_v36  ;;  %5774 = vmatpush.bf16.msrb.mxu0 %v8324_v21  ;;  %v5027_v36 = vld [vmem:[#allocation2 + $0x50] ss:$2 sm:$0xff] }
 0x41c   : > { %7803 = vmatmul.msk.bf16.gmra.mxu2 %vm2394_vm4, %v4476_v18  ;;  %v5210_v18 = vld [vmem:[#allocation2 + $0x51] ss:$2 sm:$0xff] }
 0x41d   : > { %7914 = vmatmul.msk.bf16.gmra.mxu3 %vm2394_vm4, %v5420_v31 }
 0x41f   : > { %v4178_v37 = vpop.f32.mrf.mxu0  ;;  %v4550_v22 = vpop.f32.mrf.mxu2 }
 0x420   : > { %v10147_v14 = vadd.f32 %v4178_v37, %v10032_v59  ;;  %v4603_v24 = vadd.f32 %v4550_v22, %v4401_v10  ;;  %v4350_v44 = vpop.f32.mrf.mxu1  ;;  %v4851_v10 = vld [vmem:[#allocation2 + $0x10f] ss:$2 sm:$0xff]  ;;  %v5026_v22 = vld [vmem:[#allocation2 + $0x40] ss:$2 sm:$0xff] }
 0x421   : > { %v10149_v32 = vpop.f32.mrf.mxu3  ;;  %v4402_v11 = vadd.f32 %v4350_v44, %v10015_v60  ;;  %v4275_v60 = vpack.c.bf16 %v4263_v6, %v4263_v6 }
 0x422   : > { %v10153_v56 = vadd.f32 %v10084_v54, %v4603_v24  ;;  %v4477_v54 = vpack.c.bf16 %v4465_v17, %v4465_v17 }
 0x427   : > { %v4181_v28 = vpop.f32.mrf.mxu0  ;;  %v4552_v51 = vpop.f32.mrf.mxu2 }
 0x428   : > { %v10156_v62 = vadd.f32 %v4181_v28, %v10044_v1  ;;  %v4604_v59 = vadd.f32 %v4552_v51, %v4402_v11  ;;  %v4353_v39 = vpop.f32.mrf.mxu1  ;;  %v5421_v1 = vpack.c.bf16 %v5397_v50, %v5396_v12  ;;  %v5209_v11 = vld [vmem:[#allocation2 + $0x41] ss:$2 sm:$0xff]  ;;  %v5029_v50 = vld [vmem:[#allocation2 + $0x70] ss:$2 sm:$0xff] }
 0x429   : > { %v10158_v16 = vpop.f32.mrf.mxu3  ;;  %v4403_v61 = vadd.f32 %v4353_v39, %v10027_v33  ;;  %v5236_v6 = vpack.c.bf16 %v5210_v18, %v5209_v11 }
 0x42a   : > { %7846 = vmatmul.msk.bf16.gmra.mxu0 %vm2394_vm4, %v4875_v41  ;;  %v10163_v3 = vadd.f32 %v10092_v27, %v4604_v59 }
 0x42b   : > { %7780 = vmatmul.msk.bf16.gmra.mxu1 %vm2394_vm4, %v4275_v60  ;;  %v4855_v60 = vld [vmem:[#allocation2 + $0x12f] ss:$2 sm:$0xff] }
 0x42c   : > { %7804 = vmatmul.msk.bf16.gmra.mxu2 %vm2394_vm4, %v4477_v54 }
 0x42d   : > { %7915 = vmatmul.msk.bf16.gmra.mxu3 %vm2394_vm4, %v5421_v1  ;;  %v4853_v1 = vld [vmem:[#allocation2 + $0x11f] ss:$2 sm:$0xff] }
 0x42f   : > { %v4183_v9 = vpop.f32.mrf.mxu0  ;;  %v4555_v40 = vpop.f32.mrf.mxu2 }
 0x430   : > { %v10169_v33 = vadd.f32 %v4183_v9, %v10054_v34  ;;  %v4605_v57 = vadd.f32 %v4555_v40, %v4403_v61  ;;  %v4355_v48 = vpop.f32.mrf.mxu1  ;;  %v4849_v34 = vld [vmem:[#allocation2 + $0xff] ss:$2 sm:$0xff] }
 0x431   : > { %v10171_v23 = vpop.f32.mrf.mxu3  ;;  %v4404_v27 = vadd.f32 %v4355_v48, %v10038_v47  ;;  %v4876_v47 = vpack.c.bf16 %v4851_v10, %v4849_v34  ;;  %v5212_v9 = vld [vmem:[#allocation2 + $0x71] ss:$2 sm:$0xff]  ;;  %v4877_v48 = vpack.c.bf16 %v4855_v60, %v4853_v1 }
 0x432   : > { %v10178_v0 = vadd.f32 %v10102_v4, %v4605_v57  ;;  %v5053_v4 = vpack.c.bf16 %v5027_v36, %v5026_v22  ;;  %v5401_v36 = vld [vmem:[#allocation2 + $0xd2] ss:$2 sm:$0xff] }
 0x437   : > { %v4186_v35 = vpop.f32.mrf.mxu0  ;;  %v4557_v20 = vpop.f32.mrf.mxu2 }
 0x438   : > { %v10181_v19 = vadd.f32 %v4186_v35, %v10066_v26  ;;  %v4606_v31 = vadd.f32 %v4557_v20, %v4404_v27  ;;  %v4358_v37 = vpop.f32.mrf.mxu1  ;;  %v5398_v26 = vld [vmem:[#allocation2 + $0xa2] ss:$2 sm:$0xff] }
 0x439   : > { %v10183_v24 = vpop.f32.mrf.mxu3  ;;  %v4405_v44 = vadd.f32 %v4358_v37, %v10047_v38  ;;  %v5422_v51 = vpack.c.bf16 %v5399_v55, %v5398_v26  ;;  %v5028_v27 = vld [vmem:[#allocation2 + $0x60] ss:$2 sm:$0xff]  ;;  %v5214_v26 = vld [vmem:[#allocation2 + $0x91] ss:$2 sm:$0xff] }
 0x43a   : > { %7847 = vmatmul.msk.bf16.gmra.mxu0 %vm2394_vm4, %v4876_v47  ;;  %v10188_v28 = vadd.f32 %v10114_v58, %v4606_v31  ;;  %v5054_v10 = vpack.c.bf16 %v5029_v50, %v5028_v27  ;;  %v5403_v50 = vld [vmem:[#allocation2 + $0xf2] ss:$2 sm:$0xff] }
 0x43b   : > { %7865 = vmatmul.msk.bf16.vlgmr.msrb.gmra.mxu1 %vm2394_vm4, %v5053_v4  ;;  %v5031_v4 = vld [vmem:[#allocation2 + $0x90] ss:$2 sm:$0xff] }
 0x43c   : > { %7889 = vmatmul.msk.bf16.vlgmr.msrb.gmra.mxu2 %vm2394_vm4, %v5236_v6  ;;  %v4857_v6 = vld [vmem:[#allocation2 + $0x13f] ss:$2 sm:$0xff] }
 0x43d   : > { %7916 = vmatmul.msk.bf16.gmra.mxu3 %vm2394_vm4, %v5422_v51 }
 0x43f   : > { %v4188_v29 = vpop.f32.mrf.mxu0  ;;  %v4560_v17 = vpop.f32.mrf.mxu2 }
 0x440   : > { %v10194_v38 = vadd.f32 %v4188_v29, %v10076_v45  ;;  %v4607_v59 = vadd.f32 %v4560_v17, %v4405_v44  ;;  %v4360_v39 = vpop.f32.mrf.mxu1 }
 0x441   : > { %v10196_v41 = vpop.f32.mrf.mxu3  ;;  %v4406_v58 = vadd.f32 %v4360_v39, %v10060_v52  ;;  %v5030_v39 = vld [vmem:[#allocation2 + $0x80] ss:$2 sm:$0xff] }
 0x442   : > { %v10200_v61 = vadd.f32 %v10127_v43, %v4607_v59  ;;  %v5211_v43 = vld [vmem:[#allocation2 + $0x61] ss:$2 sm:$0xff]  ;;  %v5055_v60 = vpack.c.bf16 %v5031_v4, %v5030_v39 }
 0x443   : > { %v5237_v35 = vpack.c.bf16 %v5212_v9, %v5211_v43  ;;  %v5033_v43 = vld [vmem:[#allocation2 + $0xb0] ss:$2 sm:$0xff]  ;;  %v5215_v4 = vld [vmem:[#allocation2 + $0xa1] ss:$2 sm:$0xff] }
 0x447   : > { %v4191_v54 = vpop.f32.mrf.mxu0  ;;  %v4562_v12 = vpop.f32.mrf.mxu2 }
 0x448   : > { %v10203_v40 = vadd.f32 %v4191_v54, %v10087_v5  ;;  %v4608_v45 = vadd.f32 %v4562_v12, %v4406_v58  ;;  %v4363_v57 = vpop.f32.mrf.mxu1  ;;  %v5400_v5 = vld [vmem:[#allocation2 + $0xc2] ss:$2 sm:$0xff] }
 0x449   : > { %v10205_v21 = vpop.f32.mrf.mxu3  ;;  %v4407_v52 = vadd.f32 %v4363_v57, %v10069_v7  ;;  %v5423_v34 = vpack.c.bf16 %v5401_v36, %v5400_v5  ;;  %v4861_v5 = vld [vmem:[#allocation2 + $0x15f] ss:$2 sm:$0xff] }
 0x44a   : > { %7848 = vmatmul.msk.bf16.gmra.mxu0 %vm2394_vm4, %v4877_v48  ;;  %v10210_v20 = vadd.f32 %v10136_v25, %v4608_v45  ;;  %v4859_v25 = vld [vmem:[#allocation2 + $0x14f] ss:$2 sm:$0xff] }
 0x44b   : > { %7866 = vmatmul.msk.bf16.gmra.mxu1 %vm2394_vm4, %v5054_v10  ;;  %v4878_v59 = vpack.c.bf16 %v4859_v25, %v4857_v6  ;;  %v4863_v10 = vld [vmem:[#allocation2 + $0x16f] ss:$2 sm:$0xff] }
 0x44c   : > { %7890 = vmatmul.msk.bf16.gmra.mxu2 %vm2394_vm4, %v5237_v35 }
 0x44d   : > { %7917 = vmatmul.msk.bf16.gmra.mxu3 %vm2394_vm4, %v5423_v34  ;;  %v5216_v34 = vld [vmem:[#allocation2 + $0xb1] ss:$2 sm:$0xff] }
 0x44f   : > { %v4193_v18 = vpop.f32.mrf.mxu0  ;;  %v4565_v31 = vpop.f32.mrf.mxu2 }
 0x450   : > { %v4609_v7 = vadd.f32 %v4565_v31, %v4407_v52  ;;  %v4365_v37 = vpop.f32.mrf.mxu1 }
 0x451   : > { %v10215_v47 = vpop.f32.mrf.mxu3  ;;  %v4408_v22 = vadd.f32 %v4365_v37, %v10082_v49  ;;  %v5032_v37 = vld [vmem:[#allocation2 + $0xa0] ss:$2 sm:$0xff] }
 0x452   : > { %v10219_v44 = vadd.f32 %v10149_v32, %v4609_v7  ;;  %v5213_v32 = vld [vmem:[#allocation2 + $0x81] ss:$2 sm:$0xff] }
 0x453   : > { %v5238_v54 = vpack.c.bf16 %v5214_v26, %v5213_v32  ;;  %v5035_v32 = vld [vmem:[#allocation2 + $0xd0] ss:$2 sm:$0xff] }
 0x457   : > { %v4567_v11 = vpop.f32.mrf.mxu2  ;;  %v4944_v55 = vpop.f32.mrf.mxu0 }
 0x458   : > { %v4610_v51 = vadd.f32 %v4567_v11, %v4408_v22  ;;  %v10222_v29 = vadd.f32 %v4944_v55, %v10109_v63  ;;  %v4368_v17 = vpop.f32.mrf.mxu1  ;;  %v5402_v63 = vld [vmem:[#allocation2 + $0xe2] ss:$2 sm:$0xff]  ;;  %v5405_v11 = vld [vmem:[#allocation2 + $0x112] ss:$2 sm:$0xff]  ;;  %v5239_v55 = vpack.c.bf16 %v5216_v34, %v5215_v4 }
 0x459   : > { %v10224_v58 = vpop.f32.mrf.mxu3  ;;  %v4409_v49 = vadd.f32 %v4368_v17, %v10090_v2  ;;  %v5424_v1 = vpack.c.bf16 %v5403_v50, %v5402_v63  ;;  %v4865_v63 = vld [vmem:[#allocation2 + $0x17f] ss:$2 sm:$0xff]  ;;  %v5037_v4 = vld [vmem:[#allocation2 + $0xf0] ss:$2 sm:$0xff] }
 0x45a   : > { %7849 = vmatmul.msk.bf16.gmra.mxu0 %vm2394_vm4, %v4878_v59  ;;  %v10229_v12 = vadd.f32 %v10158_v16, %v4610_v51  ;;  %v8323_v16 = vld [vmem:[%s10911_s5 + $0x28] sm:$0xff] }
 0x45b   : > { %7867 = vmatmul.msk.bf16.gmra.mxu1 %vm2394_vm4, %v5055_v60  ;;  %5775 = vmatpush.bf16.msrb.mxu0 %v8323_v16  ;;  %v4867_v60 = vld [vmem:[#allocation2 + $0x18f] ss:$2 sm:$0xff]  ;;  %v5034_v16 = vld [vmem:[#allocation2 + $0xc0] ss:$2 sm:$0xff] }
 0x45c   : > { %7891 = vmatmul.msk.bf16.gmra.mxu2 %vm2394_vm4, %v5238_v54 }
 0x45d   : > { %7918 = vmatmul.msk.bf16.gmra.mxu3 %vm2394_vm4, %v5424_v1  ;;  %v5218_v1 = vld [vmem:[#allocation2 + $0xd1] ss:$2 sm:$0xff] }
 0x45f   : > { %v4570_v9 = vpop.f32.mrf.mxu2  ;;  %v10234_v45 = vpop.f32.mrf.mxu0 }
 0x460   : > { %v4611_v2 = vadd.f32 %v4570_v9, %v4409_v49  ;;  %v4370_v57 = vpop.f32.mrf.mxu1 }
 0x461   : > { %v10236_v48 = vpop.f32.mrf.mxu3  ;;  %v4410_v27 = vadd.f32 %v4370_v57, %v10100_v42  ;;  %v4879_v42 = vpack.c.bf16 %v4863_v10, %v4861_v5 }
 0x462   : > { %v10243_v52 = vadd.f32 %v10171_v23, %v4611_v2  ;;  %v5056_v23 = vpack.c.bf16 %v5033_v43, %v5032_v37  ;;  %v5057_v43 = vpack.c.bf16 %v5035_v32, %v5034_v16 }
 0x467   : > { %v4572_v36 = vpop.f32.mrf.mxu2  ;;  %v4949_v35 = vpop.f32.mrf.mxu0 }
 0x468   : > { %v4612_v18 = vadd.f32 %v4572_v36, %v4410_v27  ;;  %v10246_v31 = vadd.f32 %v4949_v35, %v10131_v53  ;;  %v4373_v7 = vpop.f32.mrf.mxu1  ;;  %v5404_v53 = vld [vmem:[#allocation2 + $0x102] ss:$2 sm:$0xff]  ;;  %v4880_v27 = vpack.c.bf16 %v4867_v60, %v4865_v63  ;;  %v5407_v36 = vld [vmem:[#allocation2 + $0x132] ss:$2 sm:$0xff]  ;;  %v5219_v60 = vld [vmem:[#allocation2 + $0xe1] ss:$2 sm:$0xff] }
 0x469   : > { %v10248_v22 = vpop.f32.mrf.mxu3  ;;  %v4411_v25 = vadd.f32 %v4373_v7, %v10112_v8  ;;  %v5425_v26 = vpack.c.bf16 %v5405_v11, %v5404_v53  ;;  %v5220_v53 = vld [vmem:[#allocation2 + $0xf1] ss:$2 sm:$0xff] }
 0x46a   : > { %7850 = vmatmul.msk.bf16.gmra.mxu0 %vm2394_vm4, %v4879_v42  ;;  %v10253_v6 = vadd.f32 %v10183_v24, %v4612_v18  ;;  %v8333_v63 = vld [vmem:[%s10911_s5 + $0x78] sm:$0xff] }
 0x46b   : > { %7868 = vmatmul.msk.bf16.gmra.mxu1 %vm2394_vm4, %v5056_v23  ;;  %v4869_v23 = vld [vmem:[#allocation2 + $0x19f] ss:$2 sm:$0x1]  ;;  %6152 = vmatpush.bf16.msrb.mxu3 %v8333_v63 }
 0x46c   : > { %7892 = vmatmul.msk.bf16.gmra.mxu2 %vm2394_vm4, %v5239_v55 }
 0x46d   : > { %7919 = vmatmul.msk.bf16.gmra.mxu3 %vm2394_vm4, %v5425_v26 }
 0x46f   : > { %v4575_v51 = vpop.f32.mrf.mxu2  ;;  %v10258_v17 = vpop.f32.mrf.mxu0 }
 0x470   : > { %v4613_v8 = vadd.f32 %v4575_v51, %v4411_v25  ;;  %v4375_v59 = vpop.f32.mrf.mxu1 }
 0x471   : > { %v10260_v39 = vpop.f32.mrf.mxu3  ;;  %v4412_v49 = vadd.f32 %v4375_v59, %v10125_v46  ;;  %v4881_v59 = vpack.c.bf16 %v4869_v23, %v4869_v23 }
 0x472   : > { %v10264_v24 = vadd.f32 %v10196_v41, %v4613_v8  ;;  %v5217_v41 = vld [vmem:[#allocation2 + $0xc1] ss:$2 sm:$0xff] }
 0x473   : > { %v5240_v35 = vpack.c.bf16 %v5218_v1, %v5217_v41 }
 0x477   : > { %v4577_v50 = vpop.f32.mrf.mxu2  ;;  %v4954_v54 = vpop.f32.mrf.mxu0 }
 0x478   : > { %v4614_v9 = vadd.f32 %v4577_v50, %v4412_v49  ;;  %v10267_v2 = vadd.f32 %v4954_v54, %v10153_v56  ;;  %v4378_v57 = vpop.f32.mrf.mxu1  ;;  %v5406_v56 = vld [vmem:[#allocation2 + $0x122] ss:$2 sm:$0xff]  ;;  %v5409_v54 = vld [vmem:[#allocation2 + $0x152] ss:$2 sm:$0xff] }
 0x479   : > { %v10269_v10 = vpop.f32.mrf.mxu3  ;;  %v4413_v46 = vadd.f32 %v4378_v57, %v10134_v30  ;;  %v5426_v34 = vpack.c.bf16 %v5407_v36, %v5406_v56  ;;  %v5036_v49 = vld [vmem:[#allocation2 + $0xe0] ss:$2 sm:$0xff]  ;;  %v8321_v57 = vld [vmem:[%s10911_s5 + $0x18] sm:$0xff] }
 0x47a   : > { %7851 = vmatmul.msk.bf16.gmra.mxu0 %vm2394_vm4, %v4880_v27  ;;  %v10274_v5 = vadd.f32 %v10205_v21, %v4614_v9  ;;  %v5408_v9 = vld [vmem:[#allocation2 + $0x142] ss:$2 sm:$0xff]  ;;  %5872 = vmatpush.bf16.msra.mxu1 %v8321_v57 }
 0x47b   : > { %7869 = vmatmul.msk.bf16.gmra.mxu1 %vm2394_vm4, %v5057_v43  ;;  %v8322_v36 = vld [vmem:[%s10911_s5 + $0x20] sm:$0xff]  ;;  %v5039_v56 = vld [vmem:[#allocation2 + $0x110] ss:$2 sm:$0xff] }
 0x47c   : > { %7893 = vmatmul.msk.bf16.gmra.mxu2 %vm2394_vm4, %v5240_v35  ;;  %5776 = vmatpush.bf16.msrb.mxu0 %v8322_v36  ;;  %v5223_v36 = vld [vmem:[#allocation2 + $0x121] ss:$2 sm:$0xff] }
 0x47d   : > { %7920 = vmatmul.msk.bf16.gmra.mxu3 %vm2394_vm4, %v5426_v34 }
 0x47f   : > { %v4580_v18 = vpop.f32.mrf.mxu2  ;;  %v10279_v7 = vpop.f32.mrf.mxu0 }
 0x480   : > { %v4615_v30 = vadd.f32 %v4580_v18, %v4413_v46  ;;  %v4380_v42 = vpop.f32.mrf.mxu1 }
 0x481   : > { %v10281_v37 = vpop.f32.mrf.mxu3  ;;  %v4414_v25 = vadd.f32 %v4380_v42, %v10147_v14  ;;  %v5058_v14 = vpack.c.bf16 %v5037_v4, %v5036_v49  ;;  %v5038_v4 = vld [vmem:[#allocation2 + $0x100] ss:$2 sm:$0xff] }
 0x482   : > { %v10285_v21 = vadd.f32 %v10215_v47, %v4615_v30  ;;  %v8329_v47 = vld [vmem:[%s10911_s5 + $0x58] sm:$0xff] }
 0x483   : > { %6006 = vmatpush.bf16.msra.mxu2 %v8329_v47  ;;  %v5222_v30 = vld [vmem:[#allocation2 + $0x111] ss:$2 sm:$0xff] }
 0x487   : > { %v4582_v11 = vpop.f32.mrf.mxu2  ;;  %v4959_v55 = vpop.f32.mrf.mxu0 }
 0x488   : > { %v4616_v26 = vadd.f32 %v4582_v11, %v4414_v25  ;;  %v10288_v51 = vadd.f32 %v4959_v55, %v10178_v0  ;;  %v4383_v8 = vpop.f32.mrf.mxu1  ;;  %v5241_v0 = vpack.c.bf16 %v5220_v53, %v5219_v60  ;;  %v5059_v55 = vpack.c.bf16 %v5039_v56, %v5038_v4  ;;  %v5221_v53 = vld [vmem:[#allocation2 + $0x101] ss:$2 sm:$0xff] }
 0x489   : > { %v4799_v32 = vpop.f32.mrf.mxu3  ;;  %v4415_v50 = vadd.f32 %v4383_v8, %v10156_v62  ;;  %v5427_v62 = vpack.c.bf16 %v5409_v54, %v5408_v9  ;;  %v5041_v54 = vld [vmem:[#allocation2 + $0x130] ss:$2 sm:$0xff] }
 0x48a   : > { %7852 = vmatmul.msk.bf16.gmra.mxu0 %vm2394_vm4, %v4881_v59  ;;  %v10299_v1 = vadd.f32 %v10224_v58, %v4616_v26  ;;  %v5412_v26 = vld [vmem:[#allocation2 + $0x172] ss:$2 sm:$0xff]  ;;  %v5410_v59 = vld [vmem:[#allocation2 + $0x162] ss:$2 sm:$0xff] }
 0x48b   : > { %7870 = vmatmul.msk.bf16.gmra.mxu1 %vm2394_vm4, %v5058_v14 }
 0x48c   : > { %7894 = vmatmul.msk.bf16.gmra.mxu2 %vm2394_vm4, %v5241_v0  ;;  %v5224_v0 = vld [vmem:[#allocation2 + $0x131] ss:$2 sm:$0xff] }
 0x48d   : > { %7921 = vmatmul.msk.bf16.gmra.mxu3 %vm2394_vm4, %v5427_v62  ;;  %v5243_v56 = vpack.c.bf16 %v5224_v0, %v5223_v36  ;;  %v5004_v36 = vadd.f32 %v10234_v45, %v10119_v15  ;;  %v8337_v15 = vld [vmem:[%s10911_s5 + $0x98] sm:$0xff] }
 0x48e   : > { %6298 = vmatpush.bf16.msra.mxu0 %v8337_v15 }
 0x48f   : > { %v4585_v27 = vpop.f32.mrf.mxu2  ;;  %v10307_v16 = vpop.f32.mrf.mxu0 }
 0x490   : > { %v4617_v46 = vadd.f32 %v4585_v27, %v4415_v50  ;;  %v4385_v58 = vpop.f32.mrf.mxu1  ;;  %v5040_v27 = vld [vmem:[#allocation2 + $0x120] ss:$2 sm:$0xff] }
 0x491   : > { %v10309_v43 = vpop.f32.mrf.mxu3  ;;  %v4416_v41 = vadd.f32 %v4385_v58, %v10169_v33 }
 0x492   : > { %v10316_v35 = vadd.f32 %v10236_v48, %v4617_v46  ;;  %v5242_v48 = vpack.c.bf16 %v5222_v30, %v5221_v53  ;;  %v5226_v53 = vld [vmem:[#allocation2 + $0x151] ss:$2 sm:$0xff] }
 0x497   : > { %v4587_v34 = vpop.f32.mrf.mxu2  ;;  %v4964_v18 = vpop.f32.mrf.mxu0 }
 0x498   : > { %v4618_v42 = vadd.f32 %v4587_v34, %v4416_v41  ;;  %v10319_v25 = vadd.f32 %v4964_v18, %v10200_v61  ;;  %v4388_v23 = vpop.f32.mrf.mxu1  ;;  %v5428_v61 = vpack.c.bf16 %v5412_v26, %v5410_v59  ;;  %v5060_v41 = vpack.c.bf16 %v5041_v54, %v5040_v27  ;;  %v5414_v34 = vld [vmem:[#allocation2 + $0x182] ss:$2 sm:$0xff] }
 0x499   : > { %v10321_v11 = vpop.f32.mrf.mxu3  ;;  %v4417_v33 = vadd.f32 %v4388_v23, %v10181_v19  ;;  %v5042_v59 = vld [vmem:[#allocation2 + $0x140] ss:$2 sm:$0xff]  ;;  %v8320_v27 = vld [vmem:[%s10911_s5 + $0x10] sm:$0xff] }
 0x49a   : > { %v10325_v8 = vadd.f32 %v10248_v22, %v4618_v42  ;;  %5873 = vmatpush.bf16.msra.mxu1 %v8320_v27 }
 0x49b   : > { %7871 = vmatmul.msk.bf16.gmra.mxu1 %vm2394_vm4, %v5059_v55 }
 0x49c   : > { %7895 = vmatmul.msk.bf16.gmra.mxu2 %vm2394_vm4, %v5242_v48 }
 0x49d   : > { %7922 = vmatmul.msk.bf16.gmra.mxu3 %vm2394_vm4, %v5428_v61 }
 0x49f   : > { %v4590_v49 = vpop.f32.mrf.mxu2  ;;  %v10330_v60 = vpop.f32.mrf.mxu0 }
 0x4a0   : > { %v4619_v32 = vadd.f32 %v4590_v49, %v4417_v33  ;;  %v4390_v19 = vpop.f32.mrf.mxu1 }
 0x4a1   : > { %v10332_v50 = vpop.f32.mrf.mxu3  ;;  %v4418_v14 = vadd.f32 %v4390_v19, %v10194_v38  ;;  %v5416_v38 = vld [vmem:[#allocation2 + $0x192] ss:$2 sm:$0xff]  ;;  %v5418_v19 = vld [vmem:[#allocation2 + $0x1a2] ss:$2 sm:$0x1] }
 0x4a2   : > { %v10336_v22 = vadd.f32 %v10260_v39, %v4619_v32  ;;  %v5225_v32 = vld [vmem:[#allocation2 + $0x141] ss:$2 sm:$0xff] }
 0x4a7   : > { %v4592_v47 = vpop.f32.mrf.mxu2  ;;  %v4969_v63 = vpop.f32.mrf.mxu0 }
 0x4a8   : > { %v4620_v9 = vadd.f32 %v4592_v47, %v4418_v14  ;;  %v10339_v62 = vadd.f32 %v4969_v63, %v10219_v44  ;;  %v4393_v57 = vpop.f32.mrf.mxu1  ;;  %v5429_v44 = vpack.c.bf16 %v5416_v38, %v5414_v34  ;;  %v5244_v14 = vpack.c.bf16 %v5226_v53, %v5225_v32  ;;  %v10371_v63 = vld [vmem:[%s10910_s4] ss:$0 sm:$0xff] }
 0x4a9   : > { %v10341_v46 = vpop.f32.mrf.mxu3  ;;  %v4419_v58 = vadd.f32 %v4393_v57, %v10203_v40  ;;  %v8328_v57 = vld [vmem:[%s10911_s5 + $0x50] sm:$0xff] }
 0x4aa   : > { %v10345_v39 = vadd.f32 %v10269_v10, %v4620_v9  ;;  %v5043_v10 = vld [vmem:[#allocation2 + $0x150] ss:$2 sm:$0xff]  ;;  %6007 = vmatpush.bf16.msra.mxu2 %v8328_v57  ;;  %v5006_v57 = vadd.f32 %v10258_v17, %v10141_v13  ;;  %v8319_v13 = vld [vmem:[%s10911_s5 + $0x8] sm:$0xff] }
 0x4ab   : > { %7872 = vmatmul.msk.bf16.gmra.mxu1 %vm2394_vm4, %v5060_v41  ;;  %v5061_v49 = vpack.c.bf16 %v5043_v10, %v5042_v59  ;;  %v8327_v17 = vld [vmem:[%s10911_s5 + $0x48] sm:$0xff] }
 0x4ac   : > { %7896 = vmatmul.msk.bf16.gmra.mxu2 %vm2394_vm4, %v5243_v56  ;;  %5874 = vmatpush.bf16.msra.mxu1 %v8319_v13 }
 0x4ad   : > { %7923 = vmatmul.msk.bf16.gmra.mxu3 %vm2394_vm4, %v5429_v44  ;;  %v5046_v44 = vld [vmem:[#allocation2 + $0x170] ss:$2 sm:$0xff] }
 0x4ae   : > { %6008 = vmatpush.bf16.msra.mxu2 %v8327_v17 }
 0x4af   : > { %v4595_v18 = vpop.f32.mrf.mxu2  ;;  %v10350_v30 = vpop.f32.mrf.mxu0 }
 0x4b0   : > { %v4621_v42 = vadd.f32 %v4595_v18, %v4419_v58  ;;  %v4395_v40 = vpop.f32.mrf.mxu1 }
 0x4b1   : > { %v10352_v23 = vpop.f32.mrf.mxu3  ;;  %v5229_v40 = vld [vmem:[#allocation2 + $0x171] ss:$2 sm:$0xff] }
 0x4b2   : > { %v10355_v4 = vadd.f32 %v10281_v37, %v4621_v42  ;;  %v5430_v37 = vpack.c.bf16 %v5418_v19, %v5418_v19 }
 0x4b7   : > { %v4597_v33 = vpop.f32.mrf.mxu2  ;;  %v4974_v55 = vpop.f32.mrf.mxu0 }
 0x4b8   : > { %v10358_v26 = vadd.f32 %v4974_v55, %v10243_v52  ;;  %v5127_v48 = vpop.f32.mrf.mxu1  ;;  %v5044_v55 = vld [vmem:[#allocation2 + $0x160] ss:$2 sm:$0xff] }
 0x4b9   : > { %v10360_v61 = vpop.f32.mrf.mxu3  ;;  %v5186_v54 = vadd.f32 %v5127_v48, %v10222_v29  ;;  %v8332_v29 = vld [vmem:[%s10911_s5 + $0x70] sm:$0xff]  ;;  %v5062_v53 = vpack.c.bf16 %v5046_v44, %v5044_v55  ;;  %v5227_v48 = vld [vmem:[#allocation2 + $0x161] ss:$2 sm:$0xff] }
 0x4ba   : > { %6153 = vmatpush.bf16.msrb.mxu3 %v8332_v29 }
 0x4bb   : > { %7873 = vmatmul.msk.bf16.gmra.mxu1 %vm2394_vm4, %v5061_v49  ;;  %v5245_v49 = vpack.c.bf16 %v5229_v40, %v5227_v48  ;;  %v8326_v48 = vld [vmem:[%s10911_s5 + $0x40] sm:$0xff] }
 0x4bc   : > { %7897 = vmatmul.msk.bf16.gmra.mxu2 %vm2394_vm4, %v5244_v14  ;;  %v8331_v14 = vld [vmem:[%s10911_s5 + $0x68] sm:$0xff] }
 0x4bd   : > { %7924 = vmatmul.msk.bf16.gmra.mxu3 %vm2394_vm4, %v5430_v37  ;;  %6009 = vmatpush.bf16.msra.mxu2 %v8326_v48 }
 0x4be   : > { %6154 = vmatpush.bf16.msrb.mxu3 %v8331_v14 }
 0x4bf   : > { %v10366_v47 = vpop.f32.mrf.mxu0  ;;  %v5310_v52 = vpop.f32.mrf.mxu2 }
 0x4c0   : > { %v5369_v0 = vadd.f32 %v5310_v52, %v5186_v54  ;;  %v5129_v9 = vpop.f32.mrf.mxu1 }
 0x4c1   : > { %v10382_v58 = vpop.f32.mrf.mxu3  ;;  %v5187_v34 = vadd.f32 %v5129_v9, %v5004_v36  ;;  %v5050_v36 = vld [vmem:[#allocation2 + $0x190] ss:$2 sm:$0xff] }
 0x4c2   : > { %v5552_v41 = vadd.f32 %v10309_v43, %v5369_v0 }
 0x4c4   : > { %v5579_v38 = vadd.f32 %v10371_v63, %v5552_v41 }
 0x4c6   : > { %v5602_v56 = vmax.f32 %v5579_v38, 0.0 }
 0x4c7   : > { %v4979_v18 = vpop.f32.mrf.mxu0  ;;  %v5312_v42 = vpop.f32.mrf.mxu2 }
 0x4c8   : > { %5625 = vst.msk [vmem:[#allocation3] sm:$0xff] %vm726_vm1, %v5602_v56  ;;  %v10390_v10 = vadd.f32 %v4979_v18, %v10264_v24  ;;  %v5370_v43 = vadd.f32 %v5312_v42, %v5187_v34  ;;  %v5132_v33 = vpop.f32.mrf.mxu1  ;;  %v5233_v34 = vld [vmem:[#allocation2 + $0x191] ss:$2 sm:$0xff]  ;;  %v5048_v42 = vld [vmem:[#allocation2 + $0x180] ss:$2 sm:$0xff] }
 0x4c9   : > { %v10395_v45 = vpop.f32.mrf.mxu3  ;;  %v5188_v19 = vadd.f32 %v5132_v33, %v10246_v31  ;;  %v8330_v31 = vld [vmem:[%s10911_s5 + $0x60] sm:$0xff] }
 0x4ca   : > { %v5553_v59 = vadd.f32 %v10321_v11, %v5370_v43  ;;  %6155 = vmatpush.bf16.msrb.mxu3 %v8330_v31  ;;  %v5063_v43 = vpack.c.bf16 %v5050_v36, %v5048_v42  ;;  %v5231_v33 = vld [vmem:[#allocation2 + $0x181] ss:$2 sm:$0xff] }
 0x4cb   : > { %7874 = vmatmul.msk.bf16.gmra.mxu1 %vm2394_vm4, %v5062_v53  ;;  %v5246_v15 = vpack.c.bf16 %v5233_v34, %v5231_v33  ;;  %v8318_v53 = vld [vmem:[%s10911_s5] sm:$0xff] }
 0x4cc   : > { %v5580_v24 = vadd.f32 %v10371_v63, %v5553_v59  ;;  %7898 = vmatmul.msk.bf16.gmra.mxu2 %vm2394_vm4, %v5245_v49  ;;  %5875 = vmatpush.bf16.msra.mxu1 %v8318_v53 }
 0x4ce   : > { %v5603_v32 = vmax.f32 %v5580_v24, 0.0 }
 0x4cf   : > { %v10405_v37 = vpop.f32.mrf.mxu0  ;;  %v5315_v54 = vpop.f32.mrf.mxu2 }
 0x4d0   : > { %5626 = vst.msk [vmem:[#allocation3 + $0x8] sm:$0xff] %vm726_vm1, %v5603_v32  ;;  %v5371_v11 = vadd.f32 %v5315_v54, %v5188_v19  ;;  %v5134_v52 = vpop.f32.mrf.mxu1 }
 0x4d1   : > { %v10408_v0 = vpop.f32.mrf.mxu3  ;;  %v5189_v41 = vadd.f32 %v5134_v52, %v5006_v57 }
 0x4d2   : > { %v5554_v9 = vadd.f32 %v10332_v50, %v5371_v11 }
 0x4d4   : > { %v5581_v29 = vadd.f32 %v10371_v63, %v5554_v9 }
 0x4d6   : > { %v5604_v27 = vmax.f32 %v5581_v29, 0.0 }
 0x4d7   : > { %v4984_v38 = vpop.f32.mrf.mxu0  ;;  %v5317_v56 = vpop.f32.mrf.mxu2  ;;  %v5683_v32 = vld [vmem:[#allocation3 + $0x1] sm:$0xff] }
 0x4d8   : > { %5627 = vst.msk [vmem:[#allocation3 + $0x10] sm:$0xff] %vm726_vm1, %v5604_v27  ;;  %v10419_v50 = vadd.f32 %v4984_v38, %v10285_v21  ;;  %v5372_v44 = vadd.f32 %v5317_v56, %v5189_v41  ;;  %v5137_v18 = vpop.f32.mrf.mxu1  ;;  %v5052_v27 = vld [vmem:[#allocation2 + $0x1a0] ss:$2 sm:$0x1] }
 0x4d9   : > { %v10427_v40 = vpop.f32.mrf.mxu3  ;;  %v5235_v38 = vld [vmem:[#allocation2 + $0x1a1] ss:$2 sm:$0x1] }
 0x4da   : > { %v5555_v55 = vadd.f32 %v10341_v46, %v5372_v44  ;;  %v5190_v46 = vadd.f32 %v5137_v18, %v10267_v2  ;;  %v5008_v2 = vadd.f32 %v10279_v7, %v10163_v3  ;;  %v8336_v44 = vld [vmem:[%s10911_s5 + $0x90] sm:$0xff]  ;;  %v5064_v7 = vpack.c.bf16 %v5052_v27, %v5052_v27  ;;  %v5649_v27 = vld [vmem:[#allocation3] sm:$0xff] }
 0x4db   : > { %7875 = vmatmul.msk.bf16.gmra.mxu1 %vm2394_vm4, %v5063_v43  ;;  %v5247_v42 = vpack.c.bf16 %v5235_v38, %v5235_v38  ;;  %6299 = vmatpush.bf16.msra.mxu0 %v8336_v44 }
 0x4dc   : > { %v5582_v21 = vadd.f32 %v10371_v63, %v5555_v55  ;;  %7899 = vmatmul.msk.bf16.gmra.mxu2 %vm2394_vm4, %v5246_v15 }
 0x4de   : > { %v5605_v59 = vmax.f32 %v5582_v21, 0.0 }
 0x4df   : > { %v10440_v49 = vpop.f32.mrf.mxu0  ;;  %v5320_v24 = vpop.f32.mrf.mxu2  ;;  %v5684_v19 = vld [vmem:[#allocation3 + $0x9] sm:$0xff] }
 0x4e0   : > { %5628 = vst.msk [vmem:[#allocation3 + $0x18] sm:$0xff] %vm726_vm1, %v5605_v59  ;;  %v5373_v14 = vadd.f32 %v5320_v24, %v5190_v46  ;;  %v5139_v54 = vpop.f32.mrf.mxu1  ;;  %v5700_v11 = vpack.c.bf16 %v5684_v19, %v5683_v32 }
 0x4e1   : > { %v10443_v52 = vpop.f32.mrf.mxu3  ;;  %v5191_v29 = vadd.f32 %v5139_v54, %v5008_v2 }
 0x4e2   : > { %v5556_v9 = vadd.f32 %v10352_v23, %v5373_v14  ;;  %7949 = vmatmul.msk.bf16.vlgmr.msrb.gmra.mxu0 %vm726_vm1, %v5700_v11  ;;  %v5650_v11 = vld [vmem:[#allocation3 + $0x8] sm:$0xff] }
 0x4e4   : > { %v5583_v31 = vadd.f32 %v10371_v63, %v5556_v9 }
 0x4e6   : > { %v5606_v57 = vmax.f32 %v5583_v31, 0.0  ;;  %v5917_v31 = vld [vmem:[#allocation3 + $0xa] sm:$0xff] }
 0x4e7   : > { %v4989_v41 = vpop.f32.mrf.mxu0  ;;  %v5322_v36 = vpop.f32.mrf.mxu2  ;;  %v5685_v43 = vld [vmem:[#allocation3 + $0x11] sm:$0xff] }
 0x4e8   : > { %5629 = vst.msk [vmem:[#allocation3 + $0x20] sm:$0xff] %vm726_vm1, %v5606_v57  ;;  %v10452_v56 = vadd.f32 %v4989_v41, %v10316_v35  ;;  %v5374_v34 = vadd.f32 %v5322_v36, %v5191_v29  ;;  %v5142_v23 = vpop.f32.mrf.mxu1  ;;  %v6062_v21 = vld [vmem:[#allocation3 + $0x15] sm:$0xff]  ;;  %v5666_v36 = vpack.c.bf16 %v5650_v11, %v5649_v27 }
 0x4e9   : > { %v10457_v3 = vpop.f32.mrf.mxu3  ;;  %v5192_v17 = vadd.f32 %v5142_v23, %v10288_v51  ;;  %v5010_v51 = vadd.f32 %v10307_v16, %v10188_v28  ;;  %v5916_v28 = vld [vmem:[#allocation3 + $0x2] sm:$0xff] }
 0x4ea   : > { %v5557_v18 = vadd.f32 %v10360_v61, %v5374_v34  ;;  %v5933_v38 = vpack.c.bf16 %v5917_v31, %v5916_v28 }
 0x4eb   : > { %7876 = vmatmul.msk.bf16.gmra.mxu1 %vm2394_vm4, %v5064_v7 }
 0x4ec   : > { %v5584_v13 = vadd.f32 %v10371_v63, %v5557_v18  ;;  %7900 = vmatmul.msk.bf16.gmra.mxu2 %vm2394_vm4, %v5247_v42  ;;  %vm7011_vm4 = vmand %vm6992_vm15, %vm7010_vm2  ;;  %vm7074_vm2 = vsmask.f32 256 }
 0x4ee   : > { %v5607_v35 = vmax.f32 %v5584_v13, 0.0 }
 0x4ef   : > { %v10464_v33 = vpop.f32.mrf.mxu0  ;;  %v5325_v55 = vpop.f32.mrf.mxu2  ;;  %v5686_v15 = vld [vmem:[#allocation3 + $0x19] sm:$0xff] }
 0x4f0   : > { %v6063_v53 = vld [vmem:[#allocation3 + $0x1d] sm:$0xff]  ;;  %5630 = vst.msk [vmem:[#allocation3 + $0x28] sm:$0xff] %vm726_vm1, %v5607_v35  ;;  %v5375_v61 = vadd.f32 %v5325_v55, %v5192_v17  ;;  %v5144_v48 = vpop.f32.mrf.mxu1  ;;  %v5701_v59 = vpack.c.bf16 %v5686_v15, %v5685_v43 }
 0x4f1   : > { %v6079_v46 = vpack.c.bf16 %v6063_v53, %v6062_v21  ;;  %v10467_v24 = vpop.f32.mrf.mxu3  ;;  %v5193_v54 = vadd.f32 %v5144_v48, %v5010_v51  ;;  %v5919_v51 = vld [vmem:[#allocation3 + $0x1a] sm:$0xff] }
 0x4f2   : > { %v5558_v32 = vadd.f32 %v10382_v58, %v5375_v61  ;;  %7950 = vmatmul.msk.bf16.gmra.mxu0 %vm726_vm1, %v5701_v59  ;;  %v5652_v59 = vld [vmem:[#allocation3 + $0x18] sm:$0xff] }
 0x4f3   : > { %8040 = vmatmul.msk.bf16.vlgmr.msrb.gmra.mxu3 %vm726_vm1, %v6079_v46 }
 0x4f4   : > { %v5585_v19 = vadd.f32 %v10371_v63, %v5558_v32 }
 0x4f6   : > { %v5608_v14 = vmax.f32 %v5585_v19, 0.0 }
 0x4f7   : > { %v4994_v9 = vpop.f32.mrf.mxu0  ;;  %v5327_v2 = vpop.f32.mrf.mxu2  ;;  %v5687_v44 = vld [vmem:[#allocation3 + $0x21] sm:$0xff] }
 0x4f8   : > { %5631 = vst.msk [vmem:[#allocation3 + $0x30] sm:$0xff] %vm726_vm1, %v5608_v14  ;;  %v10477_v57 = vadd.f32 %v4994_v9, %v10336_v22  ;;  %v5376_v58 = vadd.f32 %v5327_v2, %v5193_v54  ;;  %v5147_v29 = vpop.f32.mrf.mxu1  ;;  %v6064_v13 = vld [vmem:[#allocation3 + $0x25] sm:$0xff]  ;;  %v5651_v54 = vld [vmem:[#allocation3 + $0x10] sm:$0xff] }
 0x4f9   : > { %v10479_v41 = vpop.f32.mrf.mxu3  ;;  %v5194_v22 = vadd.f32 %v5147_v29, %v10319_v25  ;;  %v5012_v25 = vadd.f32 %v10330_v60, %v10210_v20  ;;  %v5667_v60 = vpack.c.bf16 %v5652_v59, %v5651_v54  ;;  %v5918_v2 = vld [vmem:[#allocation3 + $0x12] sm:$0xff] }
 0x4fa   : > { %v5559_v16 = vadd.f32 %v10395_v45, %v5376_v58  ;;  %v5934_v29 = vpack.c.bf16 %v5919_v51, %v5918_v2  ;;  %v5920_v51 = vld [vmem:[#allocation3 + $0x22] sm:$0xff] }
 0x4fb   : > { %7974 = vmatmul.msk.bf16.vlgmr.msra.gmra.mxu1 %vm726_vm1, %v5666_v36 }
 0x4fc   : > { %v5586_v34 = vadd.f32 %v10371_v63, %v5559_v16  ;;  %8007 = vmatmul.msk.bf16.vlgmr.msra.gmra.mxu2 %vm726_vm1, %v5933_v38 }
 0x4fe   : > { %v5609_v23 = vmax.f32 %v5586_v34, 0.0 }
 0x4ff   : > { %v10486_v7 = vpop.f32.mrf.mxu0  ;;  %v5330_v18 = vpop.f32.mrf.mxu2  ;;  %v5688_v42 = vld [vmem:[#allocation3 + $0x29] sm:$0xff] }
 0x500   : > { %v6065_v35 = vld [vmem:[#allocation3 + $0x2d] sm:$0xff]  ;;  %5632 = vst.msk [vmem:[#allocation3 + $0x38] sm:$0xff] %vm726_vm1, %v5609_v23  ;;  %v5377_v45 = vadd.f32 %v5330_v18, %v5194_v22  ;;  %v5149_v17 = vpop.f32.mrf.mxu1  ;;  %v5702_v43 = vpack.c.bf16 %v5688_v42, %v5687_v44 }
 0x501   : > { %v6080_v55 = vpack.c.bf16 %v6065_v35, %v6064_v13  ;;  %v10489_v15 = vpop.f32.mrf.mxu3  ;;  %v5195_v48 = vadd.f32 %v5149_v17, %v5012_v25  ;;  %v10501_v11 = vld [vmem:[#allocation3 + $0x2a] sm:$0xff]  ;;  %v8335_v13 = vld [vmem:[%s10911_s5 + $0x88] sm:$0xff] }
 0x502   : > { %v5560_v21 = vadd.f32 %v10408_v0, %v5377_v45  ;;  %7951 = vmatmul.msk.bf16.gmra.mxu0 %vm726_vm1, %v5702_v43  ;;  %v5014_v45 = vadd.f32 %v10350_v30, %v10229_v12 }
 0x503   : > { %8041 = vmatmul.msk.bf16.gmra.mxu3 %vm726_vm1, %v6080_v55  ;;  %6300 = vmatpush.bf16.msra.mxu0 %v8335_v13 }
 0x504   : > { %v5587_v53 = vadd.f32 %v10371_v63, %v5560_v21  ;;  %v5654_v21 = vld [vmem:[#allocation3 + $0x28] sm:$0xff] }
 0x506   : > { %v5610_v61 = vmax.f32 %v5587_v53, 0.0 }
 0x507   : > { %v4999_v46 = vpop.f32.mrf.mxu0  ;;  %v5332_v32 = vpop.f32.mrf.mxu2  ;;  %v10503_v9 = vld [vmem:[#allocation3 + $0x32] sm:$0xff] }
 0x508   : > { %5633 = vst.msk [vmem:[#allocation3 + $0x40] sm:$0xff] %vm726_vm1, %v5610_v61  ;;  %v10499_v19 = vadd.f32 %v4999_v46, %v10355_v4  ;;  %v5378_v0 = vadd.f32 %v5332_v32, %v5195_v48  ;;  %v5152_v14 = vpop.f32.mrf.mxu1  ;;  %v6517_v31 = vpack.c.bf16 %v10503_v9, %v10501_v11  ;;  %v5689_v28 = vld [vmem:[#allocation3 + $0x31] sm:$0xff]  ;;  %v5653_v48 = vld [vmem:[#allocation3 + $0x20] sm:$0xff] }
 0x509   : > { %v10505_v20 = vpop.f32.mrf.mxu3  ;;  %v5196_v36 = vadd.f32 %v5152_v14, %v10339_v62  ;;  %v6066_v23 = vld [vmem:[#allocation3 + $0x35] sm:$0xff]  ;;  %v5668_v32 = vpack.c.bf16 %v5654_v21, %v5653_v48 }
 0x50a   : > { %v5561_v58 = vadd.f32 %v10427_v40, %v5378_v0  ;;  %v5935_v0 = vpack.c.bf16 %v10501_v11, %v5920_v51 }
 0x50b   : > { %7975 = vmatmul.msk.bf16.gmra.mxu1 %vm726_vm1, %v5667_v60 }
 0x50c   : > { %v5588_v4 = vadd.f32 %v10371_v63, %v5561_v58  ;;  %8008 = vmatmul.msk.bf16.gmra.mxu2 %vm726_vm1, %v5934_v29 }
 0x50e   : > { %v5611_v27 = vmax.f32 %v5588_v4, 0.0 }
 0x50f   : > { %v5001_v16 = vpop.f32.mrf.mxu0  ;;  %v5335_v38 = vpop.f32.mrf.mxu2  ;;  %v5690_v34 = vld [vmem:[#allocation3 + $0x39] sm:$0xff] }
 0x510   : > { %v6067_v22 = vld [vmem:[#allocation3 + $0x3d] sm:$0xff]  ;;  %5634 = vst.msk [vmem:[#allocation3 + $0x48] sm:$0xff] %vm726_vm1, %v5611_v27  ;;  %v5379_v44 = vadd.f32 %v5335_v38, %v5196_v36  ;;  %v5154_v40 = vpop.f32.mrf.mxu1  ;;  %v5703_v18 = vpack.c.bf16 %v5690_v34, %v5689_v28 }
 0x511   : > { %v6081_v42 = vpack.c.bf16 %v6067_v22, %v6066_v23  ;;  %v10518_v35 = vpop.f32.mrf.mxu3  ;;  %v5197_v55 = vadd.f32 %v5154_v40, %v5014_v45  ;;  %v5656_v40 = vld [vmem:[#allocation3 + $0x38] sm:$0xff] }
 0x512   : > { %v5562_v62 = vadd.f32 %v10443_v52, %v5379_v44  ;;  %7952 = vmatmul.msk.bf16.gmra.mxu0 %vm726_vm1, %v5703_v18  ;;  %v10527_v52 = vld [vmem:[#allocation3 + $0x3a] sm:$0xff] }
 0x513   : > { %8042 = vmatmul.msk.bf16.gmra.mxu3 %vm726_vm1, %v6081_v42 }
 0x514   : > { %v5589_v17 = vadd.f32 %v10371_v63, %v5562_v62  ;;  %v5655_v62 = vld [vmem:[#allocation3 + $0x30] sm:$0xff] }
 0x516   : > { %v5612_v43 = vmax.f32 %v5589_v17, 0.0 }
 0x517   : > { %v5337_v25 = vpop.f32.mrf.mxu2  ;;  %v10529_v59 = vld [vmem:[#allocation3 + $0x42] sm:$0xff] }
 0x518   : > { %5635 = vst.msk [vmem:[#allocation3 + $0x50] sm:$0xff] %vm726_vm1, %v5612_v43  ;;  %v5380_v53 = vadd.f32 %v5337_v25, %v5197_v55  ;;  %v5157_v61 = vpop.f32.mrf.mxu1  ;;  %v6518_v12 = vpack.c.bf16 %v10529_v59, %v10527_v52  ;;  %v5691_v2 = vld [vmem:[#allocation3 + $0x41] sm:$0xff]  ;;  %v5669_v43 = vpack.c.bf16 %v5656_v40, %v5655_v62  ;;  %v5936_v55 = vpack.c.bf16 %v10527_v52, %v10503_v9  ;;  %v6357_v9 = vld [vmem:[#allocation3 + $0x2f] sm:$0xff] }
 0x519   : > { %v10531_v46 = vpop.f32.mrf.mxu3  ;;  %v5198_v60 = vadd.f32 %v5157_v61, %v10358_v26  ;;  %v6068_v4 = vld [vmem:[#allocation3 + $0x45] sm:$0xff]  ;;  %v5016_v26 = vadd.f32 %v10366_v47, %v10253_v6 }
 0x51a   : > { %v5563_v30 = vadd.f32 %v10457_v3, %v5380_v53 }
 0x51b   : > { %7976 = vmatmul.msk.bf16.gmra.mxu1 %vm726_vm1, %v5668_v32 }
 0x51c   : > { %v5590_v14 = vadd.f32 %v10371_v63, %v5563_v30  ;;  %8009 = vmatmul.msk.bf16.gmra.mxu2 %vm726_vm1, %v5935_v0 }
 0x51e   : > { %v5613_v54 = vmax.f32 %v5590_v14, 0.0 }
 0x51f   : > { %v5340_v58 = vpop.f32.mrf.mxu2  ;;  %v5692_v29 = vld [vmem:[#allocation3 + $0x49] sm:$0xff] }
 0x520   : > { %v6069_v27 = vld [vmem:[#allocation3 + $0x4d] sm:$0xff]  ;;  %5636 = vst.msk [vmem:[#allocation3 + $0x58] sm:$0xff] %vm726_vm1, %v5613_v54  ;;  %v5381_v36 = vadd.f32 %v5340_v58, %v5198_v60  ;;  %v5159_v3 = vpop.f32.mrf.mxu1  ;;  %v5704_v28 = vpack.c.bf16 %v5692_v29, %v5691_v2  ;;  %v8334_v60 = vld [vmem:[%s10911_s5 + $0x80] sm:$0xff] }
 0x521   : > { %v6082_v16 = vpack.c.bf16 %v6069_v27, %v6068_v4  ;;  %v10542_v38 = vpop.f32.mrf.mxu3  ;;  %v5199_v44 = vadd.f32 %v5159_v3, %v5016_v26  ;;  %v10551_v45 = vld [vmem:[#allocation3 + $0x4a] sm:$0xff]  ;;  %6301 = vmatpush.bf16.msra.mxu0 %v8334_v60 }
 0x522   : > { %v5564_v34 = vadd.f32 %v10467_v24, %v5381_v36  ;;  %7953 = vmatmul.msk.bf16.gmra.mxu0 %vm726_vm1, %v5704_v28  ;;  %v5658_v36 = vld [vmem:[#allocation3 + $0x48] sm:$0xff]  ;;  %v5659_v60 = vld [vmem:[#allocation3 + $0x50] sm:$0xff] }
 0x523   : > { %8043 = vmatmul.msk.bf16.gmra.mxu3 %vm726_vm1, %v6082_v16 }
 0x524   : > { %v5591_v23 = vadd.f32 %v10371_v63, %v5564_v34  ;;  %v5657_v34 = vld [vmem:[#allocation3 + $0x40] sm:$0xff] }
 0x526   : > { %v5614_v22 = vmax.f32 %v5591_v23, 0.0 }
 0x527   : > { %v5342_v18 = vpop.f32.mrf.mxu2  ;;  %v10553_v24 = vld [vmem:[#allocation3 + $0x52] sm:$0xff] }
 0x528   : > { %5637 = vst.msk [vmem:[#allocation3 + $0x60] sm:$0xff] %vm726_vm1, %v5614_v22  ;;  %v5382_v42 = vadd.f32 %v5342_v18, %v5199_v44  ;;  %v5162_v13 = vpop.f32.mrf.mxu1  ;;  %v6519_v6 = vpack.c.bf16 %v10553_v24, %v10551_v45  ;;  %v5693_v61 = vld [vmem:[#allocation3 + $0x51] sm:$0xff]  ;;  %v5670_v22 = vpack.c.bf16 %v5658_v36, %v5657_v34  ;;  %v5937_v44 = vpack.c.bf16 %v10551_v45, %v10529_v59 }
 0x529   : > { %v10555_v17 = vpop.f32.mrf.mxu3  ;;  %v5200_v53 = vadd.f32 %v5162_v13, %v10390_v10  ;;  %v6070_v51 = vld [vmem:[#allocation3 + $0x55] sm:$0xff]  ;;  %v5018_v10 = vadd.f32 %v10405_v37, %v10274_v5 }
 0x52a   : > { %v5565_v47 = vadd.f32 %v10479_v41, %v5382_v42 }
 0x52b   : > { %7977 = vmatmul.msk.bf16.gmra.mxu1 %vm726_vm1, %v5669_v43 }
 0x52c   : > { %v5592_v21 = vadd.f32 %v10371_v63, %v5565_v47  ;;  %8010 = vmatmul.msk.bf16.gmra.mxu2 %vm726_vm1, %v5936_v55 }
 0x52e   : > { %v5615_v25 = vmax.f32 %v5592_v21, 0.0 }
 0x52f   : > { %v5345_v48 = vpop.f32.mrf.mxu2  ;;  %v5694_v32 = vld [vmem:[#allocation3 + $0x59] sm:$0xff] }
 0x530   : > { %v6071_v30 = vld [vmem:[#allocation3 + $0x5d] sm:$0xff]  ;;  %5638 = vst.msk [vmem:[#allocation3 + $0x68] sm:$0xff] %vm726_vm1, %v5615_v25  ;;  %v5383_v41 = vadd.f32 %v5345_v48, %v5200_v53  ;;  %v5164_v0 = vpop.f32.mrf.mxu1  ;;  %v5705_v14 = vpack.c.bf16 %v5694_v32, %v5693_v61 }
 0x531   : > { %v6083_v54 = vpack.c.bf16 %v6071_v30, %v6070_v51  ;;  %v10570_v2 = vpop.f32.mrf.mxu3  ;;  %v5201_v27 = vadd.f32 %v5164_v0, %v5018_v10 }
 0x532   : > { %v5566_v58 = vadd.f32 %v10489_v15, %v5383_v41  ;;  %7954 = vmatmul.msk.bf16.gmra.mxu0 %vm726_vm1, %v5705_v14  ;;  %v10579_v15 = vld [vmem:[#allocation3 + $0x5a] sm:$0xff] }
 0x533   : > { %8044 = vmatmul.msk.bf16.gmra.mxu3 %vm726_vm1, %v6083_v54  ;;  %v5660_v41 = vld [vmem:[#allocation3 + $0x58] sm:$0xff] }
 0x534   : > { %v5593_v29 = vadd.f32 %v10371_v63, %v5566_v58 }
 0x536   : > { %v5616_v4 = vmax.f32 %v5593_v29, 0.0  ;;  %v5671_v29 = vpack.c.bf16 %v5660_v41, %v5659_v60 }
 0x537   : > { %v5347_v3 = vpop.f32.mrf.mxu2  ;;  %v10581_v26 = vld [vmem:[#allocation3 + $0x62] sm:$0xff] }
 0x538   : > { %5639 = vst.msk [vmem:[#allocation3 + $0x70] sm:$0xff] %vm726_vm1, %v5616_v4  ;;  %v5384_v28 = vadd.f32 %v5347_v3, %v5201_v27  ;;  %v5167_v16 = vpop.f32.mrf.mxu1  ;;  %v6520_v5 = vpack.c.bf16 %v10581_v26, %v10579_v15  ;;  %v5695_v13 = vld [vmem:[#allocation3 + $0x61] sm:$0xff]  ;;  %v5938_v4 = vpack.c.bf16 %v10579_v15, %v10553_v24  ;;  %v6361_v24 = vld [vmem:[#allocation3 + $0x4f] sm:$0xff] }
 0x539   : > { %v10583_v23 = vpop.f32.mrf.mxu3  ;;  %v5202_v42 = vadd.f32 %v5167_v16, %v10419_v50  ;;  %v6072_v47 = vld [vmem:[#allocation3 + $0x65] sm:$0xff]  ;;  %v5020_v50 = vadd.f32 %v10440_v49, %v10299_v1 }
 0x53a   : > { %v5567_v37 = vadd.f32 %v10505_v20, %v5384_v28 }
 0x53b   : > { %7978 = vmatmul.msk.bf16.gmra.mxu1 %vm726_vm1, %v5670_v22 }
 0x53c   : > { %v5594_v40 = vadd.f32 %v10371_v63, %v5567_v37  ;;  %8011 = vmatmul.msk.bf16.gmra.mxu2 %vm726_vm1, %v5937_v44 }
 0x53e   : > { %v5617_v18 = vmax.f32 %v5594_v40, 0.0 }
 0x53f   : > { %v5350_v62 = vpop.f32.mrf.mxu2  ;;  %v5696_v43 = vld [vmem:[#allocation3 + $0x69] sm:$0xff] }
 0x540   : > { %v6073_v55 = vld [vmem:[#allocation3 + $0x6d] sm:$0xff]  ;;  %5640 = vst.msk [vmem:[#allocation3 + $0x78] sm:$0xff] %vm726_vm1, %v5617_v18  ;;  %v5385_v20 = vadd.f32 %v5350_v62, %v5202_v42  ;;  %v5169_v21 = vpop.f32.mrf.mxu1  ;;  %v5706_v25 = vpack.c.bf16 %v5696_v43, %v5695_v13  ;;  %v5022_v43 = vadd.f32 %v10464_v33, %v10325_v8 }
 0x541   : > { %v6084_v53 = vpack.c.bf16 %v6073_v55, %v6072_v47  ;;  %v10595_v61 = vpop.f32.mrf.mxu3  ;;  %v5203_v30 = vadd.f32 %v5169_v21, %v5020_v50  ;;  %v10604_v58 = vld [vmem:[#allocation3 + $0x6a] sm:$0xff] }
 0x542   : > { %v5568_v48 = vadd.f32 %v10518_v35, %v5385_v20  ;;  %7955 = vmatmul.msk.bf16.gmra.mxu0 %vm726_vm1, %v5706_v25  ;;  %v8345_v42 = vld [vmem:[%s10911_s5 + $0xd8] sm:$0xff]  ;;  %v5662_v21 = vld [vmem:[#allocation3 + $0x68] sm:$0xff] }
 0x543   : > { %8045 = vmatmul.msk.bf16.gmra.mxu3 %vm726_vm1, %v6084_v53  ;;  %v8349_v13 = vld [vmem:[%s10911_s5 + $0xf8] sm:$0xff]  ;;  %6590 = vmatpush.bf16.msrb.mxu2 %v8345_v42  ;;  %v8348_v8 = vld [vmem:[%s10911_s5 + $0xf0] sm:$0xff] }
 0x544   : > { %v5595_v32 = vadd.f32 %v10371_v63, %v5568_v48  ;;  %6736 = vmatpush.bf16.msra.mxu3 %v8349_v13  ;;  %v5661_v48 = vld [vmem:[#allocation3 + $0x60] sm:$0xff]  ;;  %v8353_v50 = vld [vmem:[%s10911_s5 + $0x118] sm:$0xff] }
 0x545   : > { %v5672_v33 = vpack.c.bf16 %v5662_v21, %v5661_v48  ;;  %6882 = vmatpush.bf16.msrb.mxu0 %v8353_v50 }
 0x546   : > { %v5618_v51 = vmax.f32 %v5595_v32, 0.0 }
 0x547   : > { %v5352_v0 = vpop.f32.mrf.mxu2  ;;  %v10606_v35 = vld [vmem:[#allocation3 + $0x72] sm:$0xff] }
 0x548   : > { %5641 = vst.msk [vmem:[#allocation3 + $0x80] sm:$0xff] %vm726_vm1, %v5618_v51  ;;  %v5386_v14 = vadd.f32 %v5352_v0, %v5203_v30  ;;  %v5172_v54 = vpop.f32.mrf.mxu1  ;;  %v6521_v1 = vpack.c.bf16 %v10606_v35, %v10604_v58  ;;  %v5697_v28 = vld [vmem:[#allocation3 + $0x71] sm:$0xff]  ;;  %v5939_v51 = vpack.c.bf16 %v10604_v58, %v10581_v26  ;;  %6737 = vmatpush.bf16.msra.mxu3 %v8348_v8  ;;  %v8347_v30 = vld [vmem:[%s10911_s5 + $0xe8] sm:$0xff] }
 0x549   : > { %v5550_v10 = vpop.f32.mrf.mxu3  ;;  %v5204_v3 = vadd.f32 %v5172_v54, %v10452_v56  ;;  %v6074_v22 = vld [vmem:[#allocation3 + $0x75] sm:$0xff] }
 0x54a   : > { %v5569_v49 = vadd.f32 %v10531_v46, %v5386_v14  ;;  %v8341_v56 = vld [vmem:[%s10911_s5 + $0xb8] sm:$0xff] }
 0x54b   : > { %7979 = vmatmul.msk.bf16.gmra.mxu1 %vm726_vm1, %v5671_v29 }
 0x54c   : > { %v5596_v27 = vadd.f32 %v10371_v63, %v5569_v49  ;;  %8012 = vmatmul.msk.bf16.gmra.mxu2 %vm726_vm1, %v5938_v4  ;;  %6444 = vmatpush.bf16.msrb.mxu1 %v8341_v56  ;;  %v5663_v56 = vld [vmem:[#allocation3 + $0x70] sm:$0xff] }
 0x54d   : > { %6738 = vmatpush.bf16.msra.mxu3 %v8347_v30 }
 0x54e   : > { %v5619_v36 = vmax.f32 %v5596_v27, 0.0 }
 0x54f   : > { %v5355_v16 = vpop.f32.mrf.mxu2  ;;  %v5698_v34 = vld [vmem:[#allocation3 + $0x79] sm:$0xff]  ;;  %v5699_v0 = vld [vmem:[#allocation3 + $0x81] sm:$0x1f] }
 0x550   : > { %v6075_v37 = vld [vmem:[#allocation3 + $0x7d] sm:$0xff]  ;;  %5642 = vst.msk [vmem:[#allocation3 + $0x88] sm:$0xff] %vm726_vm1, %v5619_v36  ;;  %v5387_v46 = vadd.f32 %v5355_v16, %v5204_v3  ;;  %v5174_v44 = vpop.f32.mrf.mxu1  ;;  %v5707_v40 = vpack.c.bf16 %v5698_v34, %v5697_v28  ;;  %v5708_v27 = vpack.c.bf16 %v5699_v0, %v5699_v0  ;;  %v8344_v28 = vld [vmem:[%s10911_s5 + $0xd0] sm:$0xff]  ;;  %v5024_v34 = vadd.f32 %v10486_v7, %v10345_v39 }
 0x551   : > { %v6085_v18 = vpack.c.bf16 %v6075_v37, %v6074_v22  ;;  %v5205_v20 = vadd.f32 %v5174_v44, %v5022_v43  ;;  %v8346_v3 = vld [vmem:[%s10911_s5 + $0xe0] sm:$0xff]  ;;  %6591 = vmatpush.bf16.msrb.mxu2 %v8344_v28  ;;  %v8339_v37 = vld [vmem:[%s10911_s5 + $0xa8] sm:$0xff] }
 0x552   : > { %v5570_v62 = vadd.f32 %v10542_v38, %v5387_v46  ;;  %7956 = vmatmul.msk.bf16.gmra.mxu0 %vm726_vm1, %v5707_v40  ;;  %6739 = vmatpush.bf16.msra.mxu3 %v8346_v3  ;;  %v5664_v40 = vld [vmem:[#allocation3 + $0x78] sm:$0xff]  ;;  %v6211_v3 = vld [vmem:[#allocation3 + $0x2e] sm:$0xff] }
 0x553   : > { %8046 = vmatmul.msk.bf16.gmra.mxu3 %vm726_vm1, %v6085_v18  ;;  %v10674_v13 = vld [vmem:[#allocation3 + $0x7a] sm:$0xff] }
 0x554   : > { %v5597_v47 = vadd.f32 %v10371_v63, %v5570_v62  ;;  %v5673_v62 = vpack.c.bf16 %v5664_v40, %v5663_v56  ;;  %v8338_v43 = vld [vmem:[%s10911_s5 + $0xa0] sm:$0xff] }
 0x555   : > { %v6354_v56 = vld [vmem:[#allocation3 + $0x17] sm:$0xff] }
 0x556   : > { %v5620_v55 = vmax.f32 %v5597_v47, 0.0  ;;  %v8342_v47 = vld [vmem:[%s10911_s5 + $0xc0] sm:$0xff] }
 0x557   : > { %v5357_v25 = vpop.f32.mrf.mxu2  ;;  %v6076_v10 = vld [vmem:[#allocation3 + $0x85] sm:$0xff] }
 0x558   : > { %5643 = vst.msk [vmem:[#allocation3 + $0x90] sm:$0xff] %vm726_vm1, %v5620_v55  ;;  %v5388_v53 = vadd.f32 %v5357_v25, %v5205_v20  ;;  %v5177_v38 = vpop.f32.mrf.mxu1  ;;  %v5940_v20 = vpack.c.bf16 %v10674_v13, %v10606_v35  ;;  %v6365_v35 = vld [vmem:[#allocation3 + $0x6f] sm:$0xff] }
 0x559   : > { %v5206_v54 = vadd.f32 %v5177_v38, %v10477_v57  ;;  %v8340_v57 = vld [vmem:[%s10911_s5 + $0xb0] sm:$0xff] }
 0x55a   : > { %v5571_v32 = vadd.f32 %v10555_v17, %v5388_v53  ;;  %6445 = vmatpush.bf16.msrb.mxu1 %v8340_v57  ;;  %v6209_v53 = vld [vmem:[#allocation3 + $0x1e] sm:$0xff]  ;;  %v6647_v57 = vld [vmem:[#allocation3 + $0x33] sm:$0xff] }
 0x55b   : > { %7980 = vmatmul.msk.bf16.gmra.mxu1 %vm726_vm1, %v5672_v33  ;;  %v6208_v33 = vld [vmem:[#allocation3 + $0x16] sm:$0xff] }
 0x55c   : > { %v5598_v41 = vadd.f32 %v10371_v63, %v5571_v32  ;;  %8013 = vmatmul.msk.bf16.gmra.mxu2 %vm726_vm1, %v5939_v51  ;;  %v6225_v30 = vpack.c.bf16 %v6209_v53, %v6208_v33  ;;  %v6212_v53 = vld [vmem:[#allocation3 + $0x36] sm:$0xff] }
 0x55e   : > { %v5621_v14 = vmax.f32 %v5598_v41, 0.0  ;;  %6446 = vmatpush.bf16.msrb.mxu1 %v8339_v37 }
 0x55f   : > { %v5360_v17 = vpop.f32.mrf.mxu2  ;;  %v10650_v60 = vpop.f32.mrf.mxu0  ;;  %v6077_v29 = vld [vmem:[#allocation3 + $0x8d] sm:$0xff] }
 0x560   : > { %5644 = vst.msk [vmem:[#allocation3 + $0x98] sm:$0xff] %vm726_vm1, %v5621_v14  ;;  %v5389_v49 = vadd.f32 %v5360_v17, %v5206_v54  ;;  %v5179_v4 = vpop.f32.mrf.mxu1  ;;  %v6086_v36 = vpack.c.bf16 %v6077_v29, %v6076_v10  ;;  %v5665_v17 = vld [vmem:[#allocation3 + $0x80] sm:$0x1f] }
 0x561   : > { %v5207_v44 = vadd.f32 %v5179_v4, %v5024_v34  ;;  %v6210_v34 = vld [vmem:[#allocation3 + $0x26] sm:$0xff] }
 0x562   : > { %v5572_v16 = vadd.f32 %v10570_v2, %v5389_v49  ;;  %7957 = vmatmul.msk.bf16.gmra.mxu0 %vm726_vm1, %v5708_v27  ;;  %v8343_v2 = vld [vmem:[%s10911_s5 + $0xc8] sm:$0xff]  ;;  %6447 = vmatpush.bf16.msrb.mxu1 %v8338_v43  ;;  %v5674_v27 = vpack.c.bf16 %v5665_v17, %v5665_v17 }
 0x563   : > { %8047 = vmatmul.msk.bf16.gmra.mxu3 %vm726_vm1, %v6086_v36  ;;  %6592 = vmatpush.bf16.msrb.mxu2 %v8343_v2  ;;  %v5932_v49 = vld [vmem:[#allocation3 + $0x82] sm:$0x1f] }
 0x564   : > { %v5599_v22 = vadd.f32 %v10371_v63, %v5572_v16  ;;  %v5941_v36 = vpack.c.bf16 %v5932_v49, %v5932_v49 }
 0x566   : > { %v5622_v46 = vmax.f32 %v5599_v22, 0.0  ;;  %v6646_v22 = vld [vmem:[#allocation3 + $0x2b] sm:$0xff] }
 0x567   : > { %v5362_v18 = vpop.f32.mrf.mxu2  ;;  %v5780_v42 = vpop.f32.mrf.mxu0  ;;  %v6078_v25 = vld [vmem:[#allocation3 + $0x95] sm:$0x1f]  ;;  %6593 = vmatpush.bf16.msrb.mxu2 %v8342_v47 }
 0x568   : > { %5645 = vst.msk [vmem:[#allocation3 + $0xa0] sm:$0xff] %vm726_vm1, %v5622_v46  ;;  %v5390_v39 = vadd.f32 %v5362_v18, %v5207_v44  ;;  %v5182_v7 = vpop.f32.mrf.mxu1  ;;  %v6087_v51 = vpack.c.bf16 %v6078_v25, %v6078_v25  ;;  %v6226_v46 = vpack.c.bf16 %v6211_v3, %v6210_v34  ;;  %v6663_v44 = vpack.c.bf16 %v6647_v57, %v6646_v22  ;;  %v6355_v18 = vld [vmem:[#allocation3 + $0x1f] sm:$0xff]  ;;  %v6358_v22 = vld [vmem:[#allocation3 + $0x37] sm:$0xff] }
 0x569   : > { %v5208_v48 = vadd.f32 %v5182_v7, %v10499_v19  ;;  %v8352_v19 = vld [vmem:[%s10911_s5 + $0x110] sm:$0xff]  ;;  %v6371_v43 = vpack.c.bf16 %v6355_v18, %v6354_v56  ;;  %v6652_v56 = vld [vmem:[#allocation3 + $0x5b] sm:$0xff] }
 0x56a   : > { %v5573_v55 = vadd.f32 %v10583_v23, %v5390_v39  ;;  %6883 = vmatpush.bf16.msrb.mxu0 %v8352_v19  ;;  %v8351_v19 = vld [vmem:[%s10911_s5 + $0x108] sm:$0xff] }
 0x56b   : > { %7981 = vmatmul.msk.bf16.gmra.mxu1 %vm726_vm1, %v5673_v62  ;;  %v6653_v18 = vld [vmem:[#allocation3 + $0x63] sm:$0xff] }
 0x56c   : > { %v5600_v21 = vadd.f32 %v10371_v63, %v5573_v55  ;;  %8014 = vmatmul.msk.bf16.gmra.mxu2 %vm726_vm1, %v5940_v20  ;;  %v6213_v55 = vld [vmem:[#allocation3 + $0x3e] sm:$0xff] }
 0x56d   : > { %v6649_v20 = vld [vmem:[#allocation3 + $0x43] sm:$0xff]  ;;  %v6227_v33 = vpack.c.bf16 %v6213_v55, %v6212_v53  ;;  %v6666_v55 = vpack.c.bf16 %v6653_v18, %v6652_v56 }
 0x56e   : > { %v5623_v38 = vmax.f32 %v5600_v21, 0.0  ;;  %6884 = vmatpush.bf16.msrb.mxu0 %v8351_v19  ;;  %v6511_v18 = vld [vmem:[#allocation3 + $0x82] sm:$0xff] }
 0x56f   : > { %v5365_v50 = vpop.f32.mrf.mxu2  ;;  %v5782_v8 = vpop.f32.mrf.mxu0 }
 0x570   : > { %5646 = vst.msk [vmem:[#allocation3 + $0xa8] sm:$0xff] %vm726_vm1, %v5623_v38  ;;  %v5391_v23 = vadd.f32 %v5365_v50, %v5208_v48  ;;  %v5184_v32 = vpop.f32.mrf.mxu1  ;;  %v6648_v38 = vld [vmem:[#allocation3 + $0x3b] sm:$0xff] }
 0x572   : > { %v5574_v41 = vadd.f32 %v10595_v61, %v5391_v23  ;;  %8073 = vmatmul.msk.bf16.vlgmr.msra.gmra.mxu0 %vm726_vm1, %v6225_v30  ;;  %v6664_v23 = vpack.c.bf16 %v6649_v20, %v6648_v38 }
 0x573   : > { %8048 = vmatmul.msk.bf16.gmra.mxu3 %vm726_vm1, %v6087_v51 }
 0x574   : > { %v5601_v0 = vadd.f32 %v10371_v63, %v5574_v41 }
 0x576   : > { %v6157_v14 = vpop.f32.mrf.mxu3  ;;  %v5624_v54 = vmax.f32 %v5601_v0, 0.0  ;;  %v6356_v0 = vld [vmem:[#allocation3 + $0x27] sm:$0xff] }
 0x577   : > { %v5367_v10 = vpop.f32.mrf.mxu2  ;;  %v5784_v29 = vpop.f32.mrf.mxu0 }
 0x578   : > { %5648 = vst.msk [vmem:[#allocation3 + $0xb0] sm:$0x1] %vm5647_vm5, %v5624_v54  ;;  %v5877_v61 = vpop.f32.mrf.mxu1  ;;  %v6215_v10 = vld [vmem:[#allocation3 + $0x4e] sm:$0xff] }
 0x579   : > { %v5878_v4 = vadd.f32 %v5877_v61, %v10650_v60 }
 0x57b   : > { %7982 = vmatmul.msk.bf16.gmra.mxu1 %vm726_vm1, %v5674_v27  ;;  %v6650_v27 = vld [vmem:[#allocation3 + $0x4b] sm:$0xff] }
 0x57c   : > { %8015 = vmatmul.msk.bf16.gmra.mxu2 %vm726_vm1, %v5941_v36 }
 0x57e   : > { %v6159_v63 = vpop.f32.mrf.mxu3 }
 0x57f   : > { %v5787_v28 = vpop.f32.mrf.mxu0  ;;  %v6011_v16 = vpop.f32.mrf.mxu2 }
 0x580   : > { %v6050_v37 = vadd.f32 %v6011_v16, %v5878_v4  ;;  %v5879_v2 = vpop.f32.mrf.mxu1  ;;  %v6214_v4 = vld [vmem:[#allocation3 + $0x46] sm:$0xff] }
 0x581   : > { %v6228_v63 = vpack.c.bf16 %v6215_v10, %v6214_v4  ;;  %v6359_v16 = vld [vmem:[#allocation3 + $0x3f] sm:$0xff]  ;;  %v6362_v4 = vld [vmem:[#allocation3 + $0x57] sm:$0xff] }
 0x582   : > { %8074 = vmatmul.msk.bf16.gmra.mxu0 %vm726_vm1, %v6226_v46  ;;  %v10704_v60 = vadd.f32 %v6157_v14, %v6050_v37  ;;  %v6372_v14 = vpack.c.bf16 %v6357_v9, %v6356_v0  ;;  %v6373_v2 = vpack.c.bf16 %v6359_v16, %v6358_v22  ;;  %v6655_v9 = vld [vmem:[#allocation3 + $0x73] sm:$0xff]  ;;  %v6654_v0 = vld [vmem:[#allocation3 + $0x6b] sm:$0xff] }
 0x583   : > { %8172 = vmatmul.msk.bf16.vlgmr.msra.gmra.mxu3 %vm726_vm1, %v6663_v44  ;;  %v6667_v10 = vpack.c.bf16 %v6655_v9, %v6654_v0  ;;  %v6513_v9 = vld [vmem:[#allocation3 + $0x92] sm:$0xff]  ;;  %v6512_v0 = vld [vmem:[#allocation3 + $0x8a] sm:$0xff] }
 0x586   : > { %v6161_v40 = vpop.f32.mrf.mxu3 }
 0x587   : > { %v5788_v42 = vpop.f32.mrf.mxu0  ;;  %v6013_v39 = vpop.f32.mrf.mxu2 }
 0x588   : > { %v5881_v7 = vpop.f32.mrf.mxu1 }
 0x589   : > { %v5882_v62 = vadd.f32 %v5881_v7, %v5782_v8  ;;  %v6216_v7 = vld [vmem:[#allocation3 + $0x56] sm:$0xff] }
 0x58b   : > { %8106 = vmatmul.msk.bf16.vlgmr.msrb.gmra.mxu1 %vm726_vm1, %v6371_v43 }
 0x58c   : > { %8139 = vmatmul.msk.bf16.vlgmr.msrb.gmra.mxu2 %vm726_vm1, %v6517_v31 }
 0x58e   : > { %v6163_v47 = vpop.f32.mrf.mxu3 }
 0x58f   : > { %v5791_v21 = vpop.f32.mrf.mxu0  ;;  %v6015_v25 = vpop.f32.mrf.mxu2 }
 0x590   : > { %v6051_v48 = vadd.f32 %v6015_v25, %v5882_v62  ;;  %v5883_v50 = vpop.f32.mrf.mxu1 }
 0x591   : > { %v5884_v8 = vadd.f32 %v5883_v50, %v5784_v29  ;;  %v6651_v29 = vld [vmem:[#allocation3 + $0x53] sm:$0xff] }
 0x592   : > { %8075 = vmatmul.msk.bf16.gmra.mxu0 %vm726_vm1, %v6227_v33  ;;  %v10713_v32 = vadd.f32 %v6161_v40, %v6051_v48  ;;  %v6665_v3 = vpack.c.bf16 %v6651_v29, %v6650_v27  ;;  %v6217_v40 = vld [vmem:[#allocation3 + $0x5e] sm:$0xff]  ;;  %v6360_v48 = vld [vmem:[#allocation3 + $0x47] sm:$0xff] }
 0x593   : > { %8173 = vmatmul.msk.bf16.gmra.mxu3 %vm726_vm1, %v6664_v23  ;;  %v6374_v33 = vpack.c.bf16 %v6361_v24, %v6360_v48 }
 0x596   : > { %v6166_v11 = vpop.f32.mrf.mxu3 }
 0x597   : > { %v5793_v31 = vpop.f32.mrf.mxu0  ;;  %v6017_v51 = vpop.f32.mrf.mxu2  ;;  %v6219_v11 = vld [vmem:[#allocation3 + $0x6e] sm:$0xff] }
 0x598   : > { %v6052_v30 = vadd.f32 %v6017_v51, %v5884_v8  ;;  %v5886_v41 = vpop.f32.mrf.mxu1 }
 0x599   : > { %v6218_v41 = vld [vmem:[#allocation3 + $0x66] sm:$0xff] }
 0x59a   : > { %v10718_v54 = vadd.f32 %v6163_v47, %v6052_v30  ;;  %v6229_v47 = vpack.c.bf16 %v6217_v40, %v6216_v7  ;;  %v6364_v7 = vld [vmem:[#allocation3 + $0x67] sm:$0xff] }
 0x59b   : > { %8107 = vmatmul.msk.bf16.gmra.mxu1 %vm726_vm1, %v6372_v14  ;;  %v6376_v56 = vpack.c.bf16 %v6365_v35, %v6364_v7 }
 0x59c   : > { %8140 = vmatmul.msk.bf16.gmra.mxu2 %vm726_vm1, %v6518_v12 }
 0x59e   : > { %v6167_v17 = vpop.f32.mrf.mxu3 }
 0x59f   : > { %v5796_v49 = vpop.f32.mrf.mxu0  ;;  %v6020_v61 = vpop.f32.mrf.mxu2 }
 0x5a0   : > { %v5887_v36 = vpop.f32.mrf.mxu1 }
 0x5a1   : > { %v5888_v57 = vadd.f32 %v5887_v36, %v5788_v42 }
 0x5a2   : > { %8076 = vmatmul.msk.bf16.gmra.mxu0 %vm726_vm1, %v6228_v63 }
 0x5a3   : > { %8174 = vmatmul.msk.bf16.gmra.mxu3 %vm726_vm1, %v6665_v3  ;;  %v6221_v3 = vld [vmem:[#allocation3 + $0x7e] sm:$0xff] }
 0x5a6   : > { %v6170_v28 = vpop.f32.mrf.mxu3 }
 0x5a7   : > { %v5798_v52 = vpop.f32.mrf.mxu0  ;;  %v6021_v59 = vpop.f32.mrf.mxu2 }
 0x5a8   : > { %v6053_v12 = vadd.f32 %v6021_v59, %v5888_v57  ;;  %v5890_v34 = vpop.f32.mrf.mxu1  ;;  %v6657_v57 = vld [vmem:[#allocation3 + $0x83] sm:$0xff]  ;;  %v6220_v52 = vld [vmem:[#allocation3 + $0x76] sm:$0xff] }
 0x5a9   : > { %v5891_v37 = vadd.f32 %v5890_v34, %v5791_v21  ;;  %v6656_v59 = vld [vmem:[#allocation3 + $0x7b] sm:$0xff]  ;;  %v6231_v22 = vpack.c.bf16 %v6221_v3, %v6220_v52 }
 0x5aa   : > { %v10727_v46 = vadd.f32 %v6167_v17, %v6053_v12  ;;  %v6230_v17 = vpack.c.bf16 %v6219_v11, %v6218_v41  ;;  %v6515_v52 = vld [vmem:[#allocation3 + $0xa2] sm:$0xff] }
 0x5ab   : > { %8108 = vmatmul.msk.bf16.gmra.mxu1 %vm726_vm1, %v6373_v2 }
 0x5ac   : > { %8141 = vmatmul.msk.bf16.gmra.mxu2 %vm726_vm1, %v6519_v6 }
 0x5ae   : > { %v6172_v44 = vpop.f32.mrf.mxu3 }
 0x5af   : > { %v5800_v42 = vpop.f32.mrf.mxu0  ;;  %v6024_v39 = vpop.f32.mrf.mxu2 }
 0x5b0   : > { %v6054_v62 = vadd.f32 %v6024_v39, %v5891_v37  ;;  %v5892_v43 = vpop.f32.mrf.mxu1  ;;  %v6668_v37 = vpack.c.bf16 %v6657_v57, %v6656_v59  ;;  %v6369_v57 = vld [vmem:[#allocation3 + $0x8f] sm:$0xff] }
 0x5b1   : > { %v5893_v20 = vadd.f32 %v5892_v43, %v5793_v31  ;;  %v8350_v31 = vld [vmem:[%s10911_s5 + $0x100] sm:$0xff] }
 0x5b2   : > { %8077 = vmatmul.msk.bf16.gmra.mxu0 %vm726_vm1, %v6229_v47  ;;  %v10736_v21 = vadd.f32 %v6170_v28, %v6054_v62  ;;  %v6522_v62 = vpack.c.bf16 %v6511_v18, %v10674_v13 }
 0x5b3   : > { %8175 = vmatmul.msk.bf16.gmra.mxu3 %vm726_vm1, %v6666_v55  ;;  %6885 = vmatpush.bf16.msrb.mxu0 %v8350_v31  ;;  %v6223_v55 = vld [vmem:[#allocation3 + $0x8e] sm:$0xff] }
 0x5b6   : > { %v6175_v45 = vpop.f32.mrf.mxu3 }
 0x5b7   : > { %v5802_v6 = vpop.f32.mrf.mxu0  ;;  %v6026_v25 = vpop.f32.mrf.mxu2 }
 0x5b8   : > { %v6055_v53 = vadd.f32 %v6026_v25, %v5893_v20  ;;  %v5895_v38 = vpop.f32.mrf.mxu1  ;;  %v6659_v20 = vld [vmem:[#allocation3 + $0x93] sm:$0xff]  ;;  %v6658_v25 = vld [vmem:[#allocation3 + $0x8b] sm:$0xff] }
 0x5b9   : > { %v5896_v50 = vadd.f32 %v5895_v38, %v5796_v49  ;;  %v6669_v48 = vpack.c.bf16 %v6659_v20, %v6658_v25 }
 0x5ba   : > { %v10738_v23 = vadd.f32 %v6172_v44, %v6055_v53 }
 0x5bb   : > { %8109 = vmatmul.msk.bf16.gmra.mxu1 %vm726_vm1, %v6374_v33  ;;  %v6367_v33 = vld [vmem:[#allocation3 + $0x7f] sm:$0xff] }
 0x5bc   : > { %8142 = vmatmul.msk.bf16.gmra.mxu2 %vm726_vm1, %v6520_v5  ;;  %v6363_v5 = vld [vmem:[#allocation3 + $0x5f] sm:$0xff] }
 0x5bd   : > { %v6375_v36 = vpack.c.bf16 %v6363_v5, %v6362_v4 }
 0x5be   : > { %v6177_v8 = vpop.f32.mrf.mxu3 }
 0x5bf   : > { %v5805_v51 = vpop.f32.mrf.mxu0  ;;  %v6029_v30 = vpop.f32.mrf.mxu2 }
 0x5c0   : > { %v6056_v14 = vadd.f32 %v6029_v30, %v5896_v50  ;;  %v5897_v19 = vpop.f32.mrf.mxu1  ;;  %v6366_v30 = vld [vmem:[#allocation3 + $0x77] sm:$0xff] }
 0x5c1   : > { %v6377_v41 = vpack.c.bf16 %v6367_v33, %v6366_v30 }
 0x5c2   : > { %8078 = vmatmul.msk.bf16.gmra.mxu0 %vm726_vm1, %v6230_v17  ;;  %v10750_v15 = vadd.f32 %v6175_v45, %v6056_v14  ;;  %v6523_v14 = vpack.c.bf16 %v6513_v9, %v6512_v0 }
 0x5c3   : > { %8176 = vmatmul.msk.bf16.gmra.mxu3 %vm726_vm1, %v6667_v10  ;;  %v6224_v10 = vld [vmem:[#allocation3 + $0x96] sm:$0x1f] }
 0x5c6   : > { %v6179_v26 = vpop.f32.mrf.mxu3 }
 0x5c7   : > { %v5806_v29 = vpop.f32.mrf.mxu0  ;;  %v6031_v49 = vpop.f32.mrf.mxu2 }
 0x5c8   : > { %v5899_v61 = vpop.f32.mrf.mxu1  ;;  %v6660_v49 = vld [vmem:[#allocation3 + $0x9b] sm:$0xff] }
 0x5c9   : > { %v5900_v27 = vadd.f32 %v5899_v61, %v5800_v42 }
 0x5cb   : > { %8110 = vmatmul.msk.bf16.gmra.mxu1 %vm726_vm1, %v6375_v36 }
 0x5cc   : > { %8143 = vmatmul.msk.bf16.gmra.mxu2 %vm726_vm1, %v6521_v1 }
 0x5ce   : > { %v6181_v63 = vpop.f32.mrf.mxu3 }
 0x5cf   : > { %v5809_v28 = vpop.f32.mrf.mxu0  ;;  %v6033_v16 = vpop.f32.mrf.mxu2 }
 0x5d0   : > { %v6057_v12 = vadd.f32 %v6033_v16, %v5900_v27  ;;  %v5901_v34 = vpop.f32.mrf.mxu1  ;;  %v6233_v27 = vpack.c.bf16 %v6224_v10, %v6224_v10 }
 0x5d1   : > { %v5902_v2 = vadd.f32 %v5901_v34, %v5802_v6  ;;  %v6222_v6 = vld [vmem:[#allocation3 + $0x86] sm:$0xff] }
 0x5d2   : > { %8079 = vmatmul.msk.bf16.gmra.mxu0 %vm726_vm1, %v6231_v22  ;;  %v10759_v44 = vadd.f32 %v6179_v26, %v6057_v12  ;;  %v6232_v38 = vpack.c.bf16 %v6223_v55, %v6222_v6  ;;  %v6661_v26 = vld [vmem:[#allocation3 + $0xa3] sm:$0xff] }
 0x5d3   : > { %8177 = vmatmul.msk.bf16.gmra.mxu3 %vm726_vm1, %v6668_v37  ;;  %v6670_v36 = vpack.c.bf16 %v6661_v26, %v6660_v49  ;;  %v6368_v34 = vld [vmem:[#allocation3 + $0x87] sm:$0xff]  ;;  %v6797_v49 = vld [vmem:[#allocation3 + $0x54] sm:$0xff] }
 0x5d4   : > { %v6378_v37 = vpack.c.bf16 %v6369_v57, %v6368_v34 }
 0x5d6   : > { %v6184_v58 = vpop.f32.mrf.mxu3 }
 0x5d7   : > { %v5810_v1 = vpop.f32.mrf.mxu0  ;;  %v6035_v40 = vpop.f32.mrf.mxu2 }
 0x5d8   : > { %v6058_v42 = vadd.f32 %v6035_v40, %v5902_v2  ;;  %v5904_v39 = vpop.f32.mrf.mxu1  ;;  %v6514_v2 = vld [vmem:[#allocation3 + $0x9a] sm:$0xff] }
 0x5d9   : > { %v6793_v40 = vld [vmem:[#allocation3 + $0x34] sm:$0xff]  ;;  %v6792_v39 = vld [vmem:[#allocation3 + $0x2c] sm:$0xff] }
 0x5da   : > { %v10762_v43 = vadd.f32 %v6181_v63, %v6058_v42  ;;  %v6809_v55 = vpack.c.bf16 %v6793_v40, %v6792_v39 }
 0x5db   : > { %8111 = vmatmul.msk.bf16.gmra.mxu1 %vm726_vm1, %v6376_v56 }
 0x5dc   : > { %8144 = vmatmul.msk.bf16.gmra.mxu2 %vm726_vm1, %v6522_v62 }
 0x5de   : > { %v6185_v47 = vpop.f32.mrf.mxu3 }
 0x5df   : > { %v5813_v45 = vpop.f32.mrf.mxu0  ;;  %v6038_v24 = vpop.f32.mrf.mxu2 }
 0x5e0   : > { %v5905_v53 = vpop.f32.mrf.mxu1  ;;  %v6370_v24 = vld [vmem:[#allocation3 + $0x97] sm:$0x1f] }
 0x5e1   : > { %v5906_v50 = vadd.f32 %v5905_v53, %v5806_v29  ;;  %v6516_v53 = vld [vmem:[#allocation3 + $0xaa] sm:$0x1f] }
 0x5e2   : > { %8080 = vmatmul.msk.bf16.gmra.mxu0 %vm726_vm1, %v6232_v38 }
 0x5e3   : > { %8178 = vmatmul.msk.bf16.gmra.mxu3 %vm726_vm1, %v6669_v48 }
 0x5e6   : > { %v6188_v13 = vpop.f32.mrf.mxu3 }
 0x5e7   : > { %v5815_v8 = vpop.f32.mrf.mxu0  ;;  %v6039_v11 = vpop.f32.mrf.mxu2  ;;  %v6379_v13 = vpack.c.bf16 %v6370_v24, %v6370_v24 }
 0x5e8   : > { %v6059_v31 = vadd.f32 %v6039_v11, %v5906_v50  ;;  %v5908_v51 = vpop.f32.mrf.mxu1  ;;  %v6795_v8 = vld [vmem:[#allocation3 + $0x44] sm:$0xff] }
 0x5ea   : > { %v10768_v19 = vadd.f32 %v6185_v47, %v6059_v31  ;;  %v6794_v31 = vld [vmem:[#allocation3 + $0x3c] sm:$0xff] }
 0x5eb   : > { %8112 = vmatmul.msk.bf16.gmra.mxu1 %vm726_vm1, %v6377_v41  ;;  %v6810_v41 = vpack.c.bf16 %v6795_v8, %v6794_v31 }
 0x5ec   : > { %8145 = vmatmul.msk.bf16.gmra.mxu2 %vm726_vm1, %v6523_v14 }
 0x5ee   : > { %v6189_v17 = vpop.f32.mrf.mxu3 }
 0x5ef   : > { %v6042_v5 = vpop.f32.mrf.mxu2  ;;  %v6303_v29 = vpop.f32.mrf.mxu0 }
 0x5f0   : > { %v6342_v61 = vadd.f32 %v6303_v29, %v10704_v60  ;;  %v5909_v4 = vpop.f32.mrf.mxu1  ;;  %v6524_v60 = vpack.c.bf16 %v6515_v52, %v6514_v2 }
 0x5f1   : > { %v5910_v63 = vadd.f32 %v5909_v4, %v5810_v1  ;;  %v6662_v1 = vld [vmem:[#allocation3 + $0xab] sm:$0x1f] }
 0x5f2   : > { %8081 = vmatmul.msk.bf16.gmra.mxu0 %vm726_vm1, %v6233_v27  ;;  %v6671_v47 = vpack.c.bf16 %v6662_v1, %v6662_v1  ;;  %v6796_v27 = vld [vmem:[#allocation3 + $0x4c] sm:$0xff]  ;;  %v6798_v1 = vld [vmem:[#allocation3 + $0x5c] sm:$0xff] }
 0x5f3   : > { %8179 = vmatmul.msk.bf16.gmra.mxu3 %vm726_vm1, %v6670_v36  ;;  %v6811_v57 = vpack.c.bf16 %v6797_v49, %v6796_v27 }
 0x5f6   : > { %v6192_v3 = vpop.f32.mrf.mxu3 }
 0x5f7   : > { %v6043_v28 = vpop.f32.mrf.mxu2  ;;  %v6305_v16 = vpop.f32.mrf.mxu0 }
 0x5f8   : > { %v6060_v59 = vadd.f32 %v6043_v28, %v5910_v63  ;;  %v5912_v12 = vpop.f32.mrf.mxu1 }
 0x5f9   : > { %v5913_v22 = vadd.f32 %v5912_v12, %v5813_v45 }
 0x5fa   : > { %v10775_v58 = vadd.f32 %v6189_v17, %v6060_v59 }
 0x5fb   : > { %8113 = vmatmul.msk.bf16.gmra.mxu1 %vm726_vm1, %v6378_v37 }
 0x5fc   : > { %8146 = vmatmul.msk.bf16.gmra.mxu2 %vm726_vm1, %v6524_v60  ;;  %v6799_v60 = vld [vmem:[#allocation3 + $0x64] sm:$0xff] }
 0x5fe   : > { %v6194_v35 = vpop.f32.mrf.mxu3 }
 0x5ff   : > { %v6046_v18 = vpop.f32.mrf.mxu2  ;;  %v6307_v42 = vpop.f32.mrf.mxu0 }
 0x600   : > { %v6061_v7 = vadd.f32 %v6046_v18, %v5913_v22  ;;  %v6343_v56 = vadd.f32 %v6307_v42, %v10713_v32  ;;  %v5914_v62 = vpop.f32.mrf.mxu1  ;;  %v6525_v32 = vpack.c.bf16 %v6516_v53, %v6516_v53  ;;  %v6812_v42 = vpack.c.bf16 %v6799_v60, %v6798_v1 }
 0x602   : > { %8205 = vmatmul.msk.bf16.vlgmr.msrb.gmra.mxu0 %vm726_vm1, %v6809_v55  ;;  %v10782_v20 = vadd.f32 %v6192_v3, %v6061_v7 }
 0x603   : > { %8180 = vmatmul.msk.bf16.gmra.mxu3 %vm726_vm1, %v6671_v47 }
 0x606   : > { %v6741_v45 = vpop.f32.mrf.mxu3 }
 0x607   : > { %v6048_v6 = vpop.f32.mrf.mxu2  ;;  %v6309_v25 = vpop.f32.mrf.mxu0 }
 0x608   : > { %v6344_v38 = vadd.f32 %v6309_v25, %v10718_v54  ;;  %v6449_v48 = vpop.f32.mrf.mxu1  ;;  %v6801_v6 = vld [vmem:[#allocation3 + $0x74] sm:$0xff] }
 0x609   : > { %v6488_v50 = vadd.f32 %v6449_v48, %v6342_v61 }
 0x60b   : > { %8114 = vmatmul.msk.bf16.gmra.mxu1 %vm726_vm1, %v6379_v13 }
 0x60c   : > { %8147 = vmatmul.msk.bf16.gmra.mxu2 %vm726_vm1, %v6525_v32 }
 0x60e   : > { %v6743_v33 = vpop.f32.mrf.mxu3 }
 0x60f   : > { %v6312_v11 = vpop.f32.mrf.mxu0  ;;  %v6595_v9 = vpop.f32.mrf.mxu2 }
 0x610   : > { %v6634_v51 = vadd.f32 %v6595_v9, %v6488_v50  ;;  %v6451_v30 = vpop.f32.mrf.mxu1 }
 0x612   : > { %8206 = vmatmul.msk.bf16.gmra.mxu0 %vm726_vm1, %v6810_v41  ;;  %v10788_v0 = vadd.f32 %v6741_v45, %v6634_v51 }
 0x616   : > { %v6745_v54 = vpop.f32.mrf.mxu3 }
 0x617   : > { %v6313_v14 = vpop.f32.mrf.mxu0  ;;  %v6597_v17 = vpop.f32.mrf.mxu2 }
 0x618   : > { %v6345_v10 = vadd.f32 %v6313_v14, %v10727_v46  ;;  %v6453_v26 = vpop.f32.mrf.mxu1 }
 0x619   : > { %v6489_v5 = vadd.f32 %v6453_v26, %v6343_v56  ;;  %v6802_v26 = vld [vmem:[#allocation3 + $0x7c] sm:$0xff] }
 0x61e   : > { %v6747_v29 = vpop.f32.mrf.mxu3 }
 0x61f   : > { %v6316_v61 = vpop.f32.mrf.mxu0  ;;  %v6599_v4 = vpop.f32.mrf.mxu2 }
 0x620   : > { %v6346_v36 = vadd.f32 %v6316_v61, %v10736_v21  ;;  %v6635_v63 = vadd.f32 %v6599_v4, %v6489_v5  ;;  %v6455_v3 = vpop.f32.mrf.mxu1 }
 0x621   : > { %v6490_v28 = vadd.f32 %v6455_v3, %v6344_v38  ;;  %v6800_v38 = vld [vmem:[#allocation3 + $0x6c] sm:$0xff] }
 0x622   : > { %8207 = vmatmul.msk.bf16.gmra.mxu0 %vm726_vm1, %v6811_v57  ;;  %v10793_v16 = vadd.f32 %v6745_v54, %v6635_v63  ;;  %v6813_v13 = vpack.c.bf16 %v6801_v6, %v6800_v38 }
 0x626   : > { %v6750_v52 = vpop.f32.mrf.mxu3 }
 0x627   : > { %v6318_v59 = vpop.f32.mrf.mxu0  ;;  %v6601_v46 = vpop.f32.mrf.mxu2 }
 0x628   : > { %v6347_v12 = vadd.f32 %v6318_v59, %v10738_v23  ;;  %v6636_v34 = vadd.f32 %v6601_v46, %v6490_v28  ;;  %v6458_v22 = vpop.f32.mrf.mxu1  ;;  %v6805_v28 = vld [vmem:[#allocation3 + $0x94] sm:$0xff]  ;;  %v6804_v46 = vld [vmem:[#allocation3 + $0x8c] sm:$0xff] }
 0x629   : > { %v6815_v22 = vpack.c.bf16 %v6805_v28, %v6804_v46 }
 0x62a   : > { %v10796_v37 = vadd.f32 %v6747_v29, %v6636_v34 }
 0x62e   : > { %v6751_v2 = vpop.f32.mrf.mxu3 }
 0x62f   : > { %v6321_v21 = vpop.f32.mrf.mxu0  ;;  %v6604_v35 = vpop.f32.mrf.mxu2 }
 0x630   : > { %v6348_v40 = vadd.f32 %v6321_v21, %v10750_v15  ;;  %v6459_v18 = vpop.f32.mrf.mxu1 }
 0x631   : > { %v6491_v39 = vadd.f32 %v6459_v18, %v6345_v10 }
 0x632   : > { %8208 = vmatmul.msk.bf16.gmra.mxu0 %vm726_vm1, %v6812_v42 }
 0x636   : > { %v6754_v7 = vpop.f32.mrf.mxu3 }
 0x637   : > { %v6323_v56 = vpop.f32.mrf.mxu0  ;;  %v6605_v62 = vpop.f32.mrf.mxu2 }
 0x638   : > { %v6637_v23 = vadd.f32 %v6605_v62, %v6491_v39  ;;  %v6462_v47 = vpop.f32.mrf.mxu1 }
 0x639   : > { %v6492_v55 = vadd.f32 %v6462_v47, %v6346_v36 }
 0x63a   : > { %v10800_v45 = vadd.f32 %v6751_v2, %v6637_v23  ;;  %v6806_v23 = vld [vmem:[#allocation3 + $0x9c] sm:$0xff] }
 0x63e   : > { %v6756_v24 = vpop.f32.mrf.mxu3 }
 0x63f   : > { %v6325_v25 = vpop.f32.mrf.mxu0  ;;  %v6608_v53 = vpop.f32.mrf.mxu2 }
 0x640   : > { %v6349_v15 = vadd.f32 %v6325_v25, %v10759_v44  ;;  %v6638_v48 = vadd.f32 %v6608_v53, %v6492_v55  ;;  %v6464_v50 = vpop.f32.mrf.mxu1  ;;  %v6803_v44 = vld [vmem:[#allocation3 + $0x84] sm:$0xff] }
 0x641   : > { %v6493_v32 = vadd.f32 %v6464_v50, %v6347_v12  ;;  %v6814_v49 = vpack.c.bf16 %v6803_v44, %v6802_v26 }
 0x642   : > { %8209 = vmatmul.msk.bf16.gmra.mxu0 %vm726_vm1, %v6813_v13  ;;  %v10804_v33 = vadd.f32 %v6754_v7, %v6638_v48  ;;  %v6807_v7 = vld [vmem:[#allocation3 + $0xa4] sm:$0xff]  ;;  %v6808_v13 = vld [vmem:[#allocation3 + $0xac] sm:$0x1f] }
 0x646   : > { %v6759_v8 = vpop.f32.mrf.mxu3 }
 0x647   : > { %v6327_v11 = vpop.f32.mrf.mxu0  ;;  %v6610_v9 = vpop.f32.mrf.mxu2 }
 0x648   : > { %v6350_v31 = vadd.f32 %v6327_v11, %v10762_v43  ;;  %v6639_v51 = vadd.f32 %v6610_v9, %v6493_v32  ;;  %v6467_v30 = vpop.f32.mrf.mxu1  ;;  %v10827_v32 = vld [vmem:[%s10912_s6] ss:$0 sm:$0xff] }
 0x649   : > { %v6494_v41 = vadd.f32 %v6467_v30, %v6348_v40 }
 0x64a   : > { %v10807_v54 = vadd.f32 %v6756_v24, %v6639_v51  ;;  %v6816_v24 = vpack.c.bf16 %v6807_v7, %v6806_v23 }
 0x64e   : > { %v6761_v14 = vpop.f32.mrf.mxu3 }
 0x64f   : > { %v6330_v17 = vpop.f32.mrf.mxu0  ;;  %v6613_v10 = vpop.f32.mrf.mxu2  ;;  %v6970_v14 = vld [vmem:[%s10833_s20] sm:$0xf] }
 0x650   : > { %v6640_v5 = vadd.f32 %v6613_v10, %v6494_v41  ;;  %v6469_v29 = vpop.f32.mrf.mxu1 }
 0x652   : > { %8210 = vmatmul.msk.bf16.gmra.mxu0 %vm726_vm1, %v6814_v49  ;;  %v10810_v61 = vadd.f32 %v6759_v8, %v6640_v5 }
 0x656   : > { %v6763_v4 = vpop.f32.mrf.mxu3 }
 0x657   : > { %v6331_v27 = vpop.f32.mrf.mxu0  ;;  %v6615_v43 = vpop.f32.mrf.mxu2 }
 0x658   : > { %v6351_v36 = vadd.f32 %v6331_v27, %v10768_v19  ;;  %v6471_v63 = vpop.f32.mrf.mxu1 }
 0x659   : > { %v6495_v3 = vadd.f32 %v6471_v63, %v6349_v15 }
 0x65e   : > { %v6765_v57 = vpop.f32.mrf.mxu3 }
 0x65f   : > { %v6334_v52 = vpop.f32.mrf.mxu0  ;;  %v6617_v59 = vpop.f32.mrf.mxu2 }
 0x660   : > { %v6641_v12 = vadd.f32 %v6617_v59, %v6495_v3  ;;  %v6473_v34 = vpop.f32.mrf.mxu1 }
 0x661   : > { %v6496_v2 = vadd.f32 %v6473_v34, %v6350_v31  ;;  %v6817_v31 = vpack.c.bf16 %v6808_v13, %v6808_v13 }
 0x662   : > { %8211 = vmatmul.msk.bf16.gmra.mxu0 %vm726_vm1, %v6815_v22  ;;  %v10814_v60 = vadd.f32 %v6763_v4, %v6641_v12 }
 0x666   : > { %v6768_v21 = vpop.f32.mrf.mxu3 }
 0x667   : > { %v6335_v35 = vpop.f32.mrf.mxu0  ;;  %v6619_v1 = vpop.f32.mrf.mxu2 }
 0x668   : > { %v6352_v19 = vadd.f32 %v6335_v35, %v10775_v58  ;;  %v6642_v40 = vadd.f32 %v6619_v1, %v6496_v2  ;;  %v6476_v18 = vpop.f32.mrf.mxu1 }
 0x66a   : > { %v10817_v42 = vadd.f32 %v6765_v57, %v6642_v40 }
 0x66e   : > { %v6769_v39 = vpop.f32.mrf.mxu3 }
 0x66f   : > { %v6338_v56 = vpop.f32.mrf.mxu0  ;;  %v6622_v62 = vpop.f32.mrf.mxu2 }
 0x670   : > { %v6353_v47 = vadd.f32 %v6338_v56, %v10782_v20  ;;  %v6477_v55 = vpop.f32.mrf.mxu1 }
 0x671   : > { %v6497_v6 = vadd.f32 %v6477_v55, %v6351_v36 }
 0x672   : > { %8212 = vmatmul.msk.bf16.gmra.mxu0 %vm726_vm1, %v6816_v24 }
 0x676   : > { %v6772_v25 = vpop.f32.mrf.mxu3 }
 0x677   : > { %v6340_v53 = vpop.f32.mrf.mxu0  ;;  %v6623_v58 = vpop.f32.mrf.mxu2 }
 0x678   : > { %v6643_v38 = vadd.f32 %v6623_v58, %v6497_v6  ;;  %v6480_v15 = vpop.f32.mrf.mxu1 }
 0x67a   : > { %v10821_v48 = vadd.f32 %v6769_v39, %v6643_v38 }
 0x67e   : > { %v6773_v50 = vpop.f32.mrf.mxu3 }
 0x67f   : > { %v6626_v20 = vpop.f32.mrf.mxu2  ;;  %v6887_v8 = vpop.f32.mrf.mxu0 }
 0x680   : > { %v6926_v11 = vadd.f32 %v6887_v8, %v10788_v0  ;;  %v6481_v9 = vpop.f32.mrf.mxu1 }
 0x681   : > { %v6498_v51 = vadd.f32 %v6481_v9, %v6352_v19 }
 0x682   : > { %v6942_v30 = vadd.f32 %v10827_v32, %v6926_v11  ;;  %8213 = vmatmul.msk.bf16.gmra.mxu0 %vm726_vm1, %v6817_v31  ;;  %vm6999_vm1 = vcmask 1045508  }
 0x683   : > { %vm10858_vm3 = vmor %vm6998_vm0, %vm6999_vm1  ;;  %vm7054_vm0 = vsmask.f32 7942 }
 0x684   : > { %v6954_v41 = vmax.f32 %v6942_v30, 0.0 }
 0x686   : > { %v6776_v0 = vpop.f32.mrf.mxu3  ;;  %v6966_v44 = vpack.c.bf16 %v6954_v41, %v6954_v41 }
 0x687   : > { %v6627_v17 = vpop.f32.mrf.mxu2  ;;  %v6889_v10 = vpop.f32.mrf.mxu0 }
 0x688   : > { %v6971_v26 = vsel %vm6969_vm8, %v6966_v44, %v6970_v14  ;;  %v6644_v5 = vadd.f32 %v6627_v17, %v6498_v51  ;;  %v6484_v29 = vpop.f32.mrf.mxu1  ;;  %vm7029_vm8 = vcmask 519170  }
 0x689   : > { %6972 = vst [vmem:[%s10833_s20] sm:$0xf] %v6971_v26  ;;  %v6499_v49 = vadd.f32 %v6484_v29, %v6353_v47 }
 0x68a   : > { %v10839_v4 = vadd.f32 %v6773_v50, %v6644_v5 }
 0x68e   : > { %v6778_v27 = vpop.f32.mrf.mxu3 }
 0x68f   : > { %v6630_v43 = vpop.f32.mrf.mxu2  ;;  %v6891_v36 = vpop.f32.mrf.mxu0 }
 0x690   : > { %v6645_v63 = vadd.f32 %v6630_v43, %v6499_v49  ;;  %v6927_v3 = vadd.f32 %v6891_v36, %v10793_v16  ;;  %v6486_v57 = vpop.f32.mrf.mxu1  ;;  %v6989_v21 = vld [vmem:[%s10833_s20] sm:$0x8] }
 0x692   : > { %v6943_v28 = vadd.f32 %v10827_v32, %v6927_v3  ;;  %v10843_v52 = vadd.f32 %v6776_v0, %v6645_v63 }
 0x694   : > { %v6955_v59 = vmax.f32 %v6943_v28, 0.0 }
 0x696   : > { %v6973_v46 = vpack.c.bf16 %v6955_v59, %v6955_v59  ;;  %v7044_v59 = vld [vmem:[%s10833_s20 + $0x10] sm:$0x3] }
 0x697   : > { %v6632_v12 = vpop.f32.mrf.mxu2  ;;  %v6893_v34 = vpop.f32.mrf.mxu0 }
 0x698   : > { %v6980_v22 = vrot.slane %v6973_v46, 7  ;;  %v6928_v2 = vadd.f32 %v6893_v34, %v10796_v37 }
 0x69a   : > { %v6990_v16 = vsel %vm6988_vm11, %v6980_v22, %v6989_v21  ;;  %v6944_v35 = vadd.f32 %v10827_v32, %v6928_v2  ;;  %v6981_v18 = vrot.slane %v6980_v22, 4 }
 0x69b   : > { %6991 = vst [vmem:[%s10833_s20] sm:$0x8] %v6990_v16 }
 0x69c   : > { %v6956_v1 = vmax.f32 %v6944_v35, 0.0 }
 0x69e   : > { %v6974_v19 = vpack.c.bf16 %v6956_v1, %v6956_v1 }
 0x69f   : > { %v6896_v40 = vpop.f32.mrf.mxu0 }
 0x6a0   : > { %v6982_v39 = vrot.slane %v6974_v19, 7 }
 0x6a2   : > { %v6983_v7 = vsel %vm6979_vm14, %v6981_v18, %v6982_v39  ;;  %vm7043_vm14 = vmand %vm7035_vm12, %vm7042_vm13 }
 0x6a3   : > { %6993 = vst.msk [vmem:[%s10833_s20 + $0x4] sm:$0x7] %vm6992_vm15, %v6983_v7  ;;  %vm7053_vm15 = vcmask 519169  }
 0x6a4   : > { %vm7055_vm1 = vmand %vm7053_vm15, %vm7054_vm0 }
 0x6a7   : > { %v6897_v56 = vpop.f32.mrf.mxu0 }
 0x6a8   : > { %v6929_v37 = vadd.f32 %v6897_v56, %v10800_v45 }
 0x6aa   : > { %v6945_v62 = vadd.f32 %v10827_v32, %v6929_v37 }
 0x6ac   : > { %v6957_v23 = vmax.f32 %v6945_v62, 0.0 }
 0x6ae   : > { %v6994_v47 = vpack.c.bf16 %v6957_v23, %v6957_v23 }
 0x6af   : > { %v6900_v55 = vpop.f32.mrf.mxu0 }
 0x6b0   : > { %v7001_v24 = vrot.slane %v6994_v47, 6  ;;  %v6930_v6 = vadd.f32 %v6900_v55, %v10804_v33  ;;  %v7012_v33 = vld [vmem:[%s10833_s20 + $0x8] sm:$0x7] }
 0x6b2   : > { %7008 = vst.msk [vmem:[%s10833_s20 + $0x4] sm:$0x8] %vm6986_vm9, %v7001_v24  ;;  %v6946_v25 = vadd.f32 %v10827_v32, %v6930_v6  ;;  %v7002_v15 = vrot.slane %v7001_v24, 4  ;;  %vm7030_vm9 = vsmask.f32 7946 }
 0x6b3   : > { %vm7031_vm11 = vmand %vm7029_vm8, %vm7030_vm9 }
 0x6b4   : > { %v6958_v53 = vmax.f32 %v6946_v25, 0.0 }
 0x6b6   : > { %v6995_v58 = vpack.c.bf16 %v6958_v53, %v6958_v53 }
 0x6b7   : > { %v6902_v38 = vpop.f32.mrf.mxu0 }
 0x6b8   : > { %v7003_v50 = vrot.slane %v6995_v58, 6  ;;  %v6931_v13 = vadd.f32 %v6902_v38, %v10807_v54 }
 0x6ba   : > { %v7004_v20 = vsel %vm10858_vm3, %v7002_v15, %v7003_v50  ;;  %v6947_v11 = vadd.f32 %v10827_v32, %v6931_v13 }
 0x6bb   : > { %v7013_v8 = vsel %vm7011_vm4, %v7004_v20, %v7012_v33  ;;  %vm7075_vm4 = vmand %vm5647_vm5, %vm7074_vm2 }
 0x6bc   : > { %7014 = vst [vmem:[%s10833_s20 + $0x8] sm:$0x7] %v7013_v8  ;;  %v6959_v31 = vmax.f32 %v6947_v11, 0.0 }
 0x6be   : > { %v7015_v41 = vpack.c.bf16 %v6959_v31, %v6959_v31 }
 0x6bf   : > { %v6905_v9 = vpop.f32.mrf.mxu0 }
 0x6c0   : > { %v6932_v51 = vadd.f32 %v6905_v9, %v10810_v61  ;;  %v8214_v44 = vrot.slane %v7015_v41, 9 }
 0x6c2   : > { %v6948_v30 = vadd.f32 %v10827_v32, %v6932_v51 }
 0x6c3   : > { %v7032_v26 = vld [vmem:[%s10833_s20 + $0x8] sm:$0xc] }
 0x6c4   : > { %v6960_v14 = vmax.f32 %v6948_v30, 0.0 }
 0x6c6   : > { %v7016_v54 = vpack.c.bf16 %v6960_v14, %v6960_v14 }
 0x6c7   : > { %v6907_v0 = vpop.f32.mrf.mxu0 }
 0x6c8   : > { %v7024_v17 = vrot.slane %v7016_v54, 5 }
 0x6ca   : > { %v7025_v61 = vsel %vm7021_vm10, %v8214_v44, %v7024_v17  ;;  %v7026_v10 = vrot.slane %v7024_v17, 4 }
 0x6cb   : > { %v7033_v5 = vsel %vm7031_vm11, %v7025_v61, %v7032_v26 }
 0x6cc   : > { %7036 = vst.msk [vmem:[%s10833_s20 + $0xc] sm:$0x3] %vm7035_vm12, %v7026_v10 }
 0x6cd   : > { %7034 = vst [vmem:[%s10833_s20 + $0x8] sm:$0xc] %v7033_v5 }
 0x6cf   : > { %v6909_v29 = vpop.f32.mrf.mxu0 }
 0x6d0   : > { %v6933_v49 = vadd.f32 %v6909_v29, %v10814_v60 }
 0x6d2   : > { %v6949_v27 = vadd.f32 %v10827_v32, %v6933_v49 }
 0x6d4   : > { %v6961_v43 = vmax.f32 %v6949_v27, 0.0 }
 0x6d6   : > { %v7037_v36 = vpack.c.bf16 %v6961_v43, %v6961_v43 }
 0x6d7   : > { %v6911_v63 = vpop.f32.mrf.mxu0 }
 0x6d8   : > { %7040 = vst.msk [vmem:[%s10833_s20 + $0xc] sm:$0xc] %vm7029_vm8, %v7037_v36  ;;  %v6934_v3 = vadd.f32 %v6911_v63, %v10817_v42 }
 0x6da   : > { %v6950_v57 = vadd.f32 %v10827_v32, %v6934_v3 }
 0x6dc   : > { %v6962_v28 = vmax.f32 %v6950_v57, 0.0 }
 0x6de   : > { %v7038_v46 = vpack.c.bf16 %v6962_v28, %v6962_v28 }
 0x6df   : > { %v6914_v12 = vpop.f32.mrf.mxu0 }
 0x6e0   : > { %v7045_v60 = vsel %vm7043_vm14, %v7038_v46, %v7044_v59 }
 0x6e1   : > { %7046 = vst [vmem:[%s10833_s20 + $0x10] sm:$0x3] %v7045_v60 }
 0x6e7   : > { %v6915_v34 = vpop.f32.mrf.mxu0 }
 0x6e8   : > { %v6935_v22 = vadd.f32 %v6915_v34, %v10821_v48  ;;  %v7056_v1 = vld [vmem:[%s10833_s20 + $0x10] sm:$0xe] }
 0x6ea   : > { %v6951_v2 = vadd.f32 %v10827_v32, %v6935_v22 }
 0x6ec   : > { %v6963_v42 = vmax.f32 %v6951_v2, 0.0 }
 0x6ee   : > { %v7047_v21 = vpack.c.bf16 %v6963_v42, %v6963_v42 }
 0x6ef   : > { %v6918_v16 = vpop.f32.mrf.mxu0 }
 0x6f0   : > { %v7049_v35 = vrot.slane %v7047_v21, 7 }
 0x6f2   : > { %v7050_v19 = vrot.slane %v7049_v35, 4  ;;  %v7057_v40 = vsel %vm7055_vm1, %v7049_v35, %v7056_v1 }
 0x6f3   : > { %7058 = vst [vmem:[%s10833_s20 + $0x10] sm:$0xe] %v7057_v40 }
 0x6f4   : > { %7059 = vst.msk [vmem:[%s10833_s20 + $0x14] sm:$0x1] %vm5647_vm5, %v7050_v19 }
 0x6f7   : > { %v6919_v18 = vpop.f32.mrf.mxu0 }
 0x6f8   : > { %v6936_v48 = vadd.f32 %v6919_v18, %v10839_v4  ;;  %v7076_v4 = vld [vmem:[%s10833_s20 + $0x18] sm:$0x1] }
 0x6fa   : > { %v6952_v39 = vadd.f32 %v10827_v32, %v6936_v48 }
 0x6fc   : > { %v6964_v56 = vmax.f32 %v6952_v39, 0.0 }
 0x6fe   : > { %v7060_v23 = vpack.c.bf16 %v6964_v56, %v6964_v56 }
 0x6ff   : > { %v6922_v7 = vpop.f32.mrf.mxu0 }
 0x700   : > { %v6937_v37 = vadd.f32 %v6922_v7, %v10843_v52  ;;  %v8215_v6 = vrot.slane %v7060_v23, 10 }
 0x702   : > { %v6953_v62 = vadd.f32 %v10827_v32, %v6937_v37 }
 0x704   : > { %v6965_v47 = vmax.f32 %v6953_v62, 0.0 }
 0x706   : > { %v7061_v55 = vpack.c.bf16 %v6965_v47, %v6965_v47 }
 0x707   : > { %v6924_v24 = vpop.f32.mrf.mxu0 }
 0x708   : > { %v7066_v25 = vrot.slane %v7061_v55, 6 }
 0x70a   : > { %v7067_v53 = vsel %vm10858_vm3, %v8215_v6, %v7066_v25  ;;  %v7068_v58 = vrot.slane %v7066_v25, 4 }
 0x70b   : > { %7072 = vst.msk [vmem:[%s10833_s20 + $0x14] sm:$0xe] %vm7053_vm15, %v7067_v53 }
 0x70c   : > { %v7077_v38 = vsel %vm7075_vm4, %v7068_v58, %v7076_v4 }
 0x70d   : > { %7078 = vst [vmem:[%s10833_s20 + $0x18] sm:$0x1] %v7077_v38 }
 0x70e PF: > { %s17_s24 = sadd.s32 1, %s8387_s24  }
 0x70f   : > { %p14_p4 = scmp.ge.s32.totalorder %s17_s24, 4  }
 0x711   :  { %16 = sbr.rel (!%p14_p4) target bundleno = 1 (0x1), region = 414 }

</bundles_post_ra>
